<compile_context>
chip_gen: v6e
topology: v6e:2x2x1
jax: 0.10.0
libtpu: 0.0.40
codegen_flags: <defaults>
</compile_context>

<pallas_src>
import functools

import jax
import jax.numpy as jnp
from jax.experimental import pallas as pl
from jax.experimental.pallas import tpu as pltpu

NEG_SLOPE = 0.2
BN_EPS = 1e-5


def _round_up(x, m):
    return (x + m - 1) // m * m


# ----------------------------- Pallas kernel -----------------------------

def _gemm_kernel(a_ref, w_ref, *rest, epilogue, multi_k, m_real):
    """Tiled (M,K)@(K,N) GEMM on the MXU, fp32 accumulation, fused epilogue.

    epilogue:
      "linear"     -> y = acc + bias
      "bias_lrelu" -> y = LeakyReLU(acc + bias, 0.2)
      "bn_lrelu"   -> y = LeakyReLU(BatchNorm(acc; batch stats), 0.2)
                      Requires gm == 1 so the whole M reduction lives in this
                      tile.  Padded M rows of `a` are zero so they drop out of
                      the channel sums; variance uses a masked two-pass
                      formula (no E[x^2]-mean^2 cancellation).
    """
    if epilogue == "bn_lrelu":
        gamma_ref, beta_ref, o_ref, *scr = rest
        bias_ref = None
    else:
        bias_ref, o_ref, *scr = rest
        gamma_ref = beta_ref = None
    acc_ref = scr[0] if multi_k else None

    def finish(acc):
        if epilogue == "bn_lrelu":
            inv_n = 1.0 / float(m_real)
            mean = jnp.sum(acc, axis=0, keepdims=True) * inv_n
            rows = jax.lax.broadcasted_iota(jnp.int32, acc.shape, 0)
            centered = jnp.where(rows < m_real, acc - mean, 0.0)
            var = jnp.sum(centered * centered, axis=0, keepdims=True) * inv_n
            scale = gamma_ref[...] * jax.lax.rsqrt(var + BN_EPS)
            y = centered * scale + beta_ref[...]
            y = jnp.where(y >= 0, y, NEG_SLOPE * y)
        else:
            y = acc + bias_ref[...]
            if epilogue == "bias_lrelu":
                y = jnp.where(y >= 0, y, NEG_SLOPE * y)
        o_ref[...] = y.astype(o_ref.dtype)

    if multi_k:
        k = pl.program_id(2)

        @pl.when(k == 0)
        def _():
            acc_ref[...] = jnp.zeros_like(acc_ref)

        acc_ref[...] += jnp.dot(a_ref[...], w_ref[...],
                                preferred_element_type=jnp.float32)

        @pl.when(k == pl.num_programs(2) - 1)
        def _():
            finish(acc_ref[...])
    else:
        # gk == 1: no accumulator scratch, no fp32 read-modify-write.
        finish(jnp.dot(a_ref[...], w_ref[...],
                       preferred_element_type=jnp.float32))


# ----------------------------- Pallas wrapper -----------------------------

def _pick_tiles(M, K, N):
    Mr, Kr, Nr = _round_up(M, 8), _round_up(K, 128), _round_up(N, 128)
    tm = min(512, Mr)          # 512 keeps gm == 1 for every BN layer here
    tk = min(4096, Kr)         # full-K tiles for all conv layers here
    tn = min(256, Nr)
    Mp, Kp, Np = _round_up(Mr, tm), _round_up(Kr, tk), _round_up(Nr, tn)
    # v7x has 2 TensorCores and shards "parallel" grid axes across them: make
    # sure there are >= 2 parallel tiles when cheap (near-free on v5e/v6e).
    if Mp // tm == 1 and Np // tn == 1 and Np >= 256:
        tn = 128
        Np = _round_up(Nr, tn)
    return tm, tk, tn, Mp, Kp, Np


def conv_gemm(a, w, *, bias=None, gamma=None, beta=None, epilogue, out_dtype):
    """a:(M,K), w:(K,N). Tiled, pipelined, megacore-parallel GEMM with fused
    bias / LeakyReLU / BatchNorm epilogue."""
    M, K = a.shape
    _, N = w.shape
    tm, tk, tn, Mp, Kp, Np = _pick_tiles(M, K, N)
    gm, gn, gk = Mp // tm, Np // tn, Kp // tk
    multi_k = gk > 1

    a_p = jnp.pad(a.astype(jnp.bfloat16), ((0, Mp - M), (0, Kp - K)))
    w_p = jnp.pad(w.astype(jnp.bfloat16), ((0, Kp - K), (0, Np - N)))

    in_arrays = [a_p, w_p]
    in_specs = [pl.BlockSpec((tm, tk), lambda i, j, k: (i, k)),
                pl.BlockSpec((tk, tn), lambda i, j, k: (k, j))]
    if epilogue == "bn_lrelu":
        assert gm == 1, "fused BN epilogue needs a single M tile"
        g_p = jnp.pad(gamma.astype(jnp.float32).reshape(1, N),
                      ((0, 0), (0, Np - N)))
        b_p = jnp.pad(beta.astype(jnp.float32).reshape(1, N),
                      ((0, 0), (0, Np - N)))
        in_arrays += [g_p, b_p]
        in_specs += [pl.BlockSpec((1, tn), lambda i, j, k: (0, j))] * 2
    else:
        b_p = jnp.pad(bias.astype(jnp.float32).reshape(1, N),
                      ((0, 0), (0, Np - N)))
        in_arrays.append(b_p)
        in_specs.append(pl.BlockSpec((1, tn), lambda i, j, k: (0, j)))

    scratch = [pltpu.VMEM((tm, tn), jnp.float32)] if multi_k else []

    out = pl.pallas_call(
        functools.partial(_gemm_kernel, epilogue=epilogue,
                          multi_k=multi_k, m_real=M),
        out_shape=jax.ShapeDtypeStruct((Mp, Np), out_dtype),
        grid_spec=pltpu.PrefetchScalarGridSpec(
            num_scalar_prefetch=0,
            grid=(gm, gn, gk),
            in_specs=in_specs,
            out_specs=pl.BlockSpec((tm, tn), lambda i, j, k: (i, j)),
            scratch_shapes=scratch),
        compiler_params=pltpu.CompilerParams(
            dimension_semantics=("parallel", "parallel", "arbitrary")),
        cost_estimate=pl.CostEstimate(
            flops=2 * Mp * Np * Kp, transcendentals=0,
            bytes_accessed=(gn * Mp * Kp * 2 + gm * Kp * Np * 2
                            + Mp * Np * jnp.dtype(out_dtype).itemsize)),
    )(*in_arrays)
    return out, (M, N)


# ----------------------------- Conv glue (im2col) -----------------------------

def _im2col(x_nhwc, kh, kw, stride, padding):
    # TODO(synk): implicit GEMM (fold kh*kw into the K grid with windowed
    # index_maps) would avoid materializing this blow-up in HBM and the
    # slice/reshape/pad ping-pong between layers; kept as bf16 XLA glue.
    if padding > 0:
        x_nhwc = jnp.pad(
            x_nhwc, ((0, 0), (padding, padding), (padding, padding), (0, 0)),
            mode="reflect")  # PyTorch padding_mode='reflect'
    n, Hp, Wp, cin = x_nhwc.shape
    Ho = (Hp - kh) // stride + 1
    Wo = (Wp - kw) // stride + 1
    patches = []
    for i in range(kh):
        for j in range(kw):
            patches.append(x_nhwc[:, i:i + stride * (Ho - 1) + 1:stride,
                                     j:j + stride * (Wo - 1) + 1:stride, :])
    # column order = (kh, kw, Cin) to match the weight matrix below
    cols = jnp.stack(patches, axis=3).reshape(n * Ho * Wo, kh * kw * cin)
    return cols, (n, Ho, Wo)


def _weight_matrix(weight_oihw):
    cout, cin, kh, kw = weight_oihw.shape
    return jnp.transpose(weight_oihw, (2, 3, 1, 0)).reshape(kh * kw * cin, cout)


def conv_leaky(x_nhwc, weight, bias, stride, padding, *, leaky, out_dtype):
    """Conv2d (+ optional LeakyReLU) matching PyTorch semantics."""
    cout = weight.shape[0]
    kh, kw = weight.shape[2], weight.shape[3]
    cols, (n, Ho, Wo) = _im2col(x_nhwc.astype(jnp.bfloat16), kh, kw,
                                stride, padding)
    out_p, (M, N) = conv_gemm(
        cols, _weight_matrix(weight), bias=bias,
        epilogue="bias_lrelu" if leaky else "linear", out_dtype=out_dtype)
    return out_p[:M, :N].reshape(n, Ho, Wo, cout)


def conv_bn_lrelu(x_nhwc, weight, gamma, beta, stride):
    """Conv2d(bias=False) -> BatchNorm(batch stats) -> LeakyReLU(0.2)."""
    cout = weight.shape[0]
    kh, kw = weight.shape[2], weight.shape[3]
    cols, (n, Ho, Wo) = _im2col(x_nhwc.astype(jnp.bfloat16), kh, kw, stride, 0)
    M, K = cols.shape
    tm, _, _, Mp, _, _ = _pick_tiles(M, K, cout)

    if Mp // tm == 1:
        # Hot path at these shapes: BN + LeakyReLU fused into the GEMM
        # epilogue, single bf16 writeback.
        out_p, (M, N) = conv_gemm(cols, _weight_matrix(weight),
                                  gamma=gamma, beta=beta,
                                  epilogue="bn_lrelu", out_dtype=jnp.bfloat16)
        y = out_p[:M, :N]
    else:
        # TODO(synk): never hit at the demo shapes -- large-M fallback keeps
        # the conv GEMM in Pallas (fp32 out) and does BN stats/apply in XLA.
        zero_bias = jnp.zeros((cout,), jnp.float32)
        out_p, (M, N) = conv_gemm(cols, _weight_matrix(weight), bias=zero_bias,
                                  epilogue="linear", out_dtype=jnp.float32)
        o = out_p[:M, :N]
        mean = jnp.mean(o, axis=0, keepdims=True)
        var = jnp.mean((o - mean) ** 2, axis=0, keepdims=True)
        y = (o - mean) * (gamma * jax.lax.rsqrt(var + BN_EPS)) + beta
        y = jnp.where(y >= 0, y, NEG_SLOPE * y).astype(jnp.bfloat16)
    return y.reshape(n, Ho, Wo, cout)


def final_conv_xla(x_nhwc, weight, bias):
    # M=8, K=8192, N=1 -> <0.1% MXU utilization; per perf review this tiny
    # matvec is cheaper as a plain XLA dot than a padded Pallas launch.
    kh, kw = weight.shape[2], weight.shape[3]
    cols, (n, Ho, Wo) = _im2col(x_nhwc, kh, kw, stride=1, padding=1)
    w_mat = _weight_matrix(weight).astype(jnp.float32)
    out = jnp.dot(cols.astype(jnp.float32), w_mat) + bias.astype(jnp.float32)
    return out.reshape(n, Ho, Wo, weight.shape[0])


# ----------------------------- Parameters & forward -----------------------------

def init_discriminator_params(key, in_channel=3, features=(64, 128, 256, 512)):
    params = {}
    keys = iter(jax.random.split(key, 2 * len(features) + 4))
    params["initial_w"] = 0.05 * jax.random.normal(
        next(keys), (features[0], in_channel * 2, 4, 4), jnp.float32)
    params["initial_b"] = 0.02 * jax.random.normal(
        next(keys), (features[0],), jnp.float32)
    in_c = features[0]
    for idx, f in enumerate(features[1:]):
        params[f"block{idx}_w"] = 0.05 * jax.random.normal(
            next(keys), (f, in_c, 4, 4), jnp.float32)
        params[f"block{idx}_gamma"] = jnp.ones((f,), jnp.float32)   # BN default
        params[f"block{idx}_beta"] = jnp.zeros((f,), jnp.float32)   # BN default
        in_c = f
    params["final_w"] = 0.05 * jax.random.normal(
        next(keys), (1, in_c, 4, 4), jnp.float32)
    params["final_b"] = 0.02 * jax.random.normal(next(keys), (1,), jnp.float32)
    return params


@functools.partial(jax.jit, static_argnames=("features",))
def discriminator_forward(params, x_nchw, y_nchw, features=(64, 128, 256, 512)):
    # torch.cat([x, y], dim=1) in NCHW, then go NHWC internally.
    h = jnp.concatenate([x_nchw, y_nchw], axis=1)
    h = jnp.transpose(h, (0, 2, 3, 1))

    # initialBlock: Conv(k4,s2,p1,reflect, bias=True) + LeakyReLU(0.2)
    h = conv_leaky(h, params["initial_w"], params["initial_b"],
                   stride=2, padding=1, leaky=True, out_dtype=jnp.bfloat16)

    # CNNBlocks: Conv(k4, stride, padding=0, bias=False) -> BN -> LeakyReLU(0.2)
    for idx, f in enumerate(features[1:]):
        stride = 1 if f == features[-1] else 2
        h = conv_bn_lrelu(h, params[f"block{idx}_w"],
                          params[f"block{idx}_gamma"],
                          params[f"block{idx}_beta"], stride=stride)

    # final Conv(k4, s1, p1, reflect, bias=True), no activation
    h = final_conv_xla(h, params["final_w"], params["final_b"])

    return jnp.transpose(h, (0, 3, 1, 2)).astype(jnp.float32)  # back to NCHW


if __name__ == "__main__":
    key = jax.random.PRNGKey(0)
    kx, ky, kp = jax.random.split(key, 3)
    B, C, H, W = 2, 3, 64, 64          # smallest spatial size that survives all layers
    features = (64, 128, 256, 512)
    x = jax.random.normal(kx, (B, C, H, W), jnp.float32)
    y = jax.random.normal(ky, (B, C, H, W), jnp.float32)
    params = init_discriminator_params(kp, in_channel=C, features=features)

    out = discriminator_forward(params, x, y, features=features)
    out = jax.block_until_ready(out)
    # 64 ->(k4,s2,p1) 32 ->(k4,s2) 15 ->(k4,s2) 6 ->(k4,s1) 3 ->(k4,s1,p1) 2
    assert out.shape == (B, 1, 2, 2), out.shape
    assert bool(jnp.all(jnp.isfinite(out)))
    print("KERNEL_OK")
</pallas_src>

<mosaic_0001>
module attributes {stable_mosaic.version = 11 : i64} {
  func.func @_gemm_kernel(%arg0: i32, %arg1: i32, %arg2: i32, %arg3: memref<512x128xbf16, #tpu.memory_space<vmem>>, %arg4: memref<128x128xbf16, #tpu.memory_space<vmem>>, %arg5: memref<1x128xf32, #tpu.memory_space<vmem>>, %arg6: memref<512x128xbf16, #tpu.memory_space<vmem>>) attributes {dimension_semantics = [#tpu.dimension_semantics<parallel>, #tpu.dimension_semantics<parallel>, #tpu.dimension_semantics<arbitrary>], iteration_bounds = array<i64: 4, 1, 1>, scalar_prefetch = 0 : i64, scratch_operands = 0 : i64, tpu.core_type = #tpu.core_type<tc>, window_params = [{transform_indices = @transform_0, window_bounds = array<i64: 512, 128>}, {transform_indices = @transform_1, window_bounds = array<i64: 128, 128>}, {transform_indices = @transform_2, window_bounds = array<i64: 1, 128>}, {transform_indices = @transform_3, window_bounds = array<i64: 512, 128>}]} {
    %c0 = arith.constant 0 : index
    %c0_0 = arith.constant 0 : index
    %0 = vector.load %arg3[%c0, %c0_0] : memref<512x128xbf16, #tpu.memory_space<vmem>>, vector<512x128xbf16>
    %c0_1 = arith.constant 0 : index
    %c0_2 = arith.constant 0 : index
    %1 = vector.load %arg4[%c0_1, %c0_2] : memref<128x128xbf16, #tpu.memory_space<vmem>>, vector<128x128xbf16>
    %cst = arith.constant dense<0.000000e+00> : vector<512x128xf32>
    %2 = tpu.matmul %0, %1, %cst {dimension_numbers = #tpu.dot_dimension_numbers<[1], [0], [0], [1], [0, 0, 1, 1], [], []>} : vector<512x128xbf16>, vector<128x128xbf16>, vector<512x128xf32> -> vector<512x128xf32>
    %c0_3 = arith.constant 0 : index
    %c0_4 = arith.constant 0 : index
    %3 = vector.load %arg5[%c0_3, %c0_4] : memref<1x128xf32, #tpu.memory_space<vmem>>, vector<1x128xf32>
    %4 = vector.broadcast %3 : vector<1x128xf32> to vector<512x128xf32>
    %5 = arith.addf %2, %4 : vector<512x128xf32>
    %cst_5 = arith.constant 0.000000e+00 : f32
    %6 = vector.broadcast %cst_5 : f32 to vector<512x128xf32>
    %7 = arith.cmpf oge, %5, %6 : vector<512x128xf32>
    %cst_6 = arith.constant 2.000000e-01 : f32
    %8 = vector.broadcast %cst_6 : f32 to vector<512x128xf32>
    %9 = arith.mulf %8, %5 : vector<512x128xf32>
    %10 = arith.select %7, %5, %9 : vector<512x128xi1>, vector<512x128xf32>
    %11 = arith.truncf %10 : vector<512x128xf32> to vector<512x128xbf16>
    %c0_7 = arith.constant 0 : index
    %c0_8 = arith.constant 0 : index
    %12 = vector.load %arg6[%c0_7, %c0_8] : memref<512x128xbf16, #tpu.memory_space<vmem>>, vector<512x128xbf16>
    tpu.vector_store %arg6[%c0_7, %c0_8], %11 {strides = array<i32>} : memref<512x128xbf16, #tpu.memory_space<vmem>>, vector<512x128xbf16>,
    return
  }
  func.func @transform_0(%arg0: i32, %arg1: i32, %arg2: i32) -> (i32, i32) {
    %c0_i32 = arith.constant 0 : i32
    return %arg0, %arg2 : i32, i32
  }
  func.func @transform_1(%arg0: i32, %arg1: i32, %arg2: i32) -> (i32, i32) {
    %c0_i32 = arith.constant 0 : i32
    return %arg2, %arg1 : i32, i32
  }
  func.func @transform_2(%arg0: i32, %arg1: i32, %arg2: i32) -> (i32, i32) {
    %c0_i32 = arith.constant 0 : i32
    %c0_i32_0 = arith.constant 0 : i32
    return %c0_i32, %arg1 : i32, i32
  }
  func.func @transform_3(%arg0: i32, %arg1: i32, %arg2: i32) -> (i32, i32) {
    %c0_i32 = arith.constant 0 : i32
    return %arg0, %arg1 : i32, i32
  }
}

module attributes {stable_mosaic.version = 11 : i64} {
  func.func @_gemm_kernel(%arg0: i32, %arg1: i32, %arg2: i32, %arg3: memref<456x1024xbf16, #tpu.memory_space<vmem>>, %arg4: memref<1024x128xbf16, #tpu.memory_space<vmem>>, %arg5: memref<1x128xf32, #tpu.memory_space<vmem>>, %arg6: memref<1x128xf32, #tpu.memory_space<vmem>>, %arg7: memref<456x128xbf16, #tpu.memory_space<vmem>>) attributes {dimension_semantics = [#tpu.dimension_semantics<parallel>, #tpu.dimension_semantics<parallel>, #tpu.dimension_semantics<arbitrary>], iteration_bounds = array<i64: 1, 1, 1>, scalar_prefetch = 0 : i64, scratch_operands = 0 : i64, tpu.core_type = #tpu.core_type<tc>, window_params = [{transform_indices = @transform_0, window_bounds = array<i64: 456, 1024>}, {transform_indices = @transform_1, window_bounds = array<i64: 1024, 128>}, {transform_indices = @transform_2, window_bounds = array<i64: 1, 128>}, {transform_indices = @transform_3, window_bounds = array<i64: 1, 128>}, {transform_indices = @transform_4, window_bounds = array<i64: 456, 128>}]} {
    %c0 = arith.constant 0 : index
    %c0_0 = arith.constant 0 : index
    %0 = vector.load %arg3[%c0, %c0_0] : memref<456x1024xbf16, #tpu.memory_space<vmem>>, vector<456x1024xbf16>
    %c0_1 = arith.constant 0 : index
    %c0_2 = arith.constant 0 : index
    %1 = vector.load %arg4[%c0_1, %c0_2] : memref<1024x128xbf16, #tpu.memory_space<vmem>>, vector<1024x128xbf16>
    %cst = arith.constant dense<0.000000e+00> : vector<456x128xf32>
    %2 = tpu.matmul %0, %1, %cst {dimension_numbers = #tpu.dot_dimension_numbers<[1], [0], [0], [1], [0, 0, 1, 1], [], []>} : vector<456x1024xbf16>, vector<1024x128xbf16>, vector<456x128xf32> -> vector<456x128xf32>
    %cst_3 = arith.constant dense<0.000000e+00> : vector<128xf32>
    %3 = vector.multi_reduction <add>, %2, %cst_3 [0] : vector<456x128xf32> to vector<128xf32>
    %4 = vector.shape_cast %3 : vector<128xf32> to vector<1x128xf32>
    %cst_4 = arith.constant 0.00222222228 : f32
    %5 = vector.broadcast %cst_4 : f32 to vector<1x128xf32>
    %6 = arith.mulf %4, %5 : vector<1x128xf32>
    %7 = tpu.iota {dimensions = array<i32: 0>} : vector<456x128xi32>
    %c450_i32 = arith.constant 450 : i32
    %8 = vector.broadcast %c450_i32 : i32 to vector<456x128xi32>
    %9 = arith.cmpi slt, %7, %8 : vector<456x128xi32>
    %10 = vector.broadcast %6 : vector<1x128xf32> to vector<456x128xf32>
    %11 = arith.subf %2, %10 : vector<456x128xf32>
    %cst_5 = arith.constant 0.000000e+00 : f32
    %12 = vector.broadcast %cst_5 : f32 to vector<456x128xf32>
    %13 = arith.select %9, %11, %12 : vector<456x128xi1>, vector<456x128xf32>
    %14 = arith.mulf %13, %13 : vector<456x128xf32>
    %cst_6 = arith.constant dense<0.000000e+00> : vector<128xf32>
    %15 = vector.multi_reduction <add>, %14, %cst_6 [0] : vector<456x128xf32> to vector<128xf32>
    %16 = vector.shape_cast %15 : vector<128xf32> to vector<1x128xf32>
    %cst_7 = arith.constant 0.00222222228 : f32
    %17 = vector.broadcast %cst_7 : f32 to vector<1x128xf32>
    %18 = arith.mulf %16, %17 : vector<1x128xf32>
    %c0_8 = arith.constant 0 : index
    %c0_9 = arith.constant 0 : index
    %19 = vector.load %arg5[%c0_8, %c0_9] : memref<1x128xf32, #tpu.memory_space<vmem>>, vector<1x128xf32>
    %cst_10 = arith.constant 9.99999974E-6 : f32
    %20 = vector.broadcast %cst_10 : f32 to vector<1x128xf32>
    %21 = arith.addf %18, %20 : vector<1x128xf32>
    %22 = math.rsqrt %21 : vector<1x128xf32>
    %23 = arith.mulf %19, %22 : vector<1x128xf32>
    %24 = vector.broadcast %23 : vector<1x128xf32> to vector<456x128xf32>
    %25 = arith.mulf %13, %24 : vector<456x128xf32>
    %c0_11 = arith.constant 0 : index
    %c0_12 = arith.constant 0 : index
    %26 = vector.load %arg6[%c0_11, %c0_12] : memref<1x128xf32, #tpu.memory_space<vmem>>, vector<1x128xf32>
    %27 = vector.broadcast %26 : vector<1x128xf32> to vector<456x128xf32>
    %28 = arith.addf %25, %27 : vector<456x128xf32>
    %cst_13 = arith.constant 0.000000e+00 : f32
    %29 = vector.broadcast %cst_13 : f32 to vector<456x128xf32>
    %30 = arith.cmpf oge, %28, %29 : vector<456x128xf32>
    %cst_14 = arith.constant 2.000000e-01 : f32
    %31 = vector.broadcast %cst_14 : f32 to vector<456x128xf32>
    %32 = arith.mulf %31, %28 : vector<456x128xf32>
    %33 = arith.select %30, %28, %32 : vector<456x128xi1>, vector<456x128xf32>
    %34 = arith.truncf %33 : vector<456x128xf32> to vector<456x128xbf16>
    %c0_15 = arith.constant 0 : index
    %c0_16 = arith.constant 0 : index
    %35 = vector.load %arg7[%c0_15, %c0_16] : memref<456x128xbf16, #tpu.memory_space<vmem>>, vector<456x128xbf16>
    tpu.vector_store %arg7[%c0_15, %c0_16], %34 {strides = array<i32>} : memref<456x128xbf16, #tpu.memory_space<vmem>>, vector<456x128xbf16>,
    return
  }
  func.func @transform_0(%arg0: i32, %arg1: i32, %arg2: i32) -> (i32, i32) {
    %c0_i32 = arith.constant 0 : i32
    return %arg0, %arg2 : i32, i32
  }
  func.func @transform_1(%arg0: i32, %arg1: i32, %arg2: i32) -> (i32, i32) {
    %c0_i32 = arith.constant 0 : i32
    return %arg2, %arg1 : i32, i32
  }
  func.func @transform_2(%arg0: i32, %arg1: i32, %arg2: i32) -> (i32, i32) {
    %c0_i32 = arith.constant 0 : i32
    %c0_i32_0 = arith.constant 0 : i32
    return %c0_i32, %arg1 : i32, i32
  }
  func.func @transform_3(%arg0: i32, %arg1: i32, %arg2: i32) -> (i32, i32) {
    %c0_i32 = arith.constant 0 : i32
    %c0_i32_0 = arith.constant 0 : i32
    return %c0_i32, %arg1 : i32, i32
  }
  func.func @transform_4(%arg0: i32, %arg1: i32, %arg2: i32) -> (i32, i32) {
    %c0_i32 = arith.constant 0 : i32
    return %arg0, %arg1 : i32, i32
  }
}

module attributes {stable_mosaic.version = 11 : i64} {
  func.func @_gemm_kernel(%arg0: i32, %arg1: i32, %arg2: i32, %arg3: memref<72x2048xbf16, #tpu.memory_space<vmem>>, %arg4: memref<2048x128xbf16, #tpu.memory_space<vmem>>, %arg5: memref<1x128xf32, #tpu.memory_space<vmem>>, %arg6: memref<1x128xf32, #tpu.memory_space<vmem>>, %arg7: memref<72x128xbf16, #tpu.memory_space<vmem>>) attributes {dimension_semantics = [#tpu.dimension_semantics<parallel>, #tpu.dimension_semantics<parallel>, #tpu.dimension_semantics<arbitrary>], iteration_bounds = array<i64: 1, 2, 1>, scalar_prefetch = 0 : i64, scratch_operands = 0 : i64, tpu.core_type = #tpu.core_type<tc>, window_params = [{transform_indices = @transform_0, window_bounds = array<i64: 72, 2048>}, {transform_indices = @transform_1, window_bounds = array<i64: 2048, 128>}, {transform_indices = @transform_2, window_bounds = array<i64: 1, 128>}, {transform_indices = @transform_3, window_bounds = array<i64: 1, 128>}, {transform_indices = @transform_4, window_bounds = array<i64: 72, 128>}]} {
    %c0 = arith.constant 0 : index
    %c0_0 = arith.constant 0 : index
    %0 = vector.load %arg3[%c0, %c0_0] : memref<72x2048xbf16, #tpu.memory_space<vmem>>, vector<72x2048xbf16>
    %c0_1 = arith.constant 0 : index
    %c0_2 = arith.constant 0 : index
    %1 = vector.load %arg4[%c0_1, %c0_2] : memref<2048x128xbf16, #tpu.memory_space<vmem>>, vector<2048x128xbf16>
    %cst = arith.constant dense<0.000000e+00> : vector<72x128xf32>
    %2 = tpu.matmul %0, %1, %cst {dimension_numbers = #tpu.dot_dimension_numbers<[1], [0], [0], [1], [0, 0, 1, 1], [], []>} : vector<72x2048xbf16>, vector<2048x128xbf16>, vector<72x128xf32> -> vector<72x128xf32>
    %cst_3 = arith.constant dense<0.000000e+00> : vector<128xf32>
    %3 = vector.multi_reduction <add>, %2, %cst_3 [0] : vector<72x128xf32> to vector<128xf32>
    %4 = vector.shape_cast %3 : vector<128xf32> to vector<1x128xf32>
    %cst_4 = arith.constant 0.013888889 : f32
    %5 = vector.broadcast %cst_4 : f32 to vector<1x128xf32>
    %6 = arith.mulf %4, %5 : vector<1x128xf32>
    %7 = tpu.iota {dimensions = array<i32: 0>} : vector<72x128xi32>
    %c72_i32 = arith.constant 72 : i32
    %8 = vector.broadcast %c72_i32 : i32 to vector<72x128xi32>
    %9 = arith.cmpi slt, %7, %8 : vector<72x128xi32>
    %10 = vector.broadcast %6 : vector<1x128xf32> to vector<72x128xf32>
    %11 = arith.subf %2, %10 : vector<72x128xf32>
    %cst_5 = arith.constant 0.000000e+00 : f32
    %12 = vector.broadcast %cst_5 : f32 to vector<72x128xf32>
    %13 = arith.select %9, %11, %12 : vector<72x128xi1>, vector<72x128xf32>
    %14 = arith.mulf %13, %13 : vector<72x128xf32>
    %cst_6 = arith.constant dense<0.000000e+00> : vector<128xf32>
    %15 = vector.multi_reduction <add>, %14, %cst_6 [0] : vector<72x128xf32> to vector<128xf32>
    %16 = vector.shape_cast %15 : vector<128xf32> to vector<1x128xf32>
    %cst_7 = arith.constant 0.013888889 : f32
    %17 = vector.broadcast %cst_7 : f32 to vector<1x128xf32>
    %18 = arith.mulf %16, %17 : vector<1x128xf32>
    %c0_8 = arith.constant 0 : index
    %c0_9 = arith.constant 0 : index
    %19 = vector.load %arg5[%c0_8, %c0_9] : memref<1x128xf32, #tpu.memory_space<vmem>>, vector<1x128xf32>
    %cst_10 = arith.constant 9.99999974E-6 : f32
    %20 = vector.broadcast %cst_10 : f32 to vector<1x128xf32>
    %21 = arith.addf %18, %20 : vector<1x128xf32>
    %22 = math.rsqrt %21 : vector<1x128xf32>
    %23 = arith.mulf %19, %22 : vector<1x128xf32>
    %24 = vector.broadcast %23 : vector<1x128xf32> to vector<72x128xf32>
    %25 = arith.mulf %13, %24 : vector<72x128xf32>
    %c0_11 = arith.constant 0 : index
    %c0_12 = arith.constant 0 : index
    %26 = vector.load %arg6[%c0_11, %c0_12] : memref<1x128xf32, #tpu.memory_space<vmem>>, vector<1x128xf32>
    %27 = vector.broadcast %26 : vector<1x128xf32> to vector<72x128xf32>
    %28 = arith.addf %25, %27 : vector<72x128xf32>
    %cst_13 = arith.constant 0.000000e+00 : f32
    %29 = vector.broadcast %cst_13 : f32 to vector<72x128xf32>
    %30 = arith.cmpf oge, %28, %29 : vector<72x128xf32>
    %cst_14 = arith.constant 2.000000e-01 : f32
    %31 = vector.broadcast %cst_14 : f32 to vector<72x128xf32>
    %32 = arith.mulf %31, %28 : vector<72x128xf32>
    %33 = arith.select %30, %28, %32 : vector<72x128xi1>, vector<72x128xf32>
    %34 = arith.truncf %33 : vector<72x128xf32> to vector<72x128xbf16>
    %c0_15 = arith.constant 0 : index
    %c0_16 = arith.constant 0 : index
    %35 = vector.load %arg7[%c0_15, %c0_16] : memref<72x128xbf16, #tpu.memory_space<vmem>>, vector<72x128xbf16>
    tpu.vector_store %arg7[%c0_15, %c0_16], %34 {strides = array<i32>} : memref<72x128xbf16, #tpu.memory_space<vmem>>, vector<72x128xbf16>,
    return
  }
  func.func @transform_0(%arg0: i32, %arg1: i32, %arg2: i32) -> (i32, i32) {
    %c0_i32 = arith.constant 0 : i32
    return %arg0, %arg2 : i32, i32
  }
  func.func @transform_1(%arg0: i32, %arg1: i32, %arg2: i32) -> (i32, i32) {
    %c0_i32 = arith.constant 0 : i32
    return %arg2, %arg1 : i32, i32
  }
  func.func @transform_2(%arg0: i32, %arg1: i32, %arg2: i32) -> (i32, i32) {
    %c0_i32 = arith.constant 0 : i32
    %c0_i32_0 = arith.constant 0 : i32
    return %c0_i32, %arg1 : i32, i32
  }
  func.func @transform_3(%arg0: i32, %arg1: i32, %arg2: i32) -> (i32, i32) {
    %c0_i32 = arith.constant 0 : i32
    %c0_i32_0 = arith.constant 0 : i32
    return %c0_i32, %arg1 : i32, i32
  }
  func.func @transform_4(%arg0: i32, %arg1: i32, %arg2: i32) -> (i32, i32) {
    %c0_i32 = arith.constant 0 : i32
    return %arg0, %arg1 : i32, i32
  }
}

module attributes {stable_mosaic.version = 11 : i64} {
  func.func @_gemm_kernel(%arg0: i32, %arg1: i32, %arg2: i32, %arg3: memref<24x4096xbf16, #tpu.memory_space<vmem>>, %arg4: memref<4096x256xbf16, #tpu.memory_space<vmem>>, %arg5: memref<1x256xf32, #tpu.memory_space<vmem>>, %arg6: memref<1x256xf32, #tpu.memory_space<vmem>>, %arg7: memref<24x256xbf16, #tpu.memory_space<vmem>>) attributes {dimension_semantics = [#tpu.dimension_semantics<parallel>, #tpu.dimension_semantics<parallel>, #tpu.dimension_semantics<arbitrary>], iteration_bounds = array<i64: 1, 2, 1>, scalar_prefetch = 0 : i64, scratch_operands = 0 : i64, tpu.core_type = #tpu.core_type<tc>, window_params = [{transform_indices = @transform_0, window_bounds = array<i64: 24, 4096>}, {transform_indices = @transform_1, window_bounds = array<i64: 4096, 256>}, {transform_indices = @transform_2, window_bounds = array<i64: 1, 256>}, {transform_indices = @transform_3, window_bounds = array<i64: 1, 256>}, {transform_indices = @transform_4, window_bounds = array<i64: 24, 256>}]} {
    %c0 = arith.constant 0 : index
    %c0_0 = arith.constant 0 : index
    %0 = vector.load %arg3[%c0, %c0_0] : memref<24x4096xbf16, #tpu.memory_space<vmem>>, vector<24x4096xbf16>
    %c0_1 = arith.constant 0 : index
    %c0_2 = arith.constant 0 : index
    %1 = vector.load %arg4[%c0_1, %c0_2] : memref<4096x256xbf16, #tpu.memory_space<vmem>>, vector<4096x256xbf16>
    %cst = arith.constant dense<0.000000e+00> : vector<24x256xf32>
    %2 = tpu.matmul %0, %1, %cst {dimension_numbers = #tpu.dot_dimension_numbers<[1], [0], [0], [1], [0, 0, 1, 1], [], []>} : vector<24x4096xbf16>, vector<4096x256xbf16>, vector<24x256xf32> -> vector<24x256xf32>
    %cst_3 = arith.constant dense<0.000000e+00> : vector<256xf32>
    %3 = vector.multi_reduction <add>, %2, %cst_3 [0] : vector<24x256xf32> to vector<256xf32>
    %4 = vector.shape_cast %3 : vector<256xf32> to vector<1x256xf32>
    %cst_4 = arith.constant 0.055555556 : f32
    %5 = vector.broadcast %cst_4 : f32 to vector<1x256xf32>
    %6 = arith.mulf %4, %5 : vector<1x256xf32>
    %7 = tpu.iota {dimensions = array<i32: 0>} : vector<24x256xi32>
    %c18_i32 = arith.constant 18 : i32
    %8 = vector.broadcast %c18_i32 : i32 to vector<24x256xi32>
    %9 = arith.cmpi slt, %7, %8 : vector<24x256xi32>
    %10 = vector.broadcast %6 : vector<1x256xf32> to vector<24x256xf32>
    %11 = arith.subf %2, %10 : vector<24x256xf32>
    %cst_5 = arith.constant 0.000000e+00 : f32
    %12 = vector.broadcast %cst_5 : f32 to vector<24x256xf32>
    %13 = arith.select %9, %11, %12 : vector<24x256xi1>, vector<24x256xf32>
    %14 = arith.mulf %13, %13 : vector<24x256xf32>
    %cst_6 = arith.constant dense<0.000000e+00> : vector<256xf32>
    %15 = vector.multi_reduction <add>, %14, %cst_6 [0] : vector<24x256xf32> to vector<256xf32>
    %16 = vector.shape_cast %15 : vector<256xf32> to vector<1x256xf32>
    %cst_7 = arith.constant 0.055555556 : f32
    %17 = vector.broadcast %cst_7 : f32 to vector<1x256xf32>
    %18 = arith.mulf %16, %17 : vector<1x256xf32>
    %c0_8 = arith.constant 0 : index
    %c0_9 = arith.constant 0 : index
    %19 = vector.load %arg5[%c0_8, %c0_9] : memref<1x256xf32, #tpu.memory_space<vmem>>, vector<1x256xf32>
    %cst_10 = arith.constant 9.99999974E-6 : f32
    %20 = vector.broadcast %cst_10 : f32 to vector<1x256xf32>
    %21 = arith.addf %18, %20 : vector<1x256xf32>
    %22 = math.rsqrt %21 : vector<1x256xf32>
    %23 = arith.mulf %19, %22 : vector<1x256xf32>
    %24 = vector.broadcast %23 : vector<1x256xf32> to vector<24x256xf32>
    %25 = arith.mulf %13, %24 : vector<24x256xf32>
    %c0_11 = arith.constant 0 : index
    %c0_12 = arith.constant 0 : index
    %26 = vector.load %arg6[%c0_11, %c0_12] : memref<1x256xf32, #tpu.memory_space<vmem>>, vector<1x256xf32>
    %27 = vector.broadcast %26 : vector<1x256xf32> to vector<24x256xf32>
    %28 = arith.addf %25, %27 : vector<24x256xf32>
    %cst_13 = arith.constant 0.000000e+00 : f32
    %29 = vector.broadcast %cst_13 : f32 to vector<24x256xf32>
    %30 = arith.cmpf oge, %28, %29 : vector<24x256xf32>
    %cst_14 = arith.constant 2.000000e-01 : f32
    %31 = vector.broadcast %cst_14 : f32 to vector<24x256xf32>
    %32 = arith.mulf %31, %28 : vector<24x256xf32>
    %33 = arith.select %30, %28, %32 : vector<24x256xi1>, vector<24x256xf32>
    %34 = arith.truncf %33 : vector<24x256xf32> to vector<24x256xbf16>
    %c0_15 = arith.constant 0 : index
    %c0_16 = arith.constant 0 : index
    %35 = vector.load %arg7[%c0_15, %c0_16] : memref<24x256xbf16, #tpu.memory_space<vmem>>, vector<24x256xbf16>
    tpu.vector_store %arg7[%c0_15, %c0_16], %34 {strides = array<i32>} : memref<24x256xbf16, #tpu.memory_space<vmem>>, vector<24x256xbf16>,
    return
  }
  func.func @transform_0(%arg0: i32, %arg1: i32, %arg2: i32) -> (i32, i32) {
    %c0_i32 = arith.constant 0 : i32
    return %arg0, %arg2 : i32, i32
  }
  func.func @transform_1(%arg0: i32, %arg1: i32, %arg2: i32) -> (i32, i32) {
    %c0_i32 = arith.constant 0 : i32
    return %arg2, %arg1 : i32, i32
  }
  func.func @transform_2(%arg0: i32, %arg1: i32, %arg2: i32) -> (i32, i32) {
    %c0_i32 = arith.constant 0 : i32
    %c0_i32_0 = arith.constant 0 : i32
    return %c0_i32, %arg1 : i32, i32
  }
  func.func @transform_3(%arg0: i32, %arg1: i32, %arg2: i32) -> (i32, i32) {
    %c0_i32 = arith.constant 0 : i32
    %c0_i32_0 = arith.constant 0 : i32
    return %c0_i32, %arg1 : i32, i32
  }
  func.func @transform_4(%arg0: i32, %arg1: i32, %arg2: i32) -> (i32, i32) {
    %c0_i32 = arith.constant 0 : i32
    return %arg0, %arg1 : i32, i32
  }
}

</mosaic_0001>

<bundles_post_ra>
// kernel: discriminator_forward.4
= control target key start
LH: loop header
LB: loop body
LE: loop exit
PB: predicated region body
PF: predicated region fallthrough
CT: control target
= control target key end

     0   :  { %s2116_s12 = smov 0   ;;  %s2118_s13 = smov 0   ;;  %s2320_s0 = inlined_call_operand.vmem [shape: bf16[2048,128], index: 0, kind: input, shape index: {}]   ;;  %s2321_s1 = inlined_call_operand.vmem [shape: bf16[128,128], index: 1, kind: input, shape index: {}]   ;;  %s2322_s2 = inlined_call_operand.vmem [shape: f32[1,128], index: 2, kind: input, shape index: {}]   ;;  %s2323_s3 = inlined_call_operand.vmem [shape: bf16[2048,128], index: 3, kind: output, shape index: {}]  }
   0x1   :  { %s2120_s14 = smov 0  }
   0x2 LB: > { %s32_s15 = sadd.s32 1, %s2090_s13  ;;  %p1505_p0 = scmp.ge.s32.totalorder %s2094_s14, 1  ;;  %s2094_s14 = sphi %s2120_s14, %s13_s14   ;;  %s2090_s13 = sphi %s2118_s13, %s2325_s13   ;;  %s2086_s12 = sphi %s2116_s12, %s2324_s12  }
   0x3   : > { %p34_p1 = scmp.ge.s32.totalorder %s32_s15, 4  ;;  %p188_p2 = scmp.lt.s32.totalorder %s2094_s14, 5 }
   0x5   : > { %s2327_s15 = smov (%p34_p1, %s32_s15), 0  ;;  %p189_p3 = pnand %p1505_p0, %p188_p2 }
   0x6   : > { %s1506_s18 = sshll.u32 (!%p189_p3), %s2086_s12, 6 }
   0x7   : > { %192 = sbr.rel (%p189_p3) target bundleno = 315 (0x13b), region = 32  ;;  %p230_p4 = scmp.lt.s32.totalorder (!%p189_p3), %s1506_s18, 255 }
   0xc   : > { %v2032_v0 = vld [vmem:[%s2321_s1 + $0x38] sm:$0xff]   ;;  %v2033_v1 = vld [vmem:[%s2321_s1 + $0x30] sm:$0xff]   ;;  %s2329_s18 = smov (!%p230_p4, %s1506_s18), 255  ;;  %v2034_v2 = vld [vmem:[%s2321_s1 + $0x28] sm:$0xff]  }
   0xd   : > { %1912 = vmatprep.subr.bf16.mxu0 %v2032_v0  ;;  %1992 = vmatprep.subr.bf16.mxu1 %v2032_v0  ;;  %s1507_s23 = sshll.u32 %s2329_s18, 2  ;;  %v2035_v3 = vld [vmem:[%s2321_s1 + $0x20] sm:$0xff]   ;;  %v2036_v6 = vld [vmem:[%s2321_s1 + $0x18] sm:$0xff]   ;;  %v2037_v7 = vld [vmem:[%s2321_s1 + $0x10] sm:$0xff]  }
   0xe   : > { %1913 = vmatpush3.bf16.msra.mxu0 %v2032_v0  ;;  %2000 = vmatpush3.bf16.msra.mxu1 %v2032_v0  ;;  %s2151_s26 = scalar_lea.vmem %s2320_s0, %s1507_s23  ;;  %v2038_v8 = vld [vmem:[%s2321_s1 + $0x8] sm:$0xff]   ;;  %v2039_v9 = vld [vmem:[%s2321_s1] sm:$0xff]   ;;  %s2218_s17 = scalar_lea.vmem %s2323_s3, %s1507_s23 }
   0xf   : > { %1914 = vmatprep.subr.bf16.mxu0 %v2033_v1  ;;  %1993 = vmatprep.subr.bf16.mxu1 %v2033_v1  ;;  %v2040_v4 = vld [vmem:[%s2151_s26] sm:$0xff]   ;;  %v2042_v10 = vld [vmem:[%s2151_s26 + $0x8] sm:$0xff]   ;;  %v2044_v12 = vld [vmem:[%s2151_s26 + $0x10] sm:$0xff]  }
  0x10   : > { %v2041_v5 = vld [vmem:[%s2151_s26 + $0x80] sm:$0xff]   ;;  %1928 = vmatprep.mubr.bf16.mxu0 %v2040_v4  ;;  %v2043_v11 = vld [vmem:[%s2151_s26 + $0x88] sm:$0xff]   ;;  %v2045_v13 = vld [vmem:[%s2151_s26 + $0x90] sm:$0xff]  }
  0x11   : > { %1960 = vmatprep.mubr.bf16.mxu1 %v2041_v5  ;;  %v2046_v14 = vld [vmem:[%s2151_s26 + $0x18] sm:$0xff]   ;;  %v2048_v16 = vld [vmem:[%s2151_s26 + $0x20] sm:$0xff]   ;;  %v2050_v18 = vld [vmem:[%s2151_s26 + $0x28] sm:$0xff]  }
  0x12   : > { %1915 = vmatpush3.bf16.msra.mxu0 %v2033_v1  ;;  %2001 = vmatpush3.bf16.msra.mxu1 %v2033_v1  ;;  %v2047_v15 = vld [vmem:[%s2151_s26 + $0x98] sm:$0xff]   ;;  %v2049_v17 = vld [vmem:[%s2151_s26 + $0xa0] sm:$0xff]   ;;  %v2051_v19 = vld [vmem:[%s2151_s26 + $0xa8] sm:$0xff]  }
  0x13   : > { %1916 = vmatprep.subr.bf16.mxu0 %v2034_v2  ;;  %1994 = vmatprep.subr.bf16.mxu1 %v2034_v2  ;;  %v2052_v20 = vld [vmem:[%s2151_s26 + $0x30] sm:$0xff]   ;;  %v2054_v22 = vld [vmem:[%s2151_s26 + $0x38] sm:$0xff]   ;;  %v2056_v24 = vld [vmem:[%s2151_s26 + $0x40] sm:$0xff]  }
  0x14   : > { %v2053_v21 = vld [vmem:[%s2151_s26 + $0xb0] sm:$0xff]   ;;  %v2055_v23 = vld [vmem:[%s2151_s26 + $0xb8] sm:$0xff]   ;;  %v2057_v25 = vld [vmem:[%s2151_s26 + $0xc0] sm:$0xff]  }
  0x15   : > { %v2058_v26 = vld [vmem:[%s2151_s26 + $0x48] sm:$0xff]   ;;  %v2060_v28 = vld [vmem:[%s2151_s26 + $0x50] sm:$0xff]   ;;  %v2062_v30 = vld [vmem:[%s2151_s26 + $0x58] sm:$0xff]  }
  0x16   : > { %1917 = vmatpush3.bf16.msra.mxu0 %v2034_v2  ;;  %2002 = vmatpush3.bf16.msra.mxu1 %v2034_v2  ;;  %v2059_v27 = vld [vmem:[%s2151_s26 + $0xc8] sm:$0xff]   ;;  %v2061_v29 = vld [vmem:[%s2151_s26 + $0xd0] sm:$0xff]   ;;  %v2063_v31 = vld [vmem:[%s2151_s26 + $0xd8] sm:$0xff]  }
  0x17   : > { %1918 = vmatprep.subr.bf16.mxu0 %v2035_v3  ;;  %1995 = vmatprep.subr.bf16.mxu1 %v2035_v3  ;;  %v2064_v32 = vld [vmem:[%s2151_s26 + $0x60] sm:$0xff]   ;;  %v2066_v34 = vld [vmem:[%s2151_s26 + $0x68] sm:$0xff]   ;;  %v2068_v36 = vld [vmem:[%s2151_s26 + $0x70] sm:$0xff]  }
  0x18   : > { %v2065_v33 = vld [vmem:[%s2151_s26 + $0xe0] sm:$0xff]   ;;  %v2067_v35 = vld [vmem:[%s2151_s26 + $0xe8] sm:$0xff]   ;;  %v2069_v37 = vld [vmem:[%s2151_s26 + $0xf0] sm:$0xff]  }
  0x19   : > { %v2070_v38 = vld [vmem:[%s2151_s26 + $0x78] sm:$0xff]   ;;  %v2203_v40 = vld [vmem:[%s2322_s2] ss:$0 sm:$0xff] }
  0x1a   : > { %1919 = vmatpush3.bf16.msra.mxu0 %v2035_v3  ;;  %2003 = vmatpush3.bf16.msra.mxu1 %v2035_v3  ;;  %v2071_v39 = vld [vmem:[%s2151_s26 + $0xf8] sm:$0xff]  }
  0x1b   : > { %1920 = vmatprep.subr.bf16.mxu0 %v2036_v6  ;;  %1996 = vmatprep.subr.bf16.mxu1 %v2036_v6 }
  0x1e   : > { %1921 = vmatpush3.bf16.msra.mxu0 %v2036_v6  ;;  %2004 = vmatpush3.bf16.msra.mxu1 %v2036_v6 }
  0x1f   : > { %1922 = vmatprep.subr.bf16.mxu0 %v2037_v7  ;;  %1997 = vmatprep.subr.bf16.mxu1 %v2037_v7 }
  0x22   : > { %1923 = vmatpush3.bf16.msra.mxu0 %v2037_v7  ;;  %2005 = vmatpush3.bf16.msra.mxu1 %v2037_v7 }
  0x23   : > { %1924 = vmatprep.subr.bf16.mxu0 %v2038_v8  ;;  %1998 = vmatprep.subr.bf16.mxu1 %v2038_v8 }
  0x26   : > { %1925 = vmatpush3.bf16.msra.mxu0 %v2038_v8  ;;  %2006 = vmatpush3.bf16.msra.mxu1 %v2038_v8 }
  0x27   : > { %1926 = vmatprep.subr.bf16.mxu0 %v2039_v9  ;;  %1999 = vmatprep.subr.bf16.mxu1 %v2039_v9 }
  0x2a   : > { %1927 = vmatpush3.bf16.msra.mxu0 %v2039_v9  ;;  %2007 = vmatpush3.bf16.msra.mxu1 %v2039_v9 }
  0x2d   : > { %1929 = vmatmul.mubr.bf16.vlgmr.msra.gmra.mxu0 %v2042_v10  ;;  %1961 = vmatmul.mubr.bf16.vlgmr.msra.gmra.mxu1 %v2043_v11 }
  0x2e   : > { %1932 = vmatprep.mubr.bf16.mxu0 %v2044_v12  ;;  %1964 = vmatprep.mubr.bf16.mxu1 %v2045_v13 }
  0x35   : > { %1933 = vmatmul.mubr.bf16.gmra.mxu0 %v2046_v14  ;;  %1965 = vmatmul.mubr.bf16.gmra.mxu1 %v2047_v15 }
  0x36   : > { %1936 = vmatprep.mubr.bf16.mxu0 %v2048_v16  ;;  %1968 = vmatprep.mubr.bf16.mxu1 %v2049_v17 }
  0x3d   : > { %1937 = vmatmul.mubr.bf16.gmra.mxu0 %v2050_v18  ;;  %1969 = vmatmul.mubr.bf16.gmra.mxu1 %v2051_v19 }
  0x3e   : > { %1940 = vmatprep.mubr.bf16.mxu0 %v2052_v20  ;;  %1972 = vmatprep.mubr.bf16.mxu1 %v2053_v21 }
  0x45   : > { %1941 = vmatmul.mubr.bf16.gmra.mxu0 %v2054_v22  ;;  %1973 = vmatmul.mubr.bf16.gmra.mxu1 %v2055_v23 }
  0x46   : > { %1944 = vmatprep.mubr.bf16.mxu0 %v2056_v24  ;;  %1976 = vmatprep.mubr.bf16.mxu1 %v2057_v25 }
  0x4d   : > { %1945 = vmatmul.mubr.bf16.gmra.mxu0 %v2058_v26  ;;  %1977 = vmatmul.mubr.bf16.gmra.mxu1 %v2059_v27 }
  0x4e   : > { %1948 = vmatprep.mubr.bf16.mxu0 %v2060_v28  ;;  %1980 = vmatprep.mubr.bf16.mxu1 %v2061_v29 }
  0x55   : > { %1949 = vmatmul.mubr.bf16.gmra.mxu0 %v2062_v30  ;;  %1981 = vmatmul.mubr.bf16.gmra.mxu1 %v2063_v31 }
  0x56   : > { %1952 = vmatprep.mubr.bf16.mxu0 %v2064_v32  ;;  %1984 = vmatprep.mubr.bf16.mxu1 %v2065_v33 }
  0x5d   : > { %1953 = vmatmul.mubr.bf16.gmra.mxu0 %v2066_v34  ;;  %1985 = vmatmul.mubr.bf16.gmra.mxu1 %v2067_v35 }
  0x5e   : > { %1956 = vmatprep.mubr.bf16.mxu0 %v2068_v36  ;;  %1988 = vmatprep.mubr.bf16.mxu1 %v2069_v37 }
  0x65   : > { %1957 = vmatmul.mubr.bf16.gmra.mxu0 %v2070_v38  ;;  %1989 = vmatmul.mubr.bf16.gmra.mxu1 %v2071_v39 }
  0xed   : > { %v1930_v41 = vpop.f32.mrf.mxu0  ;;  %v1962_v42 = vpop.f32.mrf.mxu1 }
  0xee   : > { %v630_v43 = vadd.f32 %v1930_v41, %v2203_v40  ;;  %v758_v44 = vadd.f32 %v1962_v42, %v2203_v40 }
  0xef   : > { %v621_v45 = vpop.f32.mrf.mxu0  ;;  %v749_v46 = vpop.f32.mrf.mxu1 }
  0xf0   : > { %vm878_vm0 = vcmp.ge.f32.partialorder %v630_v43, 0.0  ;;  %v942_v47 = vmul.f32 0.2, %v630_v43  ;;  %vm910_vm1 = vcmp.ge.f32.partialorder %v758_v44, 0.0  ;;  %v974_v48 = vmul.f32 0.2, %v758_v44 }
  0xf1   : > { %v622_v49 = vadd.f32 %v2203_v40, %v621_v45  ;;  %v750_v50 = vadd.f32 %v2203_v40, %v749_v46  ;;  %v1931_v51 = vpop.f32.mrf.mxu0  ;;  %v1963_v52 = vpop.f32.mrf.mxu1 }
  0xf2   : > { %v1006_v53 = vsel %vm878_vm0, %v630_v43, %v942_v47  ;;  %v633_v54 = vadd.f32 %v1931_v51, %v2203_v40  ;;  %v761_v55 = vadd.f32 %v1963_v52, %v2203_v40  ;;  %v1038_v56 = vsel %vm910_vm1, %v758_v44, %v974_v48 }
  0xf3   : > { %vm876_vm2 = vcmp.ge.f32.partialorder %v622_v49, 0.0  ;;  %v940_v57 = vmul.f32 0.2, %v622_v49  ;;  %vm908_vm3 = vcmp.ge.f32.partialorder %v750_v50, 0.0  ;;  %v624_v58 = vpop.f32.mrf.mxu0  ;;  %v752_v59 = vpop.f32.mrf.mxu1  ;;  %v972_v63 = vmul.f32 0.2, %v750_v50 }
  0xf4   : > { %vm879_vm4 = vcmp.ge.f32.partialorder %v633_v54, 0.0  ;;  %v943_v60 = vmul.f32 0.2, %v633_v54  ;;  %vm911_vm5 = vcmp.ge.f32.partialorder %v761_v55, 0.0  ;;  %v975_v61 = vmul.f32 0.2, %v761_v55 }
  0xf5   : > { %v1004_v62 = vsel %vm876_vm2, %v622_v49, %v940_v57  ;;  %v625_v0 = vadd.f32 %v2203_v40, %v624_v58  ;;  %v753_v1 = vadd.f32 %v2203_v40, %v752_v59  ;;  %v1934_v2 = vpop.f32.mrf.mxu0  ;;  %v1966_v3 = vpop.f32.mrf.mxu1  ;;  %v1036_v15 = vsel %vm908_vm3, %v750_v50, %v972_v63 }
  0xf6   : > { %v1007_v4 = vsel %vm879_vm4, %v633_v54, %v943_v60  ;;  %v1039_v5 = vsel %vm911_vm5, %v761_v55, %v975_v61  ;;  %v646_v6 = vadd.f32 %v1934_v2, %v2203_v40  ;;  %v774_v7 = vadd.f32 %v1966_v3, %v2203_v40 }
  0xf7   : > { %v1689_v8 = vpack.c.bf16 %v1007_v4, %v1006_v53  ;;  %v1769_v9 = vpack.c.bf16 %v1039_v5, %v1038_v56  ;;  %vm877_vm6 = vcmp.ge.f32.partialorder %v625_v0, 0.0  ;;  %v941_v10 = vmul.f32 0.2, %v625_v0  ;;  %v637_v11 = vpop.f32.mrf.mxu0  ;;  %v765_v12 = vpop.f32.mrf.mxu1 }
  0xf8   : > { %vm909_vm7 = vcmp.ge.f32.partialorder %v753_v1, 0.0  ;;  %v973_v13 = vmul.f32 0.2, %v753_v1  ;;  %vm882_vm8 = vcmp.ge.f32.partialorder %v646_v6, 0.0  ;;  %v946_v14 = vmul.f32 0.2, %v646_v6 }
  0xf9   : > { %1841 = vst [vmem:[%s2218_s17 + $0x8] sm:$0xff] %v1689_v8   ;;  %1857 = vst [vmem:[%s2218_s17 + $0x88] sm:$0xff] %v1769_v9   ;;  %v1005_v16 = vsel %vm877_vm6, %v625_v0, %v941_v10  ;;  %v978_v17 = vmul.f32 0.2, %v774_v7  ;;  %v638_v18 = vadd.f32 %v2203_v40, %v637_v11  ;;  %v1935_v19 = vpop.f32.mrf.mxu0  ;;  %v1967_v20 = vpop.f32.mrf.mxu1  ;;  %vm914_vm9 = vcmp.ge.f32.partialorder %v774_v7, 0.0 }
  0xfa   : > { %v1684_v21 = vpack.c.bf16 %v1005_v16, %v1004_v62  ;;  %v1037_v22 = vsel %vm909_vm7, %v753_v1, %v973_v13  ;;  %v766_v23 = vadd.f32 %v2203_v40, %v765_v12  ;;  %v1010_v25 = vsel %vm882_vm8, %v646_v6, %v946_v14 }
  0xfb   : > { %v1764_v24 = vpack.c.bf16 %v1037_v22, %v1036_v15  ;;  %vm880_vm10 = vcmp.ge.f32.partialorder %v638_v18, 0.0  ;;  %v944_v26 = vmul.f32 0.2, %v638_v18  ;;  %v640_v27 = vpop.f32.mrf.mxu0  ;;  %v768_v28 = vpop.f32.mrf.mxu1  ;;  %v649_v30 = vadd.f32 %v1935_v19, %v2203_v40 }
  0xfc   : > { %1685 = vst [vmem:[%s2218_s17] sm:$0xff] %v1684_v21   ;;  %vm912_vm11 = vcmp.ge.f32.partialorder %v766_v23, 0.0  ;;  %v976_v29 = vmul.f32 0.2, %v766_v23  ;;  %v777_v31 = vadd.f32 %v1967_v20, %v2203_v40  ;;  %v1042_v32 = vsel %vm914_vm9, %v774_v7, %v978_v17 }
  0xfd   : > { %1856 = vst [vmem:[%s2218_s17 + $0x80] sm:$0xff] %v1764_v24   ;;  %v1008_v33 = vsel %vm880_vm10, %v638_v18, %v944_v26  ;;  %v641_v34 = vadd.f32 %v2203_v40, %v640_v27  ;;  %v769_v35 = vadd.f32 %v2203_v40, %v768_v28  ;;  %v1938_v36 = vpop.f32.mrf.mxu0  ;;  %v1970_v37 = vpop.f32.mrf.mxu1  ;;  %vm883_vm12 = vcmp.ge.f32.partialorder %v649_v30, 0.0 }
  0xfe   : > { %v1040_v38 = vsel %vm912_vm11, %v766_v23, %v976_v29  ;;  %v947_v39 = vmul.f32 0.2, %v649_v30  ;;  %vm915_vm13 = vcmp.ge.f32.partialorder %v777_v31, 0.0  ;;  %v979_v41 = vmul.f32 0.2, %v777_v31 }
  0xff   : > { %vm881_vm14 = vcmp.ge.f32.partialorder %v641_v34, 0.0  ;;  %v945_v42 = vmul.f32 0.2, %v641_v34  ;;  %vm913_vm15 = vcmp.ge.f32.partialorder %v769_v35, 0.0  ;;  %v653_v43 = vpop.f32.mrf.mxu0  ;;  %v781_v44 = vpop.f32.mrf.mxu1  ;;  %v977_v46 = vmul.f32 0.2, %v769_v35 }
 0x100   : > { %v1011_v45 = vsel %vm883_vm12, %v649_v30, %v947_v39  ;;  %v662_v47 = vadd.f32 %v1938_v36, %v2203_v40  ;;  %v790_v48 = vadd.f32 %v1970_v37, %v2203_v40  ;;  %v1043_v50 = vsel %vm915_vm13, %v777_v31, %v979_v41 }
 0x101   : > { %v1699_v49 = vpack.c.bf16 %v1011_v45, %v1010_v25  ;;  %v1009_v51 = vsel %vm881_vm14, %v641_v34, %v945_v42  ;;  %v654_v52 = vadd.f32 %v2203_v40, %v653_v43  ;;  %v1939_v53 = vpop.f32.mrf.mxu0  ;;  %v1971_v54 = vpop.f32.mrf.mxu1  ;;  %v1779_v55 = vpack.c.bf16 %v1043_v50, %v1042_v32 }
 0x102   : > { %v1694_v56 = vpack.c.bf16 %v1009_v51, %v1008_v33  ;;  %v1041_v57 = vsel %vm913_vm15, %v769_v35, %v977_v46  ;;  %vm886_vm0 = vcmp.ge.f32.partialorder %v662_v47, 0.0  ;;  %v950_v59 = vmul.f32 0.2, %v662_v47 }
 0x103   : > { %1843 = vst [vmem:[%s2218_s17 + $0x18] sm:$0xff] %v1699_v49   ;;  %v1774_v58 = vpack.c.bf16 %v1041_v57, %v1040_v38  ;;  %vm918_vm1 = vcmp.ge.f32.partialorder %v790_v48, 0.0  ;;  %v982_v60 = vmul.f32 0.2, %v790_v48  ;;  %v656_v61 = vpop.f32.mrf.mxu0  ;;  %v784_v62 = vpop.f32.mrf.mxu1  ;;  %1859 = vst [vmem:[%s2218_s17 + $0x98] sm:$0xff] %v1779_v55   ;;  %vm884_vm2 = vcmp.ge.f32.partialorder %v654_v52, 0.0 }
 0x104   : > { %1842 = vst [vmem:[%s2218_s17 + $0x10] sm:$0xff] %v1694_v56   ;;  %v948_v63 = vmul.f32 0.2, %v654_v52  ;;  %v782_v0 = vadd.f32 %v2203_v40, %v781_v44  ;;  %v665_v1 = vadd.f32 %v1939_v53, %v2203_v40  ;;  %v1014_v2 = vsel %vm886_vm0, %v662_v47, %v950_v59 }
 0x105   : > { %1858 = vst [vmem:[%s2218_s17 + $0x90] sm:$0xff] %v1774_v58   ;;  %v1046_v3 = vsel %vm918_vm1, %v790_v48, %v982_v60  ;;  %v793_v4 = vadd.f32 %v1971_v54, %v2203_v40  ;;  %v657_v5 = vadd.f32 %v2203_v40, %v656_v61  ;;  %v1942_v6 = vpop.f32.mrf.mxu0  ;;  %v1974_v7 = vpop.f32.mrf.mxu1  ;;  %v785_v16 = vadd.f32 %v2203_v40, %v784_v62 }
 0x106   : > { %v1012_v8 = vsel %vm884_vm2, %v654_v52, %v948_v63  ;;  %vm916_vm3 = vcmp.ge.f32.partialorder %v782_v0, 0.0  ;;  %v980_v9 = vmul.f32 0.2, %v782_v0  ;;  %vm887_vm4 = vcmp.ge.f32.partialorder %v665_v1, 0.0 }
 0x107   : > { %v951_v10 = vmul.f32 0.2, %v665_v1  ;;  %vm919_vm5 = vcmp.ge.f32.partialorder %v793_v4, 0.0  ;;  %v983_v11 = vmul.f32 0.2, %v793_v4  ;;  %vm885_vm6 = vcmp.ge.f32.partialorder %v657_v5, 0.0  ;;  %v669_v12 = vpop.f32.mrf.mxu0  ;;  %v797_v13 = vpop.f32.mrf.mxu1 }
 0x108   : > { %v1044_v14 = vsel %vm916_vm3, %v782_v0, %v980_v9  ;;  %v949_v15 = vmul.f32 0.2, %v657_v5  ;;  %v678_v17 = vadd.f32 %v1942_v6, %v2203_v40  ;;  %v806_v20 = vadd.f32 %v1974_v7, %v2203_v40 }
 0x109   : > { %v1015_v18 = vsel %vm887_vm4, %v665_v1, %v951_v10  ;;  %v1047_v19 = vsel %vm919_vm5, %v793_v4, %v983_v11  ;;  %v670_v21 = vadd.f32 %v2203_v40, %v669_v12  ;;  %v1943_v22 = vpop.f32.mrf.mxu0  ;;  %v1975_v23 = vpop.f32.mrf.mxu1  ;;  %vm917_vm7 = vcmp.ge.f32.partialorder %v785_v16, 0.0 }
 0x10a   : > { %v1709_v24 = vpack.c.bf16 %v1015_v18, %v1014_v2  ;;  %v1789_v25 = vpack.c.bf16 %v1047_v19, %v1046_v3  ;;  %v1013_v26 = vsel %vm885_vm6, %v657_v5, %v949_v15  ;;  %v981_v28 = vmul.f32 0.2, %v785_v16 }
 0x10b   : > { %v1704_v27 = vpack.c.bf16 %v1013_v26, %v1012_v8  ;;  %vm890_vm8 = vcmp.ge.f32.partialorder %v678_v17, 0.0  ;;  %v954_v29 = vmul.f32 0.2, %v678_v17  ;;  %v672_v30 = vpop.f32.mrf.mxu0  ;;  %v800_v31 = vpop.f32.mrf.mxu1  ;;  %vm922_vm9 = vcmp.ge.f32.partialorder %v806_v20, 0.0 }
 0x10c   : > { %1845 = vst [vmem:[%s2218_s17 + $0x28] sm:$0xff] %v1709_v24   ;;  %1861 = vst [vmem:[%s2218_s17 + $0xa8] sm:$0xff] %v1789_v25   ;;  %v986_v32 = vmul.f32 0.2, %v806_v20  ;;  %vm888_vm10 = vcmp.ge.f32.partialorder %v670_v21, 0.0  ;;  %v1045_v34 = vsel %vm917_vm7, %v785_v16, %v981_v28  ;;  %v798_v36 = vadd.f32 %v2203_v40, %v797_v13 }
 0x10d   : > { %v952_v33 = vmul.f32 0.2, %v670_v21  ;;  %1844 = vst [vmem:[%s2218_s17 + $0x20] sm:$0xff] %v1704_v27   ;;  %v1018_v35 = vsel %vm890_vm8, %v678_v17, %v954_v29  ;;  %v681_v37 = vadd.f32 %v1943_v22, %v2203_v40  ;;  %v1946_v38 = vpop.f32.mrf.mxu0  ;;  %v1978_v39 = vpop.f32.mrf.mxu1  ;;  %v1784_v41 = vpack.c.bf16 %v1045_v34, %v1044_v14 }
 0x10e   : > { %v1050_v42 = vsel %vm922_vm9, %v806_v20, %v986_v32  ;;  %v809_v44 = vadd.f32 %v1975_v23, %v2203_v40  ;;  %vm920_vm11 = vcmp.ge.f32.partialorder %v798_v36, 0.0  ;;  %v984_v45 = vmul.f32 0.2, %v798_v36 }
 0x10f   : > { %v1016_v43 = vsel %vm888_vm10, %v670_v21, %v952_v33  ;;  %vm891_vm12 = vcmp.ge.f32.partialorder %v681_v37, 0.0  ;;  %v955_v46 = vmul.f32 0.2, %v681_v37  ;;  %v685_v47 = vpop.f32.mrf.mxu0  ;;  %v813_v48 = vpop.f32.mrf.mxu1  ;;  %1860 = vst [vmem:[%s2218_s17 + $0xa0] sm:$0xff] %v1784_v41   ;;  %v673_v50 = vadd.f32 %v2203_v40, %v672_v30 }
 0x110   : > { %vm923_vm13 = vcmp.ge.f32.partialorder %v809_v44, 0.0  ;;  %v987_v49 = vmul.f32 0.2, %v809_v44  ;;  %v801_v51 = vadd.f32 %v2203_v40, %v800_v31  ;;  %v1048_v52 = vsel %vm920_vm11, %v798_v36, %v984_v45 }
 0x111   : > { %v1019_v53 = vsel %vm891_vm12, %v681_v37, %v955_v46  ;;  %v694_v54 = vadd.f32 %v1946_v38, %v2203_v40  ;;  %v822_v55 = vadd.f32 %v1978_v39, %v2203_v40  ;;  %v1947_v56 = vpop.f32.mrf.mxu0  ;;  %v1979_v57 = vpop.f32.mrf.mxu1  ;;  %vm889_vm14 = vcmp.ge.f32.partialorder %v673_v50, 0.0 }
 0x112   : > { %v1719_v58 = vpack.c.bf16 %v1019_v53, %v1018_v35  ;;  %v1051_v59 = vsel %vm923_vm13, %v809_v44, %v987_v49  ;;  %v953_v60 = vmul.f32 0.2, %v673_v50  ;;  %vm921_vm15 = vcmp.ge.f32.partialorder %v801_v51, 0.0 }
 0x113   : > { %v1799_v61 = vpack.c.bf16 %v1051_v59, %v1050_v42  ;;  %v985_v62 = vmul.f32 0.2, %v801_v51  ;;  %vm894_vm0 = vcmp.ge.f32.partialorder %v694_v54, 0.0  ;;  %v688_v63 = vpop.f32.mrf.mxu0  ;;  %v816_v0 = vpop.f32.mrf.mxu1  ;;  %v958_v2 = vmul.f32 0.2, %v694_v54 }
 0x114   : > { %1847 = vst [vmem:[%s2218_s17 + $0x38] sm:$0xff] %v1719_v58   ;;  %v1017_v1 = vsel %vm889_vm14, %v673_v50, %v953_v60  ;;  %vm926_vm1 = vcmp.ge.f32.partialorder %v822_v55, 0.0  ;;  %v990_v3 = vmul.f32 0.2, %v822_v55  ;;  %v686_v6 = vadd.f32 %v2203_v40, %v685_v47 }
 0x115   : > { %1863 = vst [vmem:[%s2218_s17 + $0xb8] sm:$0xff] %v1799_v61   ;;  %v1714_v4 = vpack.c.bf16 %v1017_v1, %v1016_v43  ;;  %v1049_v5 = vsel %vm921_vm15, %v801_v51, %v985_v62  ;;  %v814_v7 = vadd.f32 %v2203_v40, %v813_v48  ;;  %v1950_v8 = vpop.f32.mrf.mxu0  ;;  %v1982_v9 = vpop.f32.mrf.mxu1  ;;  %v1022_v11 = vsel %vm894_vm0, %v694_v54, %v958_v2 }
 0x116   : > { %v1794_v10 = vpack.c.bf16 %v1049_v5, %v1048_v52  ;;  %v1054_v12 = vsel %vm926_vm1, %v822_v55, %v990_v3  ;;  %v697_v13 = vadd.f32 %v1947_v56, %v2203_v40  ;;  %vm892_vm2 = vcmp.ge.f32.partialorder %v686_v6, 0.0 }
 0x117   : > { %1846 = vst [vmem:[%s2218_s17 + $0x30] sm:$0xff] %v1714_v4   ;;  %v956_v14 = vmul.f32 0.2, %v686_v6  ;;  %vm924_vm3 = vcmp.ge.f32.partialorder %v814_v7, 0.0  ;;  %v988_v15 = vmul.f32 0.2, %v814_v7  ;;  %v701_v16 = vpop.f32.mrf.mxu0  ;;  %v829_v17 = vpop.f32.mrf.mxu1  ;;  %v825_v19 = vadd.f32 %v1979_v57, %v2203_v40 }
 0x118   : > { %1862 = vst [vmem:[%s2218_s17 + $0xb0] sm:$0xff] %v1794_v10   ;;  %vm895_vm4 = vcmp.ge.f32.partialorder %v697_v13, 0.0  ;;  %v959_v18 = vmul.f32 0.2, %v697_v13  ;;  %v689_v20 = vadd.f32 %v2203_v40, %v688_v63  ;;  %v817_v23 = vadd.f32 %v2203_v40, %v816_v0 }
 0x119   : > { %v1020_v21 = vsel %vm892_vm2, %v686_v6, %v956_v14  ;;  %v1052_v22 = vsel %vm924_vm3, %v814_v7, %v988_v15  ;;  %v710_v24 = vadd.f32 %v1950_v8, %v2203_v40  ;;  %v1951_v25 = vpop.f32.mrf.mxu0  ;;  %v1983_v26 = vpop.f32.mrf.mxu1  ;;  %vm927_vm5 = vcmp.ge.f32.partialorder %v825_v19, 0.0 }
 0x11a   : > { %v1023_v27 = vsel %vm895_vm4, %v697_v13, %v959_v18  ;;  %v991_v28 = vmul.f32 0.2, %v825_v19  ;;  %vm893_vm6 = vcmp.ge.f32.partialorder %v689_v20, 0.0  ;;  %v957_v30 = vmul.f32 0.2, %v689_v20 }
 0x11b   : > { %v1729_v29 = vpack.c.bf16 %v1023_v27, %v1022_v11  ;;  %vm925_vm7 = vcmp.ge.f32.partialorder %v817_v23, 0.0  ;;  %v989_v31 = vmul.f32 0.2, %v817_v23  ;;  %v704_v32 = vpop.f32.mrf.mxu0  ;;  %v832_v33 = vpop.f32.mrf.mxu1  ;;  %vm898_vm8 = vcmp.ge.f32.partialorder %v710_v24, 0.0 }
 0x11c   : > { %v1055_v34 = vsel %vm927_vm5, %v825_v19, %v991_v28  ;;  %v962_v35 = vmul.f32 0.2, %v710_v24  ;;  %v838_v36 = vadd.f32 %v1982_v9, %v2203_v40  ;;  %v1021_v38 = vsel %vm893_vm6, %v689_v20, %v957_v30 }
 0x11d   : > { %1849 = vst [vmem:[%s2218_s17 + $0x48] sm:$0xff] %v1729_v29   ;;  %v1809_v37 = vpack.c.bf16 %v1055_v34, %v1054_v12  ;;  %v1053_v39 = vsel %vm925_vm7, %v817_v23, %v989_v31  ;;  %v702_v41 = vadd.f32 %v2203_v40, %v701_v16  ;;  %v1954_v42 = vpop.f32.mrf.mxu0  ;;  %v1986_v43 = vpop.f32.mrf.mxu1  ;;  %v1724_v44 = vpack.c.bf16 %v1021_v38, %v1020_v21 }
 0x11e   : > { %v1804_v45 = vpack.c.bf16 %v1053_v39, %v1052_v22  ;;  %v1026_v46 = vsel %vm898_vm8, %v710_v24, %v962_v35  ;;  %vm930_vm9 = vcmp.ge.f32.partialorder %v838_v36, 0.0  ;;  %v994_v47 = vmul.f32 0.2, %v838_v36 }
 0x11f   : > { %1865 = vst [vmem:[%s2218_s17 + $0xc8] sm:$0xff] %v1809_v37   ;;  %vm896_vm10 = vcmp.ge.f32.partialorder %v702_v41, 0.0  ;;  %v960_v48 = vmul.f32 0.2, %v702_v41  ;;  %v830_v49 = vadd.f32 %v2203_v40, %v829_v17  ;;  %v717_v50 = vpop.f32.mrf.mxu0  ;;  %v845_v51 = vpop.f32.mrf.mxu1  ;;  %1848 = vst [vmem:[%s2218_s17 + $0x40] sm:$0xff] %v1724_v44   ;;  %v713_v52 = vadd.f32 %v1951_v25, %v2203_v40 }
 0x120   : > { %1864 = vst [vmem:[%s2218_s17 + $0xc0] sm:$0xff] %v1804_v45   ;;  %v841_v53 = vadd.f32 %v1983_v26, %v2203_v40  ;;  %v705_v54 = vadd.f32 %v2203_v40, %v704_v32  ;;  %v833_v55 = vadd.f32 %v2203_v40, %v832_v33  ;;  %v1058_v56 = vsel %vm930_vm9, %v838_v36, %v994_v47 }
 0x121   : > { %v1024_v57 = vsel %vm896_vm10, %v702_v41, %v960_v48  ;;  %vm928_vm11 = vcmp.ge.f32.partialorder %v830_v49, 0.0  ;;  %v992_v58 = vmul.f32 0.2, %v830_v49  ;;  %v1955_v59 = vpop.f32.mrf.mxu0  ;;  %v1987_v60 = vpop.f32.mrf.mxu1  ;;  %vm899_vm12 = vcmp.ge.f32.partialorder %v713_v52, 0.0 }
 0x122   : > { %v963_v61 = vmul.f32 0.2, %v713_v52  ;;  %vm931_vm13 = vcmp.ge.f32.partialorder %v841_v53, 0.0  ;;  %v995_v62 = vmul.f32 0.2, %v841_v53  ;;  %vm897_vm14 = vcmp.ge.f32.partialorder %v705_v54, 0.0 }
 0x123   : > { %v1056_v63 = vsel %vm928_vm11, %v830_v49, %v992_v58  ;;  %v961_v0 = vmul.f32 0.2, %v705_v54  ;;  %vm929_vm15 = vcmp.ge.f32.partialorder %v833_v55, 0.0  ;;  %v720_v1 = vpop.f32.mrf.mxu0  ;;  %v848_v2 = vpop.f32.mrf.mxu1  ;;  %v993_v5 = vmul.f32 0.2, %v833_v55 }
 0x124   : > { %v1027_v3 = vsel %vm899_vm12, %v713_v52, %v963_v61  ;;  %v1059_v4 = vsel %vm931_vm13, %v841_v53, %v995_v62  ;;  %v726_v6 = vadd.f32 %v1954_v42, %v2203_v40  ;;  %v854_v10 = vadd.f32 %v1986_v43, %v2203_v40 }
 0x125   : > { %v1739_v7 = vpack.c.bf16 %v1027_v3, %v1026_v46  ;;  %v1819_v8 = vpack.c.bf16 %v1059_v4, %v1058_v56  ;;  %v1025_v9 = vsel %vm897_vm14, %v705_v54, %v961_v0  ;;  %v1958_v11 = vpop.f32.mrf.mxu0  ;;  %v1990_v12 = vpop.f32.mrf.mxu1  ;;  %v1057_v14 = vsel %vm929_vm15, %v833_v55, %v993_v5 }
 0x126   : > { %v1734_v13 = vpack.c.bf16 %v1025_v9, %v1024_v57  ;;  %vm902_vm0 = vcmp.ge.f32.partialorder %v726_v6, 0.0  ;;  %v966_v15 = vmul.f32 0.2, %v726_v6  ;;  %v1814_v16 = vpack.c.bf16 %v1057_v14, %v1056_v63 }
 0x127   : > { %1851 = vst [vmem:[%s2218_s17 + $0x58] sm:$0xff] %v1739_v7   ;;  %1867 = vst [vmem:[%s2218_s17 + $0xd8] sm:$0xff] %v1819_v8   ;;  %vm934_vm1 = vcmp.ge.f32.partialorder %v854_v10, 0.0  ;;  %v998_v17 = vmul.f32 0.2, %v854_v10  ;;  %v718_v18 = vadd.f32 %v2203_v40, %v717_v50  ;;  %v846_v19 = vadd.f32 %v2203_v40, %v845_v51  ;;  %v733_v25 = vpop.f32.mrf.mxu0  ;;  %v861_v26 = vpop.f32.mrf.mxu1 }
 0x128   : > { %1850 = vst [vmem:[%s2218_s17 + $0x50] sm:$0xff] %v1734_v13   ;;  %v729_v20 = vadd.f32 %v1955_v59, %v2203_v40  ;;  %v857_v21 = vadd.f32 %v1987_v60, %v2203_v40  ;;  %1866 = vst [vmem:[%s2218_s17 + $0xd0] sm:$0xff] %v1814_v16   ;;  %v1030_v22 = vsel %vm902_vm0, %v726_v6, %v966_v15 }
 0x129   : > { %vm900_vm2 = vcmp.ge.f32.partialorder %v718_v18, 0.0  ;;  %v964_v23 = vmul.f32 0.2, %v718_v18  ;;  %v721_v24 = vadd.f32 %v2203_v40, %v720_v1  ;;  %v1062_v27 = vsel %vm934_vm1, %v854_v10, %v998_v17  ;;  %v1959_v39 = vpop.f32.mrf.mxu0  ;;  %v1991_v41 = vpop.f32.mrf.mxu1 }
 0x12a   : > { %vm932_vm3 = vcmp.ge.f32.partialorder %v846_v19, 0.0  ;;  %vm903_vm4 = vcmp.ge.f32.partialorder %v729_v20, 0.0  ;;  %v967_v28 = vmul.f32 0.2, %v729_v20  ;;  %v996_v29 = vmul.f32 0.2, %v846_v19 }
 0x12b   : > { %vm935_vm5 = vcmp.ge.f32.partialorder %v857_v21, 0.0  ;;  %v999_v30 = vmul.f32 0.2, %v857_v21  ;;  %vm901_vm6 = vcmp.ge.f32.partialorder %v721_v24, 0.0  ;;  %v1028_v31 = vsel %vm900_vm2, %v718_v18, %v964_v23  ;;  %v736_v55 = vpop.f32.mrf.mxu0  ;;  %v864_v56 = vpop.f32.mrf.mxu1 }
 0x12c   : > { %v1031_v32 = vsel %vm903_vm4, %v729_v20, %v967_v28  ;;  %v965_v33 = vmul.f32 0.2, %v721_v24  ;;  %v849_v34 = vadd.f32 %v2203_v40, %v848_v2  ;;  %v742_v37 = vadd.f32 %v1958_v11, %v2203_v40 }
 0x12d   : > { %v1749_v35 = vpack.c.bf16 %v1031_v32, %v1030_v22  ;;  %v1063_v36 = vsel %vm935_vm5, %v857_v21, %v999_v30  ;;  %v870_v38 = vadd.f32 %v1990_v12, %v2203_v40  ;;  %v1060_v45 = vsel %vm932_vm3, %v846_v19, %v996_v29 }
 0x12e   : > { %v1829_v42 = vpack.c.bf16 %v1063_v36, %v1062_v27  ;;  %v1029_v43 = vsel %vm901_vm6, %v721_v24, %v965_v33  ;;  %vm933_vm7 = vcmp.ge.f32.partialorder %v849_v34, 0.0  ;;  %v997_v44 = vmul.f32 0.2, %v849_v34 }
 0x12f   : > { %1853 = vst [vmem:[%s2218_s17 + $0x68] sm:$0xff] %v1749_v35   ;;  %v1744_v46 = vpack.c.bf16 %v1029_v43, %v1028_v31  ;;  %vm906_vm8 = vcmp.ge.f32.partialorder %v742_v37, 0.0  ;;  %v970_v47 = vmul.f32 0.2, %v742_v37  ;;  %vm938_vm9 = vcmp.ge.f32.partialorder %v870_v38, 0.0 }
 0x130   : > { %1869 = vst [vmem:[%s2218_s17 + $0xe8] sm:$0xff] %v1829_v42   ;;  %v1061_v48 = vsel %vm933_vm7, %v849_v34, %v997_v44  ;;  %v1002_v49 = vmul.f32 0.2, %v870_v38  ;;  %v734_v50 = vadd.f32 %v2203_v40, %v733_v25  ;;  %v862_v52 = vadd.f32 %v2203_v40, %v861_v26 }
 0x131   : > { %1852 = vst [vmem:[%s2218_s17 + $0x60] sm:$0xff] %v1744_v46   ;;  %v1824_v51 = vpack.c.bf16 %v1061_v48, %v1060_v45  ;;  %v745_v53 = vadd.f32 %v1959_v39, %v2203_v40  ;;  %v873_v54 = vadd.f32 %v1991_v41, %v2203_v40  ;;  %v1034_v57 = vsel %vm906_vm8, %v742_v37, %v970_v47 }
 0x132   : > { %v1066_v58 = vsel %vm938_vm9, %v870_v38, %v1002_v49  ;;  %v968_v60 = vmul.f32 0.2, %v734_v50  ;;  %v737_v62 = vadd.f32 %v2203_v40, %v736_v55  ;;  %v865_v63 = vadd.f32 %v2203_v40, %v864_v56 }
 0x133   : > { %1868 = vst [vmem:[%s2218_s17 + $0xe0] sm:$0xff] %v1824_v51   ;;  %vm907_vm10 = vcmp.ge.f32.partialorder %v745_v53, 0.0  ;;  %v971_v59 = vmul.f32 0.2, %v745_v53  ;;  %vm939_vm11 = vcmp.ge.f32.partialorder %v873_v54, 0.0  ;;  %vm904_vm12 = vcmp.ge.f32.partialorder %v734_v50, 0.0 }
 0x134   : > { %v1003_v61 = vmul.f32 0.2, %v873_v54  ;;  %vm936_vm13 = vcmp.ge.f32.partialorder %v862_v52, 0.0  ;;  %v1000_v0 = vmul.f32 0.2, %v862_v52  ;;  %vm905_vm14 = vcmp.ge.f32.partialorder %v737_v62, 0.0 }
 0x135   : > { %v1035_v1 = vsel %vm907_vm10, %v745_v53, %v971_v59  ;;  %v969_v4 = vmul.f32 0.2, %v737_v62  ;;  %vm937_vm15 = vcmp.ge.f32.partialorder %v865_v63, 0.0  ;;  %v1001_v6 = vmul.f32 0.2, %v865_v63 }
 0x136   : > { %v1759_v2 = vpack.c.bf16 %v1035_v1, %v1034_v57  ;;  %v1067_v3 = vsel %vm939_vm11, %v873_v54, %v1003_v61  ;;  %v1032_v7 = vsel %vm904_vm12, %v734_v50, %v968_v60  ;;  %v1064_v9 = vsel %vm936_vm13, %v862_v52, %v1000_v0 }
 0x137   : > { %v1839_v5 = vpack.c.bf16 %v1067_v3, %v1066_v58  ;;  %v1033_v8 = vsel %vm905_vm14, %v737_v62, %v969_v4  ;;  %v1065_v10 = vsel %vm937_vm15, %v865_v63, %v1001_v6 }
 0x138   : > { %1855 = vst [vmem:[%s2218_s17 + $0x78] sm:$0xff] %v1759_v2   ;;  %v1754_v40 = vpack.c.bf16 %v1033_v8, %v1032_v7  ;;  %v1834_v11 = vpack.c.bf16 %v1065_v10, %v1064_v9 }
 0x139   : > { %1871 = vst [vmem:[%s2218_s17 + $0xf8] sm:$0xff] %v1839_v5  }
 0x13a   : > { %1854 = vst [vmem:[%s2218_s17 + $0x70] sm:$0xff] %v1754_v40   ;;  %1870 = vst [vmem:[%s2218_s17 + $0xf0] sm:$0xff] %v1834_v11  }
 0x13b PF: > { %s13_s14 = sadd.s32 1, %s2094_s14   ;;  %s2324_s12 = smov %s2090_s13 }
 0x13c   : > { %p10_p5 = scmp.ge.s32.totalorder %s13_s14, 6   ;;  %s2325_s13 = smov %s2327_s15 }
 0x13e   :  { %12 = sbr.rel (!%p10_p5) target bundleno = 2 (0x2), region = 68 }

// kernel: discriminator_forward.5
= control target key start
LH: loop header
LB: loop body
LE: loop exit
PB: predicated region body
PF: predicated region fallthrough
CT: control target
= control target key end

     0   :  { %v4619_v0 = vmov 0   ;;  %s7133_s1 = inlined_call_operand.vmem [shape: bf16[1024,128], index: 1, kind: input, shape index: {}]   ;;  %s7134_s0 = inlined_call_operand.vmem [shape: bf16[456,1024], index: 0, kind: input, shape index: {}]   ;;  %s7135_s2 = inlined_call_operand.vmem [shape: f32[1,128], index: 2, kind: input, shape index: {}]   ;;  %s7136_s3 = inlined_call_operand.vmem [shape: f32[1,128], index: 3, kind: input, shape index: {}]   ;;  %s7137_s4 = inlined_call_operand.vmem [shape: bf16[456,128], index: 4, kind: output, shape index: {}]  }
   0x1   :  { %1906 = vmatprep.subr.bf16.mxu0 %v4619_v0  ;;  %2170 = vmatprep.subr.bf16.mxu1 %v4619_v0  ;;  %v4545_v1 = vld [vmem:[%s7133_s1 + $0x38] sm:$0xff]   ;;  %v4547_v3 = vld [vmem:[%s7133_s1 + $0x30] sm:$0xff]   ;;  %v4549_v5 = vld [vmem:[%s7133_s1 + $0x28] sm:$0xff]  }
   0x2   :  { %v4546_v2 = vld [vmem:[%s7133_s1 + $0xb8] sm:$0xff]   ;;  %1907 = vmatpush1.bf16.msra.mxu0 %v4545_v1  ;;  %v4548_v4 = vld [vmem:[%s7133_s1 + $0xb0] sm:$0xff]   ;;  %v4550_v6 = vld [vmem:[%s7133_s1 + $0xa8] sm:$0xff]  }
   0x3   :  { %2171 = vmatpush1.bf16.msra.mxu1 %v4546_v2  ;;  %1908 = vmatprep.subr.bf16.mxu0 %v4619_v0  ;;  %v4551_v7 = vld [vmem:[%s7133_s1 + $0x20] sm:$0xff]   ;;  %v4553_v9 = vld [vmem:[%s7133_s1 + $0x18] sm:$0xff]   ;;  %v4555_v11 = vld [vmem:[%s7133_s1 + $0x10] sm:$0xff]  }
   0x4   :  { %2172 = vmatprep.subr.bf16.mxu1 %v4619_v0  ;;  %v4552_v8 = vld [vmem:[%s7133_s1 + $0xa0] sm:$0xff]   ;;  %v4554_v10 = vld [vmem:[%s7133_s1 + $0x98] sm:$0xff]   ;;  %v4556_v12 = vld [vmem:[%s7133_s1 + $0x90] sm:$0xff]  }
   0x5   :  { %v4557_v13 = vld [vmem:[%s7133_s1 + $0x8] sm:$0xff]   ;;  %v4559_v15 = vld [vmem:[%s7133_s1] sm:$0xff]   ;;  %v4561_v17 = vld [vmem:[%s7133_s1 + $0x78] sm:$0xff]  }
   0x6   :  { %1909 = vmatpush1.bf16.msra.mxu0 %v4547_v3  ;;  %v4558_v14 = vld [vmem:[%s7133_s1 + $0x88] sm:$0xff]   ;;  %v4560_v16 = vld [vmem:[%s7133_s1 + $0x80] sm:$0xff]   ;;  %v4562_v18 = vld [vmem:[%s7133_s1 + $0xf8] sm:$0xff]  }
   0x7   :  { %2173 = vmatpush1.bf16.msra.mxu1 %v4548_v4  ;;  %1910 = vmatprep.subr.bf16.mxu0 %v4619_v0  ;;  %v4720_v19 = vld [vmem:[%s7134_s0] sm:$0xff]  ;;  %v4730_v21 = vld [vmem:[%s7134_s0 + $0x8] sm:$0xff]  ;;  %v4563_v24 = vld [vmem:[%s7133_s1 + $0x70] sm:$0xff]  }
   0x8   :  { %2174 = vmatprep.subr.bf16.mxu1 %v4619_v0  ;;  %v4725_v20 = vld [vmem:[%s7134_s0 + $0x20] sm:$0xff]  ;;  %v23_v23 = vld [vmem:[%s7134_s0 + $0x28] sm:$0xff]  ;;  %v4564_v26 = vld [vmem:[%s7133_s1 + $0xf0] sm:$0xff]  }
   0x9   :  { %v3967_v22 = vcombine.high %v4720_v19, %v4725_v20  ;;  %v3969_v25 = vcombine.high %v4730_v21, %v23_v23  ;;  %v4565_v27 = vld [vmem:[%s7133_s1 + $0x68] sm:$0xff]   ;;  %v4567_v29 = vld [vmem:[%s7133_s1 + $0x60] sm:$0xff]   ;;  %v4569_v31 = vld [vmem:[%s7133_s1 + $0x58] sm:$0xff]   ;;  %v3966_v42 = vcombine.low %v4720_v19, %v4725_v20  ;;  %v3968_v44 = vcombine.low %v4730_v21, %v23_v23 }
   0xa   :  { %1911 = vmatpush1.bf16.msra.mxu0 %v4549_v5  ;;  %v4566_v28 = vld [vmem:[%s7133_s1 + $0xe8] sm:$0xff]   ;;  %v4568_v30 = vld [vmem:[%s7133_s1 + $0xe0] sm:$0xff]   ;;  %v4570_v32 = vld [vmem:[%s7133_s1 + $0xd8] sm:$0xff]  }
   0xb   :  { %2175 = vmatpush1.bf16.msra.mxu1 %v4550_v6  ;;  %1912 = vmatprep.subr.bf16.mxu0 %v4619_v0  ;;  %v4571_v33 = vld [vmem:[%s7133_s1 + $0x50] sm:$0xff]   ;;  %v4573_v35 = vld [vmem:[%s7133_s1 + $0x48] sm:$0xff]   ;;  %v4575_v37 = vld [vmem:[%s7133_s1 + $0x40] sm:$0xff]  }
   0xc   :  { %2176 = vmatprep.subr.bf16.mxu1 %v4619_v0  ;;  %1938 = vmatprep.mubr.bf16.mxu0 %v3967_v22  ;;  %v4572_v34 = vld [vmem:[%s7133_s1 + $0xd0] sm:$0xff]   ;;  %v4574_v36 = vld [vmem:[%s7133_s1 + $0xc8] sm:$0xff]   ;;  %v4576_v38 = vld [vmem:[%s7133_s1 + $0xc0] sm:$0xff]  }
   0xd   :  { %2202 = vmatprep.mubr.bf16.mxu1 %v3969_v25  ;;  %v26_v39 = vld [vmem:[%s7134_s0 + $0x40] sm:$0xff]  ;;  %v27_v41 = vld [vmem:[%s7134_s0 + $0x48] sm:$0xff]  ;;  %v4577_v45 = vld [vmem:[%s7133_s1 + $0x138] sm:$0xff]  }
   0xe   :  { %1913 = vmatpush1.bf16.msra.mxu0 %v4551_v7  ;;  %v30_v40 = vld [vmem:[%s7134_s0 + $0x60] sm:$0xff]  ;;  %v31_v43 = vld [vmem:[%s7134_s0 + $0x68] sm:$0xff]  ;;  %v4578_v46 = vld [vmem:[%s7133_s1 + $0x1b8] sm:$0xff]  }
   0xf   :  { %2177 = vmatpush1.bf16.msra.mxu1 %v4552_v8  ;;  %1914 = vmatprep.subr.bf16.mxu0 %v4619_v0  ;;  %v3975_v47 = vcombine.high %v26_v39, %v30_v40  ;;  %v3977_v48 = vcombine.high %v27_v41, %v31_v43  ;;  %v34_v49 = vld [vmem:[%s7134_s0 + $0x80] sm:$0xff]  ;;  %v4579_v50 = vld [vmem:[%s7133_s1 + $0x130] sm:$0xff]   ;;  %v35_v52 = vld [vmem:[%s7134_s0 + $0x88] sm:$0xff]  ;;  %v3974_v55 = vcombine.low %v26_v39, %v30_v40 }
  0x10   :  { %2178 = vmatprep.subr.bf16.mxu1 %v4619_v0  ;;  %v38_v51 = vld [vmem:[%s7134_s0 + $0xa0] sm:$0xff]  ;;  %v4580_v53 = vld [vmem:[%s7133_s1 + $0x1b0] sm:$0xff]   ;;  %v39_v54 = vld [vmem:[%s7134_s0 + $0xa8] sm:$0xff]  ;;  %v3976_v56 = vcombine.low %v27_v41, %v31_v43 }
  0x11   :  { %v3983_v57 = vcombine.high %v34_v49, %v38_v51  ;;  %v3985_v58 = vcombine.high %v35_v52, %v39_v54  ;;  %v4581_v59 = vld [vmem:[%s7133_s1 + $0x128] sm:$0xff]   ;;  %v42_v61 = vld [vmem:[%s7134_s0 + $0xc0] sm:$0xff]  ;;  %v3982_v4 = vcombine.low %v34_v49, %v38_v51  ;;  %v4585_v5 = vld [vmem:[%s7133_s1 + $0x118] sm:$0xff]   ;;  %v3984_v6 = vcombine.low %v35_v52, %v39_v54 }
  0x12   :  { %1915 = vmatpush1.bf16.msra.mxu0 %v4553_v9  ;;  %v4582_v60 = vld [vmem:[%s7133_s1 + $0x1a8] sm:$0xff]   ;;  %v46_v62 = vld [vmem:[%s7134_s0 + $0xe0] sm:$0xff]  ;;  %v4586_v8 = vld [vmem:[%s7133_s1 + $0x198] sm:$0xff]  }
  0x13   :  { %2179 = vmatpush1.bf16.msra.mxu1 %v4554_v10  ;;  %1916 = vmatprep.subr.bf16.mxu0 %v4619_v0  ;;  %v4583_v63 = vld [vmem:[%s7133_s1 + $0x120] sm:$0xff]   ;;  %v43_v1 = vld [vmem:[%s7134_s0 + $0xc8] sm:$0xff]  ;;  %v3991_v7 = vcombine.high %v42_v61, %v46_v62  ;;  %v4596_v39 = vld [vmem:[%s7133_s1 + $0x1f0] sm:$0xff]  }
  0x14   :  { %2180 = vmatprep.subr.bf16.mxu1 %v4619_v0  ;;  %v47_v2 = vld [vmem:[%s7134_s0 + $0xe8] sm:$0xff]  ;;  %v4584_v3 = vld [vmem:[%s7133_s1 + $0x1a0] sm:$0xff]  }
  0x15   :  { %v3993_v9 = vcombine.high %v43_v1, %v47_v2  ;;  %v50_v10 = vld [vmem:[%s7134_s0 + $0x100] sm:$0xff]  ;;  %v4589_v20 = vld [vmem:[%s7133_s1 + $0x108] sm:$0xff]  }
  0x16   :  { %1917 = vmatpush1.bf16.msra.mxu0 %v4555_v11  ;;  %v54_v11 = vld [vmem:[%s7134_s0 + $0x120] sm:$0xff]  ;;  %v4590_v21 = vld [vmem:[%s7133_s1 + $0x188] sm:$0xff]  }
  0x17   :  { %2181 = vmatpush1.bf16.msra.mxu1 %v4556_v12  ;;  %1918 = vmatprep.subr.bf16.mxu0 %v4619_v0  ;;  %v51_v12 = vld [vmem:[%s7134_s0 + $0x108] sm:$0xff]  ;;  %v58_v22 = vld [vmem:[%s7134_s0 + $0x140] sm:$0xff] }
  0x18   :  { %2182 = vmatprep.subr.bf16.mxu1 %v4619_v0  ;;  %v62_v23 = vld [vmem:[%s7134_s0 + $0x160] sm:$0xff]  ;;  %v59_v25 = vld [vmem:[%s7134_s0 + $0x148] sm:$0xff] }
  0x19   :  { %v4006_v40 = vcombine.low %v58_v22, %v62_v23  ;;  %v75_v49 = vld [vmem:[%s7134_s0 + $0x1c8] sm:$0xff]  ;;  %v4600_v51 = vld [vmem:[%s7133_s1 + $0x1e0] sm:$0xff]  }
  0x1a   :  { %1919 = vmatpush1.bf16.msra.mxu0 %v4557_v13  ;;  %v55_v13 = vld [vmem:[%s7134_s0 + $0x128] sm:$0xff] }
  0x1b   :  { %2183 = vmatpush1.bf16.msra.mxu1 %v4558_v14  ;;  %1920 = vmatprep.subr.bf16.mxu0 %v4619_v0  ;;  %v4587_v14 = vld [vmem:[%s7133_s1 + $0x110] sm:$0xff]   ;;  %v4001_v19 = vcombine.high %v51_v12, %v55_v13 }
  0x1c   :  { %2184 = vmatprep.subr.bf16.mxu1 %v4619_v0 }
  0x1e   :  { %1921 = vmatpush1.bf16.msra.mxu0 %v4559_v15  ;;  %v4588_v15 = vld [vmem:[%s7133_s1 + $0x190] sm:$0xff]  }
  0x1f   :  { %2185 = vmatpush1.bf16.msra.mxu1 %v4560_v16  ;;  %1922 = vmatprep.subr.bf16.mxu0 %v4619_v0  ;;  %v3990_v16 = vcombine.low %v42_v61, %v46_v62  ;;  %v87_v61 = vld [vmem:[%s7134_s0 + $0x228] sm:$0xff] }
  0x20   :  { %2186 = vmatprep.subr.bf16.mxu1 %v4619_v0 }
  0x22   :  { %1923 = vmatpush2.bf16.msra.mxu0 %v4561_v17  ;;  %v3992_v17 = vcombine.low %v43_v1, %v47_v2 }
  0x23   :  { %2187 = vmatpush2.bf16.msra.mxu1 %v4562_v18  ;;  %1924 = vmatprep.subr.bf16.mxu0 %v4619_v0  ;;  %v3999_v18 = vcombine.high %v50_v10, %v54_v11 }
  0x24   :  { %2188 = vmatprep.subr.bf16.mxu1 %v4619_v0 }
  0x26   :  { %1925 = vmatpush2.bf16.msra.mxu0 %v4563_v24  ;;  %v4591_v24 = vld [vmem:[%s7133_s1 + $0x100] sm:$0xff]  }
  0x27   :  { %2189 = vmatpush2.bf16.msra.mxu1 %v4564_v26  ;;  %1926 = vmatprep.subr.bf16.mxu0 %v4619_v0  ;;  %v63_v26 = vld [vmem:[%s7134_s0 + $0x168] sm:$0xff] }
  0x28   :  { %2190 = vmatprep.subr.bf16.mxu1 %v4619_v0  ;;  %v4008_v41 = vcombine.low %v59_v25, %v63_v26 }
  0x2a   :  { %1927 = vmatpush2.bf16.msra.mxu0 %v4565_v27  ;;  %v4592_v27 = vld [vmem:[%s7133_s1 + $0x180] sm:$0xff]  }
  0x2b   :  { %2191 = vmatpush2.bf16.msra.mxu1 %v4566_v28  ;;  %1928 = vmatprep.subr.bf16.mxu0 %v4619_v0  ;;  %v3998_v28 = vcombine.low %v50_v10, %v54_v11 }
  0x2c   :  { %2192 = vmatprep.subr.bf16.mxu1 %v4619_v0 }
  0x2e   :  { %1929 = vmatpush2.bf16.msra.mxu0 %v4567_v29  ;;  %v4000_v29 = vcombine.low %v51_v12, %v55_v13  ;;  %v98_v12 = vld [vmem:[%s7134_s0 + $0x280] sm:$0xff] }
  0x2f   :  { %2193 = vmatpush2.bf16.msra.mxu1 %v4568_v30  ;;  %1930 = vmatprep.subr.bf16.mxu0 %v4619_v0  ;;  %v4007_v30 = vcombine.high %v58_v22, %v62_v23  ;;  %v102_v13 = vld [vmem:[%s7134_s0 + $0x2a0] sm:$0xff]  ;;  %v107_v23 = vld [vmem:[%s7134_s0 + $0x2c8] sm:$0xff] }
  0x30   :  { %2194 = vmatprep.subr.bf16.mxu1 %v4619_v0  ;;  %v110_v22 = vld [vmem:[%s7134_s0 + $0x2e0] sm:$0xff] }
  0x32   :  { %1931 = vmatpush2.bf16.msra.mxu0 %v4569_v31  ;;  %v4009_v31 = vcombine.high %v59_v25, %v63_v26  ;;  %v4046_v25 = vcombine.low %v98_v12, %v102_v13 }
  0x33   :  { %2195 = vmatpush2.bf16.msra.mxu1 %v4570_v32  ;;  %1932 = vmatprep.subr.bf16.mxu0 %v4619_v0  ;;  %v4593_v32 = vld [vmem:[%s7133_s1 + $0x178] sm:$0xff]  }
  0x34   :  { %2196 = vmatprep.subr.bf16.mxu1 %v4619_v0 }
  0x36   :  { %1933 = vmatpush2.bf16.msra.mxu0 %v4571_v33  ;;  %v4594_v33 = vld [vmem:[%s7133_s1 + $0x1f8] sm:$0xff]  }
  0x37   :  { %2197 = vmatpush2.bf16.msra.mxu1 %v4572_v34  ;;  %1934 = vmatprep.subr.bf16.mxu0 %v4619_v0  ;;  %v66_v34 = vld [vmem:[%s7134_s0 + $0x180] sm:$0xff] }
  0x38   :  { %2198 = vmatprep.subr.bf16.mxu1 %v4619_v0 }
  0x3a   :  { %1935 = vmatpush2.bf16.msra.mxu0 %v4573_v35  ;;  %v70_v35 = vld [vmem:[%s7134_s0 + $0x1a0] sm:$0xff] }
  0x3b   :  { %2199 = vmatpush2.bf16.msra.mxu1 %v4574_v36  ;;  %1936 = vmatprep.subr.bf16.mxu0 %v4619_v0  ;;  %v4595_v36 = vld [vmem:[%s7133_s1 + $0x170] sm:$0xff]   ;;  %v4014_v52 = vcombine.low %v66_v34, %v70_v35 }
  0x3c   :  { %2200 = vmatprep.subr.bf16.mxu1 %v4619_v0 }
  0x3e   :  { %1937 = vmatpush2.bf16.msra.mxu0 %v4575_v37  ;;  %v67_v37 = vld [vmem:[%s7134_s0 + $0x188] sm:$0xff] }
  0x3f   :  { %2201 = vmatpush2.bf16.msra.mxu1 %v4576_v38  ;;  %2434 = vmatprep.subr.bf16.mxu0 %v4619_v0  ;;  %v71_v38 = vld [vmem:[%s7134_s0 + $0x1a8] sm:$0xff] }
  0x40   :  { %2698 = vmatprep.subr.bf16.mxu1 %v4619_v0  ;;  %v4017_v43 = vcombine.high %v67_v37, %v71_v38 }
  0x41   :  { %1939 = vmatmul.mubr.bf16.vlgmr.msra.gmra.mxu0 %v3966_v42  ;;  %v4015_v42 = vcombine.high %v66_v34, %v70_v35  ;;  %v119_v34 = vld [vmem:[%s7134_s0 + $0x328] sm:$0xff] }
  0x42   :  { %2203 = vmatmul.mubr.bf16.vlgmr.msra.gmra.mxu1 %v3968_v44  ;;  %2435 = vmatpush1.bf16.msra.mxu0 %v4577_v45  ;;  %v4597_v44 = vld [vmem:[%s7133_s1 + $0x168] sm:$0xff]  }
  0x43   :  { %2699 = vmatpush1.bf16.msra.mxu1 %v4578_v46  ;;  %1946 = vmatprep.mubr.bf16.mxu0 %v3975_v47  ;;  %v4598_v45 = vld [vmem:[%s7133_s1 + $0x1e8] sm:$0xff]   ;;  %v74_v46 = vld [vmem:[%s7134_s0 + $0x1c0] sm:$0xff] }
  0x44   :  { %2210 = vmatprep.mubr.bf16.mxu1 %v3977_v48  ;;  %2436 = vmatprep.subr.bf16.mxu0 %v4619_v0  ;;  %v78_v47 = vld [vmem:[%s7134_s0 + $0x1e0] sm:$0xff] }
  0x45   :  { %2700 = vmatprep.subr.bf16.mxu1 %v4619_v0  ;;  %v4599_v48 = vld [vmem:[%s7133_s1 + $0x160] sm:$0xff]   ;;  %v4023_v54 = vcombine.high %v74_v46, %v78_v47  ;;  %v4022_v62 = vcombine.low %v74_v46, %v78_v47 }
  0x46   :  { %2437 = vmatpush1.bf16.msra.mxu0 %v4579_v50  ;;  %v79_v50 = vld [vmem:[%s7134_s0 + $0x1e8] sm:$0xff]  ;;  %v4608_v47 = vld [vmem:[%s7133_s1 + $0x1c0] sm:$0xff]  }
  0x47   :  { %2701 = vmatpush1.bf16.msra.mxu1 %v4580_v53  ;;  %2438 = vmatprep.subr.bf16.mxu0 %v4619_v0  ;;  %v4016_v53 = vcombine.low %v67_v37, %v71_v38 }
  0x48   :  { %2702 = vmatprep.subr.bf16.mxu1 %v4619_v0 }
  0x49   :  { %1947 = vmatmul.mubr.bf16.gmra.mxu0 %v3974_v55  ;;  %v4025_v55 = vcombine.high %v75_v49, %v79_v50 }
  0x4a   :  { %2211 = vmatmul.mubr.bf16.gmra.mxu1 %v3976_v56  ;;  %1954 = vmatprep.mubr.bf16.mxu0 %v3983_v57  ;;  %v4601_v56 = vld [vmem:[%s7133_s1 + $0x158] sm:$0xff]  }
  0x4b   :  { %2218 = vmatprep.mubr.bf16.mxu1 %v3985_v58  ;;  %2439 = vmatpush1.bf16.msra.mxu0 %v4581_v59  ;;  %v4602_v57 = vld [vmem:[%s7133_s1 + $0x1d8] sm:$0xff]   ;;  %v82_v58 = vld [vmem:[%s7134_s0 + $0x200] sm:$0xff] }
  0x4c   :  { %2703 = vmatpush1.bf16.msra.mxu1 %v4582_v60  ;;  %2440 = vmatprep.subr.bf16.mxu0 %v4619_v0  ;;  %v86_v59 = vld [vmem:[%s7134_s0 + $0x220] sm:$0xff]  ;;  %v83_v60 = vld [vmem:[%s7134_s0 + $0x208] sm:$0xff] }
  0x4d   :  { %2704 = vmatprep.subr.bf16.mxu1 %v4619_v0  ;;  %v4031_v1 = vcombine.high %v82_v58, %v86_v59  ;;  %v4033_v2 = vcombine.high %v83_v60, %v87_v61 }
  0x4f   :  { %2441 = vmatpush1.bf16.msra.mxu0 %v4583_v63  ;;  %v4024_v63 = vcombine.low %v75_v49, %v79_v50  ;;  %v134_v49 = vld [vmem:[%s7134_s0 + $0x3a0] sm:$0xff]  ;;  %v131_v50 = vld [vmem:[%s7134_s0 + $0x388] sm:$0xff] }
  0x50   :  { %2705 = vmatpush1.bf16.msra.mxu1 %v4584_v3  ;;  %2442 = vmatprep.subr.bf16.mxu0 %v4619_v0  ;;  %v4603_v3 = vld [vmem:[%s7133_s1 + $0x150] sm:$0xff]  }
  0x51   :  { %1955 = vmatmul.mubr.bf16.gmra.mxu0 %v3982_v4  ;;  %2706 = vmatprep.subr.bf16.mxu1 %v4619_v0  ;;  %v90_v4 = vld [vmem:[%s7134_s0 + $0x240] sm:$0xff] }
  0x52   :  { %2219 = vmatmul.mubr.bf16.gmra.mxu1 %v3984_v6  ;;  %1962 = vmatprep.mubr.bf16.mxu0 %v3991_v7  ;;  %v91_v6 = vld [vmem:[%s7134_s0 + $0x248] sm:$0xff] }
  0x53   :  { %2226 = vmatprep.mubr.bf16.mxu1 %v3993_v9  ;;  %2443 = vmatpush1.bf16.msra.mxu0 %v4585_v5  ;;  %v94_v5 = vld [vmem:[%s7134_s0 + $0x260] sm:$0xff]  ;;  %v95_v7 = vld [vmem:[%s7134_s0 + $0x268] sm:$0xff]  ;;  %v4032_v9 = vcombine.low %v83_v60, %v87_v61 }
  0x54   :  { %2707 = vmatpush1.bf16.msra.mxu1 %v4586_v8  ;;  %2444 = vmatprep.subr.bf16.mxu0 %v4619_v0  ;;  %v4030_v8 = vcombine.low %v82_v58, %v86_v59  ;;  %v4039_v10 = vcombine.high %v90_v4, %v94_v5  ;;  %v4041_v11 = vcombine.high %v91_v6, %v95_v7  ;;  %v139_v58 = vld [vmem:[%s7134_s0 + $0x3c8] sm:$0xff] }
  0x55   :  { %2708 = vmatprep.subr.bf16.mxu1 %v4619_v0  ;;  %v143_v59 = vld [vmem:[%s7134_s0 + $0x3e8] sm:$0xff] }
  0x57   :  { %2445 = vmatpush1.bf16.msra.mxu0 %v4587_v14  ;;  %v4604_v14 = vld [vmem:[%s7133_s1 + $0x1d0] sm:$0xff]  }
  0x58   :  { %2709 = vmatpush1.bf16.msra.mxu1 %v4588_v15  ;;  %2446 = vmatprep.subr.bf16.mxu0 %v4619_v0  ;;  %v99_v15 = vld [vmem:[%s7134_s0 + $0x288] sm:$0xff] }
  0x59   :  { %1963 = vmatmul.mubr.bf16.gmra.mxu0 %v3990_v16  ;;  %2710 = vmatprep.subr.bf16.mxu1 %v4619_v0  ;;  %v103_v16 = vld [vmem:[%s7134_s0 + $0x2a8] sm:$0xff] }
  0x5a   :  { %2227 = vmatmul.mubr.bf16.gmra.mxu1 %v3992_v17  ;;  %1970 = vmatprep.mubr.bf16.mxu0 %v3999_v18  ;;  %v4038_v17 = vcombine.low %v90_v4, %v94_v5  ;;  %v4040_v18 = vcombine.low %v91_v6, %v95_v7  ;;  %v4048_v26 = vcombine.low %v99_v15, %v103_v16  ;;  %v151_v4 = vld [vmem:[%s7134_s0 + $0x428] sm:$0xff] }
  0x5b   :  { %2234 = vmatprep.mubr.bf16.mxu1 %v4001_v19  ;;  %2447 = vmatpush1.bf16.msra.mxu0 %v4589_v20  ;;  %v4047_v19 = vcombine.high %v98_v12, %v102_v13  ;;  %v4049_v20 = vcombine.high %v99_v15, %v103_v16  ;;  %v4088_v6 = vcombine.low %v139_v58, %v143_v59  ;;  %v159_v12 = vld [vmem:[%s7134_s0 + $0x468] sm:$0xff] }
  0x5c   :  { %2711 = vmatpush1.bf16.msra.mxu1 %v4590_v21  ;;  %2448 = vmatprep.subr.bf16.mxu0 %v4619_v0  ;;  %v106_v21 = vld [vmem:[%s7134_s0 + $0x2c0] sm:$0xff] }
  0x5d   :  { %2712 = vmatprep.subr.bf16.mxu1 %v4619_v0  ;;  %v4054_v35 = vcombine.low %v106_v21, %v110_v22 }
  0x5f   :  { %2449 = vmatpush1.bf16.msra.mxu0 %v4591_v24  ;;  %v111_v24 = vld [vmem:[%s7134_s0 + $0x2e8] sm:$0xff] }
  0x60   :  { %2713 = vmatpush1.bf16.msra.mxu1 %v4592_v27  ;;  %2450 = vmatprep.subr.bf16.mxu0 %v4619_v0  ;;  %v4055_v27 = vcombine.high %v106_v21, %v110_v22 }
  0x61   :  { %1971 = vmatmul.mubr.bf16.gmra.mxu0 %v3998_v28  ;;  %2714 = vmatprep.subr.bf16.mxu1 %v4619_v0  ;;  %v4057_v28 = vcombine.high %v107_v23, %v111_v24 }
  0x62   :  { %2235 = vmatmul.mubr.bf16.gmra.mxu1 %v4000_v29  ;;  %1978 = vmatprep.mubr.bf16.mxu0 %v4007_v30  ;;  %v4605_v29 = vld [vmem:[%s7133_s1 + $0x148] sm:$0xff]  }
  0x63   :  { %2242 = vmatprep.mubr.bf16.mxu1 %v4009_v31  ;;  %2451 = vmatpush2.bf16.msra.mxu0 %v4593_v32  ;;  %v4606_v30 = vld [vmem:[%s7133_s1 + $0x1c8] sm:$0xff]   ;;  %v114_v31 = vld [vmem:[%s7134_s0 + $0x300] sm:$0xff] }
  0x64   :  { %2715 = vmatpush2.bf16.msra.mxu1 %v4594_v33  ;;  %2452 = vmatprep.subr.bf16.mxu0 %v4619_v0  ;;  %v118_v32 = vld [vmem:[%s7134_s0 + $0x320] sm:$0xff]  ;;  %v115_v33 = vld [vmem:[%s7134_s0 + $0x308] sm:$0xff] }
  0x65   :  { %2716 = vmatprep.subr.bf16.mxu1 %v4619_v0  ;;  %v4063_v37 = vcombine.high %v114_v31, %v118_v32  ;;  %v4065_v38 = vcombine.high %v115_v33, %v119_v34 }
  0x67   :  { %2453 = vmatpush2.bf16.msra.mxu0 %v4595_v36  ;;  %v4056_v36 = vcombine.low %v107_v23, %v111_v24 }
  0x68   :  { %2717 = vmatpush2.bf16.msra.mxu1 %v4596_v39  ;;  %2454 = vmatprep.subr.bf16.mxu0 %v4619_v0  ;;  %v122_v39 = vld [vmem:[%s7134_s0 + $0x340] sm:$0xff] }
  0x69   :  { %1979 = vmatmul.mubr.bf16.gmra.mxu0 %v4006_v40  ;;  %2718 = vmatprep.subr.bf16.mxu1 %v4619_v0  ;;  %v126_v40 = vld [vmem:[%s7134_s0 + $0x360] sm:$0xff] }
  0x6a   :  { %2243 = vmatmul.mubr.bf16.gmra.mxu1 %v4008_v41  ;;  %1986 = vmatprep.mubr.bf16.mxu0 %v4015_v42  ;;  %v123_v41 = vld [vmem:[%s7134_s0 + $0x348] sm:$0xff]  ;;  %v4607_v42 = vld [vmem:[%s7133_s1 + $0x140] sm:$0xff]  }
  0x6b   :  { %2250 = vmatprep.mubr.bf16.mxu1 %v4017_v43  ;;  %2455 = vmatpush2.bf16.msra.mxu0 %v4597_v44  ;;  %v4062_v43 = vcombine.low %v114_v31, %v118_v32  ;;  %v4064_v44 = vcombine.low %v115_v33, %v119_v34  ;;  %v178_v33 = vld [vmem:[%s7134_s0 + $0x500] sm:$0xff] }
  0x6c   :  { %2719 = vmatpush2.bf16.msra.mxu1 %v4598_v45  ;;  %2456 = vmatprep.subr.bf16.mxu0 %v4619_v0  ;;  %v4071_v45 = vcombine.high %v122_v39, %v126_v40  ;;  %v182_v34 = vld [vmem:[%s7134_s0 + $0x520] sm:$0xff] }
  0x6d   :  { %2720 = vmatprep.subr.bf16.mxu1 %v4619_v0 }
  0x6f   :  { %2457 = vmatpush2.bf16.msra.mxu0 %v4599_v48  ;;  %v130_v48 = vld [vmem:[%s7134_s0 + $0x380] sm:$0xff] }
  0x70   :  { %2721 = vmatpush2.bf16.msra.mxu1 %v4600_v51  ;;  %2458 = vmatprep.subr.bf16.mxu0 %v4619_v0  ;;  %v135_v51 = vld [vmem:[%s7134_s0 + $0x3a8] sm:$0xff]  ;;  %v4078_v60 = vcombine.low %v130_v48, %v134_v49 }
  0x71   :  { %1987 = vmatmul.mubr.bf16.gmra.mxu0 %v4014_v52  ;;  %2722 = vmatprep.subr.bf16.mxu1 %v4619_v0  ;;  %v4070_v52 = vcombine.low %v122_v39, %v126_v40  ;;  %v4080_v61 = vcombine.low %v131_v50, %v135_v51  ;;  %v4127_v39 = vcombine.high %v178_v33, %v182_v34 }
  0x72   :  { %2251 = vmatmul.mubr.bf16.gmra.mxu1 %v4016_v53  ;;  %1994 = vmatprep.mubr.bf16.mxu0 %v4023_v54  ;;  %v4079_v54 = vcombine.high %v130_v48, %v134_v49  ;;  %v194_v48 = vld [vmem:[%s7134_s0 + $0x580] sm:$0xff] }
  0x73   :  { %2258 = vmatprep.mubr.bf16.mxu1 %v4025_v55  ;;  %2459 = vmatpush2.bf16.msra.mxu0 %v4601_v56  ;;  %v4081_v55 = vcombine.high %v131_v50, %v135_v51  ;;  %v138_v56 = vld [vmem:[%s7134_s0 + $0x3c0] sm:$0xff]  ;;  %v195_v50 = vld [vmem:[%s7134_s0 + $0x588] sm:$0xff] }
  0x74   :  { %2723 = vmatpush2.bf16.msra.mxu1 %v4602_v57  ;;  %2460 = vmatprep.subr.bf16.mxu0 %v4619_v0  ;;  %v142_v57 = vld [vmem:[%s7134_s0 + $0x3e0] sm:$0xff]  ;;  %v199_v51 = vld [vmem:[%s7134_s0 + $0x5a8] sm:$0xff] }
  0x75   :  { %2724 = vmatprep.subr.bf16.mxu1 %v4619_v0  ;;  %v4086_v5 = vcombine.low %v138_v56, %v142_v57  ;;  %v198_v49 = vld [vmem:[%s7134_s0 + $0x5a0] sm:$0xff] }
  0x77   :  { %2461 = vmatpush2.bf16.msra.mxu0 %v4603_v3  ;;  %v147_v3 = vld [vmem:[%s7134_s0 + $0x408] sm:$0xff] }
  0x78   :  { %2462 = vmatprep.subr.bf16.mxu0 %v4619_v0  ;;  %2725 = vmatpush2.bf16.msra.mxu1 %v4604_v14  ;;  %v4096_v14 = vcombine.low %v147_v3, %v151_v4 }
  0x79   :  { %1995 = vmatmul.mubr.bf16.gmra.mxu0 %v4022_v62  ;;  %2726 = vmatprep.subr.bf16.mxu1 %v4619_v0  ;;  %v4087_v62 = vcombine.high %v138_v56, %v142_v57  ;;  %v202_v56 = vld [vmem:[%s7134_s0 + $0x5c0] sm:$0xff] }
  0x7a   :  { %2259 = vmatmul.mubr.bf16.gmra.mxu1 %v4024_v63  ;;  %2002 = vmatprep.mubr.bf16.mxu0 %v4031_v1  ;;  %v4089_v63 = vcombine.high %v139_v58, %v143_v59  ;;  %v146_v1 = vld [vmem:[%s7134_s0 + $0x400] sm:$0xff]  ;;  %v203_v58 = vld [vmem:[%s7134_s0 + $0x5c8] sm:$0xff] }
  0x7b   :  { %2266 = vmatprep.mubr.bf16.mxu1 %v4033_v2  ;;  %2463 = vmatpush2.bf16.msra.mxu0 %v4605_v29  ;;  %v150_v2 = vld [vmem:[%s7134_s0 + $0x420] sm:$0xff]  ;;  %v207_v59 = vld [vmem:[%s7134_s0 + $0x5e8] sm:$0xff] }
  0x7c   :  { %2727 = vmatpush2.bf16.msra.mxu1 %v4606_v30  ;;  %2464 = vmatprep.subr.bf16.mxu0 %v4619_v0  ;;  %v4095_v7 = vcombine.high %v146_v1, %v150_v2  ;;  %v4094_v13 = vcombine.low %v146_v1, %v150_v2  ;;  %v206_v57 = vld [vmem:[%s7134_s0 + $0x5e0] sm:$0xff] }
  0x7d   :  { %2728 = vmatprep.subr.bf16.mxu1 %v4619_v0  ;;  %v127_v0 = vld [vmem:[%s7134_s0 + $0x368] sm:$0xff]  ;;  %v210_v1 = vld [vmem:[%s7134_s0 + $0x600] sm:$0xff] }
  0x7e   :  { %v4073_v46 = vcombine.high %v123_v41, %v127_v0  ;;  %v4072_v53 = vcombine.low %v123_v41, %v127_v0  ;;  %v186_v41 = vld [vmem:[%s7134_s0 + $0x540] sm:$0xff] }
  0x7f   :  { %2465 = vmatpush2.bf16.msra.mxu0 %v4607_v42  ;;  %v190_v0 = vld [vmem:[%s7134_s0 + $0x560] sm:$0xff]  ;;  %v187_v42 = vld [vmem:[%s7134_s0 + $0x548] sm:$0xff] }
  0x80   :  { %2729 = vmatpush2.bf16.msra.mxu1 %v4608_v47  ;;  %v214_v2 = vld [vmem:[%s7134_s0 + $0x620] sm:$0xff] }
  0x81   :  { %2003 = vmatmul.mubr.bf16.gmra.mxu0 %v4030_v8  ;;  %v4097_v8 = vcombine.high %v147_v3, %v151_v4  ;;  %v211_v3 = vld [vmem:[%s7134_s0 + $0x608] sm:$0xff] }
  0x82   :  { %2267 = vmatmul.mubr.bf16.gmra.mxu1 %v4032_v9  ;;  %2010 = vmatprep.mubr.bf16.mxu0 %v4039_v10  ;;  %v154_v9 = vld [vmem:[%s7134_s0 + $0x440] sm:$0xff]  ;;  %v215_v4 = vld [vmem:[%s7134_s0 + $0x628] sm:$0xff] }
  0x83   :  { %2274 = vmatprep.mubr.bf16.mxu1 %v4041_v11  ;;  %v158_v10 = vld [vmem:[%s7134_s0 + $0x460] sm:$0xff]  ;;  %v155_v11 = vld [vmem:[%s7134_s0 + $0x448] sm:$0xff] }
  0x84   :  { %v4103_v15 = vcombine.high %v154_v9, %v158_v10  ;;  %v4105_v16 = vcombine.high %v155_v11, %v159_v12  ;;  %v4102_v21 = vcombine.low %v154_v9, %v158_v10  ;;  %v4104_v22 = vcombine.low %v155_v11, %v159_v12  ;;  %v218_v9 = vld [vmem:[%s7134_s0 + $0x640] sm:$0xff]  ;;  %v219_v11 = vld [vmem:[%s7134_s0 + $0x648] sm:$0xff] }
  0x85   :  { %v222_v10 = vld [vmem:[%s7134_s0 + $0x660] sm:$0xff]  ;;  %v223_v12 = vld [vmem:[%s7134_s0 + $0x668] sm:$0xff] }
  0x89   :  { %2011 = vmatmul.mubr.bf16.gmra.mxu0 %v4038_v17  ;;  %v162_v17 = vld [vmem:[%s7134_s0 + $0x480] sm:$0xff] }
  0x8a   :  { %2275 = vmatmul.mubr.bf16.gmra.mxu1 %v4040_v18  ;;  %2018 = vmatprep.mubr.bf16.mxu0 %v4047_v19  ;;  %v166_v18 = vld [vmem:[%s7134_s0 + $0x4a0] sm:$0xff]  ;;  %v163_v19 = vld [vmem:[%s7134_s0 + $0x488] sm:$0xff] }
  0x8b   :  { %2282 = vmatprep.mubr.bf16.mxu1 %v4049_v20  ;;  %v167_v20 = vld [vmem:[%s7134_s0 + $0x4a8] sm:$0xff]  ;;  %v4111_v23 = vcombine.high %v162_v17, %v166_v18  ;;  %v4110_v29 = vcombine.low %v162_v17, %v166_v18 }
  0x8c   :  { %v4113_v24 = vcombine.high %v163_v19, %v167_v20  ;;  %v4112_v30 = vcombine.low %v163_v19, %v167_v20 }
  0x91   :  { %2019 = vmatmul.mubr.bf16.gmra.mxu0 %v4046_v25  ;;  %v170_v25 = vld [vmem:[%s7134_s0 + $0x4c0] sm:$0xff] }
  0x92   :  { %2283 = vmatmul.mubr.bf16.gmra.mxu1 %v4048_v26  ;;  %2026 = vmatprep.mubr.bf16.mxu0 %v4055_v27  ;;  %v174_v26 = vld [vmem:[%s7134_s0 + $0x4e0] sm:$0xff]  ;;  %v171_v27 = vld [vmem:[%s7134_s0 + $0x4c8] sm:$0xff] }
  0x93   :  { %2290 = vmatprep.mubr.bf16.mxu1 %v4057_v28  ;;  %v175_v28 = vld [vmem:[%s7134_s0 + $0x4e8] sm:$0xff]  ;;  %v4119_v31 = vcombine.high %v170_v25, %v174_v26 }
  0x94   :  { %v4121_v32 = vcombine.high %v171_v27, %v175_v28 }
  0x99   :  { %2027 = vmatmul.mubr.bf16.gmra.mxu0 %v4054_v35  ;;  %v179_v35 = vld [vmem:[%s7134_s0 + $0x508] sm:$0xff] }
  0x9a   :  { %2291 = vmatmul.mubr.bf16.gmra.mxu1 %v4056_v36  ;;  %2034 = vmatprep.mubr.bf16.mxu0 %v4063_v37  ;;  %v183_v36 = vld [vmem:[%s7134_s0 + $0x528] sm:$0xff]  ;;  %v4118_v37 = vcombine.low %v170_v25, %v174_v26 }
  0x9b   :  { %2298 = vmatprep.mubr.bf16.mxu1 %v4065_v38  ;;  %v4120_v38 = vcombine.low %v171_v27, %v175_v28  ;;  %v4129_v40 = vcombine.high %v179_v35, %v183_v36  ;;  %v231_v25 = vld [vmem:[%s7134_s0 + $0x6a8] sm:$0xff]  ;;  %v4166_v27 = vcombine.low %v218_v9, %v222_v10 }
  0xa1   :  { %2035 = vmatmul.mubr.bf16.gmra.mxu0 %v4062_v43  ;;  %v191_v43 = vld [vmem:[%s7134_s0 + $0x568] sm:$0xff] }
  0xa2   :  { %2299 = vmatmul.mubr.bf16.gmra.mxu1 %v4064_v44  ;;  %2042 = vmatprep.mubr.bf16.mxu0 %v4071_v45  ;;  %v4126_v44 = vcombine.low %v178_v33, %v182_v34  ;;  %v4128_v45 = vcombine.low %v179_v35, %v183_v36  ;;  %v4137_v47 = vcombine.high %v187_v42, %v191_v43 }
  0xa3   :  { %2306 = vmatprep.mubr.bf16.mxu1 %v4073_v46  ;;  %v4135_v46 = vcombine.high %v186_v41, %v190_v0 }
  0xa9   :  { %2043 = vmatmul.mubr.bf16.gmra.mxu0 %v4070_v52  ;;  %v4134_v52 = vcombine.low %v186_v41, %v190_v0  ;;  %v235_v0 = vld [vmem:[%s7134_s0 + $0x6c8] sm:$0xff] }
  0xaa   :  { %2307 = vmatmul.mubr.bf16.gmra.mxu1 %v4072_v53  ;;  %2050 = vmatprep.mubr.bf16.mxu0 %v4079_v54  ;;  %v4136_v53 = vcombine.low %v187_v42, %v191_v43  ;;  %v4143_v54 = vcombine.high %v194_v48, %v198_v49  ;;  %v239_v42 = vld [vmem:[%s7134_s0 + $0x6e8] sm:$0xff] }
  0xab   :  { %2314 = vmatprep.mubr.bf16.mxu1 %v4081_v55  ;;  %v4145_v55 = vcombine.high %v195_v50, %v199_v51 }
  0xb1   :  { %2051 = vmatmul.mubr.bf16.gmra.mxu0 %v4078_v60  ;;  %v4142_v60 = vcombine.low %v194_v48, %v198_v49 }
  0xb2   :  { %2315 = vmatmul.mubr.bf16.gmra.mxu1 %v4080_v61  ;;  %2058 = vmatprep.mubr.bf16.mxu0 %v4087_v62  ;;  %v4144_v61 = vcombine.low %v195_v50, %v199_v51  ;;  %v4151_v62 = vcombine.high %v202_v56, %v206_v57  ;;  %v4185_v50 = vcombine.high %v235_v0, %v239_v42 }
  0xb3   :  { %2322 = vmatprep.mubr.bf16.mxu1 %v4089_v63  ;;  %v4153_v63 = vcombine.high %v203_v58, %v207_v59 }
  0xb9   :  { %2059 = vmatmul.mubr.bf16.gmra.mxu0 %v4086_v5  ;;  %v4150_v5 = vcombine.low %v202_v56, %v206_v57  ;;  %v242_v56 = vld [vmem:[%s7134_s0 + $0x700] sm:$0xff] }
  0xba   :  { %2323 = vmatmul.mubr.bf16.gmra.mxu1 %v4088_v6  ;;  %2066 = vmatprep.mubr.bf16.mxu0 %v4095_v7  ;;  %v4152_v6 = vcombine.low %v203_v58, %v207_v59  ;;  %v4159_v7 = vcombine.high %v210_v1, %v214_v2  ;;  %v243_v58 = vld [vmem:[%s7134_s0 + $0x708] sm:$0xff] }
  0xbb   :  { %2330 = vmatprep.mubr.bf16.mxu1 %v4097_v8  ;;  %v4161_v8 = vcombine.high %v211_v3, %v215_v4 }
  0xc1   :  { %2067 = vmatmul.mubr.bf16.gmra.mxu0 %v4094_v13  ;;  %v4158_v13 = vcombine.low %v210_v1, %v214_v2 }
  0xc2   :  { %2331 = vmatmul.mubr.bf16.gmra.mxu1 %v4096_v14  ;;  %2074 = vmatprep.mubr.bf16.mxu0 %v4103_v15  ;;  %v4160_v14 = vcombine.low %v211_v3, %v215_v4  ;;  %v4167_v15 = vcombine.high %v218_v9, %v222_v10  ;;  %v4193_v3 = vcombine.high %v243_v58, %v243_v58  ;;  %v20_v9 = vld [vmem:[%s7134_s0 + $0x10] sm:$0xff] }
  0xc3   :  { %2338 = vmatprep.mubr.bf16.mxu1 %v4105_v16  ;;  %v4169_v16 = vcombine.high %v219_v11, %v223_v12  ;;  %v24_v10 = vld [vmem:[%s7134_s0 + $0x30] sm:$0xff] }
  0xc9   :  { %2075 = vmatmul.mubr.bf16.gmra.mxu0 %v4102_v21  ;;  %v226_v21 = vld [vmem:[%s7134_s0 + $0x680] sm:$0xff] }
  0xca   :  { %2339 = vmatmul.mubr.bf16.gmra.mxu1 %v4104_v22  ;;  %2082 = vmatprep.mubr.bf16.mxu0 %v4111_v23  ;;  %v230_v22 = vld [vmem:[%s7134_s0 + $0x6a0] sm:$0xff] }
  0xcb   :  { %2346 = vmatprep.mubr.bf16.mxu1 %v4113_v24  ;;  %v227_v24 = vld [vmem:[%s7134_s0 + $0x688] sm:$0xff] }
  0xcc   :  { %v4177_v33 = vcombine.high %v227_v24, %v231_v25 }
  0xd1   :  { %2083 = vmatmul.mubr.bf16.gmra.mxu0 %v4110_v29  ;;  %v4168_v29 = vcombine.low %v219_v11, %v223_v12  ;;  %v21_v12 = vld [vmem:[%s7134_s0 + $0x18] sm:$0xff] }
  0xd2   :  { %2347 = vmatmul.mubr.bf16.gmra.mxu1 %v4112_v30  ;;  %2090 = vmatprep.mubr.bf16.mxu0 %v4119_v31  ;;  %v4175_v30 = vcombine.high %v226_v21, %v230_v22 }
  0xd3   :  { %2354 = vmatprep.mubr.bf16.mxu1 %v4121_v32 }
  0xd9   :  { %2091 = vmatmul.mubr.bf16.gmra.mxu0 %v4118_v37 }
  0xda   :  { %2355 = vmatmul.mubr.bf16.gmra.mxu1 %v4120_v38  ;;  %2098 = vmatprep.mubr.bf16.mxu0 %v4127_v39  ;;  %v234_v39 = vld [vmem:[%s7134_s0 + $0x6c0] sm:$0xff] }
  0xdb   :  { %2362 = vmatprep.mubr.bf16.mxu1 %v4129_v40  ;;  %v238_v40 = vld [vmem:[%s7134_s0 + $0x6e0] sm:$0xff] }
  0xe1   :  { %2099 = vmatmul.mubr.bf16.gmra.mxu0 %v4126_v44  ;;  %v4174_v44 = vcombine.low %v226_v21, %v230_v22 }
  0xe2   :  { %2363 = vmatmul.mubr.bf16.gmra.mxu1 %v4128_v45  ;;  %2106 = vmatprep.mubr.bf16.mxu0 %v4135_v46  ;;  %v4176_v46 = vcombine.low %v227_v24, %v231_v25 }
  0xe3   :  { %2370 = vmatprep.mubr.bf16.mxu1 %v4137_v47  ;;  %v4183_v47 = vcombine.high %v234_v39, %v238_v40 }
  0xe9   :  { %2107 = vmatmul.mubr.bf16.gmra.mxu0 %v4134_v52 }
  0xea   :  { %2371 = vmatmul.mubr.bf16.gmra.mxu1 %v4136_v53  ;;  %2114 = vmatprep.mubr.bf16.mxu0 %v4143_v54 }
  0xeb   :  { %2378 = vmatprep.mubr.bf16.mxu1 %v4145_v55 }
  0xf1   :  { %2115 = vmatmul.mubr.bf16.gmra.mxu0 %v4142_v60  ;;  %v4182_v60 = vcombine.low %v234_v39, %v238_v40 }
  0xf2   :  { %2379 = vmatmul.mubr.bf16.gmra.mxu1 %v4144_v61  ;;  %2122 = vmatprep.mubr.bf16.mxu0 %v4151_v62  ;;  %v4184_v62 = vcombine.low %v235_v0, %v239_v42 }
  0xf3   :  { %2386 = vmatprep.mubr.bf16.mxu1 %v4153_v63  ;;  %v4191_v63 = vcombine.high %v242_v56, %v242_v56 }
  0xf9   :  { %2123 = vmatmul.mubr.bf16.gmra.mxu0 %v4150_v5 }
  0xfa   :  { %2387 = vmatmul.mubr.bf16.gmra.mxu1 %v4152_v6  ;;  %2130 = vmatprep.mubr.bf16.mxu0 %v4159_v7 }
  0xfb   :  { %2394 = vmatprep.mubr.bf16.mxu1 %v4161_v8 }
 0x101   :  { %v1940_v17 = vpop.f32.mrf.mxu0  ;;  %2131 = vmatmul.mubr.bf16.gmra.mxu0 %v4158_v13  ;;  %v25_v13 = vld [vmem:[%s7134_s0 + $0x38] sm:$0xff] }
 0x102   :  { %v2204_v18 = vpop.f32.mrf.mxu1  ;;  %2395 = vmatmul.mubr.bf16.gmra.mxu1 %v4160_v14  ;;  %2138 = vmatprep.mubr.bf16.mxu0 %v4167_v15  ;;  %v4190_v15 = vcombine.low %v242_v56, %v242_v56  ;;  %v3973_v22 = vcombine.high %v21_v12, %v25_v13 }
 0x103   :  { %v5225_v19 = vadd.f32 %v2204_v18, %v1940_v17  ;;  %v1942_v20 = vpop.f32.mrf.mxu0  ;;  %2402 = vmatprep.mubr.bf16.mxu1 %v4169_v16  ;;  %v4192_v17 = vcombine.low %v243_v58, %v243_v58  ;;  %v3971_v18 = vcombine.high %v20_v9, %v24_v10 }
 0x104   :  { %v2206_v23 = vpop.f32.mrf.mxu1 }
 0x105   :  { %v1943_v26 = vpop.f32.mrf.mxu0 }
 0x106   :  { %v2207_v28 = vpop.f32.mrf.mxu1 }
 0x107   :  { %v5239_v31 = vadd.f32 %v2207_v28, %v1943_v26  ;;  %v1945_v32 = vpop.f32.mrf.mxu0  ;;  %v28_v28 = vld [vmem:[%s7134_s0 + $0x50] sm:$0xff] }
 0x108   :  { %v2209_v34 = vpop.f32.mrf.mxu1  ;;  %v29_v32 = vld [vmem:[%s7134_s0 + $0x58] sm:$0xff] }
 0x109   :  { %v1948_v35 = vpop.f32.mrf.mxu0  ;;  %2139 = vmatmul.mubr.bf16.gmra.mxu0 %v4166_v27 }
 0x10a   :  { %v2212_v36 = vpop.f32.mrf.mxu1  ;;  %2403 = vmatmul.mubr.bf16.gmra.mxu1 %v4168_v29  ;;  %2146 = vmatprep.mubr.bf16.mxu0 %v4175_v30  ;;  %v32_v29 = vld [vmem:[%s7134_s0 + $0x70] sm:$0xff] }
 0x10b   :  { %v5241_v37 = vadd.f32 %v2212_v36, %v1948_v35  ;;  %v1950_v38 = vpop.f32.mrf.mxu0  ;;  %2410 = vmatprep.mubr.bf16.mxu1 %v4177_v33  ;;  %v33_v33 = vld [vmem:[%s7134_s0 + $0x78] sm:$0xff]  ;;  %v3970_v35 = vcombine.low %v20_v9, %v24_v10  ;;  %v3979_v39 = vcombine.high %v28_v28, %v32_v29 }
 0x10c   :  { %v2214_v41 = vpop.f32.mrf.mxu1  ;;  %v3972_v38 = vcombine.low %v21_v12, %v25_v13  ;;  %v3981_v0 = vcombine.high %v29_v32, %v33_v33  ;;  %v45_v9 = vld [vmem:[%s7134_s0 + $0xd8] sm:$0xff] }
 0x10d   :  { %v1951_v43 = vpop.f32.mrf.mxu0  ;;  %v49_v10 = vld [vmem:[%s7134_s0 + $0xf8] sm:$0xff] }
 0x10e   :  { %v2215_v45 = vpop.f32.mrf.mxu1 }
 0x10f   :  { %v5255_v48 = vadd.f32 %v2215_v45, %v1951_v43  ;;  %v1953_v49 = vpop.f32.mrf.mxu0 }
 0x110   :  { %v2217_v51 = vpop.f32.mrf.mxu1  ;;  %v40_v49 = vld [vmem:[%s7134_s0 + $0xb0] sm:$0xff] }
 0x111   :  { %v1956_v52 = vpop.f32.mrf.mxu0  ;;  %2147 = vmatmul.mubr.bf16.gmra.mxu0 %v4174_v44  ;;  %v37_v51 = vld [vmem:[%s7134_s0 + $0x98] sm:$0xff] }
 0x112   :  { %v2220_v53 = vpop.f32.mrf.mxu1  ;;  %2411 = vmatmul.mubr.bf16.gmra.mxu1 %v4176_v46  ;;  %2154 = vmatprep.mubr.bf16.mxu0 %v4183_v47  ;;  %v36_v47 = vld [vmem:[%s7134_s0 + $0x90] sm:$0xff] }
 0x113   :  { %v5257_v54 = vadd.f32 %v2220_v53, %v1956_v52  ;;  %v1958_v55 = vpop.f32.mrf.mxu0  ;;  %2418 = vmatprep.mubr.bf16.mxu1 %v4185_v50  ;;  %v41_v52 = vld [vmem:[%s7134_s0 + $0xb8] sm:$0xff]  ;;  %v3987_v58 = vcombine.high %v36_v47, %v40_v49  ;;  %v3986_v12 = vcombine.low %v36_v47, %v40_v49  ;;  %v60_v49 = vld [vmem:[%s7134_s0 + $0x150] sm:$0xff] }
 0x114   :  { %v2222_v57 = vpop.f32.mrf.mxu1  ;;  %v3978_v55 = vcombine.low %v28_v28, %v32_v29  ;;  %v56_v28 = vld [vmem:[%s7134_s0 + $0x130] sm:$0xff] }
 0x115   :  { %v1959_v59 = vpop.f32.mrf.mxu0  ;;  %v3980_v57 = vcombine.low %v29_v32, %v33_v33  ;;  %v57_v32 = vld [vmem:[%s7134_s0 + $0x138] sm:$0xff] }
 0x116   :  { %v2223_v61 = vpop.f32.mrf.mxu1 }
 0x117   :  { %v5265_v1 = vadd.f32 %v2223_v61, %v1959_v59  ;;  %v1961_v2 = vpop.f32.mrf.mxu0  ;;  %v3989_v61 = vcombine.high %v37_v51, %v41_v52 }
 0x118   :  { %v2225_v4 = vpop.f32.mrf.mxu1 }
 0x119   :  { %v1964_v5 = vpop.f32.mrf.mxu0  ;;  %2155 = vmatmul.mubr.bf16.gmra.mxu0 %v4182_v60 }
 0x11a   :  { %v2228_v6 = vpop.f32.mrf.mxu1  ;;  %2419 = vmatmul.mubr.bf16.gmra.mxu1 %v4184_v62  ;;  %2162 = vmatprep.mubr.bf16.mxu0 %v4191_v63 }
 0x11b   :  { %v5267_v7 = vadd.f32 %v2228_v6, %v1964_v5  ;;  %v1966_v8 = vpop.f32.mrf.mxu0  ;;  %2426 = vmatprep.mubr.bf16.mxu1 %v4193_v3  ;;  %v44_v5 = vld [vmem:[%s7134_s0 + $0xd0] sm:$0xff] }
 0x11c   :  { %v2230_v11 = vpop.f32.mrf.mxu1  ;;  %v48_v6 = vld [vmem:[%s7134_s0 + $0xf0] sm:$0xff] }
 0x11d   :  { %v1967_v14 = vpop.f32.mrf.mxu0 }
 0x11e   :  { %v2231_v16 = vpop.f32.mrf.mxu1 }
 0x11f   :  { %v5281_v20 = vadd.f32 %v2231_v16, %v1967_v14  ;;  %v1969_v21 = vpop.f32.mrf.mxu0  ;;  %v3988_v14 = vcombine.low %v37_v51, %v41_v52  ;;  %v61_v52 = vld [vmem:[%s7134_s0 + $0x158] sm:$0xff] }
 0x120   :  { %v2233_v23 = vpop.f32.mrf.mxu1 }
 0x121   :  { %v1972_v24 = vpop.f32.mrf.mxu0  ;;  %2163 = vmatmul.mubr.bf16.gmra.mxu0 %v4190_v15  ;;  %v3995_v15 = vcombine.high %v44_v5, %v48_v6 }
 0x122   :  { %v2236_v25 = vpop.f32.mrf.mxu1  ;;  %2427 = vmatmul.mubr.bf16.gmra.mxu1 %v4192_v17  ;;  %2466 = vmatprep.mubr.bf16.mxu0 %v3971_v18  ;;  %v3997_v18 = vcombine.high %v45_v9, %v49_v10 }
 0x123   :  { %v5283_v26 = vadd.f32 %v2236_v25, %v1972_v24  ;;  %v1974_v27 = vpop.f32.mrf.mxu0  ;;  %2730 = vmatprep.mubr.bf16.mxu1 %v3973_v22 }
 0x124   :  { %v2238_v30 = vpop.f32.mrf.mxu1  ;;  %v52_v27 = vld [vmem:[%s7134_s0 + $0x110] sm:$0xff] }
 0x125   :  { %v1975_v34 = vpop.f32.mrf.mxu0  ;;  %v53_v30 = vld [vmem:[%s7134_s0 + $0x118] sm:$0xff] }
 0x126   :  { %v2239_v36 = vpop.f32.mrf.mxu1 }
 0x127   :  { %v5297_v40 = vadd.f32 %v2239_v36, %v1975_v34  ;;  %v1977_v41 = vpop.f32.mrf.mxu0  ;;  %v3994_v34 = vcombine.low %v44_v5, %v48_v6  ;;  %v3996_v36 = vcombine.low %v45_v9, %v49_v10  ;;  %v68_v9 = vld [vmem:[%s7134_s0 + $0x190] sm:$0xff] }
 0x128   :  { %v2241_v42 = vpop.f32.mrf.mxu1  ;;  %v72_v10 = vld [vmem:[%s7134_s0 + $0x1b0] sm:$0xff] }
 0x129   :  { %v1980_v43 = vpop.f32.mrf.mxu0  ;;  %2467 = vmatmul.mubr.bf16.vlgmr.msra.gmra.mxu0 %v3970_v35 }
 0x12a   :  { %v2244_v44 = vpop.f32.mrf.mxu1  ;;  %2731 = vmatmul.mubr.bf16.vlgmr.msra.gmra.mxu1 %v3972_v38  ;;  %2474 = vmatprep.mubr.bf16.mxu0 %v3979_v39  ;;  %v4003_v38 = vcombine.high %v52_v27, %v56_v28 }
 0x12b   :  { %v5299_v45 = vadd.f32 %v2244_v44, %v1980_v43  ;;  %v1982_v46 = vpop.f32.mrf.mxu0  ;;  %2738 = vmatprep.mubr.bf16.mxu1 %v3981_v0  ;;  %v4005_v0 = vcombine.high %v53_v30, %v57_v32 }
 0x12c   :  { %v2246_v50 = vpop.f32.mrf.mxu1 }
 0x12d   :  { %v1983_v53 = vpop.f32.mrf.mxu0  ;;  %v64_v50 = vld [vmem:[%s7134_s0 + $0x170] sm:$0xff] }
 0x12e   :  { %v2247_v56 = vpop.f32.mrf.mxu1 }
 0x12f   :  { %v5313_v59 = vadd.f32 %v2247_v56, %v1983_v53  ;;  %v1985_v60 = vpop.f32.mrf.mxu0  ;;  %v65_v53 = vld [vmem:[%s7134_s0 + $0x178] sm:$0xff]  ;;  %v4002_v56 = vcombine.low %v52_v27, %v56_v28 }
 0x130   :  { %v2249_v62 = vpop.f32.mrf.mxu1  ;;  %v4011_v60 = vcombine.high %v60_v49, %v64_v50 }
 0x131   :  { %v1988_v63 = vpop.f32.mrf.mxu0  ;;  %2475 = vmatmul.mubr.bf16.gmra.mxu0 %v3978_v55 }
 0x132   :  { %v2252_v2 = vpop.f32.mrf.mxu1  ;;  %2739 = vmatmul.mubr.bf16.gmra.mxu1 %v3980_v57  ;;  %2482 = vmatprep.mubr.bf16.mxu0 %v3987_v58  ;;  %v4004_v58 = vcombine.low %v53_v30, %v57_v32 }
 0x133   :  { %v5315_v3 = vadd.f32 %v2252_v2, %v1988_v63  ;;  %v1990_v4 = vpop.f32.mrf.mxu0  ;;  %2746 = vmatprep.mubr.bf16.mxu1 %v3989_v61  ;;  %v4013_v63 = vcombine.high %v61_v52, %v65_v53 }
 0x134   :  { %v2254_v8 = vpop.f32.mrf.mxu1 }
 0x135   :  { %v1991_v11 = vpop.f32.mrf.mxu0 }
 0x136   :  { %v2255_v13 = vpop.f32.mrf.mxu1 }
 0x137   :  { %v5329_v16 = vadd.f32 %v2255_v13, %v1991_v11  ;;  %v1993_v17 = vpop.f32.mrf.mxu0  ;;  %v73_v13 = vld [vmem:[%s7134_s0 + $0x1b8] sm:$0xff] }
 0x138   :  { %v2257_v21 = vpop.f32.mrf.mxu1 }
 0x139   :  { %v1996_v22 = vpop.f32.mrf.mxu0  ;;  %2483 = vmatmul.mubr.bf16.gmra.mxu0 %v3986_v12  ;;  %v69_v12 = vld [vmem:[%s7134_s0 + $0x198] sm:$0xff]  ;;  %v4019_v21 = vcombine.high %v68_v9, %v72_v10 }
 0x13a   :  { %v2260_v23 = vpop.f32.mrf.mxu1  ;;  %2747 = vmatmul.mubr.bf16.gmra.mxu1 %v3988_v14  ;;  %2490 = vmatprep.mubr.bf16.mxu0 %v3995_v15  ;;  %v4010_v15 = vcombine.low %v60_v49, %v64_v50 }
 0x13b   :  { %v5331_v24 = vadd.f32 %v2260_v23, %v1996_v22  ;;  %v1998_v25 = vpop.f32.mrf.mxu0  ;;  %2754 = vmatprep.mubr.bf16.mxu1 %v3997_v18  ;;  %v4012_v18 = vcombine.low %v61_v52, %v65_v53 }
 0x13c   :  { %v2262_v29 = vpop.f32.mrf.mxu1  ;;  %v4021_v25 = vcombine.high %v69_v12, %v73_v13 }
 0x13d   :  { %v1999_v33 = vpop.f32.mrf.mxu0 }
 0x13e   :  { %v2263_v35 = vpop.f32.mrf.mxu1 }
 0x13f   :  { %v5345_v39 = vadd.f32 %v2263_v35, %v1999_v33  ;;  %v2001_v41 = vpop.f32.mrf.mxu0  ;;  %v76_v33 = vld [vmem:[%s7134_s0 + $0x1d0] sm:$0xff] }
 0x140   :  { %v2265_v42 = vpop.f32.mrf.mxu1 }
 0x141   :  { %v2004_v43 = vpop.f32.mrf.mxu0  ;;  %2491 = vmatmul.mubr.bf16.gmra.mxu0 %v3994_v34  ;;  %v80_v34 = vld [vmem:[%s7134_s0 + $0x1f0] sm:$0xff] }
 0x142   :  { %v2268_v44 = vpop.f32.mrf.mxu1  ;;  %2755 = vmatmul.mubr.bf16.gmra.mxu1 %v3996_v36  ;;  %2498 = vmatprep.mubr.bf16.mxu0 %v4003_v38  ;;  %v77_v36 = vld [vmem:[%s7134_s0 + $0x1d8] sm:$0xff] }
 0x143   :  { %v5347_v46 = vadd.f32 %v2268_v44, %v2004_v43  ;;  %v2006_v47 = vpop.f32.mrf.mxu0  ;;  %2762 = vmatprep.mubr.bf16.mxu1 %v4005_v0  ;;  %v81_v38 = vld [vmem:[%s7134_s0 + $0x1f8] sm:$0xff]  ;;  %v4018_v0 = vcombine.low %v68_v9, %v72_v10  ;;  %v4020_v43 = vcombine.low %v69_v12, %v73_v13  ;;  %v4027_v44 = vcombine.high %v76_v33, %v80_v34 }
 0x144   :  { %v2270_v51 = vpop.f32.mrf.mxu1  ;;  %v4029_v50 = vcombine.high %v77_v36, %v81_v38 }
 0x145   :  { %v2007_v55 = vpop.f32.mrf.mxu0 }
 0x146   :  { %v2271_v57 = vpop.f32.mrf.mxu1 }
 0x147   :  { %v5361_v61 = vadd.f32 %v2271_v57, %v2007_v55  ;;  %v2009_v62 = vpop.f32.mrf.mxu0  ;;  %v84_v57 = vld [vmem:[%s7134_s0 + $0x210] sm:$0xff] }
 0x148   :  { %v2273_v2 = vpop.f32.mrf.mxu1  ;;  %v85_v62 = vld [vmem:[%s7134_s0 + $0x218] sm:$0xff] }
 0x149   :  { %v2012_v4 = vpop.f32.mrf.mxu0  ;;  %2499 = vmatmul.mubr.bf16.gmra.mxu0 %v4002_v56 }
 0x14a   :  { %v2276_v5 = vpop.f32.mrf.mxu1  ;;  %2763 = vmatmul.mubr.bf16.gmra.mxu1 %v4004_v58  ;;  %2506 = vmatprep.mubr.bf16.mxu0 %v4011_v60  ;;  %v88_v58 = vld [vmem:[%s7134_s0 + $0x230] sm:$0xff] }
 0x14b   :  { %v5363_v6 = vadd.f32 %v2276_v5, %v2012_v4  ;;  %v2014_v8 = vpop.f32.mrf.mxu0  ;;  %2770 = vmatprep.mubr.bf16.mxu1 %v4013_v63  ;;  %v89_v63 = vld [vmem:[%s7134_s0 + $0x238] sm:$0xff]  ;;  %v4026_v4 = vcombine.low %v76_v33, %v80_v34  ;;  %v4035_v9 = vcombine.high %v84_v57, %v88_v58 }
 0x14c   :  { %v2278_v11 = vpop.f32.mrf.mxu1  ;;  %v4028_v8 = vcombine.low %v77_v36, %v81_v38  ;;  %v4037_v12 = vcombine.high %v85_v62, %v89_v63  ;;  %v4036_v34 = vcombine.low %v85_v62, %v89_v63 }
 0x14d   :  { %v2015_v14 = vpop.f32.mrf.mxu0 }
 0x14e   :  { %v2279_v17 = vpop.f32.mrf.mxu1 }
 0x14f   :  { %v5377_v22 = vadd.f32 %v2279_v17, %v2015_v14  ;;  %v2017_v23 = vpop.f32.mrf.mxu0 }
 0x150   :  { %v2281_v27 = vpop.f32.mrf.mxu1  ;;  %v96_v23 = vld [vmem:[%s7134_s0 + $0x270] sm:$0xff] }
 0x151   :  { %v2020_v28 = vpop.f32.mrf.mxu0  ;;  %2507 = vmatmul.mubr.bf16.gmra.mxu0 %v4010_v15  ;;  %v93_v27 = vld [vmem:[%s7134_s0 + $0x258] sm:$0xff] }
 0x152   :  { %v2284_v29 = vpop.f32.mrf.mxu1  ;;  %2771 = vmatmul.mubr.bf16.gmra.mxu1 %v4012_v18  ;;  %2514 = vmatprep.mubr.bf16.mxu0 %v4019_v21  ;;  %v92_v21 = vld [vmem:[%s7134_s0 + $0x250] sm:$0xff] }
 0x153   :  { %v5379_v30 = vadd.f32 %v2284_v29, %v2020_v28  ;;  %v2022_v32 = vpop.f32.mrf.mxu0  ;;  %2778 = vmatprep.mubr.bf16.mxu1 %v4021_v25  ;;  %v97_v28 = vld [vmem:[%s7134_s0 + $0x278] sm:$0xff] }
 0x154   :  { %v2286_v35 = vpop.f32.mrf.mxu1  ;;  %v4034_v32 = vcombine.low %v84_v57, %v88_v58  ;;  %v4042_v58 = vcombine.low %v92_v21, %v96_v23  ;;  %v4044_v62 = vcombine.low %v93_v27, %v97_v28 }
 0x155   :  { %v2023_v41 = vpop.f32.mrf.mxu0  ;;  %v4043_v35 = vcombine.high %v92_v21, %v96_v23  ;;  %v109_v21 = vld [vmem:[%s7134_s0 + $0x2d8] sm:$0xff] }
 0x156   :  { %v2287_v42 = vpop.f32.mrf.mxu1  ;;  %v113_v23 = vld [vmem:[%s7134_s0 + $0x2f8] sm:$0xff] }
 0x157   :  { %v5393_v47 = vadd.f32 %v2287_v42, %v2023_v41  ;;  %v2025_v49 = vpop.f32.mrf.mxu0  ;;  %v4045_v41 = vcombine.high %v93_v27, %v97_v28 }
 0x158   :  { %v2289_v51 = vpop.f32.mrf.mxu1 }
 0x159   :  { %v2028_v52 = vpop.f32.mrf.mxu0  ;;  %2515 = vmatmul.mubr.bf16.gmra.mxu0 %v4018_v0  ;;  %v104_v51 = vld [vmem:[%s7134_s0 + $0x2b0] sm:$0xff] }
 0x15a   :  { %v2292_v53 = vpop.f32.mrf.mxu1  ;;  %2779 = vmatmul.mubr.bf16.gmra.mxu1 %v4020_v43  ;;  %2522 = vmatprep.mubr.bf16.mxu0 %v4027_v44 }
 0x15b   :  { %v5395_v55 = vadd.f32 %v2292_v53, %v2028_v52  ;;  %v2030_v56 = vpop.f32.mrf.mxu0  ;;  %2786 = vmatprep.mubr.bf16.mxu1 %v4029_v50  ;;  %v100_v50 = vld [vmem:[%s7134_s0 + $0x290] sm:$0xff]  ;;  %v101_v53 = vld [vmem:[%s7134_s0 + $0x298] sm:$0xff] }
 0x15c   :  { %v2294_v60 = vpop.f32.mrf.mxu1  ;;  %v105_v56 = vld [vmem:[%s7134_s0 + $0x2b8] sm:$0xff]  ;;  %v4051_v63 = vcombine.high %v100_v50, %v104_v51  ;;  %v4050_v27 = vcombine.low %v100_v50, %v104_v51  ;;  %v120_v50 = vld [vmem:[%s7134_s0 + $0x330] sm:$0xff] }
 0x15d   :  { %v2031_v2 = vpop.f32.mrf.mxu0 }
 0x15e   :  { %v2295_v5 = vpop.f32.mrf.mxu1 }
 0x15f   :  { %v5409_v10 = vadd.f32 %v2295_v5, %v2031_v2  ;;  %v2033_v11 = vpop.f32.mrf.mxu0  ;;  %v4053_v5 = vcombine.high %v101_v53, %v105_v56 }
 0x160   :  { %v2297_v13 = vpop.f32.mrf.mxu1 }
 0x161   :  { %v2036_v14 = vpop.f32.mrf.mxu0  ;;  %2523 = vmatmul.mubr.bf16.gmra.mxu0 %v4026_v4 }
 0x162   :  { %v2300_v15 = vpop.f32.mrf.mxu1  ;;  %2787 = vmatmul.mubr.bf16.gmra.mxu1 %v4028_v8  ;;  %2530 = vmatprep.mubr.bf16.mxu0 %v4035_v9 }
 0x163   :  { %v5411_v17 = vadd.f32 %v2300_v15, %v2036_v14  ;;  %v2038_v18 = vpop.f32.mrf.mxu0  ;;  %2794 = vmatprep.mubr.bf16.mxu1 %v4037_v12  ;;  %v108_v14 = vld [vmem:[%s7134_s0 + $0x2d0] sm:$0xff] }
 0x164   :  { %v2302_v25 = vpop.f32.mrf.mxu1  ;;  %v112_v15 = vld [vmem:[%s7134_s0 + $0x2f0] sm:$0xff] }
 0x165   :  { %v2039_v29 = vpop.f32.mrf.mxu0 }
 0x166   :  { %v2303_v33 = vpop.f32.mrf.mxu1 }
 0x167   :  { %v5425_v36 = vadd.f32 %v2303_v33, %v2039_v29  ;;  %v2041_v38 = vpop.f32.mrf.mxu0  ;;  %v4052_v29 = vcombine.low %v101_v53, %v105_v56  ;;  %v121_v53 = vld [vmem:[%s7134_s0 + $0x338] sm:$0xff] }
 0x168   :  { %v2305_v0 = vpop.f32.mrf.mxu1 }
 0x169   :  { %v2044_v42 = vpop.f32.mrf.mxu0  ;;  %2531 = vmatmul.mubr.bf16.gmra.mxu0 %v4034_v32  ;;  %v4059_v32 = vcombine.high %v108_v14, %v112_v15 }
 0x16a   :  { %v2308_v43 = vpop.f32.mrf.mxu1  ;;  %2795 = vmatmul.mubr.bf16.gmra.mxu1 %v4036_v34  ;;  %2538 = vmatprep.mubr.bf16.mxu0 %v4043_v35  ;;  %v4061_v35 = vcombine.high %v109_v21, %v113_v23 }
 0x16b   :  { %v5427_v44 = vadd.f32 %v2308_v43, %v2044_v42  ;;  %v2046_v49 = vpop.f32.mrf.mxu0  ;;  %2802 = vmatprep.mubr.bf16.mxu1 %v4045_v41 }
 0x16c   :  { %v2310_v52 = vpop.f32.mrf.mxu1  ;;  %v116_v49 = vld [vmem:[%s7134_s0 + $0x310] sm:$0xff] }
 0x16d   :  { %v2047_v57 = vpop.f32.mrf.mxu0  ;;  %v117_v52 = vld [vmem:[%s7134_s0 + $0x318] sm:$0xff] }
 0x16e   :  { %v2311_v60 = vpop.f32.mrf.mxu1 }
 0x16f   :  { %v5441_v2 = vadd.f32 %v2311_v60, %v2047_v57  ;;  %v2049_v4 = vpop.f32.mrf.mxu0  ;;  %v4058_v57 = vcombine.low %v108_v14, %v112_v15  ;;  %v4060_v60 = vcombine.low %v109_v21, %v113_v23  ;;  %v124_v14 = vld [vmem:[%s7134_s0 + $0x350] sm:$0xff]  ;;  %v125_v23 = vld [vmem:[%s7134_s0 + $0x358] sm:$0xff] }
 0x170   :  { %v2313_v8 = vpop.f32.mrf.mxu1  ;;  %v128_v15 = vld [vmem:[%s7134_s0 + $0x370] sm:$0xff] }
 0x171   :  { %v2052_v9 = vpop.f32.mrf.mxu0  ;;  %2539 = vmatmul.mubr.bf16.gmra.mxu0 %v4042_v58 }
 0x172   :  { %v2316_v11 = vpop.f32.mrf.mxu1  ;;  %2803 = vmatmul.mubr.bf16.gmra.mxu1 %v4044_v62  ;;  %2546 = vmatprep.mubr.bf16.mxu0 %v4051_v63  ;;  %v4067_v62 = vcombine.high %v116_v49, %v120_v50 }
 0x173   :  { %v5443_v12 = vadd.f32 %v2316_v11, %v2052_v9  ;;  %v2054_v13 = vpop.f32.mrf.mxu0  ;;  %2810 = vmatprep.mubr.bf16.mxu1 %v4053_v5  ;;  %v4069_v5 = vcombine.high %v117_v52, %v121_v53 }
 0x174   :  { %v2318_v18 = vpop.f32.mrf.mxu1 }
 0x175   :  { %v2055_v25 = vpop.f32.mrf.mxu0 }
 0x176   :  { %v2319_v28 = vpop.f32.mrf.mxu1 }
 0x177   :  { %v5457_v33 = vadd.f32 %v2319_v28, %v2055_v25  ;;  %v2057_v34 = vpop.f32.mrf.mxu0  ;;  %v129_v25 = vld [vmem:[%s7134_s0 + $0x378] sm:$0xff]  ;;  %v4066_v28 = vcombine.low %v116_v49, %v120_v50  ;;  %v132_v49 = vld [vmem:[%s7134_s0 + $0x390] sm:$0xff] }
 0x178   :  { %v2321_v38 = vpop.f32.mrf.mxu1  ;;  %v4075_v34 = vcombine.high %v124_v14, %v128_v15  ;;  %v136_v50 = vld [vmem:[%s7134_s0 + $0x3b0] sm:$0xff] }
 0x179   :  { %v2060_v41 = vpop.f32.mrf.mxu0  ;;  %2547 = vmatmul.mubr.bf16.gmra.mxu0 %v4050_v27 }
 0x17a   :  { %v2324_v0 = vpop.f32.mrf.mxu1  ;;  %2811 = vmatmul.mubr.bf16.gmra.mxu1 %v4052_v29  ;;  %2554 = vmatprep.mubr.bf16.mxu0 %v4059_v32  ;;  %v4068_v32 = vcombine.low %v117_v52, %v121_v53  ;;  %v133_v53 = vld [vmem:[%s7134_s0 + $0x398] sm:$0xff] }
 0x17b   :  { %v5459_v42 = vadd.f32 %v2324_v0, %v2060_v41  ;;  %v2062_v43 = vpop.f32.mrf.mxu0  ;;  %2818 = vmatprep.mubr.bf16.mxu1 %v4061_v35  ;;  %v4077_v41 = vcombine.high %v125_v23, %v129_v25 }
 0x17c   :  { %v2326_v51 = vpop.f32.mrf.mxu1 }
 0x17d   :  { %v2063_v56 = vpop.f32.mrf.mxu0 }
 0x17e   :  { %v2327_v58 = vpop.f32.mrf.mxu1 }
 0x17f   :  { %v5473_v63 = vadd.f32 %v2327_v58, %v2063_v56  ;;  %v2065_v4 = vpop.f32.mrf.mxu0  ;;  %v137_v58 = vld [vmem:[%s7134_s0 + $0x3b8] sm:$0xff] }
 0x180   :  { %v2329_v8 = vpop.f32.mrf.mxu1 }
 0x181   :  { %v2068_v9 = vpop.f32.mrf.mxu0  ;;  %2555 = vmatmul.mubr.bf16.gmra.mxu0 %v4058_v57  ;;  %v4083_v8 = vcombine.high %v132_v49, %v136_v50 }
 0x182   :  { %v2332_v11 = vpop.f32.mrf.mxu1  ;;  %2819 = vmatmul.mubr.bf16.gmra.mxu1 %v4060_v60  ;;  %2562 = vmatprep.mubr.bf16.mxu0 %v4067_v62  ;;  %v4074_v62 = vcombine.low %v124_v14, %v128_v15  ;;  %v140_v14 = vld [vmem:[%s7134_s0 + $0x3d0] sm:$0xff] }
 0x183   :  { %v5475_v13 = vadd.f32 %v2332_v11, %v2068_v9  ;;  %v2070_v18 = vpop.f32.mrf.mxu0  ;;  %2826 = vmatprep.mubr.bf16.mxu1 %v4069_v5  ;;  %v4076_v5 = vcombine.low %v125_v23, %v129_v25  ;;  %v144_v15 = vld [vmem:[%s7134_s0 + $0x3f0] sm:$0xff]  ;;  %v141_v25 = vld [vmem:[%s7134_s0 + $0x3d8] sm:$0xff] }
 0x184   :  { %v2334_v21 = vpop.f32.mrf.mxu1  ;;  %v4085_v18 = vcombine.high %v133_v53, %v137_v58 }
 0x185   :  { %v2071_v27 = vpop.f32.mrf.mxu0 }
 0x186   :  { %v2335_v29 = vpop.f32.mrf.mxu1 }
 0x187   :  { %v5489_v35 = vadd.f32 %v2335_v29, %v2071_v27  ;;  %v2073_v38 = vpop.f32.mrf.mxu0 }
 0x188   :  { %v2337_v0 = vpop.f32.mrf.mxu1 }
 0x189   :  { %v2076_v43 = vpop.f32.mrf.mxu0  ;;  %2563 = vmatmul.mubr.bf16.gmra.mxu0 %v4066_v28 }
 0x18a   :  { %v2340_v51 = vpop.f32.mrf.mxu1  ;;  %2827 = vmatmul.mubr.bf16.gmra.mxu1 %v4068_v32  ;;  %2570 = vmatprep.mubr.bf16.mxu0 %v4075_v34  ;;  %v145_v34 = vld [vmem:[%s7134_s0 + $0x3f8] sm:$0xff] }
 0x18b   :  { %v5491_v56 = vadd.f32 %v2340_v51, %v2076_v43  ;;  %v2078_v57 = vpop.f32.mrf.mxu0  ;;  %2834 = vmatprep.mubr.bf16.mxu1 %v4077_v41  ;;  %v4082_v41 = vcombine.low %v132_v49, %v136_v50  ;;  %v4084_v43 = vcombine.low %v133_v53, %v137_v58  ;;  %v4091_v51 = vcombine.high %v140_v14, %v144_v15  ;;  %v148_v49 = vld [vmem:[%s7134_s0 + $0x410] sm:$0xff]  ;;  %v149_v58 = vld [vmem:[%s7134_s0 + $0x418] sm:$0xff] }
 0x18c   :  { %v2342_v52 = vpop.f32.mrf.mxu1  ;;  %v152_v50 = vld [vmem:[%s7134_s0 + $0x430] sm:$0xff] }
 0x18d   :  { %v2079_v60 = vpop.f32.mrf.mxu0 }
 0x18e   :  { %v2343_v4 = vpop.f32.mrf.mxu1 }
 0x18f   :  { %v5505_v9 = vadd.f32 %v2343_v4, %v2079_v60  ;;  %v2081_v11 = vpop.f32.mrf.mxu0  ;;  %v4093_v60 = vcombine.high %v141_v25, %v145_v34 }
 0x190   :  { %v2345_v21 = vpop.f32.mrf.mxu1 }
 0x191   :  { %v2084_v27 = vpop.f32.mrf.mxu0  ;;  %2571 = vmatmul.mubr.bf16.gmra.mxu0 %v4074_v62 }
 0x192   :  { %v2348_v28 = vpop.f32.mrf.mxu1  ;;  %2835 = vmatmul.mubr.bf16.gmra.mxu1 %v4076_v5  ;;  %2578 = vmatprep.mubr.bf16.mxu0 %v4083_v8 }
 0x193   :  { %v5507_v29 = vadd.f32 %v2348_v28, %v2084_v27  ;;  %v2086_v32 = vpop.f32.mrf.mxu0  ;;  %2842 = vmatprep.mubr.bf16.mxu1 %v4085_v18  ;;  %v153_v18 = vld [vmem:[%s7134_s0 + $0x438] sm:$0xff]  ;;  %v4090_v27 = vcombine.low %v140_v14, %v144_v15  ;;  %v156_v14 = vld [vmem:[%s7134_s0 + $0x450] sm:$0xff] }
 0x194   :  { %v2350_v23 = vpop.f32.mrf.mxu1  ;;  %v4092_v32 = vcombine.low %v141_v25, %v145_v34  ;;  %v160_v15 = vld [vmem:[%s7134_s0 + $0x470] sm:$0xff]  ;;  %v157_v34 = vld [vmem:[%s7134_s0 + $0x458] sm:$0xff] }
 0x195   :  { %v2087_v38 = vpop.f32.mrf.mxu0  ;;  %v4099_v23 = vcombine.high %v148_v49, %v152_v50 }
 0x196   :  { %v2351_v0 = vpop.f32.mrf.mxu1 }
 0x197   :  { %v5521_v57 = vadd.f32 %v2351_v0, %v2087_v38  ;;  %v2089_v52 = vpop.f32.mrf.mxu0  ;;  %v4101_v0 = vcombine.high %v149_v58, %v153_v18 }
 0x198   :  { %v2353_v62 = vpop.f32.mrf.mxu1 }
 0x199   :  { %v2092_v4 = vpop.f32.mrf.mxu0  ;;  %2579 = vmatmul.mubr.bf16.gmra.mxu0 %v4082_v41 }
 0x19a   :  { %v2356_v5 = vpop.f32.mrf.mxu1  ;;  %2843 = vmatmul.mubr.bf16.gmra.mxu1 %v4084_v43  ;;  %2586 = vmatprep.mubr.bf16.mxu0 %v4091_v51 }
 0x19b   :  { %v5523_v8 = vadd.f32 %v2356_v5, %v2092_v4  ;;  %v2094_v11 = vpop.f32.mrf.mxu0  ;;  %2850 = vmatprep.mubr.bf16.mxu1 %v4093_v60  ;;  %v161_v4 = vld [vmem:[%s7134_s0 + $0x478] sm:$0xff] }
 0x19c   :  { %v2358_v53 = vpop.f32.mrf.mxu1  ;;  %v4098_v11 = vcombine.low %v148_v49, %v152_v50  ;;  %v164_v49 = vld [vmem:[%s7134_s0 + $0x490] sm:$0xff] }
 0x19d   :  { %v2095_v21 = vpop.f32.mrf.mxu0  ;;  %v168_v50 = vld [vmem:[%s7134_s0 + $0x4b0] sm:$0xff] }
 0x19e   :  { %v2359_v28 = vpop.f32.mrf.mxu1 }
 0x19f   :  { %v5537_v38 = vadd.f32 %v2359_v28, %v2095_v21  ;;  %v2097_v41 = vpop.f32.mrf.mxu0  ;;  %v4100_v21 = vcombine.low %v149_v58, %v153_v18  ;;  %v165_v18 = vld [vmem:[%s7134_s0 + $0x498] sm:$0xff] }
 0x1a0   :  { %v2361_v43 = vpop.f32.mrf.mxu1 }
 0x1a1   :  { %v2100_v51 = vpop.f32.mrf.mxu0  ;;  %2587 = vmatmul.mubr.bf16.gmra.mxu0 %v4090_v27  ;;  %v4107_v27 = vcombine.high %v156_v14, %v160_v15 }
 0x1a2   :  { %v2364_v52 = vpop.f32.mrf.mxu1  ;;  %2851 = vmatmul.mubr.bf16.gmra.mxu1 %v4092_v32  ;;  %2594 = vmatprep.mubr.bf16.mxu0 %v4099_v23  ;;  %v4109_v23 = vcombine.high %v157_v34, %v161_v4 }
 0x1a3   :  { %v5539_v60 = vadd.f32 %v2364_v52, %v2100_v51  ;;  %v2102_v62 = vpop.f32.mrf.mxu0  ;;  %2858 = vmatprep.mubr.bf16.mxu1 %v4101_v0 }
 0x1a4   :  { %v2366_v25 = vpop.f32.mrf.mxu1  ;;  %v169_v62 = vld [vmem:[%s7134_s0 + $0x4b8] sm:$0xff] }
 0x1a5   :  { %v2103_v5 = vpop.f32.mrf.mxu0 }
 0x1a6   :  { %v2367_v53 = vpop.f32.mrf.mxu1 }
 0x1a7   :  { %v5553_v28 = vadd.f32 %v2367_v53, %v2103_v5  ;;  %v2105_v32 = vpop.f32.mrf.mxu0  ;;  %v4106_v5 = vcombine.low %v156_v14, %v160_v15  ;;  %v4108_v53 = vcombine.low %v157_v34, %v161_v4  ;;  %v172_v14 = vld [vmem:[%s7134_s0 + $0x4d0] sm:$0xff]  ;;  %v173_v4 = vld [vmem:[%s7134_s0 + $0x4d8] sm:$0xff] }
 0x1a8   :  { %v2369_v41 = vpop.f32.mrf.mxu1  ;;  %v176_v15 = vld [vmem:[%s7134_s0 + $0x4f0] sm:$0xff] }
 0x1a9   :  { %v2108_v0 = vpop.f32.mrf.mxu0  ;;  %2595 = vmatmul.mubr.bf16.gmra.mxu0 %v4098_v11 }
 0x1aa   :  { %v2372_v43 = vpop.f32.mrf.mxu1  ;;  %2859 = vmatmul.mubr.bf16.gmra.mxu1 %v4100_v21  ;;  %2602 = vmatprep.mubr.bf16.mxu0 %v4107_v27  ;;  %v4115_v21 = vcombine.high %v164_v49, %v168_v50 }
 0x1ab   :  { %v5555_v51 = vadd.f32 %v2372_v43, %v2108_v0  ;;  %v2110_v52 = vpop.f32.mrf.mxu0  ;;  %2866 = vmatprep.mubr.bf16.mxu1 %v4109_v23  ;;  %v4117_v23 = vcombine.high %v165_v18, %v169_v62 }
 0x1ac   :  { %v2374_v58 = vpop.f32.mrf.mxu1 }
 0x1ad   :  { %7199 = vst [vmem:[#allocation2_spill] sm:$0xff] %v5555_v51  ;;  %v2111_v25 = vpop.f32.mrf.mxu0 }
 0x1ae   :  { %v2375_v11 = vpop.f32.mrf.mxu1 }
 0x1af   :  { %v5569_v27 = vadd.f32 %v2375_v11, %v2111_v25  ;;  %v2113_v32 = vpop.f32.mrf.mxu0  ;;  %v177_v25 = vld [vmem:[%s7134_s0 + $0x4f8] sm:$0xff]  ;;  %v4114_v11 = vcombine.low %v164_v49, %v168_v50  ;;  %v180_v49 = vld [vmem:[%s7134_s0 + $0x510] sm:$0xff] }
 0x1b0   :  { %v2377_v41 = vpop.f32.mrf.mxu1  ;;  %v4123_v32 = vcombine.high %v172_v14, %v176_v15  ;;  %v184_v50 = vld [vmem:[%s7134_s0 + $0x530] sm:$0xff] }
 0x1b1   :  { %7200 = vst [vmem:[#allocation3_spill] sm:$0xff] %v5569_v27  ;;  %v2116_v0 = vpop.f32.mrf.mxu0  ;;  %2603 = vmatmul.mubr.bf16.gmra.mxu0 %v4106_v5 }
 0x1b2   :  { %v2380_v43 = vpop.f32.mrf.mxu1  ;;  %2867 = vmatmul.mubr.bf16.gmra.mxu1 %v4108_v53  ;;  %2610 = vmatprep.mubr.bf16.mxu0 %v4115_v21  ;;  %v4116_v21 = vcombine.low %v165_v18, %v169_v62  ;;  %v181_v62 = vld [vmem:[%s7134_s0 + $0x518] sm:$0xff] }
 0x1b3   :  { %v5571_v52 = vadd.f32 %v2380_v43, %v2116_v0  ;;  %v2118_v58 = vpop.f32.mrf.mxu0  ;;  %2874 = vmatprep.mubr.bf16.mxu1 %v4117_v23  ;;  %v4125_v0 = vcombine.high %v173_v4, %v177_v25 }
 0x1b4   :  { %v2382_v34 = vpop.f32.mrf.mxu1 }
 0x1b5   :  { %7201 = vst [vmem:[#allocation4_spill] sm:$0xff] %v5571_v52  ;;  %v2119_v5 = vpop.f32.mrf.mxu0 }
 0x1b6   :  { %v2383_v53 = vpop.f32.mrf.mxu1 }
 0x1b7   :  { %v5585_v23 = vadd.f32 %v2383_v53, %v2119_v5  ;;  %v2121_v41 = vpop.f32.mrf.mxu0  ;;  %v185_v5 = vld [vmem:[%s7134_s0 + $0x538] sm:$0xff] }
 0x1b8   :  { %v2385_v43 = vpop.f32.mrf.mxu1 }
 0x1b9   :  { %7202 = vst [vmem:[#allocation5_spill] sm:$0xff] %v5585_v23  ;;  %v2124_v58 = vpop.f32.mrf.mxu0  ;;  %2611 = vmatmul.mubr.bf16.gmra.mxu0 %v4114_v11  ;;  %v4133_v43 = vcombine.high %v181_v62, %v185_v5 }
 0x1ba   :  { %v2388_v34 = vpop.f32.mrf.mxu1  ;;  %2875 = vmatmul.mubr.bf16.gmra.mxu1 %v4116_v21  ;;  %2618 = vmatprep.mubr.bf16.mxu0 %v4123_v32  ;;  %v4124_v21 = vcombine.low %v173_v4, %v177_v25  ;;  %v4131_v32 = vcombine.high %v180_v49, %v184_v50  ;;  %v189_v25 = vld [vmem:[%s7134_s0 + $0x558] sm:$0xff] }
 0x1bb   :  { %v5587_v52 = vadd.f32 %v2388_v34, %v2124_v58  ;;  %v2126_v27 = vpop.f32.mrf.mxu0  ;;  %2882 = vmatprep.mubr.bf16.mxu1 %v4125_v0 }
 0x1bc   :  { %v2390_v18 = vpop.f32.mrf.mxu1  ;;  %v4122_v27 = vcombine.low %v172_v14, %v176_v15  ;;  %v188_v14 = vld [vmem:[%s7134_s0 + $0x550] sm:$0xff] }
 0x1bd   :  { %7203 = vst [vmem:[#allocation6_spill] sm:$0xff] %v5587_v52  ;;  %v2127_v11 = vpop.f32.mrf.mxu0  ;;  %v192_v15 = vld [vmem:[%s7134_s0 + $0x570] sm:$0xff] }
 0x1be   :  { %v2391_v53 = vpop.f32.mrf.mxu1 }
 0x1bf   :  { %v5601_v41 = vadd.f32 %v2391_v53, %v2127_v11  ;;  %v2129_v0 = vpop.f32.mrf.mxu0  ;;  %v193_v11 = vld [vmem:[%s7134_s0 + $0x578] sm:$0xff] }
 0x1c0   :  { %v2393_v58 = vpop.f32.mrf.mxu1 }
 0x1c1   :  { %7204 = vst [vmem:[#allocation7_spill] sm:$0xff] %v5601_v41  ;;  %v2132_v34 = vpop.f32.mrf.mxu0  ;;  %2619 = vmatmul.mubr.bf16.gmra.mxu0 %v4122_v27  ;;  %v4141_v58 = vcombine.high %v189_v25, %v193_v11 }
 0x1c2   :  { %v2396_v18 = vpop.f32.mrf.mxu1  ;;  %2883 = vmatmul.mubr.bf16.gmra.mxu1 %v4124_v21  ;;  %2626 = vmatprep.mubr.bf16.mxu0 %v4131_v32  ;;  %v4132_v21 = vcombine.low %v181_v62, %v185_v5  ;;  %v4139_v32 = vcombine.high %v188_v14, %v192_v15  ;;  %v197_v5 = vld [vmem:[%s7134_s0 + $0x598] sm:$0xff] }
 0x1c3   :  { %v5603_v52 = vadd.f32 %v2396_v18, %v2132_v34  ;;  %v2134_v23 = vpop.f32.mrf.mxu0  ;;  %2890 = vmatprep.mubr.bf16.mxu1 %v4133_v43 }
 0x1c4   :  { %v2398_v4 = vpop.f32.mrf.mxu1  ;;  %v4130_v23 = vcombine.low %v180_v49, %v184_v50  ;;  %v196_v49 = vld [vmem:[%s7134_s0 + $0x590] sm:$0xff] }
 0x1c5   :  { %7205 = vst [vmem:[#allocation8_spill] sm:$0xff] %v5603_v52  ;;  %v2135_v27 = vpop.f32.mrf.mxu0  ;;  %v200_v50 = vld [vmem:[%s7134_s0 + $0x5b0] sm:$0xff] }
 0x1c6   :  { %v2399_v53 = vpop.f32.mrf.mxu1 }
 0x1c7   :  { %v5617_v0 = vadd.f32 %v2399_v53, %v2135_v27  ;;  %v2137_v43 = vpop.f32.mrf.mxu0  ;;  %v201_v27 = vld [vmem:[%s7134_s0 + $0x5b8] sm:$0xff] }
 0x1c8   :  { %v2401_v34 = vpop.f32.mrf.mxu1 }
 0x1c9   :  { %7206 = vst [vmem:[#allocation9_spill] sm:$0xff] %v5617_v0  ;;  %v2140_v18 = vpop.f32.mrf.mxu0  ;;  %2627 = vmatmul.mubr.bf16.gmra.mxu0 %v4130_v23  ;;  %v4149_v34 = vcombine.high %v197_v5, %v201_v27 }
 0x1ca   :  { %v2404_v4 = vpop.f32.mrf.mxu1  ;;  %2891 = vmatmul.mubr.bf16.gmra.mxu1 %v4132_v21  ;;  %2634 = vmatprep.mubr.bf16.mxu0 %v4139_v32  ;;  %v4140_v21 = vcombine.low %v189_v25, %v193_v11  ;;  %v4147_v32 = vcombine.high %v196_v49, %v200_v50  ;;  %v205_v11 = vld [vmem:[%s7134_s0 + $0x5d8] sm:$0xff] }
 0x1cb   :  { %v5619_v52 = vadd.f32 %v2404_v4, %v2140_v18  ;;  %v2142_v41 = vpop.f32.mrf.mxu0  ;;  %2898 = vmatprep.mubr.bf16.mxu1 %v4141_v58 }
 0x1cc   :  { %v2406_v62 = vpop.f32.mrf.mxu1  ;;  %v4138_v41 = vcombine.low %v188_v14, %v192_v15  ;;  %v204_v14 = vld [vmem:[%s7134_s0 + $0x5d0] sm:$0xff] }
 0x1cd   :  { %7207 = vst [vmem:[#allocation10_spill] sm:$0xff] %v5619_v52  ;;  %v2143_v23 = vpop.f32.mrf.mxu0  ;;  %v208_v15 = vld [vmem:[%s7134_s0 + $0x5f0] sm:$0xff] }
 0x1ce   :  { %v2407_v53 = vpop.f32.mrf.mxu1 }
 0x1cf   :  { %v5633_v43 = vadd.f32 %v2407_v53, %v2143_v23  ;;  %v2145_v58 = vpop.f32.mrf.mxu0  ;;  %v209_v23 = vld [vmem:[%s7134_s0 + $0x5f8] sm:$0xff] }
 0x1d0   :  { %v2409_v18 = vpop.f32.mrf.mxu1 }
 0x1d1   :  { %7208 = vst [vmem:[#allocation11_spill] sm:$0xff] %v5633_v43  ;;  %v2148_v4 = vpop.f32.mrf.mxu0  ;;  %2635 = vmatmul.mubr.bf16.gmra.mxu0 %v4138_v41  ;;  %v4157_v18 = vcombine.high %v205_v11, %v209_v23 }
 0x1d2   :  { %v2412_v62 = vpop.f32.mrf.mxu1  ;;  %2899 = vmatmul.mubr.bf16.gmra.mxu1 %v4140_v21  ;;  %2642 = vmatprep.mubr.bf16.mxu0 %v4147_v32  ;;  %v4148_v21 = vcombine.low %v197_v5, %v201_v27  ;;  %v4155_v32 = vcombine.high %v204_v14, %v208_v15  ;;  %v213_v27 = vld [vmem:[%s7134_s0 + $0x618] sm:$0xff] }
 0x1d3   :  { %v5635_v52 = vadd.f32 %v2412_v62, %v2148_v4  ;;  %v2150_v0 = vpop.f32.mrf.mxu0  ;;  %2906 = vmatprep.mubr.bf16.mxu1 %v4149_v34 }
 0x1d4   :  { %v2414_v25 = vpop.f32.mrf.mxu1  ;;  %v4146_v0 = vcombine.low %v196_v49, %v200_v50  ;;  %v212_v49 = vld [vmem:[%s7134_s0 + $0x610] sm:$0xff] }
 0x1d5   :  { %7209 = vst [vmem:[#allocation12_spill] sm:$0xff] %v5635_v52  ;;  %v2151_v41 = vpop.f32.mrf.mxu0  ;;  %v216_v50 = vld [vmem:[%s7134_s0 + $0x630] sm:$0xff] }
 0x1d6   :  { %v2415_v53 = vpop.f32.mrf.mxu1 }
 0x1d7   :  { %v5649_v58 = vadd.f32 %v2415_v53, %v2151_v41  ;;  %v2153_v34 = vpop.f32.mrf.mxu0  ;;  %v217_v41 = vld [vmem:[%s7134_s0 + $0x638] sm:$0xff] }
 0x1d8   :  { %v2417_v4 = vpop.f32.mrf.mxu1 }
 0x1d9   :  { %7210 = vst [vmem:[#allocation13_spill] sm:$0xff] %v5649_v58  ;;  %v2156_v62 = vpop.f32.mrf.mxu0  ;;  %2643 = vmatmul.mubr.bf16.gmra.mxu0 %v4146_v0  ;;  %v4165_v4 = vcombine.high %v213_v27, %v217_v41 }
 0x1da   :  { %v2420_v25 = vpop.f32.mrf.mxu1  ;;  %2907 = vmatmul.mubr.bf16.gmra.mxu1 %v4148_v21  ;;  %2650 = vmatprep.mubr.bf16.mxu0 %v4155_v32  ;;  %v4156_v21 = vcombine.low %v205_v11, %v209_v23  ;;  %v4163_v32 = vcombine.high %v212_v49, %v216_v50  ;;  %v221_v23 = vld [vmem:[%s7134_s0 + $0x658] sm:$0xff] }
 0x1db   :  { %v5651_v52 = vadd.f32 %v2420_v25, %v2156_v62  ;;  %v2158_v43 = vpop.f32.mrf.mxu0  ;;  %2914 = vmatprep.mubr.bf16.mxu1 %v4157_v18 }
 0x1dc   :  { %v2422_v5 = vpop.f32.mrf.mxu1  ;;  %v4154_v43 = vcombine.low %v204_v14, %v208_v15  ;;  %v220_v14 = vld [vmem:[%s7134_s0 + $0x650] sm:$0xff] }
 0x1dd   :  { %7211 = vst [vmem:[#allocation14_spill] sm:$0xff] %v5651_v52  ;;  %v2159_v0 = vpop.f32.mrf.mxu0  ;;  %v224_v15 = vld [vmem:[%s7134_s0 + $0x670] sm:$0xff] }
 0x1de   :  { %v2423_v53 = vpop.f32.mrf.mxu1 }
 0x1df   :  { %v5665_v34 = vadd.f32 %v2423_v53, %v2159_v0  ;;  %v2161_v18 = vpop.f32.mrf.mxu0  ;;  %v225_v0 = vld [vmem:[%s7134_s0 + $0x678] sm:$0xff] }
 0x1e0   :  { %v2425_v62 = vpop.f32.mrf.mxu1 }
 0x1e1   :  { %7212 = vst [vmem:[#allocation15_spill] sm:$0xff] %v5665_v34  ;;  %v2164_v25 = vpop.f32.mrf.mxu0  ;;  %2651 = vmatmul.mubr.bf16.gmra.mxu0 %v4154_v43 }
 0x1e2   :  { %v2428_v5 = vpop.f32.mrf.mxu1  ;;  %2915 = vmatmul.mubr.bf16.gmra.mxu1 %v4156_v21  ;;  %2658 = vmatprep.mubr.bf16.mxu0 %v4163_v32  ;;  %v4164_v21 = vcombine.low %v213_v27, %v217_v41  ;;  %v4171_v32 = vcombine.high %v220_v14, %v224_v15 }
 0x1e3   :  { %v5667_v52 = vadd.f32 %v2428_v5, %v2164_v25  ;;  %v2166_v58 = vpop.f32.mrf.mxu0  ;;  %2922 = vmatprep.mubr.bf16.mxu1 %v4165_v4  ;;  %v4173_v4 = vcombine.high %v221_v23, %v225_v0 }
 0x1e4   :  { %v2430_v11 = vpop.f32.mrf.mxu1  ;;  %v4162_v58 = vcombine.low %v212_v49, %v216_v50  ;;  %v232_v49 = vld [vmem:[%s7134_s0 + $0x6b0] sm:$0xff] }
 0x1e5   :  { %7213 = vst [vmem:[#allocation16_spill] sm:$0xff] %v5667_v52  ;;  %v2167_v43 = vpop.f32.mrf.mxu0 }
 0x1e6   :  { %v2431_v53 = vpop.f32.mrf.mxu1  ;;  %v228_v43 = vld [vmem:[%s7134_s0 + $0x690] sm:$0xff] }
 0x1e7   :  { %v2168_v18 = vpop.f32.mrf.mxu0 }
 0x1e8   :  { %v2432_v62 = vpop.f32.mrf.mxu1  ;;  %v4179_v18 = vcombine.high %v228_v43, %v232_v49 }
 0x1e9   :  { %v2468_v25 = vpop.f32.mrf.mxu0  ;;  %2659 = vmatmul.mubr.bf16.gmra.mxu0 %v4162_v58  ;;  %v4170_v58 = vcombine.low %v220_v14, %v224_v15  ;;  %v240_v14 = vld [vmem:[%s7134_s0 + $0x6f0] sm:$0xff] }
 0x1ea   :  { %v2469_v5 = vadd.f32 %v2468_v25, %v5225_v19  ;;  %v2732_v11 = vpop.f32.mrf.mxu1  ;;  %2923 = vmatmul.mubr.bf16.gmra.mxu1 %v4164_v21  ;;  %2666 = vmatprep.mubr.bf16.mxu0 %v4171_v32  ;;  %v229_v19 = vld [vmem:[%s7134_s0 + $0x698] sm:$0xff]  ;;  %v4172_v32 = vcombine.low %v221_v23, %v225_v0 }
 0x1eb   :  { %v2470_v52 = vpop.f32.mrf.mxu0  ;;  %2930 = vmatprep.mubr.bf16.mxu1 %v4173_v4 }
 0x1ec   :  { %v5688_v50 = vadd.f32 %v2732_v11, %v2469_v5  ;;  %v2734_v27 = vpop.f32.mrf.mxu1  ;;  %v233_v52 = vld [vmem:[%s7134_s0 + $0x6b8] sm:$0xff] }
 0x1ed   :  { %v2471_v41 = vpop.f32.mrf.mxu0  ;;  %v4181_v62 = vcombine.high %v229_v19, %v233_v52 }
 0x1ee   :  { %v2472_v53 = vadd.f32 %v2471_v41, %v5239_v31  ;;  %v2735_v21 = vpop.f32.mrf.mxu1  ;;  %v236_v31 = vld [vmem:[%s7134_s0 + $0x6d0] sm:$0xff]  ;;  %v4178_v41 = vcombine.low %v228_v43, %v232_v49 }
 0x1ef   :  { %v2473_v4 = vpop.f32.mrf.mxu0 }
 0x1f0   :  { %v5697_v25 = vadd.f32 %v2735_v21, %v2472_v53  ;;  %v2737_v5 = vpop.f32.mrf.mxu1  ;;  %v4180_v21 = vcombine.low %v229_v19, %v233_v52  ;;  %v245_v19 = vld [vmem:[%s7134_s0 + $0x718] sm:$0xff] }
 0x1f1   :  { %v2476_v11 = vpop.f32.mrf.mxu0  ;;  %2667 = vmatmul.mubr.bf16.gmra.mxu0 %v4170_v58 }
 0x1f2   :  { %v2477_v27 = vadd.f32 %v2476_v11, %v5241_v37  ;;  %v2740_v34 = vpop.f32.mrf.mxu1  ;;  %2931 = vmatmul.mubr.bf16.gmra.mxu1 %v4172_v32  ;;  %2674 = vmatprep.mubr.bf16.mxu0 %v4179_v18  ;;  %v237_v37 = vld [vmem:[%s7134_s0 + $0x6d8] sm:$0xff]  ;;  %v4187_v32 = vcombine.high %v236_v31, %v240_v14 }
 0x1f3   :  { %v2478_v51 = vpop.f32.mrf.mxu0  ;;  %2938 = vmatprep.mubr.bf16.mxu1 %v4181_v62 }
 0x1f4   :  { %v5706_v15 = vadd.f32 %v2740_v34, %v2477_v27  ;;  %v2742_v23 = vpop.f32.mrf.mxu1  ;;  %v241_v51 = vld [vmem:[%s7134_s0 + $0x6f8] sm:$0xff] }
 0x1f5   :  { %v2479_v0 = vpop.f32.mrf.mxu0  ;;  %v4189_v4 = vcombine.high %v237_v37, %v241_v51 }
 0x1f6   :  { %v2480_v58 = vadd.f32 %v2479_v0, %v5255_v48  ;;  %v2743_v53 = vpop.f32.mrf.mxu1  ;;  %v244_v48 = vld [vmem:[%s7134_s0 + $0x710] sm:$0xff]  ;;  %v4186_v0 = vcombine.low %v236_v31, %v240_v14 }
 0x1f7   :  { %v2481_v18 = vpop.f32.mrf.mxu0 }
 0x1f8   :  { %v5715_v34 = vadd.f32 %v2743_v53, %v2480_v58  ;;  %v2745_v62 = vpop.f32.mrf.mxu1  ;;  %v4188_v58 = vcombine.low %v237_v37, %v241_v51  ;;  %v4195_v53 = vcombine.high %v244_v48, %v244_v48  ;;  %v4194_v37 = vcombine.low %v244_v48, %v244_v48 }
 0x1f9   :  { %v2484_v5 = vpop.f32.mrf.mxu0  ;;  %2675 = vmatmul.mubr.bf16.gmra.mxu0 %v4178_v41 }
 0x1fa   :  { %v2485_v11 = vadd.f32 %v2484_v5, %v5257_v54  ;;  %v2748_v27 = vpop.f32.mrf.mxu1  ;;  %2939 = vmatmul.mubr.bf16.gmra.mxu1 %v4180_v21  ;;  %2682 = vmatprep.mubr.bf16.mxu0 %v4187_v32  ;;  %v4197_v32 = vcombine.high %v245_v19, %v245_v19 }
 0x1fb   :  { %v2486_v23 = vpop.f32.mrf.mxu0  ;;  %2946 = vmatprep.mubr.bf16.mxu1 %v4189_v4 }
 0x1fc   :  { %v5721_v43 = vadd.f32 %v2748_v27, %v2485_v11  ;;  %v2750_v49 = vpop.f32.mrf.mxu1 }
 0x1fd   :  { %v2487_v52 = vpop.f32.mrf.mxu0  ;;  %v4196_v49 = vcombine.low %v245_v19, %v245_v19 }
 0x1fe   :  { %v2488_v54 = vadd.f32 %v2487_v52, %v5265_v1  ;;  %v2751_v41 = vpop.f32.mrf.mxu1 }
 0x1ff   :  { %v2489_v21 = vpop.f32.mrf.mxu0 }
 0x200   :  { %v5727_v18 = vadd.f32 %v2751_v41, %v2488_v54  ;;  %v2753_v4 = vpop.f32.mrf.mxu1 }
 0x201   :  { %v2492_v62 = vpop.f32.mrf.mxu0  ;;  %2683 = vmatmul.mubr.bf16.gmra.mxu0 %v4186_v0 }
 0x202   :  { %v2493_v5 = vadd.f32 %v2492_v62, %v5267_v7  ;;  %v2756_v11 = vpop.f32.mrf.mxu1  ;;  %2947 = vmatmul.mubr.bf16.gmra.mxu1 %v4188_v58  ;;  %2690 = vmatprep.mubr.bf16.mxu0 %v4195_v53 }
 0x203   :  { %v2494_v27 = vpop.f32.mrf.mxu0  ;;  %2954 = vmatprep.mubr.bf16.mxu1 %v4197_v32 }
 0x204   :  { %v5730_v31 = vadd.f32 %v2756_v11, %v2493_v5  ;;  %v2758_v1 = vpop.f32.mrf.mxu1 }
 0x205   :  { %v2495_v14 = vpop.f32.mrf.mxu0 }
 0x206   :  { %v2496_v51 = vadd.f32 %v2495_v14, %v5281_v20  ;;  %v2759_v23 = vpop.f32.mrf.mxu1 }
 0x207   :  { %v2497_v52 = vpop.f32.mrf.mxu0 }
 0x208   :  { %v5733_v54 = vadd.f32 %v2759_v23, %v2496_v51  ;;  %v2761_v0 = vpop.f32.mrf.mxu1 }
 0x209   :  { %v2500_v41 = vpop.f32.mrf.mxu0  ;;  %2691 = vmatmul.mubr.bf16.gmra.mxu0 %v4194_v37 }
 0x20a   :  { %v2501_v7 = vadd.f32 %v2500_v41, %v5283_v26  ;;  %v2764_v58 = vpop.f32.mrf.mxu1  ;;  %2955 = vmatmul.mubr.bf16.gmra.mxu1 %v4196_v49 }
 0x20b   :  { %v2502_v53 = vpop.f32.mrf.mxu0 }
 0x20c   :  { %v5736_v21 = vadd.f32 %v2764_v58, %v2501_v7  ;;  %v2766_v32 = vpop.f32.mrf.mxu1 }
 0x20d   :  { %v2503_v4 = vpop.f32.mrf.mxu0 }
 0x20e   :  { %v2504_v48 = vadd.f32 %v2503_v4, %v5297_v40  ;;  %v2767_v20 = vpop.f32.mrf.mxu1 }
 0x20f   :  { %v2505_v62 = vpop.f32.mrf.mxu0 }
 0x210   :  { %v5739_v19 = vadd.f32 %v2767_v20, %v2504_v48  ;;  %v2769_v5 = vpop.f32.mrf.mxu1 }
 0x211   :  { %v2508_v11 = vpop.f32.mrf.mxu0 }
 0x212   :  { %v2509_v27 = vadd.f32 %v2508_v11, %v5299_v45  ;;  %v2772_v1 = vpop.f32.mrf.mxu1 }
 0x213   :  { %v2510_v14 = vpop.f32.mrf.mxu0 }
 0x214   :  { %v5742_v26 = vadd.f32 %v2772_v1, %v2509_v27  ;;  %v2774_v37 = vpop.f32.mrf.mxu1 }
 0x215   :  { %v2511_v51 = vpop.f32.mrf.mxu0 }
 0x216   :  { %v2512_v23 = vadd.f32 %v2511_v51, %v5313_v59  ;;  %v2775_v49 = vpop.f32.mrf.mxu1 }
 0x217   :  { %v2513_v52 = vpop.f32.mrf.mxu0 }
 0x218   :  { %v5745_v0 = vadd.f32 %v2775_v49, %v2512_v23  ;;  %v2777_v40 = vpop.f32.mrf.mxu1 }
 0x219   :  { %v2516_v41 = vpop.f32.mrf.mxu0 }
 0x21a   :  { %v2517_v7 = vadd.f32 %v2516_v41, %v5315_v3  ;;  %v2780_v58 = vpop.f32.mrf.mxu1 }
 0x21b   :  { %v2518_v53 = vpop.f32.mrf.mxu0 }
 0x21c   :  { %v5748_v32 = vadd.f32 %v2780_v58, %v2517_v7  ;;  %v2782_v45 = vpop.f32.mrf.mxu1 }
 0x21d   :  { %v2519_v4 = vpop.f32.mrf.mxu0 }
 0x21e   :  { %v2520_v48 = vadd.f32 %v2519_v4, %v5329_v16  ;;  %v2783_v20 = vpop.f32.mrf.mxu1 }
 0x21f   :  { %v2521_v62 = vpop.f32.mrf.mxu0 }
 0x220   :  { %v5751_v5 = vadd.f32 %v2783_v20, %v2520_v48  ;;  %v2785_v59 = vpop.f32.mrf.mxu1 }
 0x221   :  { %v2524_v11 = vpop.f32.mrf.mxu0 }
 0x222   :  { %v2525_v27 = vadd.f32 %v2524_v11, %v5331_v24  ;;  %v2788_v1 = vpop.f32.mrf.mxu1 }
 0x223   :  { %v2526_v14 = vpop.f32.mrf.mxu0 }
 0x224   :  { %v5754_v37 = vadd.f32 %v2788_v1, %v2525_v27  ;;  %v2790_v3 = vpop.f32.mrf.mxu1 }
 0x225   :  { %v2527_v51 = vpop.f32.mrf.mxu0 }
 0x226   :  { %v2528_v23 = vadd.f32 %v2527_v51, %v5345_v39  ;;  %v2791_v49 = vpop.f32.mrf.mxu1 }
 0x227   :  { %v2529_v52 = vpop.f32.mrf.mxu0 }
 0x228   :  { %v5757_v40 = vadd.f32 %v2791_v49, %v2528_v23  ;;  %v2793_v16 = vpop.f32.mrf.mxu1 }
 0x229   :  { %v2532_v41 = vpop.f32.mrf.mxu0 }
 0x22a   :  { %v2533_v7 = vadd.f32 %v2532_v41, %v5347_v46  ;;  %v2796_v58 = vpop.f32.mrf.mxu1 }
 0x22b   :  { %v2534_v53 = vpop.f32.mrf.mxu0 }
 0x22c   :  { %v5760_v45 = vadd.f32 %v2796_v58, %v2533_v7  ;;  %v2798_v24 = vpop.f32.mrf.mxu1 }
 0x22d   :  { %v2535_v4 = vpop.f32.mrf.mxu0 }
 0x22e   :  { %v2536_v48 = vadd.f32 %v2535_v4, %v5361_v61  ;;  %v2799_v20 = vpop.f32.mrf.mxu1 }
 0x22f   :  { %v2537_v62 = vpop.f32.mrf.mxu0 }
 0x230   :  { %v5763_v59 = vadd.f32 %v2799_v20, %v2536_v48  ;;  %v2801_v39 = vpop.f32.mrf.mxu1 }
 0x231   :  { %v2540_v11 = vpop.f32.mrf.mxu0 }
 0x232   :  { %v2541_v27 = vadd.f32 %v2540_v11, %v5363_v6  ;;  %v2804_v1 = vpop.f32.mrf.mxu1 }
 0x233   :  { %v2542_v14 = vpop.f32.mrf.mxu0 }
 0x234   :  { %v5766_v3 = vadd.f32 %v2804_v1, %v2541_v27  ;;  %v2806_v46 = vpop.f32.mrf.mxu1 }
 0x235   :  { %v2543_v51 = vpop.f32.mrf.mxu0 }
 0x236   :  { %v2544_v23 = vadd.f32 %v2543_v51, %v5377_v22  ;;  %v2807_v49 = vpop.f32.mrf.mxu1 }
 0x237   :  { %v2545_v52 = vpop.f32.mrf.mxu0 }
 0x238   :  { %v5769_v16 = vadd.f32 %v2807_v49, %v2544_v23  ;;  %v2809_v61 = vpop.f32.mrf.mxu1 }
 0x239   :  { %v2548_v41 = vpop.f32.mrf.mxu0 }
 0x23a   :  { %v2549_v7 = vadd.f32 %v2548_v41, %v5379_v30  ;;  %v2812_v58 = vpop.f32.mrf.mxu1 }
 0x23b   :  { %v2550_v53 = vpop.f32.mrf.mxu0 }
 0x23c   :  { %v5772_v24 = vadd.f32 %v2812_v58, %v2549_v7  ;;  %v2814_v6 = vpop.f32.mrf.mxu1 }
 0x23d   :  { %v2551_v4 = vpop.f32.mrf.mxu0 }
 0x23e   :  { %v2552_v48 = vadd.f32 %v2551_v4, %v5393_v47  ;;  %v2815_v20 = vpop.f32.mrf.mxu1 }
 0x23f   :  { %v2553_v62 = vpop.f32.mrf.mxu0 }
 0x240   :  { %v5775_v39 = vadd.f32 %v2815_v20, %v2552_v48  ;;  %v2817_v22 = vpop.f32.mrf.mxu1 }
 0x241   :  { %v2556_v11 = vpop.f32.mrf.mxu0 }
 0x242   :  { %v2557_v27 = vadd.f32 %v2556_v11, %v5395_v55  ;;  %v2820_v1 = vpop.f32.mrf.mxu1 }
 0x243   :  { %v2558_v14 = vpop.f32.mrf.mxu0 }
 0x244   :  { %v5778_v46 = vadd.f32 %v2820_v1, %v2557_v27  ;;  %v2822_v30 = vpop.f32.mrf.mxu1 }
 0x245   :  { %v2559_v51 = vpop.f32.mrf.mxu0 }
 0x246   :  { %v2560_v23 = vadd.f32 %v2559_v51, %v5409_v10  ;;  %v2823_v49 = vpop.f32.mrf.mxu1  ;;  %v2962_v10 = vadd.f32 %v5697_v25, %v5688_v50 }
 0x247   :  { %v2561_v52 = vpop.f32.mrf.mxu0 }
 0x248   :  { %v5781_v61 = vadd.f32 %v2823_v49, %v2560_v23  ;;  %v2825_v47 = vpop.f32.mrf.mxu1  ;;  %v2963_v1 = vadd.f32 %v2962_v10, %v5706_v15 }
 0x249   :  { %v2564_v41 = vpop.f32.mrf.mxu0 }
 0x24a   :  { %v2565_v7 = vadd.f32 %v2564_v41, %v5411_v17  ;;  %v2828_v58 = vpop.f32.mrf.mxu1  ;;  %v2964_v51 = vadd.f32 %v2963_v1, %v5715_v34 }
 0x24b   :  { %v2566_v53 = vpop.f32.mrf.mxu0 }
 0x24c   :  { %v5784_v6 = vadd.f32 %v2828_v58, %v2565_v7  ;;  %v2830_v55 = vpop.f32.mrf.mxu1  ;;  %v2965_v52 = vadd.f32 %v2964_v51, %v5721_v43 }
 0x24d   :  { %v2567_v4 = vpop.f32.mrf.mxu0 }
 0x24e   :  { %v2568_v48 = vadd.f32 %v2567_v4, %v5425_v36  ;;  %v2831_v20 = vpop.f32.mrf.mxu1  ;;  %v2966_v58 = vadd.f32 %v2965_v52, %v5727_v18 }
 0x24f   :  { %v2569_v62 = vpop.f32.mrf.mxu0 }
 0x250   :  { %v5789_v22 = vadd.f32 %v2831_v20, %v2568_v48  ;;  %v2833_v11 = vpop.f32.mrf.mxu1  ;;  %v2967_v4 = vadd.f32 %v2966_v58, %v5730_v31 }
 0x251   :  { %v2572_v27 = vpop.f32.mrf.mxu0 }
 0x252   :  { %v2573_v17 = vadd.f32 %v2572_v27, %v5427_v44  ;;  %v2836_v14 = vpop.f32.mrf.mxu1  ;;  %v2968_v10 = vadd.f32 %v2967_v4, %v5733_v54 }
 0x253   :  { %v2574_v30 = vpop.f32.mrf.mxu0 }
 0x254   :  { %v5794_v23 = vadd.f32 %v2836_v14, %v2573_v17  ;;  %v2838_v36 = vpop.f32.mrf.mxu1  ;;  %v2969_v1 = vadd.f32 %v2968_v10, %v5736_v21 }
 0x255   :  { %v2575_v49 = vpop.f32.mrf.mxu0 }
 0x256   :  { %v2576_v47 = vadd.f32 %v2575_v49, %v5441_v2  ;;  %v2839_v41 = vpop.f32.mrf.mxu1  ;;  %v2970_v51 = vadd.f32 %v2969_v1, %v5739_v19 }
 0x257   :  { %v2577_v7 = vpop.f32.mrf.mxu0 }
 0x258   :  { %v5799_v53 = vadd.f32 %v2839_v41, %v2576_v47  ;;  %v2841_v55 = vpop.f32.mrf.mxu1  ;;  %v2971_v52 = vadd.f32 %v2970_v51, %v5742_v26 }
 0x259   :  { %v2580_v44 = vpop.f32.mrf.mxu0 }
 0x25a   :  { %v2581_v48 = vadd.f32 %v2580_v44, %v5443_v12  ;;  %v2844_v20 = vpop.f32.mrf.mxu1  ;;  %v2972_v58 = vadd.f32 %v2971_v52, %v5745_v0 }
 0x25b   :  { %v2582_v62 = vpop.f32.mrf.mxu0 }
 0x25c   :  { %v5804_v11 = vadd.f32 %v2844_v20, %v2581_v48  ;;  %v2846_v27 = vpop.f32.mrf.mxu1  ;;  %v2973_v4 = vadd.f32 %v2972_v58, %v5748_v32 }
 0x25d   :  { %v2583_v2 = vpop.f32.mrf.mxu0 }
 0x25e   :  { %v2584_v17 = vadd.f32 %v2583_v2, %v5457_v33  ;;  %v2847_v14 = vpop.f32.mrf.mxu1  ;;  %v2974_v10 = vadd.f32 %v2973_v4, %v5751_v5 }
 0x25f   :  { %v2585_v30 = vpop.f32.mrf.mxu0 }
 0x260   :  { %v5809_v36 = vadd.f32 %v2847_v14, %v2584_v17  ;;  %v2849_v49 = vpop.f32.mrf.mxu1  ;;  %v2975_v1 = vadd.f32 %v2974_v10, %v5754_v37 }
 0x261   :  { %v2588_v12 = vpop.f32.mrf.mxu0 }
 0x262   :  { %v2589_v47 = vadd.f32 %v2588_v12, %v5459_v42  ;;  %v2852_v41 = vpop.f32.mrf.mxu1  ;;  %v2976_v51 = vadd.f32 %v2975_v1, %v5757_v40 }
 0x263   :  { %v2590_v7 = vpop.f32.mrf.mxu0 }
 0x264   :  { %v5814_v55 = vadd.f32 %v2852_v41, %v2589_v47  ;;  %v2854_v44 = vpop.f32.mrf.mxu1  ;;  %v2977_v52 = vadd.f32 %v2976_v51, %v5760_v45 }
 0x265   :  { %v2591_v33 = vpop.f32.mrf.mxu0 }
 0x266   :  { %v2592_v48 = vadd.f32 %v2591_v33, %v5473_v63  ;;  %v2855_v20 = vpop.f32.mrf.mxu1  ;;  %v2978_v58 = vadd.f32 %v2977_v52, %v5763_v59 }
 0x267   :  { %v2593_v62 = vpop.f32.mrf.mxu0 }
 0x268   :  { %v5819_v27 = vadd.f32 %v2855_v20, %v2592_v48  ;;  %v2857_v2 = vpop.f32.mrf.mxu1  ;;  %v2979_v4 = vadd.f32 %v2978_v58, %v5766_v3 }
 0x269   :  { %v2596_v42 = vpop.f32.mrf.mxu0 }
 0x26a   :  { %v2597_v17 = vadd.f32 %v2596_v42, %v5475_v13  ;;  %v2860_v14 = vpop.f32.mrf.mxu1  ;;  %v2980_v10 = vadd.f32 %v2979_v4, %v5769_v16 }
 0x26b   :  { %v2598_v30 = vpop.f32.mrf.mxu0 }
 0x26c   :  { %v5824_v49 = vadd.f32 %v2860_v14, %v2597_v17  ;;  %v2862_v12 = vpop.f32.mrf.mxu1  ;;  %v2981_v1 = vadd.f32 %v2980_v10, %v5772_v24 }
 0x26d   :  { %v2599_v63 = vpop.f32.mrf.mxu0 }
 0x26e   :  { %v2600_v47 = vadd.f32 %v2599_v63, %v5489_v35  ;;  %v2863_v41 = vpop.f32.mrf.mxu1  ;;  %v2982_v51 = vadd.f32 %v2981_v1, %v5775_v39 }
 0x26f   :  { %v2601_v7 = vpop.f32.mrf.mxu0 }
 0x270   :  { %v5829_v44 = vadd.f32 %v2863_v41, %v2600_v47  ;;  %v2865_v33 = vpop.f32.mrf.mxu1  ;;  %v2983_v52 = vadd.f32 %v2982_v51, %v5778_v46 }
 0x271   :  { %v2604_v13 = vpop.f32.mrf.mxu0 }
 0x272   :  { %v2605_v48 = vadd.f32 %v2604_v13, %v5491_v56  ;;  %v2868_v20 = vpop.f32.mrf.mxu1  ;;  %v2984_v58 = vadd.f32 %v2983_v52, %v5781_v61 }
 0x273   :  { %v2606_v62 = vpop.f32.mrf.mxu0 }
 0x274   :  { %v5834_v2 = vadd.f32 %v2868_v20, %v2605_v48  ;;  %v2870_v42 = vpop.f32.mrf.mxu1  ;;  %v2985_v4 = vadd.f32 %v2984_v58, %v5784_v6 }
 0x275   :  { %v2607_v35 = vpop.f32.mrf.mxu0 }
 0x276   :  { %7214 = vst [vmem:[#allocation17_spill] sm:$0xff] %v5834_v2  ;;  %v2608_v17 = vadd.f32 %v2607_v35, %v5505_v9  ;;  %v2871_v14 = vpop.f32.mrf.mxu1  ;;  %v2986_v10 = vadd.f32 %v2985_v4, %v5789_v22 }
 0x277   :  { %v2609_v30 = vpop.f32.mrf.mxu0 }
 0x278   :  { %v5839_v12 = vadd.f32 %v2871_v14, %v2608_v17  ;;  %v2873_v63 = vpop.f32.mrf.mxu1  ;;  %v2987_v1 = vadd.f32 %v2986_v10, %v5794_v23 }
 0x279   :  { %v2612_v56 = vpop.f32.mrf.mxu0 }
 0x27a   :  { %7215 = vst [vmem:[#allocation18_spill] sm:$0xff] %v5839_v12  ;;  %v2613_v47 = vadd.f32 %v2612_v56, %v5507_v29  ;;  %v2876_v41 = vpop.f32.mrf.mxu1  ;;  %v2988_v51 = vadd.f32 %v2987_v1, %v5799_v53 }
 0x27b   :  { %v2614_v7 = vpop.f32.mrf.mxu0 }
 0x27c   :  { %v5844_v33 = vadd.f32 %v2876_v41, %v2613_v47  ;;  %v2878_v13 = vpop.f32.mrf.mxu1  ;;  %v2989_v52 = vadd.f32 %v2988_v51, %v5804_v11 }
 0x27d   :  { %v2615_v9 = vpop.f32.mrf.mxu0 }
 0x27e   :  { %7216 = vst [vmem:[#allocation19_spill] sm:$0xff] %v5844_v33  ;;  %v2616_v48 = vadd.f32 %v2615_v9, %v5521_v57  ;;  %v2879_v20 = vpop.f32.mrf.mxu1  ;;  %v2990_v58 = vadd.f32 %v2989_v52, %v5809_v36 }
 0x27f   :  { %v2617_v62 = vpop.f32.mrf.mxu0 }
 0x280   :  { %v5849_v42 = vadd.f32 %v2879_v20, %v2616_v48  ;;  %v2881_v35 = vpop.f32.mrf.mxu1  ;;  %v2991_v4 = vadd.f32 %v2990_v58, %v5814_v55 }
 0x281   :  { %v2620_v29 = vpop.f32.mrf.mxu0 }
 0x282   :  { %7217 = vst [vmem:[#allocation20_spill] sm:$0xff] %v5849_v42  ;;  %v2621_v17 = vadd.f32 %v2620_v29, %v5523_v8  ;;  %v2884_v14 = vpop.f32.mrf.mxu1  ;;  %v2992_v10 = vadd.f32 %v2991_v4, %v5819_v27 }
 0x283   :  { %v2622_v30 = vpop.f32.mrf.mxu0 }
 0x284   :  { %v5854_v63 = vadd.f32 %v2884_v14, %v2621_v17  ;;  %v2886_v56 = vpop.f32.mrf.mxu1  ;;  %v2993_v1 = vadd.f32 %v2992_v10, %v5824_v49 }
 0x285   :  { %v2623_v57 = vpop.f32.mrf.mxu0 }
 0x286   :  { %7218 = vst [vmem:[#allocation21_spill] sm:$0xff] %v5854_v63  ;;  %v2624_v47 = vadd.f32 %v2623_v57, %v5537_v38  ;;  %v2887_v41 = vpop.f32.mrf.mxu1  ;;  %v2994_v51 = vadd.f32 %v2993_v1, %v5829_v44 }
 0x287   :  { %v2625_v7 = vpop.f32.mrf.mxu0 }
 0x288   :  { %v5859_v13 = vadd.f32 %v2887_v41, %v2624_v47  ;;  %v2889_v9 = vpop.f32.mrf.mxu1  ;;  %v2995_v52 = vadd.f32 %v2994_v51, %v5834_v2  ;;  %v7222_v47 = vld [vmem:[#allocation2_spill] sm:$0xff]  ;;  %v7226_v51 = vld [vmem:[#allocation4_spill] sm:$0xff] }
 0x289   :  { %v2628_v8 = vpop.f32.mrf.mxu0 }
 0x28a   :  { %7219 = vst [vmem:[#allocation22_spill] sm:$0xff] %v5859_v13  ;;  %v2629_v48 = vadd.f32 %v2628_v8, %v5539_v60  ;;  %v2892_v20 = vpop.f32.mrf.mxu1  ;;  %v2996_v9 = vadd.f32 %v2995_v52, %v5839_v12 }
 0x28b   :  { %v2630_v62 = vpop.f32.mrf.mxu0 }
 0x28c   :  { %v5864_v35 = vadd.f32 %v2892_v20, %v2629_v48  ;;  %v2894_v29 = vpop.f32.mrf.mxu1  ;;  %v2997_v48 = vadd.f32 %v2996_v9, %v5844_v33  ;;  %v7224_v20 = vld [vmem:[#allocation3_spill] sm:$0xff] }
 0x28d   :  { %v2631_v38 = vpop.f32.mrf.mxu0 }
 0x28e   :  { %7220 = vst [vmem:[#allocation23_spill] sm:$0xff] %v5864_v35  ;;  %v2632_v17 = vadd.f32 %v2631_v38, %v5553_v28  ;;  %v2895_v14 = vpop.f32.mrf.mxu1  ;;  %v2998_v38 = vadd.f32 %v2997_v48, %v5849_v42 }
 0x28f   :  { %v2633_v30 = vpop.f32.mrf.mxu0 }
 0x290   :  { %v5869_v56 = vadd.f32 %v2895_v14, %v2632_v17  ;;  %v2897_v57 = vpop.f32.mrf.mxu1  ;;  %v2999_v30 = vadd.f32 %v2998_v38, %v5854_v63 }
 0x291   :  { %v2636_v60 = vpop.f32.mrf.mxu0 }
 0x292   :  { %7221 = vst [vmem:[#allocation24_spill] sm:$0xff] %v5869_v56  ;;  %v2637_v41 = vadd.f32 %v2636_v60, %v7222_v47  ;;  %v2900_v7 = vpop.f32.mrf.mxu1  ;;  %v3000_v47 = vadd.f32 %v2999_v30, %v5859_v13 }
 0x293   :  { %v2638_v58 = vpop.f32.mrf.mxu0 }
 0x294   :  { %v5874_v8 = vadd.f32 %v2900_v7, %v2637_v41  ;;  %v2902_v4 = vpop.f32.mrf.mxu1  ;;  %v3001_v9 = vadd.f32 %v3000_v47, %v5864_v35 }
 0x295   :  { %v2639_v28 = vpop.f32.mrf.mxu0  ;;  %v7228_v4 = vld [vmem:[#allocation5_spill] sm:$0xff] }
 0x296   :  { %7223 = vst [vmem:[#allocation2_spill] sm:$0xff] %v5874_v8  ;;  %v2640_v62 = vadd.f32 %v2639_v28, %v7224_v20  ;;  %v2903_v10 = vpop.f32.mrf.mxu1 }
 0x297   :  { %v2641_v29 = vpop.f32.mrf.mxu0 }
 0x298   :  { %v5879_v1 = vadd.f32 %v2903_v10, %v2640_v62  ;;  %v2905_v17 = vpop.f32.mrf.mxu1  ;;  %v3002_v62 = vadd.f32 %v3001_v9, %v5869_v56 }
 0x299   :  { %v2644_v14 = vpop.f32.mrf.mxu0 }
 0x29a   :  { %7225 = vst [vmem:[#allocation3_spill] sm:$0xff] %v5879_v1  ;;  %v2645_v57 = vadd.f32 %v2644_v14, %v7226_v51  ;;  %v2908_v60 = vpop.f32.mrf.mxu1  ;;  %v3003_v17 = vadd.f32 %v3002_v62, %v5874_v8  ;;  %v7230_v14 = vld [vmem:[#allocation6_spill] sm:$0xff]  ;;  %v7236_v8 = vld [vmem:[#allocation11_spill] sm:$0xff] }
 0x29b   :  { %v2646_v52 = vpop.f32.mrf.mxu0 }
 0x29c   :  { %v5884_v41 = vadd.f32 %v2908_v60, %v2645_v57  ;;  %v2910_v7 = vpop.f32.mrf.mxu1  ;;  %v3004_v60 = vadd.f32 %v3003_v17, %v5879_v1 }
 0x29d   :  { %v2647_v58 = vpop.f32.mrf.mxu0 }
 0x29e   :  { %7227 = vst [vmem:[#allocation4_spill] sm:$0xff] %v5884_v41  ;;  %v2648_v28 = vadd.f32 %v2647_v58, %v7228_v4  ;;  %v2911_v48 = vpop.f32.mrf.mxu1  ;;  %v3005_v58 = vadd.f32 %v3004_v60, %v5884_v41  ;;  %v7232_v4 = vld [vmem:[#allocation7_spill] sm:$0xff] }
 0x29f   :  { %v2649_v20 = vpop.f32.mrf.mxu0 }
 0x2a0   :  { %v5889_v10 = vadd.f32 %v2911_v48, %v2648_v28  ;;  %v2913_v29 = vpop.f32.mrf.mxu1 }
 0x2a1   :  { %v2652_v38 = vpop.f32.mrf.mxu0 }
 0x2a2   :  { %7229 = vst [vmem:[#allocation5_spill] sm:$0xff] %v5889_v10  ;;  %v2653_v30 = vadd.f32 %v2652_v38, %v7230_v14  ;;  %v2916_v51 = vpop.f32.mrf.mxu1  ;;  %v3006_v20 = vadd.f32 %v3005_v58, %v5889_v10 }
 0x2a3   :  { %v2654_v57 = vpop.f32.mrf.mxu0 }
 0x2a4   :  { %v5894_v52 = vadd.f32 %v2916_v51, %v2653_v30  ;;  %v2918_v47 = vpop.f32.mrf.mxu1  ;;  %v7233_v57 = vld [vmem:[#allocation8_spill] sm:$0xff] }
 0x2a5   :  { %v2655_v7 = vpop.f32.mrf.mxu0 }
 0x2a6   :  { %7231 = vst [vmem:[#allocation6_spill] sm:$0xff] %v5894_v52  ;;  %v2656_v9 = vadd.f32 %v2655_v7, %v7232_v4  ;;  %v2919_v28 = vpop.f32.mrf.mxu1  ;;  %v3007_v14 = vadd.f32 %v3006_v20, %v5894_v52 }
 0x2a7   :  { %v2657_v48 = vpop.f32.mrf.mxu0 }
 0x2a8   :  { %v5899_v29 = vadd.f32 %v2919_v28, %v2656_v9  ;;  %v2921_v62 = vpop.f32.mrf.mxu1  ;;  %v7234_v48 = vld [vmem:[#allocation9_spill] sm:$0xff] }
 0x2a9   :  { %v2660_v38 = vpop.f32.mrf.mxu0 }
 0x2aa   :  { %v2661_v17 = vadd.f32 %v2660_v38, %v7233_v57  ;;  %v2924_v30 = vpop.f32.mrf.mxu1  ;;  %v3008_v47 = vadd.f32 %v3007_v14, %v5899_v29  ;;  %v7235_v57 = vld [vmem:[#allocation10_spill] sm:$0xff] }
 0x2ab   :  { %v2662_v51 = vpop.f32.mrf.mxu0 }
 0x2ac   :  { %v5904_v1 = vadd.f32 %v2924_v30, %v2661_v17  ;;  %v2926_v60 = vpop.f32.mrf.mxu1 }
 0x2ad   :  { %v2663_v7 = vpop.f32.mrf.mxu0 }
 0x2ae   :  { %v3009_v4 = vadd.f32 %v3008_v47, %v5904_v1  ;;  %v2664_v58 = vadd.f32 %v2663_v7, %v7234_v48  ;;  %v2927_v9 = vpop.f32.mrf.mxu1 }
 0x2af   :  { %v2665_v28 = vpop.f32.mrf.mxu0 }
 0x2b0   :  { %v5908_v62 = vadd.f32 %v2927_v9, %v2664_v58  ;;  %v2929_v10 = vpop.f32.mrf.mxu1 }
 0x2b1   :  { %v2668_v20 = vpop.f32.mrf.mxu0  ;;  %v7237_v10 = vld [vmem:[#allocation12_spill] sm:$0xff] }
 0x2b2   :  { %v3010_v38 = vadd.f32 %v3009_v4, %v5908_v62  ;;  %v2669_v51 = vadd.f32 %v2668_v20, %v7235_v57  ;;  %v2932_v52 = vpop.f32.mrf.mxu1 }
 0x2b3   :  { %v2670_v14 = vpop.f32.mrf.mxu0 }
 0x2b4   :  { %v2933_v17 = vadd.f32 %v2932_v52, %v2669_v51  ;;  %v2934_v30 = vpop.f32.mrf.mxu1  ;;  %v7238_v52 = vld [vmem:[#allocation13_spill] sm:$0xff] }
 0x2b5   :  { %v2671_v60 = vpop.f32.mrf.mxu0 }
 0x2b6   :  { %v3011_v41 = vadd.f32 %v3010_v38, %v2933_v17  ;;  %v2672_v47 = vadd.f32 %v2671_v60, %v7236_v8  ;;  %v2935_v56 = vpop.f32.mrf.mxu1 }
 0x2b7   :  { %v2673_v7 = vpop.f32.mrf.mxu0 }
 0x2b8   :  { %v2936_v48 = vadd.f32 %v2935_v56, %v2672_v47  ;;  %v2937_v28 = vpop.f32.mrf.mxu1  ;;  %v7239_v56 = vld [vmem:[#allocation14_spill] sm:$0xff] }
 0x2b9   :  { %v2676_v58 = vpop.f32.mrf.mxu0 }
 0x2ba   :  { %v3012_v9 = vadd.f32 %v3011_v41, %v2936_v48  ;;  %v2677_v35 = vadd.f32 %v2676_v58, %v7237_v10  ;;  %v2940_v13 = vpop.f32.mrf.mxu1 }
 0x2bb   :  { %v2678_v4 = vpop.f32.mrf.mxu0 }
 0x2bc   :  { %v2941_v63 = vadd.f32 %v2940_v13, %v2677_v35  ;;  %v2942_v20 = vpop.f32.mrf.mxu1  ;;  %v7240_v13 = vld [vmem:[#allocation15_spill] sm:$0xff] }
 0x2bd   :  { %v2679_v57 = vpop.f32.mrf.mxu0 }
 0x2be   :  { %v3013_v14 = vadd.f32 %v3012_v9, %v2941_v63  ;;  %v2680_v51 = vadd.f32 %v2679_v57, %v7238_v52  ;;  %v2943_v30 = vpop.f32.mrf.mxu1 }
 0x2bf   :  { %v2681_v38 = vpop.f32.mrf.mxu0 }
 0x2c0   :  { %v2944_v42 = vadd.f32 %v2943_v30, %v2680_v51  ;;  %v2945_v8 = vpop.f32.mrf.mxu1  ;;  %v7241_v51 = vld [vmem:[#allocation16_spill] sm:$0xff] }
 0x2c1   :  { %v2684_v60 = vpop.f32.mrf.mxu0 }
 0x2c2   :  { %v3014_v7 = vadd.f32 %v3013_v14, %v2944_v42  ;;  %v2685_v47 = vadd.f32 %v2684_v60, %v7239_v56  ;;  %v2948_v28 = vpop.f32.mrf.mxu1 }
 0x2c3   :  { %v2686_v41 = vpop.f32.mrf.mxu0 }
 0x2c4   :  { %v2949_v33 = vadd.f32 %v2948_v28, %v2685_v47  ;;  %v2950_v58 = vpop.f32.mrf.mxu1 }
 0x2c5   :  { %v2687_v10 = vpop.f32.mrf.mxu0 }
 0x2c6   :  { %v3015_v4 = vadd.f32 %v3014_v7, %v2949_v33  ;;  %v2688_v35 = vadd.f32 %v2687_v10, %v7240_v13  ;;  %v2951_v20 = vpop.f32.mrf.mxu1 }
 0x2c7   :  { %v2689_v9 = vpop.f32.mrf.mxu0 }
 0x2c8   :  { %v2952_v12 = vadd.f32 %v2951_v20, %v2688_v35  ;;  %v2953_v57 = vpop.f32.mrf.mxu1 }
 0x2c9   :  { %v2692_v52 = vpop.f32.mrf.mxu0 }
 0x2ca   :  { %v3016_v38 = vadd.f32 %v3015_v4, %v2952_v12  ;;  %v2693_v30 = vadd.f32 %v2692_v52, %v7241_v51  ;;  %v2956_v8 = vpop.f32.mrf.mxu1 }
 0x2cb   :  { %v2694_v14 = vpop.f32.mrf.mxu0 }
 0x2cc   :  { %v5918_v2 = vadd.f32 %v2956_v8, %v2693_v30  ;;  %v2958_v60 = vpop.f32.mrf.mxu1 }
 0x2cd   :  { %v2695_v56 = vpop.f32.mrf.mxu0 }
 0x2ce   :  { %v3017_v47 = vadd.f32 %v3016_v38, %v5918_v2  ;;  %v2959_v28 = vpop.f32.mrf.mxu1 }
 0x2cf   :  { %v2696_v7 = vpop.f32.mrf.mxu0 }
 0x2d0   :  { %v3018_v41 = vrot.slane %v3017_v47, 4  ;;  %v2960_v58 = vpop.f32.mrf.mxu1 }
 0x2d2   :  { %v3019_v10 = vadd.f32 %v3018_v41, %v3017_v47 }
 0x2d4   :  { %v3020_v13 = vrot.slane %v3019_v10, 2 }
 0x2d6   :  { %v3021_v35 = vadd.f32 %v3020_v13, %v3019_v10 }
 0x2d8   :  { %v3022_v20 = vrot.slane %v3021_v35, 1 }
 0x2da   :  { %v3023_v9 = vadd.f32 %v3022_v20, %v3021_v35 }
 0x2dc   :  { %v5921_v4 = vmul.f32 0.0022222223, %v3023_v9 }
 0x2de   :  { %v5925_v57 = vsub.f32 %v5899_v29, %v5921_v4  ;;  %v5929_v52 = vsub.f32 %v5904_v1, %v5921_v4  ;;  %v5933_v38 = vsub.f32 %v5908_v62, %v5921_v4  ;;  %v5936_v51 = vsub.f32 %v2933_v17, %v5921_v4 }
 0x2df   :  { %v5939_v30 = vsub.f32 %v2936_v48, %v5921_v4  ;;  %v5942_v8 = vsub.f32 %v2941_v63, %v5921_v4  ;;  %v5945_v29 = vsub.f32 %v2944_v42, %v5921_v4  ;;  %v5948_v14 = vsub.f32 %v2949_v33, %v5921_v4 }
 0x2e0   :  { %v5951_v1 = vsub.f32 %v2952_v12, %v5921_v4  ;;  %v5957_v17 = vsub.f32 %v5688_v50, %v5921_v4  ;;  %v5961_v63 = vsub.f32 %v5697_v25, %v5921_v4  ;;  %v5965_v42 = vsub.f32 %v5706_v15, %v5921_v4 }
 0x2e1   :  { %v5973_v48 = vsub.f32 %v5715_v34, %v5921_v4  ;;  %v5977_v50 = vsub.f32 %v5721_v43, %v5921_v4  ;;  %v5983_v15 = vsub.f32 %v5727_v18, %v5921_v4  ;;  %v5989_v34 = vsub.f32 %v5730_v31, %v5921_v4 }
 0x2e2   :  { %v3254_v33 = vmul.f32 %v5957_v17, %v5957_v17  ;;  %v3255_v12 = vmul.f32 %v5961_v63, %v5961_v63  ;;  %v3256_v25 = vmul.f32 %v5965_v42, %v5965_v42  ;;  %v5995_v7 = vsub.f32 %v5733_v54, %v5921_v4 }
 0x2e3   :  { %v3257_v56 = vmul.f32 %v5973_v48, %v5973_v48  ;;  %v3258_v43 = vmul.f32 %v5977_v50, %v5977_v50  ;;  %v3259_v18 = vmul.f32 %v5983_v15, %v5983_v15  ;;  %v6001_v58 = vsub.f32 %v5736_v21, %v5921_v4 }
 0x2e4   :  { %v3311_v60 = vadd.f32 %v3255_v12, %v3254_v33  ;;  %v3260_v31 = vmul.f32 %v5989_v34, %v5989_v34  ;;  %v6007_v13 = vsub.f32 %v5739_v19, %v5921_v4  ;;  %v3261_v54 = vmul.f32 %v5995_v7, %v5995_v7 }
 0x2e5   :  { %v6013_v20 = vsub.f32 %v5742_v26, %v5921_v4  ;;  %v3262_v21 = vmul.f32 %v6001_v58, %v6001_v58  ;;  %v6019_v33 = vsub.f32 %v5745_v0, %v5921_v4 }
 0x2e6   :  { %v3312_v47 = vadd.f32 %v3311_v60, %v3256_v25  ;;  %v3263_v19 = vmul.f32 %v6007_v13, %v6007_v13  ;;  %v6025_v25 = vsub.f32 %v5748_v32, %v5921_v4 }
 0x2e7   :  { %v3264_v26 = vmul.f32 %v6013_v20, %v6013_v20  ;;  %v3265_v0 = vmul.f32 %v6019_v33, %v6019_v33 }
 0x2e8   :  { %v3313_v28 = vadd.f32 %v3312_v47, %v3257_v56  ;;  %v6031_v56 = vsub.f32 %v5751_v5, %v5921_v4  ;;  %v3266_v32 = vmul.f32 %v6025_v25, %v6025_v25 }
 0x2ea   :  { %v3314_v41 = vadd.f32 %v3313_v28, %v3258_v43  ;;  %v6037_v43 = vsub.f32 %v5754_v37, %v5921_v4  ;;  %v3267_v5 = vmul.f32 %v6031_v56, %v6031_v56 }
 0x2ec   :  { %v3315_v10 = vadd.f32 %v3314_v41, %v3259_v18  ;;  %v6043_v18 = vsub.f32 %v5757_v40, %v5921_v4  ;;  %v3268_v37 = vmul.f32 %v6037_v43, %v6037_v43 }
 0x2ee   :  { %v3316_v35 = vadd.f32 %v3315_v10, %v3260_v31  ;;  %v6049_v31 = vsub.f32 %v5760_v45, %v5921_v4  ;;  %v3269_v40 = vmul.f32 %v6043_v18, %v6043_v18 }
 0x2f0   :  { %v3317_v9 = vadd.f32 %v3316_v35, %v3261_v54  ;;  %v6055_v54 = vsub.f32 %v5763_v59, %v5921_v4  ;;  %v3270_v45 = vmul.f32 %v6049_v31, %v6049_v31 }
 0x2f2   :  { %v3318_v12 = vadd.f32 %v3317_v9, %v3262_v21  ;;  %v6061_v21 = vsub.f32 %v5766_v3, %v5921_v4  ;;  %v3271_v59 = vmul.f32 %v6055_v54, %v6055_v54 }
 0x2f4   :  { %v3319_v60 = vadd.f32 %v3318_v12, %v3263_v19  ;;  %v6067_v19 = vsub.f32 %v5769_v16, %v5921_v4  ;;  %v3272_v3 = vmul.f32 %v6061_v21, %v6061_v21 }
 0x2f6   :  { %v3320_v47 = vadd.f32 %v3319_v60, %v3264_v26  ;;  %v6073_v26 = vsub.f32 %v5772_v24, %v5921_v4  ;;  %v3273_v16 = vmul.f32 %v6067_v19, %v6067_v19 }
 0x2f8   :  { %v3321_v28 = vadd.f32 %v3320_v47, %v3265_v0  ;;  %v6079_v0 = vsub.f32 %v5775_v39, %v5921_v4  ;;  %v3274_v24 = vmul.f32 %v6073_v26, %v6073_v26 }
 0x2fa   :  { %v3322_v41 = vadd.f32 %v3321_v28, %v3266_v32  ;;  %v6085_v32 = vsub.f32 %v5778_v46, %v5921_v4  ;;  %v3275_v39 = vmul.f32 %v6079_v0, %v6079_v0 }
 0x2fc   :  { %v3323_v10 = vadd.f32 %v3322_v41, %v3267_v5  ;;  %v6091_v5 = vsub.f32 %v5781_v61, %v5921_v4  ;;  %v3276_v46 = vmul.f32 %v6085_v32, %v6085_v32 }
 0x2fe   :  { %v3324_v35 = vadd.f32 %v3323_v10, %v3268_v37  ;;  %v6097_v37 = vsub.f32 %v5784_v6, %v5921_v4  ;;  %v3277_v61 = vmul.f32 %v6091_v5, %v6091_v5 }
 0x300   :  { %v3325_v9 = vadd.f32 %v3324_v35, %v3269_v40  ;;  %v6103_v40 = vsub.f32 %v5789_v22, %v5921_v4  ;;  %v3278_v6 = vmul.f32 %v6097_v37, %v6097_v37 }
 0x302   :  { %v3326_v12 = vadd.f32 %v3325_v9, %v3270_v45  ;;  %v6109_v45 = vsub.f32 %v5794_v23, %v5921_v4  ;;  %v3279_v22 = vmul.f32 %v6103_v40, %v6103_v40 }
 0x304   :  { %v3327_v60 = vadd.f32 %v3326_v12, %v3271_v59  ;;  %v6115_v59 = vsub.f32 %v5799_v53, %v5921_v4  ;;  %v3280_v23 = vmul.f32 %v6109_v45, %v6109_v45 }
 0x306   :  { %v3328_v47 = vadd.f32 %v3327_v60, %v3272_v3  ;;  %v6121_v3 = vsub.f32 %v5804_v11, %v5921_v4  ;;  %v3281_v53 = vmul.f32 %v6115_v59, %v6115_v59 }
 0x308   :  { %v3329_v28 = vadd.f32 %v3328_v47, %v3273_v16  ;;  %v6127_v16 = vsub.f32 %v5809_v36, %v5921_v4  ;;  %v3282_v11 = vmul.f32 %v6121_v3, %v6121_v3 }
 0x30a   :  { %v3330_v41 = vadd.f32 %v3329_v28, %v3274_v24  ;;  %v6133_v24 = vsub.f32 %v5814_v55, %v5921_v4  ;;  %v3283_v36 = vmul.f32 %v6127_v16, %v6127_v16 }
 0x30c   :  { %v3331_v10 = vadd.f32 %v3330_v41, %v3275_v39  ;;  %v6139_v39 = vsub.f32 %v5819_v27, %v5921_v4  ;;  %v3284_v55 = vmul.f32 %v6133_v24, %v6133_v24 }
 0x30e   :  { %v3332_v35 = vadd.f32 %v3331_v10, %v3276_v46  ;;  %v6145_v46 = vsub.f32 %v5824_v49, %v5921_v4  ;;  %v3285_v27 = vmul.f32 %v6139_v39, %v6139_v39 }
 0x310   :  { %v3333_v9 = vadd.f32 %v3332_v35, %v3277_v61  ;;  %7242 = vst [vmem:[#allocation7_spill] sm:$0xff] %v6145_v46  ;;  %v6151_v61 = vsub.f32 %v5829_v44, %v5921_v4  ;;  %v3286_v49 = vmul.f32 %v6145_v46, %v6145_v46 }
 0x312   :  { %v3334_v12 = vadd.f32 %v3333_v9, %v3278_v6  ;;  %7243 = vst [vmem:[#allocation8_spill] sm:$0xff] %v6151_v61  ;;  %v7244_v6 = vld [vmem:[#allocation17_spill] sm:$0xff]  ;;  %v3287_v44 = vmul.f32 %v6151_v61, %v6151_v61 }
 0x313   :  { %v6157_v9 = vsub.f32 %v7244_v6, %v5921_v4 }
 0x314   :  { %v3335_v60 = vadd.f32 %v3334_v12, %v3279_v22  ;;  %v7246_v12 = vld [vmem:[#allocation18_spill] sm:$0xff] }
 0x315   :  { %7245 = vst [vmem:[#allocation9_spill] sm:$0xff] %v6157_v9 }
 0x316   :  { %v3336_v47 = vadd.f32 %v3335_v60, %v3280_v23  ;;  %v6163_v23 = vsub.f32 %v7246_v12, %v5921_v4 }
 0x318   :  { %v3337_v28 = vadd.f32 %v3336_v47, %v3281_v53  ;;  %7247 = vst [vmem:[#allocation10_spill] sm:$0xff] %v6163_v23  ;;  %v7248_v53 = vld [vmem:[#allocation19_spill] sm:$0xff] }
 0x319   :  { %v6169_v47 = vsub.f32 %v7248_v53, %v5921_v4  ;;  %v7256_v53 = vld [vmem:[#allocation23_spill] sm:$0xff] }
 0x31a   :  { %v3338_v41 = vadd.f32 %v3337_v28, %v3282_v11  ;;  %v3288_v11 = vmul.f32 %v6157_v9, %v6157_v9 }
 0x31b   :  { %7249 = vst [vmem:[#allocation11_spill] sm:$0xff] %v6169_v47  ;;  %v3290_v6 = vmul.f32 %v6169_v47, %v6169_v47  ;;  %v3025_v47 = vlaneseq }
 0x31c   :  { %v3339_v10 = vadd.f32 %v3338_v41, %v3283_v36  ;;  %v7250_v36 = vld [vmem:[#allocation20_spill] sm:$0xff] }
 0x31d   :  { %v6175_v41 = vsub.f32 %v7250_v36, %v5921_v4  ;;  %v6193_v36 = vsub.f32 %v7256_v53, %v5921_v4  ;;  %v7262_v53 = vld [vmem:[#allocation3_spill] sm:$0xff] }
 0x31e   :  { %v3340_v35 = vadd.f32 %v3339_v10, %v3284_v55  ;;  %v3289_v55 = vmul.f32 %v6163_v23, %v6163_v23 }
 0x31f   :  { %7251 = vst [vmem:[#allocation12_spill] sm:$0xff] %v6175_v41  ;;  %7257 = vst [vmem:[#allocation15_spill] sm:$0xff] %v6193_v36 }
 0x320   :  { %v3341_v22 = vadd.f32 %v3340_v35, %v3285_v27  ;;  %v7252_v27 = vld [vmem:[#allocation21_spill] sm:$0xff] }
 0x321   :  { %v6181_v35 = vsub.f32 %v7252_v27, %v5921_v4  ;;  %v7258_v27 = vld [vmem:[#allocation24_spill] sm:$0xff] }
 0x322   :  { %v3342_v60 = vadd.f32 %v3341_v22, %v3286_v49  ;;  %v7254_v22 = vld [vmem:[#allocation22_spill] sm:$0xff]  ;;  %v6199_v62 = vsub.f32 %v7258_v27, %v5921_v4  ;;  %v7264_v27 = vld [vmem:[#allocation4_spill] sm:$0xff] }
 0x323   :  { %7253 = vst [vmem:[#allocation13_spill] sm:$0xff] %v6181_v35  ;;  %v6187_v12 = vsub.f32 %v7254_v22, %v5921_v4  ;;  %v7260_v22 = vld [vmem:[#allocation2_spill] sm:$0xff] }
 0x324   :  { %v3343_v28 = vadd.f32 %v3342_v60, %v3287_v44  ;;  %v3291_v44 = vmul.f32 %v6175_v41, %v6175_v41  ;;  %7259 = vst [vmem:[#allocation16_spill] sm:$0xff] %v6199_v62  ;;  %v6205_v41 = vsub.f32 %v7260_v22, %v5921_v4  ;;  %v7266_v22 = vld [vmem:[#allocation5_spill] sm:$0xff] }
 0x325   :  { %7255 = vst [vmem:[#allocation14_spill] sm:$0xff] %v6187_v12 }
 0x326   :  { %v3344_v10 = vadd.f32 %v3343_v28, %v3288_v11  ;;  %v3292_v11 = vmul.f32 %v6181_v35, %v6181_v35  ;;  %7261 = vst [vmem:[#allocation17_spill] sm:$0xff] %v6205_v41  ;;  %v6211_v35 = vsub.f32 %v7262_v53, %v5921_v4  ;;  %v7268_v53 = vld [vmem:[#allocation6_spill] sm:$0xff] }
 0x328   :  { %v3345_v49 = vadd.f32 %v3344_v10, %v3289_v55  ;;  %v3293_v55 = vmul.f32 %v6187_v12, %v6187_v12  ;;  %7263 = vst [vmem:[#allocation18_spill] sm:$0xff] %v6211_v35  ;;  %v6217_v12 = vsub.f32 %v7264_v27, %v5921_v4 }
 0x32a   :  { %v3346_v60 = vadd.f32 %v3345_v49, %v3290_v6  ;;  %v3294_v6 = vmul.f32 %v6193_v36, %v6193_v36  ;;  %7265 = vst [vmem:[#allocation19_spill] sm:$0xff] %v6217_v12  ;;  %v6223_v36 = vsub.f32 %v7266_v22, %v5921_v4  ;;  %v3301_v22 = vmul.f32 %v5925_v57, %v5925_v57 }
 0x32c   :  { %v3347_v28 = vadd.f32 %v3346_v60, %v3291_v44  ;;  %v3295_v44 = vmul.f32 %v6199_v62, %v6199_v62  ;;  %7267 = vst [vmem:[#allocation20_spill] sm:$0xff] %v6223_v36  ;;  %v3186_v62 = vsub.f32 %v7268_v53, %v5921_v4  ;;  %v3299_v27 = vmul.f32 %v6223_v36, %v6223_v36 }
 0x32d   :  { %v3026_v53 = vshrl.u32 %v3025_v47, 7 }
 0x32e   :  { %v3348_v10 = vadd.f32 %v3347_v28, %v3292_v11  ;;  %v3296_v11 = vmul.f32 %v6205_v41, %v6205_v41 }
 0x330   :  { %v3349_v49 = vadd.f32 %v3348_v10, %v3293_v55  ;;  %v3297_v55 = vmul.f32 %v6211_v35, %v6211_v35 }
 0x332   :  { %v3350_v60 = vadd.f32 %v3349_v49, %v3294_v6  ;;  %v3298_v6 = vmul.f32 %v6217_v12, %v6217_v12  ;;  %v3303_v12 = vmul.f32 %v5933_v38, %v5933_v38 }
 0x334   :  { %v3351_v28 = vadd.f32 %v3350_v60, %v3295_v44  ;;  %v3300_v44 = vmul.f32 %v3186_v62, %v3186_v62 }
 0x336   :  { %v3352_v10 = vadd.f32 %v3351_v28, %v3296_v11  ;;  %v3302_v11 = vmul.f32 %v5929_v52, %v5929_v52 }
 0x338   :  { %v3353_v49 = vadd.f32 %v3352_v10, %v3297_v55  ;;  %v3304_v10 = vmul.f32 %v5936_v51, %v5936_v51 }
 0x33a   :  { %v3354_v41 = vadd.f32 %v3353_v49, %v3298_v6  ;;  %v3082_v49 = vadd.s32 448, %v3026_v53 }
 0x33c   :  { %v3355_v60 = vadd.f32 %v3354_v41, %v3299_v27  ;;  %v3305_v41 = vmul.f32 %v5939_v30, %v5939_v30  ;;  %vm3139_vm0 = vcmp.lt.s32.totalorder %v3082_v49, 450 }
 0x33e   :  { %v3356_v23 = vadd.f32 %v3355_v60, %v3300_v44  ;;  %v3306_v44 = vmul.f32 %v5942_v8, %v5942_v8 }
 0x340   :  { %v3357_v28 = vadd.f32 %v3356_v23, %v3301_v22  ;;  %v3307_v23 = vmul.f32 %v5945_v29, %v5945_v29  ;;  %v3308_v22 = vmul.f32 %v5948_v14, %v5948_v14 }
 0x342   :  { %v3358_v55 = vadd.f32 %v3357_v28, %v3302_v11 }
 0x344   :  { %v3359_v6 = vadd.f32 %v3358_v55, %v3303_v12  ;;  %v7269_v12 = vsub.f32 %v5918_v2, %v5921_v4  ;;  %v3309_v55 = vmul.f32 %v5951_v1, %v5951_v1  ;;  %v3374_v2 = vld [vmem:[%s7135_s2] sm:$0x1] }
 0x346   :  { %v3360_v27 = vadd.f32 %v3359_v6, %v3304_v10  ;;  %v3253_v28 = vsel %vm3139_vm0, %v7269_v12, 0.0 }
 0x347   :  { %v3310_v6 = vmul.f32 %v3253_v28, %v3253_v28 }
 0x348   :  { %v3361_v60 = vadd.f32 %v3360_v27, %v3305_v41 }
 0x34a   :  { %v3362_v47 = vadd.f32 %v3361_v60, %v3306_v44 }
 0x34c   :  { %v3363_v11 = vadd.f32 %v3362_v47, %v3307_v23  ;;  %v3381_v47 = vsub.s32 0, %v3026_v53 }
 0x34e   :  { %v3364_v10 = vadd.f32 %v3363_v11, %v3308_v22 }
 0x350   :  { %v3365_v36 = vadd.f32 %v3364_v10, %v3309_v55 }
 0x352   :  { %v3366_v41 = vadd.f32 %v3365_v36, %v3310_v6  ;;  %v7275_v6 = vld [vmem:[#allocation7_spill] sm:$0xff] }
 0x354   :  { %v3367_v49 = vrot.slane %v3366_v41, 4 }
 0x356   :  { %v3368_v27 = vadd.f32 %v3367_v49, %v3366_v41  ;;  %v7276_v41 = vld [vmem:[#allocation8_spill] sm:$0xff]  ;;  %v7277_v49 = vld [vmem:[#allocation9_spill] sm:$0xff] }
 0x358   :  { %v3369_v35 = vrot.slane %v3368_v27, 2 }
 0x35a   :  { %v3370_v9 = vadd.f32 %v3369_v35, %v3368_v27  ;;  %v7278_v27 = vld [vmem:[#allocation10_spill] sm:$0xff] }
 0x35c   :  { %v3371_v44 = vrot.slane %v3370_v9, 1 }
 0x35e   :  { %v3372_v60 = vadd.f32 %v3371_v44, %v3370_v9  ;;  %v7279_v44 = vld [vmem:[#allocation11_spill] sm:$0xff] }
 0x360   :  { %v3373_v61 = vmul.f32 0.0022222223, %v3372_v60 }
 0x362   :  { %v3375_v46 = vadd.f32 1e-05, %v3373_v61 }
 0x364   :  { %4617 = vrsqrt.f32 %v3375_v46 }
 0x371   :  { %v4618_v23 = vpop.eup %4617 }
 0x372   :  { %v3377_v4 = vmul.f32 %v4618_v23, %v3374_v2  ;;  %v7283_v2 = vld [vmem:[#allocation15_spill] sm:$0xff] }
 0x374   :  { %v3382_v22 = vrot.slane %v3377_v4, %v3381_v47  ;;  %v7284_v47 = vld [vmem:[#allocation16_spill] sm:$0xff] }
 0x376   :  { %v6257_v11 = vmul.f32 %v3382_v22, %v3186_v62  ;;  %v6260_v36 = vmul.f32 %v3382_v22, %v5925_v57  ;;  %v6263_v35 = vmul.f32 %v3382_v22, %v5929_v52  ;;  %v6266_v9 = vmul.f32 %v3382_v22, %v5933_v38 }
 0x377   :  { %v6269_v46 = vmul.f32 %v3382_v22, %v5936_v51  ;;  %v6272_v61 = vmul.f32 %v3382_v22, %v5939_v30  ;;  %v6275_v53 = vmul.f32 %v3382_v22, %v5942_v8  ;;  %v6278_v62 = vmul.f32 %v3382_v22, %v5945_v29 }
 0x378   :  { %v6281_v57 = vmul.f32 %v3382_v22, %v5948_v14  ;;  %v6284_v52 = vmul.f32 %v3382_v22, %v5951_v1  ;;  %v3384_v38 = vmul.f32 %v3382_v22, %v5957_v17  ;;  %v6287_v12 = vmul.f32 %v3382_v22, %v3253_v28 }
 0x379   :  { %7270 = vst [vmem:[#allocation21_spill] sm:$0xff] %v6275_v53  ;;  %7271 = vst [vmem:[#allocation22_spill] sm:$0xff] %v6278_v62  ;;  %v3385_v51 = vmul.f32 %v3382_v22, %v5961_v63  ;;  %v3386_v30 = vmul.f32 %v3382_v22, %v5965_v42  ;;  %v3387_v8 = vmul.f32 %v3382_v22, %v5973_v48 }
 0x37a   :  { %7272 = vst [vmem:[#allocation23_spill] sm:$0xff] %v6281_v57  ;;  %7273 = vst [vmem:[#allocation24_spill] sm:$0xff] %v6284_v52  ;;  %v3388_v55 = vmul.f32 %v3382_v22, %v5977_v50  ;;  %v3389_v29 = vmul.f32 %v3382_v22, %v5983_v15  ;;  %v3390_v14 = vmul.f32 %v3382_v22, %v5989_v34  ;;  %v7288_v57 = vld [vmem:[#allocation20_spill] sm:$0xff] }
 0x37b   :  { %7274 = vst [vmem:[#allocation2_spill] sm:$0xff] %v6287_v12  ;;  %v3391_v10 = vmul.f32 %v3382_v22, %v5995_v7  ;;  %v3392_v1 = vmul.f32 %v3382_v22, %v6001_v58  ;;  %v3393_v17 = vmul.f32 %v3382_v22, %v6007_v13  ;;  %v3394_v28 = vmul.f32 %v3382_v22, %v6013_v20 }
 0x37c   :  { %v3395_v63 = vmul.f32 %v3382_v22, %v6019_v33  ;;  %v3396_v42 = vmul.f32 %v3382_v22, %v6025_v25  ;;  %v3397_v48 = vmul.f32 %v3382_v22, %v6031_v56  ;;  %v3398_v50 = vmul.f32 %v3382_v22, %v6037_v43 }
 0x37d   :  { %v3399_v15 = vmul.f32 %v3382_v22, %v6043_v18  ;;  %v3400_v34 = vmul.f32 %v3382_v22, %v6049_v31  ;;  %v3401_v7 = vmul.f32 %v3382_v22, %v6055_v54  ;;  %v3402_v58 = vmul.f32 %v3382_v22, %v6061_v21 }
 0x37e   :  { %v3403_v13 = vmul.f32 %v3382_v22, %v6067_v19  ;;  %v3404_v20 = vmul.f32 %v3382_v22, %v6073_v26  ;;  %v3405_v33 = vmul.f32 %v3382_v22, %v6079_v0  ;;  %v3406_v25 = vmul.f32 %v3382_v22, %v6085_v32 }
 0x37f   :  { %v3407_v56 = vmul.f32 %v3382_v22, %v6091_v5  ;;  %v3408_v43 = vmul.f32 %v3382_v22, %v6097_v37  ;;  %v3409_v18 = vmul.f32 %v3382_v22, %v6103_v40  ;;  %v3410_v31 = vmul.f32 %v3382_v22, %v6109_v45 }
 0x380   :  { %v3411_v54 = vmul.f32 %v3382_v22, %v6115_v59  ;;  %v3412_v21 = vmul.f32 %v3382_v22, %v6121_v3  ;;  %v3413_v19 = vmul.f32 %v3382_v22, %v6127_v16  ;;  %v3414_v26 = vmul.f32 %v3382_v22, %v6133_v24  ;;  %v6328_v59 = vld [vmem:[%s7136_s3] ss:$0 sm:$0xff]  ;;  %v7280_v3 = vld [vmem:[#allocation12_spill] sm:$0xff]  ;;  %v7281_v24 = vld [vmem:[#allocation13_spill] sm:$0xff] }
 0x381   :  { %v3415_v0 = vmul.f32 %v3382_v22, %v6139_v39  ;;  %v3416_v32 = vmul.f32 %v3382_v22, %v7275_v6  ;;  %v3417_v5 = vmul.f32 %v3382_v22, %v7276_v41  ;;  %v3418_v37 = vmul.f32 %v3382_v22, %v7277_v49  ;;  %v7282_v39 = vld [vmem:[#allocation14_spill] sm:$0xff]  ;;  %v7285_v41 = vld [vmem:[#allocation17_spill] sm:$0xff] }
 0x382   :  { %v3419_v40 = vmul.f32 %v3382_v22, %v7278_v27  ;;  %v3420_v45 = vmul.f32 %v3382_v22, %v7279_v44  ;;  %v3421_v16 = vmul.f32 %v3382_v22, %v7280_v3  ;;  %v3422_v60 = vmul.f32 %v3382_v22, %v7281_v24  ;;  %v7286_v27 = vld [vmem:[#allocation18_spill] sm:$0xff]  ;;  %v7287_v44 = vld [vmem:[#allocation19_spill] sm:$0xff] }
 0x383   :  { %v3423_v23 = vmul.f32 %v3382_v22, %v7282_v39  ;;  %v3424_v4 = vmul.f32 %v3382_v22, %v7283_v2  ;;  %v3425_v6 = vmul.f32 %v3382_v22, %v7284_v47  ;;  %v3426_v49 = vmul.f32 %v3382_v22, %v7285_v41  ;;  %v7307_v41 = vld [vmem:[#allocation23_spill] sm:$0xff] }
 0x384   :  { %v3427_v12 = vmul.f32 %v3382_v22, %v7286_v27  ;;  %v3428_v52 = vmul.f32 %v3382_v22, %v7287_v44  ;;  %v3429_v62 = vmul.f32 %v3382_v22, %v7288_v57  ;;  %v6340_v53 = vadd.f32 %v6328_v59, %v3384_v38  ;;  %v7311_v27 = vld [vmem:[#allocation2_spill] sm:$0xff] }
 0x385   :  { %v6343_v3 = vadd.f32 %v6328_v59, %v3385_v51  ;;  %v6346_v24 = vadd.f32 %v6328_v59, %v3386_v30  ;;  %v6349_v39 = vadd.f32 %v6328_v59, %v3387_v8  ;;  %v6352_v2 = vadd.f32 %v6328_v59, %v3388_v55 }
 0x386   :  { %v6355_v47 = vadd.f32 %v6328_v59, %v3389_v29  ;;  %v6358_v22 = vadd.f32 %v6328_v59, %v3390_v14  ;;  %v6361_v57 = vadd.f32 %v6328_v59, %v3391_v10  ;;  %v6364_v38 = vadd.f32 %v6328_v59, %v3392_v1 }
 0x387   :  { %v6367_v51 = vadd.f32 %v6328_v59, %v3393_v17  ;;  %v6370_v30 = vadd.f32 %v6328_v59, %v3394_v28  ;;  %v6373_v8 = vadd.f32 %v6328_v59, %v3395_v63  ;;  %v6376_v55 = vadd.f32 %v6328_v59, %v3396_v42 }
 0x388   :  { %v6379_v29 = vadd.f32 %v6328_v59, %v3397_v48  ;;  %v6382_v14 = vadd.f32 %v6328_v59, %v3398_v50  ;;  %v6385_v10 = vadd.f32 %v6328_v59, %v3399_v15  ;;  %v6388_v1 = vadd.f32 %v6328_v59, %v3400_v34 }
 0x389   :  { %v6391_v17 = vadd.f32 %v6328_v59, %v3401_v7  ;;  %v6394_v28 = vadd.f32 %v6328_v59, %v3402_v58  ;;  %v6397_v63 = vadd.f32 %v6328_v59, %v3403_v13  ;;  %v6400_v42 = vadd.f32 %v6328_v59, %v3404_v20 }
 0x38a   :  { %v6403_v48 = vadd.f32 %v6328_v59, %v3405_v33  ;;  %v6406_v50 = vadd.f32 %v6328_v59, %v3406_v25  ;;  %v6409_v15 = vadd.f32 %v6328_v59, %v3407_v56  ;;  %v6412_v34 = vadd.f32 %v6328_v59, %v3408_v43 }
 0x38b   :  { %v6415_v7 = vadd.f32 %v6328_v59, %v3409_v18  ;;  %v6418_v58 = vadd.f32 %v6328_v59, %v3410_v31  ;;  %v6421_v13 = vadd.f32 %v6328_v59, %v3411_v54  ;;  %v6424_v20 = vadd.f32 %v6328_v59, %v3412_v21 }
 0x38c   :  { %v6427_v33 = vadd.f32 %v6328_v59, %v3413_v19  ;;  %v6430_v25 = vadd.f32 %v6328_v59, %v3414_v26  ;;  %v6433_v56 = vadd.f32 %v6328_v59, %v3415_v0  ;;  %v6436_v43 = vadd.f32 %v6328_v59, %v3416_v32 }
 0x38d   :  { %v6439_v18 = vadd.f32 %v6328_v59, %v3417_v5  ;;  %v6442_v31 = vadd.f32 %v6328_v59, %v3418_v37  ;;  %v6445_v54 = vadd.f32 %v6328_v59, %v3419_v40  ;;  %v6448_v21 = vadd.f32 %v6328_v59, %v3420_v45 }
 0x38e   :  { %v6451_v19 = vadd.f32 %v6328_v59, %v3421_v16  ;;  %v6454_v26 = vadd.f32 %v6328_v59, %v3422_v60  ;;  %v6457_v0 = vadd.f32 %v6328_v59, %v3423_v23  ;;  %v6460_v32 = vadd.f32 %v6328_v59, %v3424_v4 }
 0x38f   :  { %v6463_v5 = vadd.f32 %v6328_v59, %v3425_v6  ;;  %v6466_v37 = vadd.f32 %v6328_v59, %v3426_v49  ;;  %v6469_v40 = vadd.f32 %v6328_v59, %v3427_v12  ;;  %v6472_v45 = vadd.f32 %v6328_v59, %v3428_v52  ;;  %v7303_v52 = vld [vmem:[#allocation21_spill] sm:$0xff]  ;;  %v7305_v6 = vld [vmem:[#allocation22_spill] sm:$0xff]  ;;  %v7309_v49 = vld [vmem:[#allocation24_spill] sm:$0xff] }
 0x390   :  { %7289 = vst [vmem:[#allocation3_spill] sm:$0xff] %v6454_v26  ;;  %7290 = vst [vmem:[#allocation4_spill] sm:$0xff] %v6457_v0  ;;  %v6475_v16 = vadd.f32 %v6328_v59, %v3429_v62  ;;  %v6479_v60 = vadd.f32 %v6328_v59, %v6257_v11  ;;  %v6483_v23 = vadd.f32 %v6328_v59, %v6260_v36  ;;  %vm3505_vm1 = vcmp.ge.f32.partialorder %v6340_v53, 0.0 }
 0x391   :  { %7291 = vst [vmem:[#allocation5_spill] sm:$0xff] %v6460_v32  ;;  %7292 = vst [vmem:[#allocation6_spill] sm:$0xff] %v6463_v5  ;;  %v6487_v4 = vadd.f32 %v6328_v59, %v6263_v35  ;;  %v6491_v12 = vadd.f32 %v6328_v59, %v6266_v9  ;;  %v6495_v62 = vadd.f32 %v6328_v59, %v6269_v46  ;;  %vm3506_vm2 = vcmp.ge.f32.partialorder %v6343_v3, 0.0 }
 0x392   :  { %7293 = vst [vmem:[#allocation7_spill] sm:$0xff] %v6466_v37  ;;  %7294 = vst [vmem:[#allocation8_spill] sm:$0xff] %v6469_v40  ;;  %v6499_v11 = vadd.f32 %v6328_v59, %v6272_v61  ;;  %v6503_v36 = vadd.f32 %v6328_v59, %v7303_v52  ;;  %v6507_v35 = vadd.f32 %v6328_v59, %v7305_v6  ;;  %vm3507_vm3 = vcmp.ge.f32.partialorder %v6346_v24, 0.0 }
 0x393   :  { %7295 = vst [vmem:[#allocation9_spill] sm:$0xff] %v6472_v45  ;;  %7296 = vst [vmem:[#allocation10_spill] sm:$0xff] %v6475_v16  ;;  %v6511_v9 = vadd.f32 %v6328_v59, %v7307_v41  ;;  %v6515_v46 = vadd.f32 %v6328_v59, %v7309_v49  ;;  %vm3508_vm4 = vcmp.ge.f32.partialorder %v6349_v39, 0.0  ;;  %vm3509_vm5 = vcmp.ge.f32.partialorder %v6352_v2, 0.0 }
 0x394   :  { %7297 = vst [vmem:[#allocation11_spill] sm:$0xff] %v6479_v60  ;;  %7298 = vst [vmem:[#allocation12_spill] sm:$0xff] %v6483_v23  ;;  %vm3510_vm6 = vcmp.ge.f32.partialorder %v6355_v47, 0.0  ;;  %vm3511_vm7 = vcmp.ge.f32.partialorder %v6358_v22, 0.0  ;;  %vm3512_vm8 = vcmp.ge.f32.partialorder %v6361_v57, 0.0  ;;  %vm3513_vm9 = vcmp.ge.f32.partialorder %v6364_v38, 0.0 }
 0x395   :  { %7299 = vst [vmem:[#allocation13_spill] sm:$0xff] %v6487_v4  ;;  %7300 = vst [vmem:[#allocation14_spill] sm:$0xff] %v6491_v12  ;;  %vm3514_vm10 = vcmp.ge.f32.partialorder %v6367_v51, 0.0  ;;  %v3562_v61 = vmul.f32 0.2, %v6340_v53  ;;  %v6530_v44 = vadd.f32 %v6328_v59, %v7311_v27  ;;  %vm3515_vm11 = vcmp.ge.f32.partialorder %v6370_v30, 0.0 }
 0x396   :  { %7301 = vst [vmem:[#allocation15_spill] sm:$0xff] %v6495_v62  ;;  %7302 = vst [vmem:[#allocation16_spill] sm:$0xff] %v6499_v11  ;;  %v3563_v52 = vmul.f32 0.2, %v6343_v3  ;;  %v3564_v6 = vmul.f32 0.2, %v6346_v24 }
 0x397   :  { %7304 = vst [vmem:[#allocation17_spill] sm:$0xff] %v6503_v36  ;;  %7306 = vst [vmem:[#allocation18_spill] sm:$0xff] %v6507_v35  ;;  %v3565_v41 = vmul.f32 0.2, %v6349_v39  ;;  %vm3516_vm12 = vcmp.ge.f32.partialorder %v6373_v8, 0.0  ;;  %v6543_v59 = vsel %vm3505_vm1, %v6340_v53, %v3562_v61  ;;  %vm3517_vm13 = vcmp.ge.f32.partialorder %v6376_v55, 0.0 }
 0x398   :  { %7308 = vst [vmem:[#allocation19_spill] sm:$0xff] %v6511_v9  ;;  %7310 = vst [vmem:[#allocation20_spill] sm:$0xff] %v6515_v46  ;;  %v3566_v49 = vmul.f32 0.2, %v6352_v2  ;;  %v3567_v46 = vmul.f32 0.2, %v6355_v47  ;;  %v6552_v36 = vsel %vm3506_vm2, %v6343_v3, %v3563_v52 }
 0x399   :  { %7312 = vst [vmem:[#allocation21_spill] sm:$0xff] %v6530_v44  ;;  %v3568_v9 = vmul.f32 0.2, %v6358_v22  ;;  %7313 = vst [vmem:[#allocation22_spill] sm:$0xff] %v6543_v59  ;;  %v3569_v27 = vmul.f32 0.2, %v6361_v57  ;;  %v6565_v59 = vsel %vm3507_vm3, %v6346_v24, %v3564_v6  ;;  %v6580_v62 = vsel %vm3508_vm4, %v6349_v39, %v3565_v41 }
 0x39a   :  { %v3570_v44 = vmul.f32 0.2, %v6364_v38  ;;  %v3571_v35 = vmul.f32 0.2, %v6367_v51  ;;  %7314 = vst [vmem:[#allocation23_spill] sm:$0xff] %v6552_v36  ;;  %vm3518_vm14 = vcmp.ge.f32.partialorder %v6379_v29, 0.0 }
 0x39b   :  { %v3572_v11 = vmul.f32 0.2, %v6370_v30  ;;  %v6557_v53 = vmul.f32 0.2, %v6373_v8  ;;  %v6560_v61 = vmul.f32 0.2, %v6376_v55 }
 0x39c   :  { %7315 = vst [vmem:[#allocation24_spill] sm:$0xff] %v6565_v59  ;;  %vm3519_vm15 = vcmp.ge.f32.partialorder %v6382_v14, 0.0  ;;  %v6569_v3 = vmul.f32 0.2, %v6379_v29  ;;  %v6572_v52 = vmul.f32 0.2, %v6382_v14 }
 0x39d   :  { %v6575_v36 = vmul.f32 0.2, %v6385_v10  ;;  %7317 = vst [vmem:[#allocation25_spill] sm:$0xff] %v6580_v62  ;;  %vm3520_vm0 = vcmp.ge.f32.partialorder %v6385_v10, 0.0  ;;  %v6584_v24 = vmul.f32 0.2, %v6388_v1 }
 0x39e   :  { %v6587_v6 = vmul.f32 0.2, %v6391_v17  ;;  %v6590_v59 = vmul.f32 0.2, %v6394_v28  ;;  %vm3521_vm1 = vcmp.ge.f32.partialorder %v6388_v1, 0.0  ;;  %vm3522_vm2 = vcmp.ge.f32.partialorder %v6391_v17, 0.0 }
 0x39f   :  { %7316 = vst [vmem:[#allocation2_spill] sm:$0xff] %v6575_v36  ;;  %v6595_v36 = vsel %vm3509_vm5, %v6352_v2, %v3566_v49  ;;  %v6599_v39 = vmul.f32 0.2, %v6397_v63  ;;  %v6602_v41 = vmul.f32 0.2, %v6400_v42  ;;  %vm3524_vm4 = vcmp.ge.f32.partialorder %v6397_v63, 0.0 }
 0x3a0   :  { %7318 = vst [vmem:[#allocation26_spill] sm:$0xff] %v6590_v59  ;;  %7319 = vst [vmem:[#allocation27_spill] sm:$0xff] %v6595_v36  ;;  %v6605_v62 = vmul.f32 0.2, %v6403_v48  ;;  %v6610_v59 = vsel %vm3510_vm6, %v6355_v47, %v3567_v46  ;;  %v6615_v2 = vmul.f32 0.2, %v6406_v50 }
 0x3a1   :  { %7321 = vst [vmem:[#allocation29_spill] sm:$0xff] %v6610_v59  ;;  %v6618_v49 = vmul.f32 0.2, %v6409_v15  ;;  %v6621_v36 = vmul.f32 0.2, %v6412_v34 }
 0x3a2   :  { %7320 = vst [vmem:[#allocation28_spill] sm:$0xff] %v6605_v62  ;;  %v6626_v62 = vsel %vm3511_vm7, %v6358_v22, %v3568_v9  ;;  %v6633_v47 = vmul.f32 0.2, %v6415_v7  ;;  %v6636_v46 = vmul.f32 0.2, %v6418_v58  ;;  %v6644_v22 = vsel %vm3512_vm8, %v6361_v57, %v3569_v27 }
 0x3a3   :  { %7322 = vst [vmem:[#allocation30_spill] sm:$0xff] %v6626_v62  ;;  %v6639_v59 = vmul.f32 0.2, %v6421_v13  ;;  %7324 = vst [vmem:[#allocation32_spill] sm:$0xff] %v6644_v22  ;;  %vm3528_vm7 = vcmp.ge.f32.partialorder %v6409_v15, 0.0  ;;  %v6662_v57 = vsel %vm3513_vm9, %v6364_v38, %v3570_v44  ;;  %vm3532_vm8 = vcmp.ge.f32.partialorder %v6421_v13, 0.0 }
 0x3a4   :  { %v6651_v9 = vmul.f32 0.2, %v6424_v20  ;;  %v6654_v62 = vmul.f32 0.2, %v6427_v33  ;;  %7326 = vst [vmem:[#allocation34_spill] sm:$0xff] %v6662_v57  ;;  %v6680_v38 = vsel %vm3514_vm10, %v6367_v51, %v3571_v35  ;;  %vm3536_vm9 = vcmp.ge.f32.partialorder %v6433_v56, 0.0 }
 0x3a5   :  { %7323 = vst [vmem:[#allocation31_spill] sm:$0xff] %v6639_v59  ;;  %v6657_v59 = vmul.f32 0.2, %v6430_v25  ;;  %v6669_v27 = vmul.f32 0.2, %v6433_v56  ;;  %7328 = vst [vmem:[#allocation36_spill] sm:$0xff] %v6680_v38  ;;  %v6698_v51 = vsel %vm3515_vm11, %v6370_v30, %v3572_v11  ;;  %v6717_v30 = vsel %vm3516_vm12, %v6373_v8, %v6557_v53 }
 0x3a6   :  { %v6672_v22 = vmul.f32 0.2, %v6436_v43  ;;  %v6687_v44 = vmul.f32 0.2, %v6442_v31  ;;  %v6690_v57 = vmul.f32 0.2, %v6445_v54  ;;  %v6730_v8 = vsel %vm3517_vm13, %v6376_v55, %v6560_v61 }
 0x3a7   :  { %7325 = vst [vmem:[#allocation33_spill] sm:$0xff] %v6657_v59  ;;  %v6675_v59 = vmul.f32 0.2, %v6439_v18  ;;  %7330 = vst [vmem:[#allocation38_spill] sm:$0xff] %v6698_v51  ;;  %vm3540_vm10 = vcmp.ge.f32.partialorder %v6445_v54, 0.0  ;;  %vm3544_vm11 = vcmp.ge.f32.partialorder %v6457_v0, 0.0  ;;  %v6743_v55 = vsel %vm3518_vm14, %v6379_v29, %v6569_v3 }
 0x3a8   :  { %v6705_v35 = vmul.f32 0.2, %v6451_v19  ;;  %v6708_v38 = vmul.f32 0.2, %v6454_v26  ;;  %7332 = vst [vmem:[#allocation40_spill] sm:$0xff] %v6717_v30  ;;  %7333 = vst [vmem:[#allocation41_spill] sm:$0xff] %v6730_v8  ;;  %v6756_v29 = vsel %vm3519_vm15, %v6382_v14, %v6572_v52 }
 0x3a9   :  { %7327 = vst [vmem:[#allocation35_spill] sm:$0xff] %v6675_v59  ;;  %v6693_v59 = vmul.f32 0.2, %v6448_v21  ;;  %v3602_v11 = vmul.f32 0.2, %v6460_v32  ;;  %vm3548_vm12 = vcmp.ge.f32.partialorder %v6469_v40, 0.0 }
 0x3aa   :  { %v3603_v51 = vmul.f32 0.2, %v6463_v5  ;;  %v3605_v53 = vmul.f32 0.2, %v6469_v40  ;;  %v3606_v30 = vmul.f32 0.2, %v6472_v45 }
 0x3ab   :  { %7329 = vst [vmem:[#allocation37_spill] sm:$0xff] %v6693_v59  ;;  %v6711_v59 = vmul.f32 0.2, %v6457_v0  ;;  %7334 = vst [vmem:[#allocation42_spill] sm:$0xff] %v6743_v55  ;;  %vm3552_vm13 = vcmp.ge.f32.partialorder %v6483_v23, 0.0  ;;  %v7335_v61 = vld [vmem:[#allocation15_spill] sm:$0xff] }
 0x3ac   :  { %v3608_v8 = vmul.f32 0.2, %v6479_v60  ;;  %v3609_v45 = vmul.f32 0.2, %v6483_v23  ;;  %7336 = vst [vmem:[#allocation43_spill] sm:$0xff] %v6756_v29  ;;  %v7337_v3 = vld [vmem:[#allocation16_spill] sm:$0xff] }
 0x3ad   :  { %7331 = vst [vmem:[#allocation39_spill] sm:$0xff] %v6711_v59  ;;  %v3604_v59 = vmul.f32 0.2, %v6466_v37  ;;  %v3607_v37 = vmul.f32 0.2, %v6475_v16  ;;  %vm3556_vm14 = vcmp.ge.f32.partialorder %v7337_v3, 0.0 }
 0x3ae   :  { %v3610_v16 = vmul.f32 0.2, %v6487_v4  ;;  %v7338_v55 = vld [vmem:[#allocation17_spill] sm:$0xff]  ;;  %v7339_v40 = vld [vmem:[#allocation18_spill] sm:$0xff]  ;;  %v7340_v5 = vld [vmem:[#allocation19_spill] sm:$0xff] }
 0x3af   :  { %vm3558_vm5 = vcmp.ge.f32.partialorder %v7339_v40, 0.0  ;;  %vm3559_vm6 = vcmp.ge.f32.partialorder %v7340_v5, 0.0  ;;  %v3611_v60 = vmul.f32 0.2, %v6491_v12  ;;  %v3612_v23 = vmul.f32 0.2, %v7335_v61 }
 0x3b0   :  { %v3613_v4 = vmul.f32 0.2, %v7337_v3  ;;  %v7341_v32 = vld [vmem:[#allocation2_spill] sm:$0xff]  ;;  %v7343_v52 = vld [vmem:[#allocation20_spill] sm:$0xff]  ;;  %v7344_v29 = vld [vmem:[#allocation21_spill] sm:$0xff]  ;;  %v6780_v3 = vsel %vm3521_vm1, %v6388_v1, %v6584_v24  ;;  %v6800_v1 = vsel %vm3524_vm4, %v6397_v63, %v6599_v39  ;;  %vm7347_vm1 = vcmp.ge.f32.partialorder %v6400_v42, 0.0 }
 0x3b1   :  { %v6769_v14 = vsel %vm3520_vm0, %v6385_v10, %v7341_v32  ;;  %vm3560_vm15 = vcmp.ge.f32.partialorder %v7343_v52, 0.0  ;;  %vm3561_vm3 = vcmp.ge.f32.partialorder %v7344_v29, 0.0  ;;  %v3614_v0 = vmul.f32 0.2, %v7338_v55 }
 0x3b2   :  { %7342 = vst [vmem:[#allocation17_spill] sm:$0xff] %v6769_v14  ;;  %v3615_v26 = vmul.f32 0.2, %v7339_v40  ;;  %v3616_v12 = vmul.f32 0.2, %v7340_v5  ;;  %v6788_v32 = vsel %vm3522_vm2, %v6391_v17, %v6587_v6  ;;  %v7345_v14 = vld [vmem:[#allocation26_spill] sm:$0xff]  ;;  %v6806_v24 = vsel %vm7347_vm1, %v6400_v42, %v6602_v41 }
 0x3b3   :  { %v3617_v61 = vmul.f32 0.2, %v7343_v52  ;;  %v3618_v10 = vmul.f32 0.2, %v7344_v29  ;;  %vm7346_vm0 = vcmp.ge.f32.partialorder %v6394_v28, 0.0  ;;  %v7348_v17 = vld [vmem:[#allocation28_spill] sm:$0xff]  ;;  %v6824_v63 = vsel %vm3528_vm7, %v6409_v15, %v6618_v49 }
 0x3b4   :  { %v6794_v5 = vsel %vm7346_vm0, %v6394_v28, %v7345_v14  ;;  %vm7349_vm2 = vcmp.ge.f32.partialorder %v6403_v48, 0.0  ;;  %vm7350_vm0 = vcmp.ge.f32.partialorder %v6406_v50, 0.0  ;;  %vm7351_vm4 = vcmp.ge.f32.partialorder %v6412_v34, 0.0  ;;  %v7354_v15 = vld [vmem:[#allocation31_spill] sm:$0xff]  ;;  %v7369_v49 = vld [vmem:[#allocation4_spill] sm:$0xff] }
 0x3b5   :  { %v6812_v6 = vsel %vm7349_vm2, %v6403_v48, %v7348_v17  ;;  %v6818_v28 = vsel %vm7350_vm0, %v6406_v50, %v6615_v2  ;;  %v6830_v42 = vsel %vm7351_vm4, %v6412_v34, %v6621_v36  ;;  %vm7352_vm1 = vcmp.ge.f32.partialorder %v6415_v7, 0.0  ;;  %v7381_v14 = vld [vmem:[#allocation11_spill] sm:$0xff]  ;;  %v7383_v17 = vld [vmem:[#allocation12_spill] sm:$0xff] }
 0x3b6   :  { %v6836_v48 = vsel %vm7352_vm1, %v6415_v7, %v6633_v47  ;;  %vm7353_vm2 = vcmp.ge.f32.partialorder %v6418_v58, 0.0  ;;  %v6848_v39 = vsel %vm3532_vm8, %v6421_v13, %v7354_v15  ;;  %vm7355_vm7 = vcmp.ge.f32.partialorder %v6424_v20, 0.0  ;;  %v7384_v15 = vld [vmem:[#allocation13_spill] sm:$0xff] }
 0x3b7   :  { %v6842_v50 = vsel %vm7353_vm2, %v6418_v58, %v6636_v46  ;;  %v6854_v34 = vsel %vm7355_vm7, %v6424_v20, %v6651_v9  ;;  %vm7356_vm0 = vcmp.ge.f32.partialorder %v6427_v33, 0.0  ;;  %v7357_v58 = vld [vmem:[#allocation33_spill] sm:$0xff]  ;;  %vm7358_vm4 = vcmp.ge.f32.partialorder %v6430_v25, 0.0  ;;  %v7374_v9 = vld [vmem:[#allocation7_spill] sm:$0xff] }
 0x3b8   :  { %v6860_v7 = vsel %vm7356_vm0, %v6427_v33, %v6654_v62  ;;  %v6866_v36 = vsel %vm7358_vm4, %v6430_v25, %v7357_v58  ;;  %v6872_v13 = vsel %vm3536_vm9, %v6433_v56, %v6669_v27  ;;  %vm7359_vm8 = vcmp.ge.f32.partialorder %v6436_v43, 0.0  ;;  %v7360_v33 = vld [vmem:[#allocation35_spill] sm:$0xff]  ;;  %v7376_v27 = vld [vmem:[#allocation8_spill] sm:$0xff]  ;;  %v7386_v58 = vld [vmem:[#allocation14_spill] sm:$0xff] }
 0x3b9   :  { %v6878_v20 = vsel %vm7359_vm8, %v6436_v43, %v6672_v22  ;;  %vm7361_vm1 = vcmp.ge.f32.partialorder %v6439_v18, 0.0  ;;  %vm7362_vm2 = vcmp.ge.f32.partialorder %v6442_v31, 0.0  ;;  %v6896_v56 = vsel %vm3540_vm10, %v6445_v54, %v6690_v57  ;;  %v7363_v43 = vld [vmem:[#allocation37_spill] sm:$0xff]  ;;  %v7368_v54 = vld [vmem:[#allocation39_spill] sm:$0xff]  ;;  %v7372_v22 = vld [vmem:[#allocation6_spill] sm:$0xff] }
 0x3ba   :  { %v6884_v62 = vsel %vm7361_vm1, %v6439_v18, %v7360_v33  ;;  %v6890_v25 = vsel %vm7362_vm2, %v6442_v31, %v6687_v44  ;;  %vm7364_vm9 = vcmp.ge.f32.partialorder %v6448_v21, 0.0  ;;  %vm7365_vm7 = vcmp.ge.f32.partialorder %v6451_v19, 0.0  ;;  %v7366_v31 = vld [vmem:[#allocation3_spill] sm:$0xff]  ;;  %v7377_v44 = vld [vmem:[#allocation9_spill] sm:$0xff] }
 0x3bb   :  { %v6902_v41 = vsel %vm7364_vm9, %v6448_v21, %v7363_v43  ;;  %v6908_v18 = vsel %vm7365_vm7, %v6451_v19, %v6705_v35  ;;  %vm7367_vm0 = vcmp.ge.f32.partialorder %v7366_v31, 0.0  ;;  %v6920_v47 = vsel %vm3544_vm11, %v7369_v49, %v7368_v54  ;;  %v7370_v21 = vld [vmem:[#allocation5_spill] sm:$0xff]  ;;  %v7388_v33 = vld [vmem:[#allocation15_spill] sm:$0xff]  ;;  %v7390_v43 = vld [vmem:[#allocation16_spill] sm:$0xff] }
 0x3bc   :  { %v6914_v2 = vsel %vm7367_vm0, %v7366_v31, %v6708_v38  ;;  %vm7371_vm10 = vcmp.ge.f32.partialorder %v7370_v21, 0.0  ;;  %vm7373_vm4 = vcmp.ge.f32.partialorder %v7372_v22, 0.0  ;;  %vm7375_vm8 = vcmp.ge.f32.partialorder %v7374_v9, 0.0  ;;  %v7392_v54 = vld [vmem:[#allocation19_spill] sm:$0xff]  ;;  %v7393_v49 = vld [vmem:[#allocation22_spill] sm:$0xff] }
 0x3bd   :  { %v6925_v46 = vsel %vm7371_vm10, %v7370_v21, %v3602_v11  ;;  %v6930_v19 = vsel %vm7373_vm4, %v7372_v22, %v3603_v51  ;;  %v6935_v57 = vsel %vm7375_vm8, %v7374_v9, %v3604_v59  ;;  %v6940_v38 = vsel %vm3548_vm12, %v7376_v27, %v3605_v53  ;;  %v7379_v11 = vld [vmem:[#allocation10_spill] sm:$0xff]  ;;  %v7394_v21 = vld [vmem:[#allocation23_spill] sm:$0xff] }
 0x3be   :  { %vm7378_vm11 = vcmp.ge.f32.partialorder %v7377_v44, 0.0  ;;  %vm7380_vm1 = vcmp.ge.f32.partialorder %v7379_v11, 0.0  ;;  %vm7382_vm2 = vcmp.ge.f32.partialorder %v7381_v14, 0.0  ;;  %v6960_v53 = vsel %vm3552_vm13, %v7383_v17, %v3609_v45  ;;  %v7401_v17 = vld [vmem:[#allocation34_spill] sm:$0xff] }
 0x3bf   :  { %v6945_v35 = vsel %vm7378_vm11, %v7377_v44, %v3606_v30  ;;  %v6950_v51 = vsel %vm7380_vm1, %v7379_v11, %v3607_v37  ;;  %v6955_v59 = vsel %vm7382_vm2, %v7381_v14, %v3608_v8  ;;  %vm7385_vm12 = vcmp.ge.f32.partialorder %v7384_v15, 0.0  ;;  %v7399_v11 = vld [vmem:[#allocation30_spill] sm:$0xff] }
 0x3c0   :  { %v6965_v30 = vsel %vm7385_vm12, %v7384_v15, %v3610_v16  ;;  %vm7387_vm9 = vcmp.ge.f32.partialorder %v7386_v58, 0.0  ;;  %vm7389_vm7 = vcmp.ge.f32.partialorder %v7388_v33, 0.0  ;;  %v3670_v45 = vsel %vm3556_vm14, %v7390_v43, %v3613_v4  ;;  %v7402_v15 = vld [vmem:[#allocation36_spill] sm:$0xff] }
 0x3c1   :  { %v6970_v37 = vsel %vm7387_vm9, %v7386_v58, %v3611_v60  ;;  %v6975_v8 = vsel %vm7389_vm7, %v7388_v33, %v3612_v23  ;;  %vm7391_vm13 = vcmp.ge.f32.partialorder %v7338_v55, 0.0  ;;  %v3672_v16 = vsel %vm3558_vm5, %v7339_v40, %v3615_v26  ;;  %v7397_v26 = vld [vmem:[#allocation27_spill] sm:$0xff]  ;;  %v7398_v40 = vld [vmem:[#allocation29_spill] sm:$0xff]  ;;  %v7406_v33 = vld [vmem:[#allocation42_spill] sm:$0xff] }
 0x3c2   :  { %v3671_v31 = vsel %vm7391_vm13, %v7338_v55, %v3614_v0  ;;  %v3673_v60 = vsel %vm3559_vm6, %v7392_v54, %v3616_v12  ;;  %v3674_v23 = vsel %vm3560_vm15, %v7343_v52, %v3617_v61  ;;  %v3675_v4 = vsel %vm3561_vm3, %v7344_v29, %v3618_v10  ;;  %v7395_v0 = vld [vmem:[#allocation24_spill] sm:$0xff]  ;;  %v7396_v55 = vld [vmem:[#allocation25_spill] sm:$0xff]  ;;  %v7403_v29 = vld [vmem:[#allocation38_spill] sm:$0xff] }
 0x3c3   :  { %v4380_v22 = vpack.c.bf16 %v7394_v21, %v7393_v49  ;;  %v4385_v9 = vpack.c.bf16 %v7396_v55, %v7395_v0  ;;  %v4376_v27 = vpack.c.bf16 %v3675_v4, %v3675_v4  ;;  %v4390_v44 = vpack.c.bf16 %v7398_v40, %v7397_v26  ;;  %v7400_v12 = vld [vmem:[#allocation32_spill] sm:$0xff]  ;;  %v7405_v58 = vld [vmem:[#allocation41_spill] sm:$0xff]  ;;  %v7407_v54 = vld [vmem:[#allocation43_spill] sm:$0xff] }
 0x3c4   :  { %v4395_v14 = vpack.c.bf16 %v7400_v12, %v7399_v11  ;;  %v4400_v61 = vpack.c.bf16 %v7402_v15, %v7401_v17  ;;  %v7404_v52 = vld [vmem:[#allocation40_spill] sm:$0xff]  ;;  %v4410_v43 = vpack.c.bf16 %v7406_v33, %v7405_v58  ;;  %v7408_v4 = vld [vmem:[#allocation17_spill] sm:$0xff]  ;;  %v4420_v21 = vpack.c.bf16 %v6788_v32, %v6780_v3 }
 0x3c5   :  { %4381 = vst [vmem:[%s7137_s4] sm:$0xff] %v4380_v22   ;;  %4517 = vst [vmem:[%s7137_s4 + $0x8] sm:$0xff] %v4385_v9   ;;  %v4405_v10 = vpack.c.bf16 %v7404_v52, %v7403_v29  ;;  %v4415_v49 = vpack.c.bf16 %v7408_v4, %v7407_v54  ;;  %v4425_v22 = vpack.c.bf16 %v6800_v1, %v6794_v5 }
 0x3c6   :  { %4518 = vst [vmem:[%s7137_s4 + $0x10] sm:$0xff] %v4390_v44   ;;  %4519 = vst [vmem:[%s7137_s4 + $0x18] sm:$0xff] %v4395_v14   ;;  %v4430_v0 = vpack.c.bf16 %v6812_v6, %v6806_v24  ;;  %v4435_v3 = vpack.c.bf16 %v6824_v63, %v6818_v28  ;;  %v4440_v32 = vpack.c.bf16 %v6836_v48, %v6830_v42 }
 0x3c7   :  { %4520 = vst [vmem:[%s7137_s4 + $0x20] sm:$0xff] %v4400_v61   ;;  %3961 = vst [vmem:[%s7137_s4 + $0xe0] sm:$0xf] %v4376_v27  ;;  %v4445_v5 = vpack.c.bf16 %v6848_v39, %v6842_v50  ;;  %v4450_v1 = vpack.c.bf16 %v6860_v7, %v6854_v34  ;;  %v4455_v24 = vpack.c.bf16 %v6872_v13, %v6866_v36 }
 0x3c8   :  { %4521 = vst [vmem:[%s7137_s4 + $0x28] sm:$0xff] %v4405_v10   ;;  %4522 = vst [vmem:[%s7137_s4 + $0x30] sm:$0xff] %v4410_v43   ;;  %v4460_v6 = vpack.c.bf16 %v6884_v62, %v6878_v20  ;;  %v4465_v28 = vpack.c.bf16 %v6896_v56, %v6890_v25  ;;  %v4470_v63 = vpack.c.bf16 %v6908_v18, %v6902_v41 }
 0x3c9   :  { %4523 = vst [vmem:[%s7137_s4 + $0x38] sm:$0xff] %v4415_v49   ;;  %4524 = vst [vmem:[%s7137_s4 + $0x40] sm:$0xff] %v4420_v21   ;;  %v4475_v42 = vpack.c.bf16 %v6920_v47, %v6914_v2  ;;  %v4480_v48 = vpack.c.bf16 %v6930_v19, %v6925_v46  ;;  %v4485_v50 = vpack.c.bf16 %v6940_v38, %v6935_v57 }
 0x3ca   :  { %4525 = vst [vmem:[%s7137_s4 + $0x48] sm:$0xff] %v4425_v22   ;;  %4526 = vst [vmem:[%s7137_s4 + $0x50] sm:$0xff] %v4430_v0   ;;  %v4490_v39 = vpack.c.bf16 %v6950_v51, %v6945_v35  ;;  %v4495_v34 = vpack.c.bf16 %v6960_v53, %v6955_v59  ;;  %v4500_v7 = vpack.c.bf16 %v6970_v37, %v6965_v30 }
 0x3cb   :  { %4527 = vst [vmem:[%s7137_s4 + $0x58] sm:$0xff] %v4435_v3   ;;  %4528 = vst [vmem:[%s7137_s4 + $0x60] sm:$0xff] %v4440_v32   ;;  %v4505_v36 = vpack.c.bf16 %v3670_v45, %v6975_v8  ;;  %v4510_v13 = vpack.c.bf16 %v3672_v16, %v3671_v31  ;;  %v4515_v20 = vpack.c.bf16 %v3674_v23, %v3673_v60 }
 0x3cc   :  { %4529 = vst [vmem:[%s7137_s4 + $0x68] sm:$0xff] %v4445_v5   ;;  %4530 = vst [vmem:[%s7137_s4 + $0x70] sm:$0xff] %v4450_v1  }
 0x3cd   :  { %4531 = vst [vmem:[%s7137_s4 + $0x78] sm:$0xff] %v4455_v24   ;;  %4532 = vst [vmem:[%s7137_s4 + $0x80] sm:$0xff] %v4460_v6  }
 0x3ce   :  { %4533 = vst [vmem:[%s7137_s4 + $0x88] sm:$0xff] %v4465_v28   ;;  %4534 = vst [vmem:[%s7137_s4 + $0x90] sm:$0xff] %v4470_v63  }
 0x3cf   :  { %4535 = vst [vmem:[%s7137_s4 + $0x98] sm:$0xff] %v4475_v42   ;;  %4536 = vst [vmem:[%s7137_s4 + $0xa0] sm:$0xff] %v4480_v48  }
 0x3d0   :  { %4537 = vst [vmem:[%s7137_s4 + $0xa8] sm:$0xff] %v4485_v50   ;;  %4538 = vst [vmem:[%s7137_s4 + $0xb0] sm:$0xff] %v4490_v39  }
 0x3d1   :  { %4539 = vst [vmem:[%s7137_s4 + $0xb8] sm:$0xff] %v4495_v34   ;;  %4540 = vst [vmem:[%s7137_s4 + $0xc0] sm:$0xff] %v4500_v7  }
 0x3d2   :  { %4541 = vst [vmem:[%s7137_s4 + $0xc8] sm:$0xff] %v4505_v36   ;;  %4542 = vst [vmem:[%s7137_s4 + $0xd0] sm:$0xff] %v4510_v13  }
 0x3d3   :  { %4543 = vst [vmem:[%s7137_s4 + $0xd8] sm:$0xff] %v4515_v20  }

// kernel: discriminator_forward.6
= control target key start
LH: loop header
LB: loop body
LE: loop exit
PB: predicated region body
PF: predicated region fallthrough
CT: control target
= control target key end

     0   :  { %s4663_s15 = smov 0   ;;  %s4665_s16 = smov 0   ;;  %s5761_s0 = inlined_call_operand.vmem [shape: bf16[72,2048], index: 0, kind: input, shape index: {}]   ;;  %s5762_s1 = inlined_call_operand.vmem [shape: bf16[2048,256], index: 1, kind: input, shape index: {}]   ;;  %s5763_s2 = inlined_call_operand.vmem [shape: f32[1,256], index: 2, kind: input, shape index: {}]   ;;  %s5764_s3 = inlined_call_operand.vmem [shape: f32[1,256], index: 3, kind: input, shape index: {}]   ;;  %s5765_s4 = inlined_call_operand.vmem [shape: bf16[72,256], index: 4, kind: output, shape index: {}]  }
   0x1   :  { %s4667_s17 = smov 0   ;;  %s4669_s18 = smov 0  }
   0x2   :  { %s4671_s19 = smov 0  }
   0x3 LB: > { %s29_s20 = sadd.s32 1, %s4632_s18  ;;  %s3781_s21 = sadd.s32 4294967295, %s4636_s19   ;;  %s4636_s19 = sphi %s4671_s19, %s14_s19   ;;  %s4632_s18 = sphi %s4669_s18, %s5770_s18   ;;  %s4628_s17 = sphi %s4667_s17, %s5769_s17   ;;  %s4624_s16 = sphi %s4665_s16, %s5768_s16   ;;  %s4620_s15 = sphi %s4663_s15, %s5767_s15  }
   0x4   : > { %p31_p0 = scmp.ge.s32.totalorder %s29_s20, 2  ;;  %p77_p1 = scmp.ne.s32.totalorder %s4624_s16, %s4620_s15 }
   0x5   : > { %p78_p2 = scmp.eq.s32.totalorder %s4636_s19, 0  ;;  %p161_p4 = scmp.eq.s32.totalorder %s3781_s21, 1 }
   0x6   : > { %s5772_s20 = smov (%p31_p0, %s29_s20), 0  ;;  %s70_s23 = sadd.s32 1, %s4624_s16 }
   0x7   : > { %p79_p3 = por %p78_p2, %p77_p1  ;;  %s66_s22 = ssub.s32 %s4632_s18, %s5772_s20 }
   0x8   : > { %p68_p5 = scmp.eq.s32.totalorder %s66_s22, 0  ;;  %p4698_p6 = por %p161_p4, %p77_p1 }
   0x9   : > { %p3785_p7 = scmp.ge.s32.totalorder %s4636_s19, 2 }
   0xa   : > { %s4703_s25 = scalar_select %p68_p5, %s4624_s16, %s70_s23  }
   0xb   : > { %198 = sbr.rel (%p3785_p7) target bundleno = 190 (0xbe), region = 20 }
  0x10   : > { %201 = sbr.rel (!%p79_p3) target bundleno = 190 (0xbe), region = 24  ;;  %s203_s26 = sand.u32 (%p79_p3), 1, %s4624_s16  }
  0x11   : > { %s3787_s27 = sshll.u32 (%p79_p3), %s4632_s18, 2  ;;  %s3786_s28 = sshll.u32 (%p79_p3), %s203_s26, 10 }
  0x12   : > { %s4711_s5 = scalar_lea.vmem (%p79_p3), %s5762_s1, %s3787_s27  ;;  %s4715_s6 = scalar_lea.vmem (%p79_p3), [#allocation2], %s3786_s28 }
  0x13   : > { %v227_v0 = vld [vmem:[%s4711_s5] sm:$0xf] (%p79_p3)  ;;  %v229_v1 = vld [vmem:[%s4711_s5 + $0x8] sm:$0xf] (%p79_p3)  ;;  %v231_v2 = vld [vmem:[%s4711_s5 + $0x10] sm:$0xf] (%p79_p3) }
  0x14   : > { %228 = vst [vmem:[%s4715_s6] sm:$0xf] (%p79_p3), %v227_v0  ;;  %230 = vst [vmem:[%s4715_s6 + $0x4] sm:$0xf] (%p79_p3), %v229_v1  ;;  %v233_v3 = vld [vmem:[%s4711_s5 + $0x18] sm:$0xf] (%p79_p3) }
  0x15   : > { %v235_v4 = vld [vmem:[%s4711_s5 + $0x20] sm:$0xf]  ;;  %232 = vst [vmem:[%s4715_s6 + $0x8] sm:$0xf] %v231_v2  ;;  %234 = vst [vmem:[%s4715_s6 + $0xc] sm:$0xf] %v233_v3 }
  0x16   : > { %236 = vst [vmem:[%s4715_s6 + $0x10] sm:$0xf] %v235_v4  ;;  %v237_v5 = vld [vmem:[%s4711_s5 + $0x28] sm:$0xf]  ;;  %v239_v6 = vld [vmem:[%s4711_s5 + $0x30] sm:$0xf] }
  0x17   : > { %v241_v7 = vld [vmem:[%s4711_s5 + $0x38] sm:$0xf]  ;;  %238 = vst [vmem:[%s4715_s6 + $0x14] sm:$0xf] %v237_v5  ;;  %240 = vst [vmem:[%s4715_s6 + $0x18] sm:$0xf] %v239_v6 }
  0x18   : > { %242 = vst [vmem:[%s4715_s6 + $0x1c] sm:$0xf] %v241_v7  ;;  %v243_v8 = vld [vmem:[%s4711_s5 + $0x40] sm:$0xf]  ;;  %v245_v9 = vld [vmem:[%s4711_s5 + $0x48] sm:$0xf] }
  0x19   : > { %v247_v10 = vld [vmem:[%s4711_s5 + $0x50] sm:$0xf]  ;;  %244 = vst [vmem:[%s4715_s6 + $0x20] sm:$0xf] %v243_v8  ;;  %246 = vst [vmem:[%s4715_s6 + $0x24] sm:$0xf] %v245_v9 }
  0x1a   : > { %248 = vst [vmem:[%s4715_s6 + $0x28] sm:$0xf] %v247_v10  ;;  %v249_v11 = vld [vmem:[%s4711_s5 + $0x58] sm:$0xf]  ;;  %v251_v12 = vld [vmem:[%s4711_s5 + $0x60] sm:$0xf] }
  0x1b   : > { %v253_v13 = vld [vmem:[%s4711_s5 + $0x68] sm:$0xf]  ;;  %250 = vst [vmem:[%s4715_s6 + $0x2c] sm:$0xf] %v249_v11  ;;  %252 = vst [vmem:[%s4715_s6 + $0x30] sm:$0xf] %v251_v12 }
  0x1c   : > { %254 = vst [vmem:[%s4715_s6 + $0x34] sm:$0xf] %v253_v13  ;;  %v255_v14 = vld [vmem:[%s4711_s5 + $0x70] sm:$0xf]  ;;  %v257_v15 = vld [vmem:[%s4711_s5 + $0x78] sm:$0xf] }
  0x1d   : > { %v259_v16 = vld [vmem:[%s4711_s5 + $0x80] sm:$0xf]  ;;  %256 = vst [vmem:[%s4715_s6 + $0x38] sm:$0xf] %v255_v14  ;;  %258 = vst [vmem:[%s4715_s6 + $0x3c] sm:$0xf] %v257_v15 }
  0x1e   : > { %260 = vst [vmem:[%s4715_s6 + $0x40] sm:$0xf] %v259_v16  ;;  %v261_v17 = vld [vmem:[%s4711_s5 + $0x88] sm:$0xf]  ;;  %v263_v18 = vld [vmem:[%s4711_s5 + $0x90] sm:$0xf] }
  0x1f   : > { %v265_v19 = vld [vmem:[%s4711_s5 + $0x98] sm:$0xf]  ;;  %262 = vst [vmem:[%s4715_s6 + $0x44] sm:$0xf] %v261_v17  ;;  %264 = vst [vmem:[%s4715_s6 + $0x48] sm:$0xf] %v263_v18 }
  0x20   : > { %266 = vst [vmem:[%s4715_s6 + $0x4c] sm:$0xf] %v265_v19  ;;  %v267_v20 = vld [vmem:[%s4711_s5 + $0xa0] sm:$0xf]  ;;  %v269_v21 = vld [vmem:[%s4711_s5 + $0xa8] sm:$0xf] }
  0x21   : > { %v271_v22 = vld [vmem:[%s4711_s5 + $0xb0] sm:$0xf]  ;;  %268 = vst [vmem:[%s4715_s6 + $0x50] sm:$0xf] %v267_v20  ;;  %270 = vst [vmem:[%s4715_s6 + $0x54] sm:$0xf] %v269_v21 }
  0x22   : > { %272 = vst [vmem:[%s4715_s6 + $0x58] sm:$0xf] %v271_v22  ;;  %v273_v23 = vld [vmem:[%s4711_s5 + $0xb8] sm:$0xf]  ;;  %v275_v24 = vld [vmem:[%s4711_s5 + $0xc0] sm:$0xf] }
  0x23   : > { %v277_v25 = vld [vmem:[%s4711_s5 + $0xc8] sm:$0xf]  ;;  %274 = vst [vmem:[%s4715_s6 + $0x5c] sm:$0xf] %v273_v23  ;;  %276 = vst [vmem:[%s4715_s6 + $0x60] sm:$0xf] %v275_v24 }
  0x24   : > { %278 = vst [vmem:[%s4715_s6 + $0x64] sm:$0xf] %v277_v25  ;;  %v279_v26 = vld [vmem:[%s4711_s5 + $0xd0] sm:$0xf]  ;;  %v281_v27 = vld [vmem:[%s4711_s5 + $0xd8] sm:$0xf] }
  0x25   : > { %v283_v28 = vld [vmem:[%s4711_s5 + $0xe0] sm:$0xf]  ;;  %280 = vst [vmem:[%s4715_s6 + $0x68] sm:$0xf] %v279_v26  ;;  %282 = vst [vmem:[%s4715_s6 + $0x6c] sm:$0xf] %v281_v27 }
  0x26   : > { %284 = vst [vmem:[%s4715_s6 + $0x70] sm:$0xf] %v283_v28  ;;  %v285_v29 = vld [vmem:[%s4711_s5 + $0xe8] sm:$0xf]  ;;  %v287_v30 = vld [vmem:[%s4711_s5 + $0xf0] sm:$0xf] }
  0x27   : > { %v289_v31 = vld [vmem:[%s4711_s5 + $0xf8] sm:$0xf]  ;;  %286 = vst [vmem:[%s4715_s6 + $0x74] sm:$0xf] %v285_v29  ;;  %288 = vst [vmem:[%s4715_s6 + $0x78] sm:$0xf] %v287_v30 }
  0x28   : > { %290 = vst [vmem:[%s4715_s6 + $0x7c] sm:$0xf] %v289_v31  ;;  %v291_v32 = vld [vmem:[%s4711_s5 + $0x100] sm:$0xf]  ;;  %v293_v33 = vld [vmem:[%s4711_s5 + $0x108] sm:$0xf] }
  0x29   : > { %v295_v34 = vld [vmem:[%s4711_s5 + $0x110] sm:$0xf]  ;;  %292 = vst [vmem:[%s4715_s6 + $0x80] sm:$0xf] %v291_v32  ;;  %294 = vst [vmem:[%s4715_s6 + $0x84] sm:$0xf] %v293_v33 }
  0x2a   : > { %296 = vst [vmem:[%s4715_s6 + $0x88] sm:$0xf] %v295_v34  ;;  %v297_v35 = vld [vmem:[%s4711_s5 + $0x118] sm:$0xf]  ;;  %v299_v36 = vld [vmem:[%s4711_s5 + $0x120] sm:$0xf] }
  0x2b   : > { %v301_v37 = vld [vmem:[%s4711_s5 + $0x128] sm:$0xf]  ;;  %298 = vst [vmem:[%s4715_s6 + $0x8c] sm:$0xf] %v297_v35  ;;  %300 = vst [vmem:[%s4715_s6 + $0x90] sm:$0xf] %v299_v36 }
  0x2c   : > { %302 = vst [vmem:[%s4715_s6 + $0x94] sm:$0xf] %v301_v37  ;;  %v303_v38 = vld [vmem:[%s4711_s5 + $0x130] sm:$0xf]  ;;  %v305_v39 = vld [vmem:[%s4711_s5 + $0x138] sm:$0xf] }
  0x2d   : > { %v307_v40 = vld [vmem:[%s4711_s5 + $0x140] sm:$0xf]  ;;  %304 = vst [vmem:[%s4715_s6 + $0x98] sm:$0xf] %v303_v38  ;;  %306 = vst [vmem:[%s4715_s6 + $0x9c] sm:$0xf] %v305_v39 }
  0x2e   : > { %308 = vst [vmem:[%s4715_s6 + $0xa0] sm:$0xf] %v307_v40  ;;  %v309_v41 = vld [vmem:[%s4711_s5 + $0x148] sm:$0xf]  ;;  %v311_v42 = vld [vmem:[%s4711_s5 + $0x150] sm:$0xf] }
  0x2f   : > { %v313_v43 = vld [vmem:[%s4711_s5 + $0x158] sm:$0xf]  ;;  %310 = vst [vmem:[%s4715_s6 + $0xa4] sm:$0xf] %v309_v41  ;;  %312 = vst [vmem:[%s4715_s6 + $0xa8] sm:$0xf] %v311_v42 }
  0x30   : > { %314 = vst [vmem:[%s4715_s6 + $0xac] sm:$0xf] %v313_v43  ;;  %v315_v44 = vld [vmem:[%s4711_s5 + $0x160] sm:$0xf]  ;;  %v317_v45 = vld [vmem:[%s4711_s5 + $0x168] sm:$0xf] }
  0x31   : > { %v319_v46 = vld [vmem:[%s4711_s5 + $0x170] sm:$0xf]  ;;  %316 = vst [vmem:[%s4715_s6 + $0xb0] sm:$0xf] %v315_v44  ;;  %318 = vst [vmem:[%s4715_s6 + $0xb4] sm:$0xf] %v317_v45 }
  0x32   : > { %320 = vst [vmem:[%s4715_s6 + $0xb8] sm:$0xf] %v319_v46  ;;  %v321_v47 = vld [vmem:[%s4711_s5 + $0x178] sm:$0xf]  ;;  %v323_v48 = vld [vmem:[%s4711_s5 + $0x180] sm:$0xf] }
  0x33   : > { %v325_v49 = vld [vmem:[%s4711_s5 + $0x188] sm:$0xf]  ;;  %322 = vst [vmem:[%s4715_s6 + $0xbc] sm:$0xf] %v321_v47  ;;  %324 = vst [vmem:[%s4715_s6 + $0xc0] sm:$0xf] %v323_v48 }
  0x34   : > { %326 = vst [vmem:[%s4715_s6 + $0xc4] sm:$0xf] %v325_v49  ;;  %v327_v50 = vld [vmem:[%s4711_s5 + $0x190] sm:$0xf]  ;;  %v329_v51 = vld [vmem:[%s4711_s5 + $0x198] sm:$0xf] }
  0x35   : > { %v331_v52 = vld [vmem:[%s4711_s5 + $0x1a0] sm:$0xf]  ;;  %328 = vst [vmem:[%s4715_s6 + $0xc8] sm:$0xf] %v327_v50  ;;  %330 = vst [vmem:[%s4715_s6 + $0xcc] sm:$0xf] %v329_v51 }
  0x36   : > { %332 = vst [vmem:[%s4715_s6 + $0xd0] sm:$0xf] %v331_v52  ;;  %v333_v53 = vld [vmem:[%s4711_s5 + $0x1a8] sm:$0xf]  ;;  %v335_v54 = vld [vmem:[%s4711_s5 + $0x1b0] sm:$0xf] }
  0x37   : > { %v337_v55 = vld [vmem:[%s4711_s5 + $0x1b8] sm:$0xf]  ;;  %334 = vst [vmem:[%s4715_s6 + $0xd4] sm:$0xf] %v333_v53  ;;  %336 = vst [vmem:[%s4715_s6 + $0xd8] sm:$0xf] %v335_v54 }
  0x38   : > { %338 = vst [vmem:[%s4715_s6 + $0xdc] sm:$0xf] %v337_v55  ;;  %v339_v56 = vld [vmem:[%s4711_s5 + $0x1c0] sm:$0xf]  ;;  %v341_v57 = vld [vmem:[%s4711_s5 + $0x1c8] sm:$0xf] }
  0x39   : > { %v343_v58 = vld [vmem:[%s4711_s5 + $0x1d0] sm:$0xf]  ;;  %340 = vst [vmem:[%s4715_s6 + $0xe0] sm:$0xf] %v339_v56  ;;  %342 = vst [vmem:[%s4715_s6 + $0xe4] sm:$0xf] %v341_v57 }
  0x3a   : > { %344 = vst [vmem:[%s4715_s6 + $0xe8] sm:$0xf] %v343_v58  ;;  %v345_v59 = vld [vmem:[%s4711_s5 + $0x1d8] sm:$0xf]  ;;  %v347_v60 = vld [vmem:[%s4711_s5 + $0x1e0] sm:$0xf] }
  0x3b   : > { %v349_v61 = vld [vmem:[%s4711_s5 + $0x1e8] sm:$0xf]  ;;  %346 = vst [vmem:[%s4715_s6 + $0xec] sm:$0xf] %v345_v59  ;;  %348 = vst [vmem:[%s4715_s6 + $0xf0] sm:$0xf] %v347_v60 }
  0x3c   : > { %350 = vst [vmem:[%s4715_s6 + $0xf4] sm:$0xf] %v349_v61  ;;  %v351_v62 = vld [vmem:[%s4711_s5 + $0x1f0] sm:$0xf]  ;;  %v353_v63 = vld [vmem:[%s4711_s5 + $0x1f8] sm:$0xf] }
  0x3d   : > { %v355_v0 = vld [vmem:[%s4711_s5 + $0x200] sm:$0xf]  ;;  %352 = vst [vmem:[%s4715_s6 + $0xf8] sm:$0xf] %v351_v62  ;;  %354 = vst [vmem:[%s4715_s6 + $0xfc] sm:$0xf] %v353_v63 }
  0x3e   : > { %356 = vst [vmem:[%s4715_s6 + $0x100] sm:$0xf] %v355_v0  ;;  %v357_v1 = vld [vmem:[%s4711_s5 + $0x208] sm:$0xf]  ;;  %v359_v2 = vld [vmem:[%s4711_s5 + $0x210] sm:$0xf] }
  0x3f   : > { %v361_v3 = vld [vmem:[%s4711_s5 + $0x218] sm:$0xf]  ;;  %358 = vst [vmem:[%s4715_s6 + $0x104] sm:$0xf] %v357_v1  ;;  %360 = vst [vmem:[%s4715_s6 + $0x108] sm:$0xf] %v359_v2 }
  0x40   : > { %362 = vst [vmem:[%s4715_s6 + $0x10c] sm:$0xf] %v361_v3  ;;  %v363_v4 = vld [vmem:[%s4711_s5 + $0x220] sm:$0xf]  ;;  %v365_v5 = vld [vmem:[%s4711_s5 + $0x228] sm:$0xf] }
  0x41   : > { %v367_v6 = vld [vmem:[%s4711_s5 + $0x230] sm:$0xf]  ;;  %364 = vst [vmem:[%s4715_s6 + $0x110] sm:$0xf] %v363_v4  ;;  %366 = vst [vmem:[%s4715_s6 + $0x114] sm:$0xf] %v365_v5 }
  0x42   : > { %368 = vst [vmem:[%s4715_s6 + $0x118] sm:$0xf] %v367_v6  ;;  %v369_v7 = vld [vmem:[%s4711_s5 + $0x238] sm:$0xf]  ;;  %v371_v8 = vld [vmem:[%s4711_s5 + $0x240] sm:$0xf] }
  0x43   : > { %v373_v9 = vld [vmem:[%s4711_s5 + $0x248] sm:$0xf]  ;;  %370 = vst [vmem:[%s4715_s6 + $0x11c] sm:$0xf] %v369_v7  ;;  %372 = vst [vmem:[%s4715_s6 + $0x120] sm:$0xf] %v371_v8 }
  0x44   : > { %374 = vst [vmem:[%s4715_s6 + $0x124] sm:$0xf] %v373_v9  ;;  %v375_v10 = vld [vmem:[%s4711_s5 + $0x250] sm:$0xf]  ;;  %v377_v11 = vld [vmem:[%s4711_s5 + $0x258] sm:$0xf] }
  0x45   : > { %v379_v12 = vld [vmem:[%s4711_s5 + $0x260] sm:$0xf]  ;;  %376 = vst [vmem:[%s4715_s6 + $0x128] sm:$0xf] %v375_v10  ;;  %378 = vst [vmem:[%s4715_s6 + $0x12c] sm:$0xf] %v377_v11 }
  0x46   : > { %380 = vst [vmem:[%s4715_s6 + $0x130] sm:$0xf] %v379_v12  ;;  %v381_v13 = vld [vmem:[%s4711_s5 + $0x268] sm:$0xf]  ;;  %v383_v14 = vld [vmem:[%s4711_s5 + $0x270] sm:$0xf] }
  0x47   : > { %v385_v15 = vld [vmem:[%s4711_s5 + $0x278] sm:$0xf]  ;;  %382 = vst [vmem:[%s4715_s6 + $0x134] sm:$0xf] %v381_v13  ;;  %384 = vst [vmem:[%s4715_s6 + $0x138] sm:$0xf] %v383_v14 }
  0x48   : > { %386 = vst [vmem:[%s4715_s6 + $0x13c] sm:$0xf] %v385_v15  ;;  %v387_v16 = vld [vmem:[%s4711_s5 + $0x280] sm:$0xf]  ;;  %v389_v17 = vld [vmem:[%s4711_s5 + $0x288] sm:$0xf] }
  0x49   : > { %v391_v18 = vld [vmem:[%s4711_s5 + $0x290] sm:$0xf]  ;;  %388 = vst [vmem:[%s4715_s6 + $0x140] sm:$0xf] %v387_v16  ;;  %390 = vst [vmem:[%s4715_s6 + $0x144] sm:$0xf] %v389_v17 }
  0x4a   : > { %392 = vst [vmem:[%s4715_s6 + $0x148] sm:$0xf] %v391_v18  ;;  %v393_v19 = vld [vmem:[%s4711_s5 + $0x298] sm:$0xf]  ;;  %v395_v20 = vld [vmem:[%s4711_s5 + $0x2a0] sm:$0xf] }
  0x4b   : > { %v397_v21 = vld [vmem:[%s4711_s5 + $0x2a8] sm:$0xf]  ;;  %394 = vst [vmem:[%s4715_s6 + $0x14c] sm:$0xf] %v393_v19  ;;  %396 = vst [vmem:[%s4715_s6 + $0x150] sm:$0xf] %v395_v20 }
  0x4c   : > { %398 = vst [vmem:[%s4715_s6 + $0x154] sm:$0xf] %v397_v21  ;;  %v399_v22 = vld [vmem:[%s4711_s5 + $0x2b0] sm:$0xf]  ;;  %v401_v23 = vld [vmem:[%s4711_s5 + $0x2b8] sm:$0xf] }
  0x4d   : > { %v403_v24 = vld [vmem:[%s4711_s5 + $0x2c0] sm:$0xf]  ;;  %400 = vst [vmem:[%s4715_s6 + $0x158] sm:$0xf] %v399_v22  ;;  %402 = vst [vmem:[%s4715_s6 + $0x15c] sm:$0xf] %v401_v23 }
  0x4e   : > { %404 = vst [vmem:[%s4715_s6 + $0x160] sm:$0xf] %v403_v24  ;;  %v405_v25 = vld [vmem:[%s4711_s5 + $0x2c8] sm:$0xf]  ;;  %v407_v26 = vld [vmem:[%s4711_s5 + $0x2d0] sm:$0xf] }
  0x4f   : > { %v409_v27 = vld [vmem:[%s4711_s5 + $0x2d8] sm:$0xf]  ;;  %406 = vst [vmem:[%s4715_s6 + $0x164] sm:$0xf] %v405_v25  ;;  %408 = vst [vmem:[%s4715_s6 + $0x168] sm:$0xf] %v407_v26 }
  0x50   : > { %410 = vst [vmem:[%s4715_s6 + $0x16c] sm:$0xf] %v409_v27  ;;  %v411_v28 = vld [vmem:[%s4711_s5 + $0x2e0] sm:$0xf]  ;;  %v413_v29 = vld [vmem:[%s4711_s5 + $0x2e8] sm:$0xf] }
  0x51   : > { %v415_v30 = vld [vmem:[%s4711_s5 + $0x2f0] sm:$0xf]  ;;  %412 = vst [vmem:[%s4715_s6 + $0x170] sm:$0xf] %v411_v28  ;;  %414 = vst [vmem:[%s4715_s6 + $0x174] sm:$0xf] %v413_v29 }
  0x52   : > { %416 = vst [vmem:[%s4715_s6 + $0x178] sm:$0xf] %v415_v30  ;;  %v417_v31 = vld [vmem:[%s4711_s5 + $0x2f8] sm:$0xf]  ;;  %v419_v32 = vld [vmem:[%s4711_s5 + $0x300] sm:$0xf] }
  0x53   : > { %v421_v33 = vld [vmem:[%s4711_s5 + $0x308] sm:$0xf]  ;;  %418 = vst [vmem:[%s4715_s6 + $0x17c] sm:$0xf] %v417_v31  ;;  %420 = vst [vmem:[%s4715_s6 + $0x180] sm:$0xf] %v419_v32 }
  0x54   : > { %422 = vst [vmem:[%s4715_s6 + $0x184] sm:$0xf] %v421_v33  ;;  %v423_v34 = vld [vmem:[%s4711_s5 + $0x310] sm:$0xf]  ;;  %v425_v35 = vld [vmem:[%s4711_s5 + $0x318] sm:$0xf] }
  0x55   : > { %v427_v36 = vld [vmem:[%s4711_s5 + $0x320] sm:$0xf]  ;;  %424 = vst [vmem:[%s4715_s6 + $0x188] sm:$0xf] %v423_v34  ;;  %426 = vst [vmem:[%s4715_s6 + $0x18c] sm:$0xf] %v425_v35 }
  0x56   : > { %428 = vst [vmem:[%s4715_s6 + $0x190] sm:$0xf] %v427_v36  ;;  %v429_v37 = vld [vmem:[%s4711_s5 + $0x328] sm:$0xf]  ;;  %v431_v38 = vld [vmem:[%s4711_s5 + $0x330] sm:$0xf] }
  0x57   : > { %v433_v39 = vld [vmem:[%s4711_s5 + $0x338] sm:$0xf]  ;;  %430 = vst [vmem:[%s4715_s6 + $0x194] sm:$0xf] %v429_v37  ;;  %432 = vst [vmem:[%s4715_s6 + $0x198] sm:$0xf] %v431_v38 }
  0x58   : > { %434 = vst [vmem:[%s4715_s6 + $0x19c] sm:$0xf] %v433_v39  ;;  %v435_v40 = vld [vmem:[%s4711_s5 + $0x340] sm:$0xf]  ;;  %v437_v41 = vld [vmem:[%s4711_s5 + $0x348] sm:$0xf] }
  0x59   : > { %v439_v42 = vld [vmem:[%s4711_s5 + $0x350] sm:$0xf]  ;;  %436 = vst [vmem:[%s4715_s6 + $0x1a0] sm:$0xf] %v435_v40  ;;  %438 = vst [vmem:[%s4715_s6 + $0x1a4] sm:$0xf] %v437_v41 }
  0x5a   : > { %440 = vst [vmem:[%s4715_s6 + $0x1a8] sm:$0xf] %v439_v42  ;;  %v441_v43 = vld [vmem:[%s4711_s5 + $0x358] sm:$0xf]  ;;  %v443_v44 = vld [vmem:[%s4711_s5 + $0x360] sm:$0xf] }
  0x5b   : > { %v445_v45 = vld [vmem:[%s4711_s5 + $0x368] sm:$0xf]  ;;  %442 = vst [vmem:[%s4715_s6 + $0x1ac] sm:$0xf] %v441_v43  ;;  %444 = vst [vmem:[%s4715_s6 + $0x1b0] sm:$0xf] %v443_v44 }
  0x5c   : > { %446 = vst [vmem:[%s4715_s6 + $0x1b4] sm:$0xf] %v445_v45  ;;  %v447_v46 = vld [vmem:[%s4711_s5 + $0x370] sm:$0xf]  ;;  %v449_v47 = vld [vmem:[%s4711_s5 + $0x378] sm:$0xf] }
  0x5d   : > { %v451_v48 = vld [vmem:[%s4711_s5 + $0x380] sm:$0xf]  ;;  %448 = vst [vmem:[%s4715_s6 + $0x1b8] sm:$0xf] %v447_v46  ;;  %450 = vst [vmem:[%s4715_s6 + $0x1bc] sm:$0xf] %v449_v47 }
  0x5e   : > { %452 = vst [vmem:[%s4715_s6 + $0x1c0] sm:$0xf] %v451_v48  ;;  %v453_v49 = vld [vmem:[%s4711_s5 + $0x388] sm:$0xf]  ;;  %v455_v50 = vld [vmem:[%s4711_s5 + $0x390] sm:$0xf] }
  0x5f   : > { %v457_v51 = vld [vmem:[%s4711_s5 + $0x398] sm:$0xf]  ;;  %454 = vst [vmem:[%s4715_s6 + $0x1c4] sm:$0xf] %v453_v49  ;;  %456 = vst [vmem:[%s4715_s6 + $0x1c8] sm:$0xf] %v455_v50 }
  0x60   : > { %458 = vst [vmem:[%s4715_s6 + $0x1cc] sm:$0xf] %v457_v51  ;;  %v459_v52 = vld [vmem:[%s4711_s5 + $0x3a0] sm:$0xf]  ;;  %v461_v53 = vld [vmem:[%s4711_s5 + $0x3a8] sm:$0xf] }
  0x61   : > { %v463_v54 = vld [vmem:[%s4711_s5 + $0x3b0] sm:$0xf]  ;;  %460 = vst [vmem:[%s4715_s6 + $0x1d0] sm:$0xf] %v459_v52  ;;  %462 = vst [vmem:[%s4715_s6 + $0x1d4] sm:$0xf] %v461_v53 }
  0x62   : > { %464 = vst [vmem:[%s4715_s6 + $0x1d8] sm:$0xf] %v463_v54  ;;  %v465_v55 = vld [vmem:[%s4711_s5 + $0x3b8] sm:$0xf]  ;;  %v467_v56 = vld [vmem:[%s4711_s5 + $0x3c0] sm:$0xf] }
  0x63   : > { %v469_v57 = vld [vmem:[%s4711_s5 + $0x3c8] sm:$0xf]  ;;  %466 = vst [vmem:[%s4715_s6 + $0x1dc] sm:$0xf] %v465_v55  ;;  %468 = vst [vmem:[%s4715_s6 + $0x1e0] sm:$0xf] %v467_v56 }
  0x64   : > { %470 = vst [vmem:[%s4715_s6 + $0x1e4] sm:$0xf] %v469_v57  ;;  %v471_v58 = vld [vmem:[%s4711_s5 + $0x3d0] sm:$0xf]  ;;  %v473_v59 = vld [vmem:[%s4711_s5 + $0x3d8] sm:$0xf] }
  0x65   : > { %v475_v60 = vld [vmem:[%s4711_s5 + $0x3e0] sm:$0xf]  ;;  %472 = vst [vmem:[%s4715_s6 + $0x1e8] sm:$0xf] %v471_v58  ;;  %474 = vst [vmem:[%s4715_s6 + $0x1ec] sm:$0xf] %v473_v59 }
  0x66   : > { %476 = vst [vmem:[%s4715_s6 + $0x1f0] sm:$0xf] %v475_v60  ;;  %v477_v61 = vld [vmem:[%s4711_s5 + $0x3e8] sm:$0xf]  ;;  %v479_v62 = vld [vmem:[%s4711_s5 + $0x3f0] sm:$0xf] }
  0x67   : > { %v481_v63 = vld [vmem:[%s4711_s5 + $0x3f8] sm:$0xf]  ;;  %478 = vst [vmem:[%s4715_s6 + $0x1f4] sm:$0xf] %v477_v61  ;;  %480 = vst [vmem:[%s4715_s6 + $0x1f8] sm:$0xf] %v479_v62 }
  0x68   : > { %482 = vst [vmem:[%s4715_s6 + $0x1fc] sm:$0xf] %v481_v63  ;;  %v483_v0 = vld [vmem:[%s4711_s5 + $0x400] sm:$0xf]  ;;  %v485_v1 = vld [vmem:[%s4711_s5 + $0x408] sm:$0xf] }
  0x69   : > { %v487_v2 = vld [vmem:[%s4711_s5 + $0x410] sm:$0xf]  ;;  %484 = vst [vmem:[%s4715_s6 + $0x200] sm:$0xf] %v483_v0  ;;  %486 = vst [vmem:[%s4715_s6 + $0x204] sm:$0xf] %v485_v1 }
  0x6a   : > { %488 = vst [vmem:[%s4715_s6 + $0x208] sm:$0xf] %v487_v2  ;;  %v489_v3 = vld [vmem:[%s4711_s5 + $0x418] sm:$0xf]  ;;  %v491_v4 = vld [vmem:[%s4711_s5 + $0x420] sm:$0xf] }
  0x6b   : > { %v493_v5 = vld [vmem:[%s4711_s5 + $0x428] sm:$0xf]  ;;  %490 = vst [vmem:[%s4715_s6 + $0x20c] sm:$0xf] %v489_v3  ;;  %492 = vst [vmem:[%s4715_s6 + $0x210] sm:$0xf] %v491_v4 }
  0x6c   : > { %494 = vst [vmem:[%s4715_s6 + $0x214] sm:$0xf] %v493_v5  ;;  %v495_v6 = vld [vmem:[%s4711_s5 + $0x430] sm:$0xf]  ;;  %v497_v7 = vld [vmem:[%s4711_s5 + $0x438] sm:$0xf] }
  0x6d   : > { %v499_v8 = vld [vmem:[%s4711_s5 + $0x440] sm:$0xf]  ;;  %496 = vst [vmem:[%s4715_s6 + $0x218] sm:$0xf] %v495_v6  ;;  %498 = vst [vmem:[%s4715_s6 + $0x21c] sm:$0xf] %v497_v7 }
  0x6e   : > { %500 = vst [vmem:[%s4715_s6 + $0x220] sm:$0xf] %v499_v8  ;;  %v501_v9 = vld [vmem:[%s4711_s5 + $0x448] sm:$0xf]  ;;  %v503_v10 = vld [vmem:[%s4711_s5 + $0x450] sm:$0xf] }
  0x6f   : > { %v505_v11 = vld [vmem:[%s4711_s5 + $0x458] sm:$0xf]  ;;  %502 = vst [vmem:[%s4715_s6 + $0x224] sm:$0xf] %v501_v9  ;;  %504 = vst [vmem:[%s4715_s6 + $0x228] sm:$0xf] %v503_v10 }
  0x70   : > { %506 = vst [vmem:[%s4715_s6 + $0x22c] sm:$0xf] %v505_v11  ;;  %v507_v12 = vld [vmem:[%s4711_s5 + $0x460] sm:$0xf]  ;;  %v509_v13 = vld [vmem:[%s4711_s5 + $0x468] sm:$0xf] }
  0x71   : > { %v511_v14 = vld [vmem:[%s4711_s5 + $0x470] sm:$0xf]  ;;  %508 = vst [vmem:[%s4715_s6 + $0x230] sm:$0xf] %v507_v12  ;;  %510 = vst [vmem:[%s4715_s6 + $0x234] sm:$0xf] %v509_v13 }
  0x72   : > { %512 = vst [vmem:[%s4715_s6 + $0x238] sm:$0xf] %v511_v14  ;;  %v513_v15 = vld [vmem:[%s4711_s5 + $0x478] sm:$0xf]  ;;  %v515_v16 = vld [vmem:[%s4711_s5 + $0x480] sm:$0xf] }
  0x73   : > { %v517_v17 = vld [vmem:[%s4711_s5 + $0x488] sm:$0xf]  ;;  %514 = vst [vmem:[%s4715_s6 + $0x23c] sm:$0xf] %v513_v15  ;;  %516 = vst [vmem:[%s4715_s6 + $0x240] sm:$0xf] %v515_v16 }
  0x74   : > { %518 = vst [vmem:[%s4715_s6 + $0x244] sm:$0xf] %v517_v17  ;;  %v519_v18 = vld [vmem:[%s4711_s5 + $0x490] sm:$0xf]  ;;  %v521_v19 = vld [vmem:[%s4711_s5 + $0x498] sm:$0xf] }
  0x75   : > { %v523_v20 = vld [vmem:[%s4711_s5 + $0x4a0] sm:$0xf]  ;;  %520 = vst [vmem:[%s4715_s6 + $0x248] sm:$0xf] %v519_v18  ;;  %522 = vst [vmem:[%s4715_s6 + $0x24c] sm:$0xf] %v521_v19 }
  0x76   : > { %524 = vst [vmem:[%s4715_s6 + $0x250] sm:$0xf] %v523_v20  ;;  %v525_v21 = vld [vmem:[%s4711_s5 + $0x4a8] sm:$0xf]  ;;  %v527_v22 = vld [vmem:[%s4711_s5 + $0x4b0] sm:$0xf] }
  0x77   : > { %v529_v23 = vld [vmem:[%s4711_s5 + $0x4b8] sm:$0xf]  ;;  %526 = vst [vmem:[%s4715_s6 + $0x254] sm:$0xf] %v525_v21  ;;  %528 = vst [vmem:[%s4715_s6 + $0x258] sm:$0xf] %v527_v22 }
  0x78   : > { %530 = vst [vmem:[%s4715_s6 + $0x25c] sm:$0xf] %v529_v23  ;;  %v531_v24 = vld [vmem:[%s4711_s5 + $0x4c0] sm:$0xf]  ;;  %v533_v25 = vld [vmem:[%s4711_s5 + $0x4c8] sm:$0xf] }
  0x79   : > { %v535_v26 = vld [vmem:[%s4711_s5 + $0x4d0] sm:$0xf]  ;;  %532 = vst [vmem:[%s4715_s6 + $0x260] sm:$0xf] %v531_v24  ;;  %534 = vst [vmem:[%s4715_s6 + $0x264] sm:$0xf] %v533_v25 }
  0x7a   : > { %536 = vst [vmem:[%s4715_s6 + $0x268] sm:$0xf] %v535_v26  ;;  %v537_v27 = vld [vmem:[%s4711_s5 + $0x4d8] sm:$0xf]  ;;  %v539_v28 = vld [vmem:[%s4711_s5 + $0x4e0] sm:$0xf] }
  0x7b   : > { %v541_v29 = vld [vmem:[%s4711_s5 + $0x4e8] sm:$0xf]  ;;  %538 = vst [vmem:[%s4715_s6 + $0x26c] sm:$0xf] %v537_v27  ;;  %540 = vst [vmem:[%s4715_s6 + $0x270] sm:$0xf] %v539_v28 }
  0x7c   : > { %542 = vst [vmem:[%s4715_s6 + $0x274] sm:$0xf] %v541_v29  ;;  %v543_v30 = vld [vmem:[%s4711_s5 + $0x4f0] sm:$0xf]  ;;  %v545_v31 = vld [vmem:[%s4711_s5 + $0x4f8] sm:$0xf] }
  0x7d   : > { %v547_v32 = vld [vmem:[%s4711_s5 + $0x500] sm:$0xf]  ;;  %544 = vst [vmem:[%s4715_s6 + $0x278] sm:$0xf] %v543_v30  ;;  %546 = vst [vmem:[%s4715_s6 + $0x27c] sm:$0xf] %v545_v31 }
  0x7e   : > { %548 = vst [vmem:[%s4715_s6 + $0x280] sm:$0xf] %v547_v32  ;;  %v549_v33 = vld [vmem:[%s4711_s5 + $0x508] sm:$0xf]  ;;  %v551_v34 = vld [vmem:[%s4711_s5 + $0x510] sm:$0xf] }
  0x7f   : > { %v553_v35 = vld [vmem:[%s4711_s5 + $0x518] sm:$0xf]  ;;  %550 = vst [vmem:[%s4715_s6 + $0x284] sm:$0xf] %v549_v33  ;;  %552 = vst [vmem:[%s4715_s6 + $0x288] sm:$0xf] %v551_v34 }
  0x80   : > { %554 = vst [vmem:[%s4715_s6 + $0x28c] sm:$0xf] %v553_v35  ;;  %v555_v36 = vld [vmem:[%s4711_s5 + $0x520] sm:$0xf]  ;;  %v557_v37 = vld [vmem:[%s4711_s5 + $0x528] sm:$0xf] }
  0x81   : > { %v559_v38 = vld [vmem:[%s4711_s5 + $0x530] sm:$0xf]  ;;  %556 = vst [vmem:[%s4715_s6 + $0x290] sm:$0xf] %v555_v36  ;;  %558 = vst [vmem:[%s4715_s6 + $0x294] sm:$0xf] %v557_v37 }
  0x82   : > { %560 = vst [vmem:[%s4715_s6 + $0x298] sm:$0xf] %v559_v38  ;;  %v561_v39 = vld [vmem:[%s4711_s5 + $0x538] sm:$0xf]  ;;  %v563_v40 = vld [vmem:[%s4711_s5 + $0x540] sm:$0xf] }
  0x83   : > { %v565_v41 = vld [vmem:[%s4711_s5 + $0x548] sm:$0xf]  ;;  %562 = vst [vmem:[%s4715_s6 + $0x29c] sm:$0xf] %v561_v39  ;;  %564 = vst [vmem:[%s4715_s6 + $0x2a0] sm:$0xf] %v563_v40 }
  0x84   : > { %566 = vst [vmem:[%s4715_s6 + $0x2a4] sm:$0xf] %v565_v41  ;;  %v567_v42 = vld [vmem:[%s4711_s5 + $0x550] sm:$0xf]  ;;  %v569_v43 = vld [vmem:[%s4711_s5 + $0x558] sm:$0xf] }
  0x85   : > { %v571_v44 = vld [vmem:[%s4711_s5 + $0x560] sm:$0xf]  ;;  %568 = vst [vmem:[%s4715_s6 + $0x2a8] sm:$0xf] %v567_v42  ;;  %570 = vst [vmem:[%s4715_s6 + $0x2ac] sm:$0xf] %v569_v43 }
  0x86   : > { %572 = vst [vmem:[%s4715_s6 + $0x2b0] sm:$0xf] %v571_v44  ;;  %v573_v45 = vld [vmem:[%s4711_s5 + $0x568] sm:$0xf]  ;;  %v575_v46 = vld [vmem:[%s4711_s5 + $0x570] sm:$0xf] }
  0x87   : > { %v577_v47 = vld [vmem:[%s4711_s5 + $0x578] sm:$0xf]  ;;  %574 = vst [vmem:[%s4715_s6 + $0x2b4] sm:$0xf] %v573_v45  ;;  %576 = vst [vmem:[%s4715_s6 + $0x2b8] sm:$0xf] %v575_v46 }
  0x88   : > { %578 = vst [vmem:[%s4715_s6 + $0x2bc] sm:$0xf] %v577_v47  ;;  %v579_v48 = vld [vmem:[%s4711_s5 + $0x580] sm:$0xf]  ;;  %v581_v49 = vld [vmem:[%s4711_s5 + $0x588] sm:$0xf] }
  0x89   : > { %v583_v50 = vld [vmem:[%s4711_s5 + $0x590] sm:$0xf]  ;;  %580 = vst [vmem:[%s4715_s6 + $0x2c0] sm:$0xf] %v579_v48  ;;  %582 = vst [vmem:[%s4715_s6 + $0x2c4] sm:$0xf] %v581_v49 }
  0x8a   : > { %584 = vst [vmem:[%s4715_s6 + $0x2c8] sm:$0xf] %v583_v50  ;;  %v585_v51 = vld [vmem:[%s4711_s5 + $0x598] sm:$0xf]  ;;  %v587_v52 = vld [vmem:[%s4711_s5 + $0x5a0] sm:$0xf] }
  0x8b   : > { %v589_v53 = vld [vmem:[%s4711_s5 + $0x5a8] sm:$0xf]  ;;  %586 = vst [vmem:[%s4715_s6 + $0x2cc] sm:$0xf] %v585_v51  ;;  %588 = vst [vmem:[%s4715_s6 + $0x2d0] sm:$0xf] %v587_v52 }
  0x8c   : > { %590 = vst [vmem:[%s4715_s6 + $0x2d4] sm:$0xf] %v589_v53  ;;  %v591_v54 = vld [vmem:[%s4711_s5 + $0x5b0] sm:$0xf]  ;;  %v593_v55 = vld [vmem:[%s4711_s5 + $0x5b8] sm:$0xf] }
  0x8d   : > { %v595_v56 = vld [vmem:[%s4711_s5 + $0x5c0] sm:$0xf]  ;;  %592 = vst [vmem:[%s4715_s6 + $0x2d8] sm:$0xf] %v591_v54  ;;  %594 = vst [vmem:[%s4715_s6 + $0x2dc] sm:$0xf] %v593_v55 }
  0x8e   : > { %596 = vst [vmem:[%s4715_s6 + $0x2e0] sm:$0xf] %v595_v56  ;;  %v597_v57 = vld [vmem:[%s4711_s5 + $0x5c8] sm:$0xf]  ;;  %v599_v58 = vld [vmem:[%s4711_s5 + $0x5d0] sm:$0xf] }
  0x8f   : > { %v601_v59 = vld [vmem:[%s4711_s5 + $0x5d8] sm:$0xf]  ;;  %598 = vst [vmem:[%s4715_s6 + $0x2e4] sm:$0xf] %v597_v57  ;;  %600 = vst [vmem:[%s4715_s6 + $0x2e8] sm:$0xf] %v599_v58 }
  0x90   : > { %602 = vst [vmem:[%s4715_s6 + $0x2ec] sm:$0xf] %v601_v59  ;;  %v603_v60 = vld [vmem:[%s4711_s5 + $0x5e0] sm:$0xf]  ;;  %v605_v61 = vld [vmem:[%s4711_s5 + $0x5e8] sm:$0xf] }
  0x91   : > { %v607_v62 = vld [vmem:[%s4711_s5 + $0x5f0] sm:$0xf]  ;;  %604 = vst [vmem:[%s4715_s6 + $0x2f0] sm:$0xf] %v603_v60  ;;  %606 = vst [vmem:[%s4715_s6 + $0x2f4] sm:$0xf] %v605_v61 }
  0x92   : > { %608 = vst [vmem:[%s4715_s6 + $0x2f8] sm:$0xf] %v607_v62  ;;  %v609_v63 = vld [vmem:[%s4711_s5 + $0x5f8] sm:$0xf]  ;;  %v611_v0 = vld [vmem:[%s4711_s5 + $0x600] sm:$0xf] }
  0x93   : > { %v613_v1 = vld [vmem:[%s4711_s5 + $0x608] sm:$0xf]  ;;  %610 = vst [vmem:[%s4715_s6 + $0x2fc] sm:$0xf] %v609_v63  ;;  %612 = vst [vmem:[%s4715_s6 + $0x300] sm:$0xf] %v611_v0 }
  0x94   : > { %614 = vst [vmem:[%s4715_s6 + $0x304] sm:$0xf] %v613_v1  ;;  %v615_v2 = vld [vmem:[%s4711_s5 + $0x610] sm:$0xf]  ;;  %v617_v3 = vld [vmem:[%s4711_s5 + $0x618] sm:$0xf] }
  0x95   : > { %v619_v4 = vld [vmem:[%s4711_s5 + $0x620] sm:$0xf]  ;;  %616 = vst [vmem:[%s4715_s6 + $0x308] sm:$0xf] %v615_v2  ;;  %618 = vst [vmem:[%s4715_s6 + $0x30c] sm:$0xf] %v617_v3 }
  0x96   : > { %620 = vst [vmem:[%s4715_s6 + $0x310] sm:$0xf] %v619_v4  ;;  %v621_v5 = vld [vmem:[%s4711_s5 + $0x628] sm:$0xf]  ;;  %v623_v6 = vld [vmem:[%s4711_s5 + $0x630] sm:$0xf] }
  0x97   : > { %v625_v7 = vld [vmem:[%s4711_s5 + $0x638] sm:$0xf]  ;;  %622 = vst [vmem:[%s4715_s6 + $0x314] sm:$0xf] %v621_v5  ;;  %624 = vst [vmem:[%s4715_s6 + $0x318] sm:$0xf] %v623_v6 }
  0x98   : > { %626 = vst [vmem:[%s4715_s6 + $0x31c] sm:$0xf] %v625_v7  ;;  %v627_v8 = vld [vmem:[%s4711_s5 + $0x640] sm:$0xf]  ;;  %v629_v9 = vld [vmem:[%s4711_s5 + $0x648] sm:$0xf] }
  0x99   : > { %v631_v10 = vld [vmem:[%s4711_s5 + $0x650] sm:$0xf]  ;;  %628 = vst [vmem:[%s4715_s6 + $0x320] sm:$0xf] %v627_v8  ;;  %630 = vst [vmem:[%s4715_s6 + $0x324] sm:$0xf] %v629_v9 }
  0x9a   : > { %632 = vst [vmem:[%s4715_s6 + $0x328] sm:$0xf] %v631_v10  ;;  %v633_v11 = vld [vmem:[%s4711_s5 + $0x658] sm:$0xf]  ;;  %v635_v12 = vld [vmem:[%s4711_s5 + $0x660] sm:$0xf] }
  0x9b   : > { %v637_v13 = vld [vmem:[%s4711_s5 + $0x668] sm:$0xf]  ;;  %634 = vst [vmem:[%s4715_s6 + $0x32c] sm:$0xf] %v633_v11  ;;  %636 = vst [vmem:[%s4715_s6 + $0x330] sm:$0xf] %v635_v12 }
  0x9c   : > { %638 = vst [vmem:[%s4715_s6 + $0x334] sm:$0xf] %v637_v13  ;;  %v639_v14 = vld [vmem:[%s4711_s5 + $0x670] sm:$0xf]  ;;  %v641_v15 = vld [vmem:[%s4711_s5 + $0x678] sm:$0xf] }
  0x9d   : > { %v643_v16 = vld [vmem:[%s4711_s5 + $0x680] sm:$0xf]  ;;  %640 = vst [vmem:[%s4715_s6 + $0x338] sm:$0xf] %v639_v14  ;;  %642 = vst [vmem:[%s4715_s6 + $0x33c] sm:$0xf] %v641_v15 }
  0x9e   : > { %644 = vst [vmem:[%s4715_s6 + $0x340] sm:$0xf] %v643_v16  ;;  %v645_v17 = vld [vmem:[%s4711_s5 + $0x688] sm:$0xf]  ;;  %v647_v18 = vld [vmem:[%s4711_s5 + $0x690] sm:$0xf] }
  0x9f   : > { %v649_v19 = vld [vmem:[%s4711_s5 + $0x698] sm:$0xf]  ;;  %646 = vst [vmem:[%s4715_s6 + $0x344] sm:$0xf] %v645_v17  ;;  %648 = vst [vmem:[%s4715_s6 + $0x348] sm:$0xf] %v647_v18 }
  0xa0   : > { %650 = vst [vmem:[%s4715_s6 + $0x34c] sm:$0xf] %v649_v19  ;;  %v651_v20 = vld [vmem:[%s4711_s5 + $0x6a0] sm:$0xf]  ;;  %v653_v21 = vld [vmem:[%s4711_s5 + $0x6a8] sm:$0xf] }
  0xa1   : > { %v655_v22 = vld [vmem:[%s4711_s5 + $0x6b0] sm:$0xf]  ;;  %652 = vst [vmem:[%s4715_s6 + $0x350] sm:$0xf] %v651_v20  ;;  %654 = vst [vmem:[%s4715_s6 + $0x354] sm:$0xf] %v653_v21 }
  0xa2   : > { %656 = vst [vmem:[%s4715_s6 + $0x358] sm:$0xf] %v655_v22  ;;  %v657_v23 = vld [vmem:[%s4711_s5 + $0x6b8] sm:$0xf]  ;;  %v659_v24 = vld [vmem:[%s4711_s5 + $0x6c0] sm:$0xf] }
  0xa3   : > { %v661_v25 = vld [vmem:[%s4711_s5 + $0x6c8] sm:$0xf]  ;;  %658 = vst [vmem:[%s4715_s6 + $0x35c] sm:$0xf] %v657_v23  ;;  %660 = vst [vmem:[%s4715_s6 + $0x360] sm:$0xf] %v659_v24 }
  0xa4   : > { %662 = vst [vmem:[%s4715_s6 + $0x364] sm:$0xf] %v661_v25  ;;  %v663_v26 = vld [vmem:[%s4711_s5 + $0x6d0] sm:$0xf]  ;;  %v665_v27 = vld [vmem:[%s4711_s5 + $0x6d8] sm:$0xf] }
  0xa5   : > { %v667_v28 = vld [vmem:[%s4711_s5 + $0x6e0] sm:$0xf]  ;;  %664 = vst [vmem:[%s4715_s6 + $0x368] sm:$0xf] %v663_v26  ;;  %666 = vst [vmem:[%s4715_s6 + $0x36c] sm:$0xf] %v665_v27 }
  0xa6   : > { %668 = vst [vmem:[%s4715_s6 + $0x370] sm:$0xf] %v667_v28  ;;  %v669_v29 = vld [vmem:[%s4711_s5 + $0x6e8] sm:$0xf]  ;;  %v671_v30 = vld [vmem:[%s4711_s5 + $0x6f0] sm:$0xf] }
  0xa7   : > { %v673_v31 = vld [vmem:[%s4711_s5 + $0x6f8] sm:$0xf]  ;;  %670 = vst [vmem:[%s4715_s6 + $0x374] sm:$0xf] %v669_v29  ;;  %672 = vst [vmem:[%s4715_s6 + $0x378] sm:$0xf] %v671_v30 }
  0xa8   : > { %674 = vst [vmem:[%s4715_s6 + $0x37c] sm:$0xf] %v673_v31  ;;  %v675_v32 = vld [vmem:[%s4711_s5 + $0x700] sm:$0xf]  ;;  %v677_v33 = vld [vmem:[%s4711_s5 + $0x708] sm:$0xf] }
  0xa9   : > { %v679_v34 = vld [vmem:[%s4711_s5 + $0x710] sm:$0xf]  ;;  %676 = vst [vmem:[%s4715_s6 + $0x380] sm:$0xf] %v675_v32  ;;  %678 = vst [vmem:[%s4715_s6 + $0x384] sm:$0xf] %v677_v33 }
  0xaa   : > { %680 = vst [vmem:[%s4715_s6 + $0x388] sm:$0xf] %v679_v34  ;;  %v681_v35 = vld [vmem:[%s4711_s5 + $0x718] sm:$0xf]  ;;  %v683_v36 = vld [vmem:[%s4711_s5 + $0x720] sm:$0xf] }
  0xab   : > { %v685_v37 = vld [vmem:[%s4711_s5 + $0x728] sm:$0xf]  ;;  %682 = vst [vmem:[%s4715_s6 + $0x38c] sm:$0xf] %v681_v35  ;;  %684 = vst [vmem:[%s4715_s6 + $0x390] sm:$0xf] %v683_v36 }
  0xac   : > { %686 = vst [vmem:[%s4715_s6 + $0x394] sm:$0xf] %v685_v37  ;;  %v687_v38 = vld [vmem:[%s4711_s5 + $0x730] sm:$0xf]  ;;  %v689_v39 = vld [vmem:[%s4711_s5 + $0x738] sm:$0xf] }
  0xad   : > { %v691_v40 = vld [vmem:[%s4711_s5 + $0x740] sm:$0xf]  ;;  %688 = vst [vmem:[%s4715_s6 + $0x398] sm:$0xf] %v687_v38  ;;  %690 = vst [vmem:[%s4715_s6 + $0x39c] sm:$0xf] %v689_v39 }
  0xae   : > { %692 = vst [vmem:[%s4715_s6 + $0x3a0] sm:$0xf] %v691_v40  ;;  %v693_v41 = vld [vmem:[%s4711_s5 + $0x748] sm:$0xf]  ;;  %v695_v42 = vld [vmem:[%s4711_s5 + $0x750] sm:$0xf] }
  0xaf   : > { %v697_v43 = vld [vmem:[%s4711_s5 + $0x758] sm:$0xf]  ;;  %694 = vst [vmem:[%s4715_s6 + $0x3a4] sm:$0xf] %v693_v41  ;;  %696 = vst [vmem:[%s4715_s6 + $0x3a8] sm:$0xf] %v695_v42 }
  0xb0   : > { %698 = vst [vmem:[%s4715_s6 + $0x3ac] sm:$0xf] %v697_v43  ;;  %v699_v44 = vld [vmem:[%s4711_s5 + $0x760] sm:$0xf]  ;;  %v701_v45 = vld [vmem:[%s4711_s5 + $0x768] sm:$0xf] }
  0xb1   : > { %v703_v46 = vld [vmem:[%s4711_s5 + $0x770] sm:$0xf]  ;;  %700 = vst [vmem:[%s4715_s6 + $0x3b0] sm:$0xf] %v699_v44  ;;  %702 = vst [vmem:[%s4715_s6 + $0x3b4] sm:$0xf] %v701_v45 }
  0xb2   : > { %704 = vst [vmem:[%s4715_s6 + $0x3b8] sm:$0xf] %v703_v46  ;;  %v705_v47 = vld [vmem:[%s4711_s5 + $0x778] sm:$0xf]  ;;  %v707_v48 = vld [vmem:[%s4711_s5 + $0x780] sm:$0xf] }
  0xb3   : > { %v709_v49 = vld [vmem:[%s4711_s5 + $0x788] sm:$0xf]  ;;  %706 = vst [vmem:[%s4715_s6 + $0x3bc] sm:$0xf] %v705_v47  ;;  %708 = vst [vmem:[%s4715_s6 + $0x3c0] sm:$0xf] %v707_v48 }
  0xb4   : > { %710 = vst [vmem:[%s4715_s6 + $0x3c4] sm:$0xf] %v709_v49  ;;  %v711_v50 = vld [vmem:[%s4711_s5 + $0x790] sm:$0xf]  ;;  %v713_v51 = vld [vmem:[%s4711_s5 + $0x798] sm:$0xf] }
  0xb5   : > { %v715_v52 = vld [vmem:[%s4711_s5 + $0x7a0] sm:$0xf]  ;;  %712 = vst [vmem:[%s4715_s6 + $0x3c8] sm:$0xf] %v711_v50  ;;  %714 = vst [vmem:[%s4715_s6 + $0x3cc] sm:$0xf] %v713_v51 }
  0xb6   : > { %716 = vst [vmem:[%s4715_s6 + $0x3d0] sm:$0xf] %v715_v52  ;;  %v717_v53 = vld [vmem:[%s4711_s5 + $0x7a8] sm:$0xf]  ;;  %v719_v54 = vld [vmem:[%s4711_s5 + $0x7b0] sm:$0xf] }
  0xb7   : > { %v721_v55 = vld [vmem:[%s4711_s5 + $0x7b8] sm:$0xf]  ;;  %718 = vst [vmem:[%s4715_s6 + $0x3d4] sm:$0xf] %v717_v53  ;;  %720 = vst [vmem:[%s4715_s6 + $0x3d8] sm:$0xf] %v719_v54 }
  0xb8   : > { %722 = vst [vmem:[%s4715_s6 + $0x3dc] sm:$0xf] %v721_v55  ;;  %v723_v56 = vld [vmem:[%s4711_s5 + $0x7c0] sm:$0xf]  ;;  %v725_v57 = vld [vmem:[%s4711_s5 + $0x7c8] sm:$0xf] }
  0xb9   : > { %v727_v58 = vld [vmem:[%s4711_s5 + $0x7d0] sm:$0xf]  ;;  %724 = vst [vmem:[%s4715_s6 + $0x3e0] sm:$0xf] %v723_v56  ;;  %726 = vst [vmem:[%s4715_s6 + $0x3e4] sm:$0xf] %v725_v57 }
  0xba   : > { %728 = vst [vmem:[%s4715_s6 + $0x3e8] sm:$0xf] %v727_v58  ;;  %v729_v59 = vld [vmem:[%s4711_s5 + $0x7d8] sm:$0xf]  ;;  %v731_v60 = vld [vmem:[%s4711_s5 + $0x7e0] sm:$0xf] }
  0xbb   : > { %v733_v61 = vld [vmem:[%s4711_s5 + $0x7e8] sm:$0xf]  ;;  %730 = vst [vmem:[%s4715_s6 + $0x3ec] sm:$0xf] %v729_v59  ;;  %732 = vst [vmem:[%s4715_s6 + $0x3f0] sm:$0xf] %v731_v60 }
  0xbc   : > { %734 = vst [vmem:[%s4715_s6 + $0x3f4] sm:$0xf] %v733_v61  ;;  %v735_v62 = vld [vmem:[%s4711_s5 + $0x7f0] sm:$0xf]  ;;  %v737_v63 = vld [vmem:[%s4711_s5 + $0x7f8] sm:$0xf] }
  0xbd   : > { %736 = vst [vmem:[%s4715_s6 + $0x3f8] sm:$0xf] %v735_v62  ;;  %738 = vst [vmem:[%s4715_s6 + $0x3fc] sm:$0xf] %v737_v63 }
  0xbe PF: > { %p3788_p8 = scmp.ge.s32.totalorder %s4636_s19, 1  ;;  %p1285_p9 = scmp.lt.s32.totalorder %s4636_s19, 3 }
  0xc0   : > { %p1286_p10 = pnand %p3788_p8, %p1285_p9 }
  0xc1   : > { %s1292_s7 = sand.u32 (!%p1286_p10), 1, %s4620_s15   ;;  %p1345_p11 = scmp.lt.s32.totalorder (!%p1286_p10), %s4628_s17, 1 }
  0xc2   : > { %1289 = sbr.rel (%p1286_p10) target bundleno = 683 (0x2ab), region = 73  ;;  %s3789_s14 = sshll.u32 (!%p1286_p10), %s1292_s7, 10 }
  0xc3   : > { %s5256_s23 = scalar_lea.vmem (!%p1286_p10), [#allocation2], %s3789_s14  ;;  %s4411_s13 = smul.u32 (!%p1286_p10), 36, %s1292_s7 }
  0xc5   : > { %s1331_s15 = scalar_lea.vmem (!%p1286_p10), [#allocation3], %s4411_s13 }
  0xc7   : > { %v5233_v0 = vld [vmem:[%s5761_s0] sm:$0xff]  ;;  %v5243_v2 = vld [vmem:[%s5761_s0 + $0x8] sm:$0xff]  ;;  %v4452_v6 = vld [vmem:[%s5256_s23 + $0x78] sm:$0xff]   ;;  %s1346_s6 = scalar_select %p1345_p11, %s4628_s17, 1 }
  0xc8   : > { %v5238_v1 = vld [vmem:[%s5761_s0 + $0x40] sm:$0xff]  ;;  %v5252_v4 = vld [vmem:[%s5761_s0 + $0x48] sm:$0xff]  ;;  %v4453_v7 = vld [vmem:[%s5256_s23 + $0xf8] sm:$0xff]   ;;  %4043 = vmatprep.subr.bf16.mxu0 %v4452_v6  ;;  %s4008_s7 = sshll.u32 (%p4698_p6), %s4628_s17, 2 }
  0xc9   : > { %v3791_v3 = vcombine.high %v5233_v0, %v5238_v1  ;;  %v3793_v5 = vcombine.high %v5243_v2, %v5252_v4  ;;  %v4454_v8 = vld [vmem:[%s5256_s23 + $0x38] sm:$0xff]   ;;  %4089 = vmatprep.subr.bf16.mxu1 %v4453_v7  ;;  %v4456_v10 = vld [vmem:[%s5256_s23 + $0x70] sm:$0xff]   ;;  %v4460_v14 = vld [vmem:[%s5256_s23 + $0x68] sm:$0xff]   ;;  %v3790_v42 = vcombine.low %v5233_v0, %v5238_v1  ;;  %v3792_v43 = vcombine.low %v5243_v2, %v5252_v4  ;;  %s1347_s10 = scalar_lea.vmem %s5763_s2, %s1346_s6  ;;  %s3596_s22 = scalar_lea.vmem (%p4698_p6), %s5765_s4, %s4008_s7 }
  0xca   : > { %v4455_v9 = vld [vmem:[%s5256_s23 + $0xb8] sm:$0xff]   ;;  %4044 = vmatpush3.bf16.msra.mxu0 %v4454_v8  ;;  %v4457_v11 = vld [vmem:[%s5256_s23 + $0xf0] sm:$0xff]   ;;  %v4461_v15 = vld [vmem:[%s5256_s23 + $0xe8] sm:$0xff]  }
  0xcb   : > { %2857 = vmatprep.mubr.bf16.mxu0 %v3791_v3  ;;  %2929 = vmatprep.mubr.bf16.mxu1 %v3793_v5  ;;  %v4458_v12 = vld [vmem:[%s5256_s23 + $0x30] sm:$0xff]   ;;  %v4462_v16 = vld [vmem:[%s5256_s23 + $0x28] sm:$0xff]   ;;  %v4464_v18 = vld [vmem:[%s5256_s23 + $0x60] sm:$0xff]  }
  0xcc   : > { %4090 = vmatpush3.bf16.msra.mxu1 %v4455_v9  ;;  %4045 = vmatprep.subr.bf16.mxu0 %v4456_v10  ;;  %v4459_v13 = vld [vmem:[%s5256_s23 + $0xb0] sm:$0xff]   ;;  %v4463_v17 = vld [vmem:[%s5256_s23 + $0xa8] sm:$0xff]   ;;  %v4465_v19 = vld [vmem:[%s5256_s23 + $0xe0] sm:$0xff]  }
  0xcd   : > { %4091 = vmatprep.subr.bf16.mxu1 %v4457_v11  ;;  %v4466_v20 = vld [vmem:[%s5256_s23 + $0x20] sm:$0xff]   ;;  %v4468_v22 = vld [vmem:[%s5256_s23 + $0x58] sm:$0xff]   ;;  %v4472_v26 = vld [vmem:[%s5256_s23 + $0x50] sm:$0xff]  }
  0xce   : > { %4046 = vmatpush3.bf16.msra.mxu0 %v4458_v12  ;;  %v4467_v21 = vld [vmem:[%s5256_s23 + $0xa0] sm:$0xff]   ;;  %v4469_v23 = vld [vmem:[%s5256_s23 + $0xd8] sm:$0xff]   ;;  %v4473_v27 = vld [vmem:[%s5256_s23 + $0xd0] sm:$0xff]  }
  0xcf   : > { %4047 = vmatprep.subr.bf16.mxu0 %v4460_v14  ;;  %v4470_v24 = vld [vmem:[%s5256_s23 + $0x18] sm:$0xff]   ;;  %v4474_v28 = vld [vmem:[%s5256_s23 + $0x10] sm:$0xff]   ;;  %v4476_v30 = vld [vmem:[%s5256_s23 + $0x48] sm:$0xff]  }
  0xd0   : > { %4092 = vmatpush3.bf16.msra.mxu1 %v4459_v13  ;;  %v4471_v25 = vld [vmem:[%s5256_s23 + $0x98] sm:$0xff]   ;;  %v4475_v29 = vld [vmem:[%s5256_s23 + $0x90] sm:$0xff]   ;;  %v4477_v31 = vld [vmem:[%s5256_s23 + $0xc8] sm:$0xff]  }
  0xd1   : > { %4093 = vmatprep.subr.bf16.mxu1 %v4461_v15  ;;  %v4478_v32 = vld [vmem:[%s5256_s23 + $0x8] sm:$0xff]   ;;  %v4480_v34 = vld [vmem:[%s5256_s23 + $0x40] sm:$0xff]   ;;  %v4484_v44 = vld [vmem:[%s5256_s23 + $0x178] sm:$0xff]  }
  0xd2   : > { %4048 = vmatpush3.bf16.msra.mxu0 %v4462_v16  ;;  %v4479_v33 = vld [vmem:[%s5256_s23 + $0x88] sm:$0xff]   ;;  %v1369_v35 = vld [vmem:[%s5761_s0 + $0x80] sm:$0xff]  ;;  %v4485_v45 = vld [vmem:[%s5256_s23 + $0x138] sm:$0xff]  }
  0xd3   : > { %4049 = vmatprep.subr.bf16.mxu0 %v4464_v18  ;;  %v1377_v36 = vld [vmem:[%s5761_s0 + $0xc0] sm:$0xff]  ;;  %v1370_v39 = vld [vmem:[%s5761_s0 + $0x88] sm:$0xff]  ;;  %v4486_v47 = vld [vmem:[%s5256_s23 + $0x1f8] sm:$0xff]  }
  0xd4   : > { %4094 = vmatpush3.bf16.msra.mxu1 %v4463_v17  ;;  %v4481_v37 = vld [vmem:[%s5256_s23 + $0xc0] sm:$0xff]   ;;  %v1378_v40 = vld [vmem:[%s5761_s0 + $0xc8] sm:$0xff]  ;;  %v3807_v46 = vcombine.high %v1369_v35, %v1377_v36  ;;  %v4487_v48 = vld [vmem:[%s5256_s23 + $0x1b8] sm:$0xff]   ;;  %v3806_v53 = vcombine.low %v1369_v35, %v1377_v36 }
  0xd5   : > { %4095 = vmatprep.subr.bf16.mxu1 %v4465_v19  ;;  %v4482_v38 = vld [vmem:[%s5256_s23] sm:$0xff]   ;;  %v3809_v49 = vcombine.high %v1370_v39, %v1378_v40  ;;  %v4488_v50 = vld [vmem:[%s5256_s23 + $0x170] sm:$0xff]   ;;  %v3808_v55 = vcombine.low %v1370_v39, %v1378_v40  ;;  %v4492_v56 = vld [vmem:[%s5256_s23 + $0x168] sm:$0xff]  }
  0xd6   : > { %4050 = vmatpush3.bf16.msra.mxu0 %v4466_v20  ;;  %v4483_v41 = vld [vmem:[%s5256_s23 + $0x80] sm:$0xff]   ;;  %v4489_v51 = vld [vmem:[%s5256_s23 + $0x130] sm:$0xff]   ;;  %v4493_v58 = vld [vmem:[%s5256_s23 + $0x128] sm:$0xff]  }
  0xd7   : > { %4051 = vmatprep.subr.bf16.mxu0 %v4468_v22  ;;  %v4490_v52 = vld [vmem:[%s5256_s23 + $0x1f0] sm:$0xff]   ;;  %v1385_v57 = vld [vmem:[%s5761_s0 + $0x100] sm:$0xff]  ;;  %v4494_v59 = vld [vmem:[%s5256_s23 + $0x1e8] sm:$0xff]  }
  0xd8   : > { %4096 = vmatpush3.bf16.msra.mxu1 %v4467_v21  ;;  %v4491_v54 = vld [vmem:[%s5256_s23 + $0x1b0] sm:$0xff]   ;;  %v4495_v60 = vld [vmem:[%s5256_s23 + $0x1a8] sm:$0xff]   ;;  %v1393_v61 = vld [vmem:[%s5761_s0 + $0x140] sm:$0xff] }
  0xd9   : > { %4097 = vmatprep.subr.bf16.mxu1 %v4469_v23  ;;  %v1386_v62 = vld [vmem:[%s5761_s0 + $0x108] sm:$0xff]  ;;  %v3823_v0 = vcombine.high %v1385_v57, %v1393_v61  ;;  %v4496_v2 = vld [vmem:[%s5256_s23 + $0x160] sm:$0xff]   ;;  %v3822_v4 = vcombine.low %v1385_v57, %v1393_v61  ;;  %v4500_v8 = vld [vmem:[%s5256_s23 + $0x158] sm:$0xff]  }
  0xda   : > { %4052 = vmatpush3.bf16.msra.mxu0 %v4470_v24  ;;  %v1394_v63 = vld [vmem:[%s5761_s0 + $0x148] sm:$0xff]  ;;  %v4497_v3 = vld [vmem:[%s5256_s23 + $0x120] sm:$0xff]   ;;  %v4501_v9 = vld [vmem:[%s5256_s23 + $0x118] sm:$0xff]  }
  0xdb   : > { %4053 = vmatprep.subr.bf16.mxu0 %v4472_v26  ;;  %v3825_v1 = vcombine.high %v1386_v62, %v1394_v63  ;;  %v4498_v5 = vld [vmem:[%s5256_s23 + $0x1e0] sm:$0xff]   ;;  %v3824_v6 = vcombine.low %v1386_v62, %v1394_v63  ;;  %v4502_v10 = vld [vmem:[%s5256_s23 + $0x1d8] sm:$0xff]   ;;  %v1402_v13 = vld [vmem:[%s5761_s0 + $0x188] sm:$0xff] }
  0xdc   : > { %4098 = vmatpush3.bf16.msra.mxu1 %v4471_v25  ;;  %v4499_v7 = vld [vmem:[%s5256_s23 + $0x1a0] sm:$0xff]   ;;  %v1410_v15 = vld [vmem:[%s5761_s0 + $0x1c8] sm:$0xff]  ;;  %v4503_v17 = vld [vmem:[%s5256_s23 + $0x198] sm:$0xff]  }
  0xdd   : > { %4099 = vmatprep.subr.bf16.mxu1 %v4473_v27  ;;  %v1401_v11 = vld [vmem:[%s5761_s0 + $0x180] sm:$0xff]  ;;  %v3841_v16 = vcombine.high %v1402_v13, %v1410_v15  ;;  %v4504_v19 = vld [vmem:[%s5256_s23 + $0x150] sm:$0xff]   ;;  %v3840_v20 = vcombine.low %v1402_v13, %v1410_v15  ;;  %v4508_v24 = vld [vmem:[%s5256_s23 + $0x148] sm:$0xff]  }
  0xde   : > { %4054 = vmatpush3.bf16.msra.mxu0 %v4474_v28  ;;  %v1409_v12 = vld [vmem:[%s5761_s0 + $0x1c0] sm:$0xff]  ;;  %v4505_v21 = vld [vmem:[%s5256_s23 + $0x110] sm:$0xff]   ;;  %v1418_v26 = vld [vmem:[%s5761_s0 + $0x208] sm:$0xff] }
  0xdf   : > { %4055 = vmatprep.subr.bf16.mxu0 %v4476_v30  ;;  %v3839_v14 = vcombine.high %v1401_v11, %v1409_v12  ;;  %v3838_v18 = vcombine.low %v1401_v11, %v1409_v12  ;;  %v4506_v22 = vld [vmem:[%s5256_s23 + $0x1d0] sm:$0xff]   ;;  %v1417_v25 = vld [vmem:[%s5761_s0 + $0x200] sm:$0xff]  ;;  %v3857_v28 = vcombine.high %v1418_v26, %v1418_v26  ;;  %v4514_v30 = vld [vmem:[%s5256_s23 + $0x1c8] sm:$0xff]  }
  0xe0   : > { %4100 = vmatpush3.bf16.msra.mxu1 %v4475_v29  ;;  %v4507_v23 = vld [vmem:[%s5256_s23 + $0x190] sm:$0xff]   ;;  %v3855_v27 = vcombine.high %v1417_v25, %v1417_v25  ;;  %v4511_v29 = vld [vmem:[%s5256_s23 + $0x108] sm:$0xff]   ;;  %v4517_v35 = vld [vmem:[%s5256_s23 + $0x100] sm:$0xff]  }
  0xe1   : > { %4101 = vmatprep.subr.bf16.mxu1 %v4477_v31  ;;  %v4515_v31 = vld [vmem:[%s5256_s23 + $0x188] sm:$0xff]   ;;  %v4518_v36 = vld [vmem:[%s5256_s23 + $0x1c0] sm:$0xff]   ;;  %v1363_v39 = vld [vmem:[%s5761_s0 + $0x50] sm:$0xff] }
  0xe2   : > { %4056 = vmatpush3.bf16.msra.mxu0 %v4478_v32  ;;  %v3854_v32 = vcombine.low %v1417_v25, %v1417_v25  ;;  %v1356_v40 = vld [vmem:[%s5761_s0 + $0x18] sm:$0xff]  ;;  %v4529_v62 = vld [vmem:[%s5256_s23 + $0x228] sm:$0xff]   ;;  %v4535_v11 = vld [vmem:[%s5256_s23 + $0x2a0] sm:$0xff]  }
  0xe3   : > { %4057 = vmatprep.subr.bf16.mxu0 %v4480_v34  ;;  %v3856_v34 = vcombine.low %v1418_v26, %v1418_v26  ;;  %v4536_v13 = vld [vmem:[%s5256_s23 + $0x258] sm:$0xff]   ;;  %v4541_v25 = vld [vmem:[%s5256_s23 + $0x210] sm:$0xff]  }
  0xe4   : > { %4102 = vmatpush3.bf16.msra.mxu1 %v4479_v33  ;;  %v4516_v33 = vld [vmem:[%s5256_s23 + $0x140] sm:$0xff]   ;;  %v4537_v15 = vld [vmem:[%s5256_s23 + $0x218] sm:$0xff]  }
  0xe5   : > { %4103 = vmatprep.subr.bf16.mxu1 %v4481_v37  ;;  %v4519_v37 = vld [vmem:[%s5256_s23 + $0x180] sm:$0xff]  }
  0xe6   : > { %4058 = vmatpush3.bf16.msra.mxu0 %v4482_v38  ;;  %v1355_v38 = vld [vmem:[%s5761_s0 + $0x10] sm:$0xff] }
  0xe7   : > { %4135 = vmatprep.subr.bf16.mxu0 %v4484_v44  ;;  %v4520_v44 = vld [vmem:[%s5256_s23 + $0x278] sm:$0xff]  }
  0xe8   : > { %4104 = vmatpush3.bf16.msra.mxu1 %v4483_v41  ;;  %v3795_v41 = vcombine.high %v1355_v38, %v1363_v39 }
  0xe9   : > { %2858 = vmatmul.mubr.bf16.vlgmr.msra.gmra.mxu0 %v3790_v42  ;;  %4181 = vmatprep.subr.bf16.mxu1 %v4486_v47  ;;  %v1364_v42 = vld [vmem:[%s5761_s0 + $0x58] sm:$0xff] }
  0xea   : > { %4136 = vmatpush3.bf16.msra.mxu0 %v4485_v45  ;;  %2865 = vmatprep.mubr.bf16.mxu0 %v3807_v46  ;;  %v4521_v45 = vld [vmem:[%s5256_s23 + $0x238] sm:$0xff]   ;;  %v3794_v46 = vcombine.low %v1355_v38, %v1363_v39  ;;  %v4552_v38 = vld [vmem:[%s5256_s23 + $0x240] sm:$0xff]  }
  0xeb   : > { %2930 = vmatmul.mubr.bf16.vlgmr.msra.gmra.mxu1 %v3792_v43  ;;  %4137 = vmatprep.subr.bf16.mxu0 %v4488_v50  ;;  %v3797_v43 = vcombine.high %v1356_v40, %v1364_v42  ;;  %v4522_v47 = vld [vmem:[%s5256_s23 + $0x2f8] sm:$0xff]   ;;  %v4524_v50 = vld [vmem:[%s5256_s23 + $0x270] sm:$0xff]   ;;  %v4553_v39 = vld [vmem:[%s5256_s23 + $0x200] sm:$0xff]  }
  0xec   : > { %4182 = vmatpush3.bf16.msra.mxu1 %v4487_v48  ;;  %2937 = vmatprep.mubr.bf16.mxu1 %v3809_v49  ;;  %v3796_v48 = vcombine.low %v1356_v40, %v1364_v42  ;;  %v4523_v49 = vld [vmem:[%s5256_s23 + $0x2b8] sm:$0xff]  }
  0xed   : > { %4183 = vmatprep.subr.bf16.mxu1 %v4490_v52  ;;  %v1371_v52 = vld [vmem:[%s5761_s0 + $0x90] sm:$0xff] }
  0xee   : > { %4138 = vmatpush3.bf16.msra.mxu0 %v4489_v51  ;;  %v4525_v51 = vld [vmem:[%s5256_s23 + $0x230] sm:$0xff]  }
  0xef   : > { %4139 = vmatprep.subr.bf16.mxu0 %v4492_v56  ;;  %v1380_v56 = vld [vmem:[%s5761_s0 + $0xd8] sm:$0xff] }
  0xf0   : > { %4184 = vmatpush3.bf16.msra.mxu1 %v4491_v54 }
  0xf1   : > { %2866 = vmatmul.mubr.bf16.gmra.mxu0 %v3806_v53  ;;  %4185 = vmatprep.subr.bf16.mxu1 %v4494_v59  ;;  %v1379_v53 = vld [vmem:[%s5761_s0 + $0xd0] sm:$0xff] }
  0xf2   : > { %4140 = vmatpush3.bf16.msra.mxu0 %v4493_v58  ;;  %2873 = vmatprep.mubr.bf16.mxu0 %v3823_v0  ;;  %v3811_v54 = vcombine.high %v1371_v52, %v1379_v53  ;;  %v4526_v58 = vld [vmem:[%s5256_s23 + $0x2f0] sm:$0xff]   ;;  %v3810_v61 = vcombine.low %v1371_v52, %v1379_v53  ;;  %v4530_v0 = vld [vmem:[%s5256_s23 + $0x2e8] sm:$0xff]   ;;  %v4557_v52 = vld [vmem:[%s5256_s23 + $0x338] sm:$0xff]  }
  0xf3   : > { %2938 = vmatmul.mubr.bf16.gmra.mxu1 %v3808_v55  ;;  %4141 = vmatprep.subr.bf16.mxu0 %v4496_v2  ;;  %v1372_v55 = vld [vmem:[%s5761_s0 + $0x98] sm:$0xff]  ;;  %v4527_v59 = vld [vmem:[%s5256_s23 + $0x2b0] sm:$0xff]  }
  0xf4   : > { %4186 = vmatpush3.bf16.msra.mxu1 %v4495_v60  ;;  %2945 = vmatprep.mubr.bf16.mxu1 %v3825_v1  ;;  %v3813_v57 = vcombine.high %v1372_v55, %v1380_v56  ;;  %v4528_v60 = vld [vmem:[%s5256_s23 + $0x268] sm:$0xff]   ;;  %v3812_v63 = vcombine.low %v1372_v55, %v1380_v56  ;;  %v1387_v2 = vld [vmem:[%s5761_s0 + $0x110] sm:$0xff] }
  0xf5   : > { %4187 = vmatprep.subr.bf16.mxu1 %v4498_v5  ;;  %v4531_v1 = vld [vmem:[%s5256_s23 + $0x2a8] sm:$0xff]   ;;  %v1396_v5 = vld [vmem:[%s5761_s0 + $0x158] sm:$0xff]  ;;  %v4560_v56 = vld [vmem:[%s5256_s23 + $0x370] sm:$0xff]  }
  0xf6   : > { %4142 = vmatpush3.bf16.msra.mxu0 %v4497_v3  ;;  %v1395_v3 = vld [vmem:[%s5761_s0 + $0x150] sm:$0xff] }
  0xf7   : > { %4143 = vmatprep.subr.bf16.mxu0 %v4500_v8  ;;  %v4532_v8 = vld [vmem:[%s5256_s23 + $0x260] sm:$0xff]   ;;  %v3826_v12 = vcombine.low %v1387_v2, %v1395_v3 }
  0xf8   : > { %4188 = vmatpush3.bf16.msra.mxu1 %v4499_v7 }
  0xf9   : > { %2874 = vmatmul.mubr.bf16.gmra.mxu0 %v3822_v4  ;;  %4189 = vmatprep.subr.bf16.mxu1 %v4502_v10  ;;  %v1388_v4 = vld [vmem:[%s5761_s0 + $0x118] sm:$0xff]  ;;  %v4534_v10 = vld [vmem:[%s5256_s23 + $0x2e0] sm:$0xff]  }
  0xfa   : > { %4144 = vmatpush3.bf16.msra.mxu0 %v4501_v9  ;;  %2881 = vmatprep.mubr.bf16.mxu0 %v3839_v14  ;;  %v3829_v7 = vcombine.high %v1388_v4, %v1396_v5  ;;  %v4533_v9 = vld [vmem:[%s5256_s23 + $0x220] sm:$0xff]   ;;  %v3828_v14 = vcombine.low %v1388_v4, %v1396_v5  ;;  %v4566_v4 = vld [vmem:[%s5256_s23 + $0x3e8] sm:$0xff]  }
  0xfb   : > { %2946 = vmatmul.mubr.bf16.gmra.mxu1 %v3824_v6  ;;  %4145 = vmatprep.subr.bf16.mxu0 %v4504_v19  ;;  %v3827_v6 = vcombine.high %v1387_v2, %v1395_v3  ;;  %v1404_v19 = vld [vmem:[%s5761_s0 + $0x198] sm:$0xff]  ;;  %v4564_v2 = vld [vmem:[%s5256_s23 + $0x368] sm:$0xff]  }
  0xfc   : > { %2953 = vmatprep.mubr.bf16.mxu1 %v3841_v16  ;;  %4190 = vmatpush3.bf16.msra.mxu1 %v4503_v17  ;;  %v4538_v16 = vld [vmem:[%s5256_s23 + $0x2d8] sm:$0xff]   ;;  %v1403_v17 = vld [vmem:[%s5761_s0 + $0x190] sm:$0xff]  ;;  %v4565_v3 = vld [vmem:[%s5256_s23 + $0x328] sm:$0xff]  }
  0xfd   : > { %4191 = vmatprep.subr.bf16.mxu1 %v4506_v22 }
  0xfe   : > { %4146 = vmatpush3.bf16.msra.mxu0 %v4505_v21  ;;  %v1412_v21 = vld [vmem:[%s5761_s0 + $0x1d8] sm:$0xff] }
  0xff   : > { %4147 = vmatprep.subr.bf16.mxu0 %v4508_v24  ;;  %v3845_v22 = vcombine.high %v1404_v19, %v1412_v21  ;;  %v4540_v24 = vld [vmem:[%s5256_s23 + $0x250] sm:$0xff]  }
 0x100   : > { %4192 = vmatpush3.bf16.msra.mxu1 %v4507_v23  ;;  %v4539_v23 = vld [vmem:[%s5256_s23 + $0x298] sm:$0xff]  }
 0x101   : > { %2882 = vmatmul.mubr.bf16.gmra.mxu0 %v3838_v18  ;;  %4193 = vmatprep.subr.bf16.mxu1 %v4514_v30  ;;  %v1411_v18 = vld [vmem:[%s5761_s0 + $0x1d0] sm:$0xff]  ;;  %v4544_v30 = vld [vmem:[%s5256_s23 + $0x248] sm:$0xff]  }
 0x102   : > { %2889 = vmatprep.mubr.bf16.mxu0 %v3855_v27  ;;  %4148 = vmatpush3.bf16.msra.mxu0 %v4511_v29  ;;  %v3842_v26 = vcombine.low %v1403_v17, %v1411_v18  ;;  %v4542_v27 = vld [vmem:[%s5256_s23 + $0x2d0] sm:$0xff]  }
 0x103   : > { %2954 = vmatmul.mubr.bf16.gmra.mxu1 %v3840_v20  ;;  %4149 = vmatprep.subr.bf16.mxu0 %v4516_v33  ;;  %v3843_v20 = vcombine.high %v1403_v17, %v1411_v18  ;;  %v4543_v29 = vld [vmem:[%s5256_s23 + $0x290] sm:$0xff]   ;;  %v4571_v17 = vld [vmem:[%s5256_s23 + $0x3a0] sm:$0xff]   ;;  %v4572_v18 = vld [vmem:[%s5256_s23 + $0x358] sm:$0xff]  }
 0x104   : > { %2961 = vmatprep.mubr.bf16.mxu1 %v3857_v28  ;;  %4194 = vmatpush3.bf16.msra.mxu1 %v4515_v31  ;;  %v3844_v28 = vcombine.low %v1404_v19, %v1412_v21  ;;  %v1419_v31 = vld [vmem:[%s5761_s0 + $0x210] sm:$0xff]  ;;  %v4573_v19 = vld [vmem:[%s5256_s23 + $0x318] sm:$0xff]  }
 0x105   : > { %4195 = vmatprep.subr.bf16.mxu1 %v4518_v36  ;;  %v3859_v33 = vcombine.high %v1419_v31, %v1419_v31  ;;  %v4550_v36 = vld [vmem:[%s5256_s23 + $0x2c8] sm:$0xff]   ;;  %v3858_v40 = vcombine.low %v1419_v31, %v1419_v31  ;;  %v4574_v21 = vld [vmem:[%s5256_s23 + $0x3d8] sm:$0xff]   ;;  %v4577_v31 = vld [vmem:[%s5256_s23 + $0x310] sm:$0xff]  }
 0x106   : > { %4150 = vmatpush3.bf16.msra.mxu0 %v4517_v35  ;;  %v4547_v35 = vld [vmem:[%s5256_s23 + $0x208] sm:$0xff]  }
 0x107   : > { %4227 = vmatprep.subr.bf16.mxu0 %v4520_v44  ;;  %v1357_v44 = vld [vmem:[%s5761_s0 + $0x20] sm:$0xff] }
 0x108   : > { %4196 = vmatpush3.bf16.msra.mxu1 %v4519_v37  ;;  %v4551_v37 = vld [vmem:[%s5256_s23 + $0x288] sm:$0xff]  }
 0x109   : > { %2890 = vmatmul.mubr.bf16.gmra.mxu0 %v3854_v32  ;;  %4273 = vmatprep.subr.bf16.mxu1 %v4522_v47  ;;  %v1420_v32 = vld [vmem:[%s5761_s0 + $0x218] sm:$0xff] }
 0x10a   : > { %3001 = vmatprep.mubr.bf16.mxu0 %v3795_v41  ;;  %v4554_v41 = vld [vmem:[%s5256_s23 + $0x2c0] sm:$0xff]   ;;  %v3860_v42 = vcombine.low %v1420_v32, %v1420_v32 }
 0x10b   : > { %2962 = vmatmul.mubr.bf16.gmra.mxu1 %v3856_v34  ;;  %v3861_v34 = vcombine.high %v1420_v32, %v1420_v32  ;;  %v4578_v32 = vld [vmem:[%s5256_s23 + $0x3d0] sm:$0xff]  }
 0x10c   : > { %3073 = vmatprep.mubr.bf16.mxu1 %v3797_v43  ;;  %v4555_v43 = vld [vmem:[%s5256_s23 + $0x280] sm:$0xff]  }
 0x111   : > { %3002 = vmatmul.mubr.bf16.vlgmr.msra.gmra.mxu0 %v3794_v46  ;;  %v1358_v46 = vld [vmem:[%s5761_s0 + $0x28] sm:$0xff] }
 0x112   : > { %4228 = vmatpush3.bf16.msra.mxu0 %v4521_v45  ;;  %3009 = vmatprep.mubr.bf16.mxu0 %v3811_v54  ;;  %v1365_v45 = vld [vmem:[%s5761_s0 + $0x60] sm:$0xff]  ;;  %v4559_v54 = vld [vmem:[%s5256_s23 + $0x3b8] sm:$0xff]  }
 0x113   : > { %3074 = vmatmul.mubr.bf16.vlgmr.msra.gmra.mxu1 %v3796_v48  ;;  %4229 = vmatprep.subr.bf16.mxu0 %v4524_v50  ;;  %v3799_v47 = vcombine.high %v1357_v44, %v1365_v45  ;;  %v1366_v48 = vld [vmem:[%s5761_s0 + $0x68] sm:$0xff]  ;;  %v4556_v50 = vld [vmem:[%s5256_s23 + $0x378] sm:$0xff]   ;;  %v3798_v53 = vcombine.low %v1357_v44, %v1365_v45  ;;  %v4588_v44 = vld [vmem:[%s5256_s23 + $0x340] sm:$0xff]  }
 0x114   : > { %4274 = vmatpush3.bf16.msra.mxu1 %v4523_v49  ;;  %3081 = vmatprep.mubr.bf16.mxu1 %v3813_v57  ;;  %v3801_v49 = vcombine.high %v1358_v46, %v1366_v48  ;;  %v3800_v55 = vcombine.low %v1358_v46, %v1366_v48  ;;  %v1373_v57 = vld [vmem:[%s5761_s0 + $0xa0] sm:$0xff] }
 0x115   : > { %4275 = vmatprep.subr.bf16.mxu1 %v4526_v58  ;;  %v1381_v58 = vld [vmem:[%s5761_s0 + $0xe0] sm:$0xff] }
 0x116   : > { %4230 = vmatpush3.bf16.msra.mxu0 %v4525_v51  ;;  %v4558_v51 = vld [vmem:[%s5256_s23 + $0x3f8] sm:$0xff]   ;;  %v3814_v5 = vcombine.low %v1373_v57, %v1381_v58  ;;  %v4589_v45 = vld [vmem:[%s5256_s23 + $0x300] sm:$0xff]  }
 0x117   : > { %4231 = vmatprep.subr.bf16.mxu0 %v4528_v60  ;;  %v1382_v60 = vld [vmem:[%s5761_s0 + $0xe8] sm:$0xff]  ;;  %v4590_v46 = vld [vmem:[%s5256_s23 + $0x3c0] sm:$0xff]  }
 0x118   : > { %4276 = vmatpush3.bf16.msra.mxu1 %v4527_v59  ;;  %v1374_v59 = vld [vmem:[%s5761_s0 + $0xa8] sm:$0xff] }
 0x119   : > { %4277 = vmatprep.subr.bf16.mxu1 %v4530_v0  ;;  %3010 = vmatmul.mubr.bf16.gmra.mxu0 %v3810_v61  ;;  %v4561_v61 = vld [vmem:[%s5256_s23 + $0x330] sm:$0xff]  }
 0x11a   : > { %4232 = vmatpush3.bf16.msra.mxu0 %v4529_v62  ;;  %3017 = vmatprep.mubr.bf16.mxu0 %v3827_v6  ;;  %v3815_v62 = vcombine.high %v1373_v57, %v1381_v58  ;;  %v4562_v0 = vld [vmem:[%s5256_s23 + $0x3f0] sm:$0xff]   ;;  %v4567_v6 = vld [vmem:[%s5256_s23 + $0x3a8] sm:$0xff]   ;;  %v1376_v58 = vld [vmem:[%s5761_s0 + $0xb8] sm:$0xff] }
 0x11b   : > { %3082 = vmatmul.mubr.bf16.gmra.mxu1 %v3812_v63  ;;  %4233 = vmatprep.subr.bf16.mxu0 %v4532_v8  ;;  %v3817_v63 = vcombine.high %v1374_v59, %v1382_v60  ;;  %v3816_v8 = vcombine.low %v1374_v59, %v1382_v60  ;;  %v1383_v57 = vld [vmem:[%s5761_s0 + $0xf0] sm:$0xff]  ;;  %v1384_v59 = vld [vmem:[%s5761_s0 + $0xf8] sm:$0xff] }
 0x11c   : > { %4278 = vmatpush3.bf16.msra.mxu1 %v4531_v1  ;;  %3089 = vmatprep.mubr.bf16.mxu1 %v3829_v7  ;;  %v4563_v1 = vld [vmem:[%s5256_s23 + $0x3b0] sm:$0xff]   ;;  %v1389_v7 = vld [vmem:[%s5761_s0 + $0x120] sm:$0xff] }
 0x11d   : > { %4279 = vmatprep.subr.bf16.mxu1 %v4534_v10  ;;  %v1390_v10 = vld [vmem:[%s5761_s0 + $0x128] sm:$0xff] }
 0x11e   : > { %4234 = vmatpush3.bf16.msra.mxu0 %v4533_v9  ;;  %v1397_v9 = vld [vmem:[%s5761_s0 + $0x160] sm:$0xff] }
 0x11f   : > { %4235 = vmatprep.subr.bf16.mxu0 %v4536_v13  ;;  %v4568_v13 = vld [vmem:[%s5256_s23 + $0x360] sm:$0xff]  }
 0x120   : > { %4280 = vmatpush3.bf16.msra.mxu1 %v4535_v11  ;;  %v1398_v11 = vld [vmem:[%s5761_s0 + $0x168] sm:$0xff] }
 0x121   : > { %3018 = vmatmul.mubr.bf16.gmra.mxu0 %v3826_v12  ;;  %4281 = vmatprep.subr.bf16.mxu1 %v4538_v16  ;;  %v3831_v12 = vcombine.high %v1389_v7, %v1397_v9  ;;  %v4570_v16 = vld [vmem:[%s5256_s23 + $0x3e0] sm:$0xff]  }
 0x122   : > { %4236 = vmatpush3.bf16.msra.mxu0 %v4537_v15  ;;  %3025 = vmatprep.mubr.bf16.mxu0 %v3843_v20  ;;  %v4569_v15 = vld [vmem:[%s5256_s23 + $0x320] sm:$0xff]   ;;  %v3830_v20 = vcombine.low %v1389_v7, %v1397_v9  ;;  %v1415_v9 = vld [vmem:[%s5761_s0 + $0x1f0] sm:$0xff] }
 0x123   : > { %3090 = vmatmul.mubr.bf16.gmra.mxu1 %v3828_v14  ;;  %4237 = vmatprep.subr.bf16.mxu0 %v4540_v24  ;;  %v3833_v14 = vcombine.high %v1390_v10, %v1398_v11  ;;  %v1413_v24 = vld [vmem:[%s5761_s0 + $0x1e0] sm:$0xff] }
 0x124   : > { %3097 = vmatprep.mubr.bf16.mxu1 %v3845_v22  ;;  %4282 = vmatpush3.bf16.msra.mxu1 %v4539_v23  ;;  %v3832_v22 = vcombine.low %v1390_v10, %v1398_v11  ;;  %v1405_v23 = vld [vmem:[%s5761_s0 + $0x1a0] sm:$0xff]  ;;  %v1408_v10 = vld [vmem:[%s5761_s0 + $0x1b8] sm:$0xff] }
 0x125   : > { %4283 = vmatprep.subr.bf16.mxu1 %v4542_v27  ;;  %v1414_v27 = vld [vmem:[%s5761_s0 + $0x1e8] sm:$0xff]  ;;  %v1416_v11 = vld [vmem:[%s5761_s0 + $0x1f8] sm:$0xff] }
 0x126   : > { %4238 = vmatpush3.bf16.msra.mxu0 %v4541_v25  ;;  %v1406_v25 = vld [vmem:[%s5761_s0 + $0x1a8] sm:$0xff] }
 0x127   : > { %4239 = vmatprep.subr.bf16.mxu0 %v4544_v30  ;;  %v4576_v30 = vld [vmem:[%s5256_s23 + $0x350] sm:$0xff]  }
 0x128   : > { %4284 = vmatpush3.bf16.msra.mxu1 %v4543_v29  ;;  %v4575_v29 = vld [vmem:[%s5256_s23 + $0x398] sm:$0xff]  }
 0x129   : > { %3026 = vmatmul.mubr.bf16.gmra.mxu0 %v3842_v26  ;;  %4285 = vmatprep.subr.bf16.mxu1 %v4550_v36  ;;  %v3847_v26 = vcombine.high %v1405_v23, %v1413_v24  ;;  %v1421_v36 = vld [vmem:[%s5761_s0 + $0x220] sm:$0xff] }
 0x12a   : > { %3033 = vmatprep.mubr.bf16.mxu0 %v3859_v33  ;;  %4240 = vmatpush3.bf16.msra.mxu0 %v4547_v35  ;;  %v4579_v33 = vld [vmem:[%s5256_s23 + $0x390] sm:$0xff]   ;;  %v4580_v35 = vld [vmem:[%s5256_s23 + $0x348] sm:$0xff]   ;;  %v3862_v48 = vcombine.low %v1421_v36, %v1421_v36 }
 0x12b   : > { %3098 = vmatmul.mubr.bf16.gmra.mxu1 %v3844_v28  ;;  %4241 = vmatprep.subr.bf16.mxu0 %v4552_v38  ;;  %v3849_v28 = vcombine.high %v1406_v25, %v1414_v27  ;;  %v3848_v38 = vcombine.low %v1406_v25, %v1414_v27 }
 0x12c   : > { %3105 = vmatprep.mubr.bf16.mxu1 %v3861_v34  ;;  %4286 = vmatpush3.bf16.msra.mxu1 %v4551_v37  ;;  %v3846_v34 = vcombine.low %v1405_v23, %v1413_v24  ;;  %v1422_v37 = vld [vmem:[%s5761_s0 + $0x228] sm:$0xff] }
 0x12d   : > { %4287 = vmatprep.subr.bf16.mxu1 %v4554_v41  ;;  %v3865_v41 = vcombine.high %v1422_v37, %v1422_v37 }
 0x12e   : > { %4242 = vmatpush3.bf16.msra.mxu0 %v4553_v39  ;;  %v3863_v39 = vcombine.high %v1421_v36, %v1421_v36 }
 0x12f   : > { %4319 = vmatprep.subr.bf16.mxu0 %v4556_v50  ;;  %v1367_v50 = vld [vmem:[%s5761_s0 + $0x70] sm:$0xff] }
 0x130   : > { %4288 = vmatpush3.bf16.msra.mxu1 %v4555_v43  ;;  %v4587_v43 = vld [vmem:[%s5256_s23 + $0x388] sm:$0xff]  }
 0x131   : > { %3034 = vmatmul.mubr.bf16.gmra.mxu0 %v3858_v40  ;;  %4365 = vmatprep.subr.bf16.mxu1 %v4558_v51  ;;  %v4583_v40 = vld [vmem:[%s5256_s23 + $0x308] sm:$0xff]   ;;  %v1360_v51 = vld [vmem:[%s5761_s0 + $0x38] sm:$0xff] }
 0x132   : > { %3145 = vmatprep.mubr.bf16.mxu0 %v3799_v47  ;;  %v4591_v47 = vld [vmem:[%s5256_s23 + $0x380] sm:$0xff]  }
 0x133   : > { %3106 = vmatmul.mubr.bf16.gmra.mxu1 %v3860_v42  ;;  %v4586_v42 = vld [vmem:[%s5256_s23 + $0x3c8] sm:$0xff]   ;;  %s1350_s23 = scalar_lea.vmem %s5764_s3, %s1346_s6 }
 0x134   : > { %3217 = vmatprep.mubr.bf16.mxu1 %v3801_v49  ;;  %v1359_v49 = vld [vmem:[%s5761_s0 + $0x30] sm:$0xff] }
 0x135   : > { %v3802_v60 = vcombine.low %v1359_v49, %v1367_v50 }
 0x139   : > { %3146 = vmatmul.mubr.bf16.vlgmr.msra.gmra.mxu0 %v3798_v53  ;;  %v3803_v53 = vcombine.high %v1359_v49, %v1367_v50 }
 0x13a   : > { %4320 = vmatpush3.bf16.msra.mxu0 %v4557_v52  ;;  %3153 = vmatprep.mubr.bf16.mxu0 %v3815_v62  ;;  %v3864_v52 = vcombine.low %v1422_v37, %v1422_v37 }
 0x13b   : > { %3218 = vmatmul.mubr.bf16.vlgmr.msra.gmra.mxu1 %v3800_v55  ;;  %4321 = vmatprep.subr.bf16.mxu0 %v4560_v56  ;;  %v1375_v56 = vld [vmem:[%s5761_s0 + $0xb0] sm:$0xff] }
 0x13c   : > { %4366 = vmatpush3.bf16.msra.mxu1 %v4559_v54  ;;  %3225 = vmatprep.mubr.bf16.mxu1 %v3817_v63  ;;  %v1368_v54 = vld [vmem:[%s5761_s0 + $0x78] sm:$0xff]  ;;  %v3819_v62 = vcombine.high %v1375_v56, %v1383_v57  ;;  %v3821_v63 = vcombine.high %v1376_v58, %v1384_v59 }
 0x13d   : > { %4367 = vmatprep.subr.bf16.mxu1 %v4562_v0  ;;  %v3805_v55 = vcombine.high %v1360_v51, %v1368_v54  ;;  %v1391_v0 = vld [vmem:[%s5761_s0 + $0x130] sm:$0xff] }
 0x13e   : > { %4322 = vmatpush3.bf16.msra.mxu0 %v4561_v61  ;;  %v3804_v61 = vcombine.low %v1360_v51, %v1368_v54 }
 0x13f   : > { %4323 = vmatprep.subr.bf16.mxu0 %v4564_v2  ;;  %v1392_v2 = vld [vmem:[%s5761_s0 + $0x138] sm:$0xff] }
 0x140   : > { %4368 = vmatpush3.bf16.msra.mxu1 %v4563_v1  ;;  %v1399_v1 = vld [vmem:[%s5761_s0 + $0x170] sm:$0xff] }
 0x141   : > { %4369 = vmatprep.subr.bf16.mxu1 %v4566_v4  ;;  %3154 = vmatmul.mubr.bf16.gmra.mxu0 %v3814_v5  ;;  %v3818_v4 = vcombine.low %v1375_v56, %v1383_v57  ;;  %v3820_v5 = vcombine.low %v1376_v58, %v1384_v59 }
 0x142   : > { %4324 = vmatpush3.bf16.msra.mxu0 %v4565_v3  ;;  %3161 = vmatprep.mubr.bf16.mxu0 %v3831_v12  ;;  %v1400_v3 = vld [vmem:[%s5761_s0 + $0x178] sm:$0xff]  ;;  %v3834_v12 = vcombine.low %v1391_v0, %v1399_v1 }
 0x143   : > { %3226 = vmatmul.mubr.bf16.gmra.mxu1 %v3816_v8  ;;  %4325 = vmatprep.subr.bf16.mxu0 %v4568_v13  ;;  %v3837_v7 = vcombine.high %v1392_v2, %v1400_v3  ;;  %v1407_v8 = vld [vmem:[%s5761_s0 + $0x1b0] sm:$0xff]  ;;  %v3836_v13 = vcombine.low %v1392_v2, %v1400_v3 }
 0x144   : > { %4370 = vmatpush3.bf16.msra.mxu1 %v4567_v6  ;;  %3233 = vmatprep.mubr.bf16.mxu1 %v3833_v14  ;;  %v3835_v6 = vcombine.high %v1391_v0, %v1399_v1  ;;  %v3851_v14 = vcombine.high %v1407_v8, %v1415_v9 }
 0x145   : > { %4371 = vmatprep.subr.bf16.mxu1 %v4570_v16  ;;  %v1423_v16 = vld [vmem:[%s5761_s0 + $0x230] sm:$0xff] }
 0x146   : > { %4326 = vmatpush3.bf16.msra.mxu0 %v4569_v15  ;;  %v3853_v15 = vcombine.high %v1408_v10, %v1416_v11 }
 0x147   : > { %4327 = vmatprep.subr.bf16.mxu0 %v4572_v18  ;;  %v3850_v18 = vcombine.low %v1407_v8, %v1415_v9 }
 0x148   : > { %4372 = vmatpush3.bf16.msra.mxu1 %v4571_v17  ;;  %v1424_v17 = vld [vmem:[%s5761_s0 + $0x238] sm:$0xff] }
 0x149   : > { %4373 = vmatprep.subr.bf16.mxu1 %v4574_v21  ;;  %3162 = vmatmul.mubr.bf16.gmra.mxu0 %v3830_v20  ;;  %v3867_v20 = vcombine.high %v1423_v16, %v1423_v16  ;;  %v3869_v21 = vcombine.high %v1424_v17, %v1424_v17  ;;  %v3868_v23 = vcombine.low %v1424_v17, %v1424_v17 }
 0x14a   : > { %4328 = vmatpush3.bf16.msra.mxu0 %v4573_v19  ;;  %3169 = vmatprep.mubr.bf16.mxu0 %v3847_v26  ;;  %v3852_v19 = vcombine.low %v1408_v10, %v1416_v11 }
 0x14b   : > { %3234 = vmatmul.mubr.bf16.gmra.mxu1 %v3832_v22  ;;  %4329 = vmatprep.subr.bf16.mxu0 %v4576_v30  ;;  %v3866_v22 = vcombine.low %v1423_v16, %v1423_v16 }
 0x14c   : > { %3241 = vmatprep.mubr.bf16.mxu1 %v3849_v28  ;;  %4374 = vmatpush3.bf16.msra.mxu1 %v4575_v29 }
 0x14d   : > { %4375 = vmatprep.subr.bf16.mxu1 %v4578_v32 }
 0x14e   : > { %4330 = vmatpush3.bf16.msra.mxu0 %v4577_v31 }
 0x14f   : > { %4331 = vmatprep.subr.bf16.mxu0 %v4580_v35 }
 0x150   : > { %4376 = vmatpush3.bf16.msra.mxu1 %v4579_v33 }
 0x151   : > { %3170 = vmatmul.mubr.bf16.gmra.mxu0 %v3846_v34  ;;  %4377 = vmatprep.subr.bf16.mxu1 %v4586_v42 }
 0x152   : > { %3177 = vmatprep.mubr.bf16.mxu0 %v3863_v39  ;;  %4332 = vmatpush3.bf16.msra.mxu0 %v4583_v40 }
 0x153   : > { %3242 = vmatmul.mubr.bf16.gmra.mxu1 %v3848_v38  ;;  %4333 = vmatprep.subr.bf16.mxu0 %v4588_v44 }
 0x154   : > { %3249 = vmatprep.mubr.bf16.mxu1 %v3865_v41  ;;  %4378 = vmatpush3.bf16.msra.mxu1 %v4587_v43 }
 0x155   : > { %4379 = vmatprep.subr.bf16.mxu1 %v4590_v46 }
 0x156   : > { %4334 = vmatpush3.bf16.msra.mxu0 %v4589_v45 }
 0x158   : > { %4380 = vmatpush3.bf16.msra.mxu1 %v4591_v47 }
 0x159   : > { %3178 = vmatmul.mubr.bf16.gmra.mxu0 %v3862_v48 }
 0x15a   : > { %3289 = vmatprep.mubr.bf16.mxu0 %v3803_v53 }
 0x15b   : > { %3250 = vmatmul.mubr.bf16.gmra.mxu1 %v3864_v52 }
 0x15c   : > { %3361 = vmatprep.mubr.bf16.mxu1 %v3805_v55 }
 0x161   : > { %3290 = vmatmul.mubr.bf16.vlgmr.msra.gmra.mxu0 %v3802_v60 }
 0x162   : > { %3297 = vmatprep.mubr.bf16.mxu0 %v3819_v62 }
 0x163   : > { %3362 = vmatmul.mubr.bf16.vlgmr.msra.gmra.mxu1 %v3804_v61 }
 0x164   : > { %3369 = vmatprep.mubr.bf16.mxu1 %v3821_v63 }
 0x169   : > { %3298 = vmatmul.mubr.bf16.gmra.mxu0 %v3818_v4 }
 0x16a   : > { %3305 = vmatprep.mubr.bf16.mxu0 %v3835_v6 }
 0x16b   : > { %3370 = vmatmul.mubr.bf16.gmra.mxu1 %v3820_v5 }
 0x16c   : > { %3377 = vmatprep.mubr.bf16.mxu1 %v3837_v7 }
 0x171   : > { %3306 = vmatmul.mubr.bf16.gmra.mxu0 %v3834_v12 }
 0x172   : > { %3313 = vmatprep.mubr.bf16.mxu0 %v3851_v14 }
 0x173   : > { %3378 = vmatmul.mubr.bf16.gmra.mxu1 %v3836_v13 }
 0x174   : > { %3385 = vmatprep.mubr.bf16.mxu1 %v3853_v15 }
 0x179   : > { %3314 = vmatmul.mubr.bf16.gmra.mxu0 %v3850_v18 }
 0x17a   : > { %3321 = vmatprep.mubr.bf16.mxu0 %v3867_v20 }
 0x17b   : > { %3386 = vmatmul.mubr.bf16.gmra.mxu1 %v3852_v19 }
 0x17c   : > { %3393 = vmatprep.mubr.bf16.mxu1 %v3869_v21 }
 0x181   : > { %3322 = vmatmul.mubr.bf16.gmra.mxu0 %v3866_v22 }
 0x183   : > { %3394 = vmatmul.mubr.bf16.gmra.mxu1 %v3868_v23 }
 0x1a9   : > { %v4059_v24 = vpop.f32.mrf.mxu0 }
 0x1ab   : > { %v4105_v25 = vpop.f32.mrf.mxu1  ;;  %v4060_v26 = vpop.f32.mrf.mxu0 }
 0x1ac   : > { %v4061_v27 = vadd.f32 %v4060_v26, %v4059_v24 }
 0x1ad   : > { %v4106_v28 = vpop.f32.mrf.mxu1  ;;  %v4062_v30 = vpop.f32.mrf.mxu0 }
 0x1ae   : > { %v4107_v29 = vadd.f32 %v4106_v28, %v4105_v25 }
 0x1af   : > { %v4108_v31 = vpop.f32.mrf.mxu1  ;;  %v4063_v33 = vpop.f32.mrf.mxu0 }
 0x1b0   : > { %v5594_v32 = vadd.f32 %v4107_v29, %v4061_v27  ;;  %v4064_v34 = vadd.f32 %v4063_v33, %v4062_v30 }
 0x1b1   : > { %v4109_v35 = vpop.f32.mrf.mxu1  ;;  %v4065_v37 = vpop.f32.mrf.mxu0 }
 0x1b2   : > { %v4110_v36 = vadd.f32 %v4109_v35, %v4108_v31 }
 0x1b3   : > { %v4111_v38 = vpop.f32.mrf.mxu1  ;;  %v4066_v40 = vpop.f32.mrf.mxu0 }
 0x1b4   : > { %v5596_v39 = vadd.f32 %v4110_v36, %v4064_v34  ;;  %v4067_v41 = vadd.f32 %v4066_v40, %v4065_v37 }
 0x1b5   : > { %v4112_v42 = vpop.f32.mrf.mxu1  ;;  %v4068_v44 = vpop.f32.mrf.mxu0 }
 0x1b6   : > { %v4113_v43 = vadd.f32 %v4112_v42, %v4111_v38 }
 0x1b7   : > { %v4114_v45 = vpop.f32.mrf.mxu1  ;;  %v4069_v47 = vpop.f32.mrf.mxu0 }
 0x1b8   : > { %v5598_v46 = vadd.f32 %v4113_v43, %v4067_v41  ;;  %v4070_v48 = vadd.f32 %v4069_v47, %v4068_v44 }
 0x1b9   : > { %v4115_v49 = vpop.f32.mrf.mxu1  ;;  %v4071_v51 = vpop.f32.mrf.mxu0 }
 0x1ba   : > { %v4116_v50 = vadd.f32 %v4115_v49, %v4114_v45 }
 0x1bb   : > { %v4117_v52 = vpop.f32.mrf.mxu1  ;;  %v4072_v54 = vpop.f32.mrf.mxu0 }
 0x1bc   : > { %v5600_v53 = vadd.f32 %v4116_v50, %v4070_v48  ;;  %v4073_v55 = vadd.f32 %v4072_v54, %v4071_v51 }
 0x1bd   : > { %v4118_v56 = vpop.f32.mrf.mxu1  ;;  %v4074_v58 = vpop.f32.mrf.mxu0 }
 0x1be   : > { %v4119_v57 = vadd.f32 %v4118_v56, %v4117_v52 }
 0x1bf   : > { %v4120_v59 = vpop.f32.mrf.mxu1  ;;  %v4075_v61 = vpop.f32.mrf.mxu0 }
 0x1c0   : > { %v5602_v60 = vadd.f32 %v4119_v57, %v4073_v55  ;;  %v4076_v62 = vadd.f32 %v4075_v61, %v4074_v58 }
 0x1c1   : > { %v4121_v63 = vpop.f32.mrf.mxu1  ;;  %v4077_v1 = vpop.f32.mrf.mxu0 }
 0x1c2   : > { %v4122_v0 = vadd.f32 %v4121_v63, %v4120_v59 }
 0x1c3   : > { %v4123_v2 = vpop.f32.mrf.mxu1  ;;  %v4078_v4 = vpop.f32.mrf.mxu0 }
 0x1c4   : > { %v5604_v3 = vadd.f32 %v4122_v0, %v4076_v62  ;;  %v4079_v5 = vadd.f32 %v4078_v4, %v4077_v1 }
 0x1c5   : > { %v4124_v6 = vpop.f32.mrf.mxu1  ;;  %v4080_v8 = vpop.f32.mrf.mxu0 }
 0x1c6   : > { %v4125_v7 = vadd.f32 %v4124_v6, %v4123_v2 }
 0x1c7   : > { %v4126_v9 = vpop.f32.mrf.mxu1  ;;  %v4081_v11 = vpop.f32.mrf.mxu0 }
 0x1c8   : > { %v5606_v10 = vadd.f32 %v4125_v7, %v4079_v5  ;;  %v4082_v12 = vadd.f32 %v4081_v11, %v4080_v8 }
 0x1c9   : > { %v4127_v13 = vpop.f32.mrf.mxu1  ;;  %v4083_v15 = vpop.f32.mrf.mxu0 }
 0x1ca   : > { %v4128_v14 = vadd.f32 %v4127_v13, %v4126_v9 }
 0x1cb   : > { %v4129_v16 = vpop.f32.mrf.mxu1  ;;  %v4084_v18 = vpop.f32.mrf.mxu0 }
 0x1cc   : > { %v5608_v17 = vadd.f32 %v4128_v14, %v4082_v12  ;;  %v4085_v19 = vadd.f32 %v4084_v18, %v4083_v15 }
 0x1cd   : > { %v4130_v20 = vpop.f32.mrf.mxu1  ;;  %v4086_v22 = vpop.f32.mrf.mxu0 }
 0x1ce   : > { %v4131_v21 = vadd.f32 %v4130_v20, %v4129_v16 }
 0x1cf   : > { %v4132_v23 = vpop.f32.mrf.mxu1  ;;  %v4087_v25 = vpop.f32.mrf.mxu0 }
 0x1d0   : > { %v5610_v24 = vadd.f32 %v4131_v21, %v4085_v19 }
 0x1d1   : > { %v4133_v26 = vpop.f32.mrf.mxu1  ;;  %v4151_v27 = vpop.f32.mrf.mxu0 }
 0x1d3   : > { %v4197_v28 = vpop.f32.mrf.mxu1  ;;  %v4152_v29 = vpop.f32.mrf.mxu0 }
 0x1d4   : > { %v4153_v30 = vadd.f32 %v4152_v29, %v4151_v27 }
 0x1d5   : > { %v4198_v31 = vpop.f32.mrf.mxu1  ;;  %v4154_v34 = vpop.f32.mrf.mxu0 }
 0x1d6   : > { %v4199_v33 = vadd.f32 %v4198_v31, %v4197_v28  ;;  %v3004_v35 = vadd.f32 %v4153_v30, %v5594_v32 }
 0x1d7   : > { %v4200_v36 = vpop.f32.mrf.mxu1  ;;  %v4155_v37 = vpop.f32.mrf.mxu0 }
 0x1d8   : > { %v5613_v38 = vadd.f32 %v4199_v33, %v3004_v35  ;;  %v4156_v40 = vadd.f32 %v4155_v37, %v4154_v34 }
 0x1d9   : > { %v4201_v41 = vpop.f32.mrf.mxu1  ;;  %v4157_v43 = vpop.f32.mrf.mxu0 }
 0x1da   : > { %v4202_v42 = vadd.f32 %v4201_v41, %v4200_v36  ;;  %v3007_v44 = vadd.f32 %v4156_v40, %v5596_v39 }
 0x1db   : > { %v4203_v45 = vpop.f32.mrf.mxu1  ;;  %v4158_v47 = vpop.f32.mrf.mxu0 }
 0x1dc   : > { %v5616_v48 = vadd.f32 %v4202_v42, %v3007_v44  ;;  %v4159_v49 = vadd.f32 %v4158_v47, %v4157_v43 }
 0x1dd   : > { %v4204_v50 = vpop.f32.mrf.mxu1  ;;  %v4160_v52 = vpop.f32.mrf.mxu0 }
 0x1de   : > { %v4205_v51 = vadd.f32 %v4204_v50, %v4203_v45  ;;  %v3012_v32 = vadd.f32 %v4159_v49, %v5598_v46 }
 0x1df   : > { %v4206_v54 = vpop.f32.mrf.mxu1  ;;  %v4161_v55 = vpop.f32.mrf.mxu0 }
 0x1e0   : > { %v5619_v56 = vadd.f32 %v4205_v51, %v3012_v32  ;;  %v4162_v57 = vadd.f32 %v4161_v55, %v4160_v52 }
 0x1e1   : > { %v4207_v58 = vpop.f32.mrf.mxu1  ;;  %v4163_v61 = vpop.f32.mrf.mxu0 }
 0x1e2   : > { %v4208_v59 = vadd.f32 %v4207_v58, %v4206_v54  ;;  %v3015_v39 = vadd.f32 %v4162_v57, %v5600_v53 }
 0x1e3   : > { %v4209_v62 = vpop.f32.mrf.mxu1  ;;  %v4164_v63 = vpop.f32.mrf.mxu0 }
 0x1e4   : > { %v5622_v0 = vadd.f32 %v4208_v59, %v3015_v39  ;;  %v4165_v1 = vadd.f32 %v4164_v63, %v4163_v61 }
 0x1e5   : > { %v4210_v2 = vpop.f32.mrf.mxu1  ;;  %v4166_v5 = vpop.f32.mrf.mxu0 }
 0x1e6   : > { %v4211_v4 = vadd.f32 %v4210_v2, %v4209_v62  ;;  %v3020_v46 = vadd.f32 %v4165_v1, %v5602_v60 }
 0x1e7   : > { %v4212_v6 = vpop.f32.mrf.mxu1  ;;  %v4167_v7 = vpop.f32.mrf.mxu0 }
 0x1e8   : > { %v5625_v8 = vadd.f32 %v4211_v4, %v3020_v46  ;;  %v4168_v9 = vadd.f32 %v4167_v7, %v4166_v5 }
 0x1e9   : > { %v4213_v11 = vpop.f32.mrf.mxu1  ;;  %v4169_v13 = vpop.f32.mrf.mxu0 }
 0x1ea   : > { %v4214_v12 = vadd.f32 %v4213_v11, %v4212_v6  ;;  %v3023_v53 = vadd.f32 %v4168_v9, %v5604_v3 }
 0x1eb   : > { %v4215_v14 = vpop.f32.mrf.mxu1  ;;  %v4170_v15 = vpop.f32.mrf.mxu0 }
 0x1ec   : > { %v5628_v16 = vadd.f32 %v4214_v12, %v3023_v53  ;;  %v4171_v18 = vadd.f32 %v4170_v15, %v4169_v13 }
 0x1ed   : > { %v4216_v19 = vpop.f32.mrf.mxu1  ;;  %v4172_v21 = vpop.f32.mrf.mxu0 }
 0x1ee   : > { %v4217_v20 = vadd.f32 %v4216_v19, %v4215_v14  ;;  %v3028_v60 = vadd.f32 %v4171_v18, %v5606_v10 }
 0x1ef   : > { %v4218_v22 = vpop.f32.mrf.mxu1  ;;  %v4173_v23 = vpop.f32.mrf.mxu0 }
 0x1f0   : > { %v5631_v25 = vadd.f32 %v4217_v20, %v3028_v60  ;;  %v4174_v26 = vadd.f32 %v4173_v23, %v4172_v21 }
 0x1f1   : > { %v4219_v27 = vpop.f32.mrf.mxu1  ;;  %v4175_v29 = vpop.f32.mrf.mxu0 }
 0x1f2   : > { %v4220_v28 = vadd.f32 %v4219_v27, %v4218_v22  ;;  %v3031_v3 = vadd.f32 %v4174_v26, %v5608_v17 }
 0x1f3   : > { %v4221_v30 = vpop.f32.mrf.mxu1  ;;  %v4176_v31 = vpop.f32.mrf.mxu0 }
 0x1f4   : > { %v5634_v33 = vadd.f32 %v4220_v28, %v3031_v3  ;;  %v4177_v34 = vadd.f32 %v4176_v31, %v4175_v29 }
 0x1f5   : > { %v4222_v35 = vpop.f32.mrf.mxu1  ;;  %v4178_v37 = vpop.f32.mrf.mxu0 }
 0x1f6   : > { %v4223_v36 = vadd.f32 %v4222_v35, %v4221_v30  ;;  %v3036_v10 = vadd.f32 %v4177_v34, %v5610_v24 }
 0x1f7   : > { %v4224_v40 = vpop.f32.mrf.mxu1  ;;  %v4179_v41 = vpop.f32.mrf.mxu0 }
 0x1f8   : > { %v5637_v42 = vadd.f32 %v4223_v36, %v3036_v10 }
 0x1f9   : > { %v4225_v43 = vpop.f32.mrf.mxu1  ;;  %v4243_v44 = vpop.f32.mrf.mxu0 }
 0x1fb   : > { %v4289_v45 = vpop.f32.mrf.mxu1  ;;  %v4244_v47 = vpop.f32.mrf.mxu0 }
 0x1fc   : > { %v4245_v60 = vadd.f32 %v4244_v47, %v4243_v44 }
 0x1fd   : > { %v4290_v49 = vpop.f32.mrf.mxu1  ;;  %v4246_v17 = vpop.f32.mrf.mxu0 }
 0x1fe   : > { %v3148_v29 = vadd.f32 %v4245_v60, %v5613_v38  ;;  %v4291_v34 = vadd.f32 %v4290_v49, %v4289_v45 }
 0x1ff   : > { %v4292_v50 = vpop.f32.mrf.mxu1  ;;  %v4247_v51 = vpop.f32.mrf.mxu0 }
 0x200   : > { %v4248_v26 = vadd.f32 %v4247_v51, %v4246_v17  ;;  %v3220_v40 = vadd.f32 %v4291_v34, %v3148_v29 }
 0x201   : > { %v4293_v52 = vpop.f32.mrf.mxu1  ;;  %v4249_v32 = vpop.f32.mrf.mxu0 }
 0x202   : > { %v3151_v35 = vadd.f32 %v4248_v26, %v5616_v48  ;;  %v4294_v41 = vadd.f32 %v4293_v52, %v4292_v50 }
 0x203   : > { %v4295_v54 = vpop.f32.mrf.mxu1  ;;  %v4250_v55 = vpop.f32.mrf.mxu0 }
 0x204   : > { %v4251_v30 = vadd.f32 %v4250_v55, %v4249_v32  ;;  %v3223_v51 = vadd.f32 %v4294_v41, %v3151_v35 }
 0x205   : > { %v4296_v57 = vpop.f32.mrf.mxu1  ;;  %v4252_v58 = vpop.f32.mrf.mxu0 }
 0x206   : > { %v3156_v44 = vadd.f32 %v4251_v30, %v5619_v56  ;;  %v4297_v60 = vadd.f32 %v4296_v57, %v4295_v54 }
 0x207   : > { %v5639_v59 = vpop.f32.mrf.mxu1  ;;  %v4253_v24 = vpop.f32.mrf.mxu0 }
 0x208   : > { %v4254_v47 = vadd.f32 %v4253_v24, %v4252_v58 }
 0x209   : > { %v4299_v61 = vpop.f32.mrf.mxu1  ;;  %v4255_v39 = vpop.f32.mrf.mxu0 }
 0x20a   : > { %v3159_v26 = vadd.f32 %v4254_v47, %v5622_v0 }
 0x20b   : > { %v5641_v62 = vpop.f32.mrf.mxu1  ;;  %v4256_v63 = vpop.f32.mrf.mxu0 }
 0x20c   : > { %v4257_v50 = vadd.f32 %v4256_v63, %v4255_v39 }
 0x20d   : > { %v5643_v1 = vpop.f32.mrf.mxu1  ;;  %v5645_v2 = vpop.f32.mrf.mxu0 }
 0x20e   : > { %v3164_v0 = vadd.f32 %v4257_v50, %v5625_v8 }
 0x20f   : > { %v5647_v4 = vpop.f32.mrf.mxu1  ;;  %v5649_v5 = vpop.f32.mrf.mxu0 }
 0x210   : > { %v4260_v39 = vadd.f32 %v5649_v5, %v5645_v2 }
 0x211   : > { %v5651_v46 = vpop.f32.mrf.mxu1  ;;  %v5653_v6 = vpop.f32.mrf.mxu0 }
 0x212   : > { %v3167_v2 = vadd.f32 %v4260_v39, %v5628_v16 }
 0x213   : > { %v5655_v7 = vpop.f32.mrf.mxu1  ;;  %v5657_v9 = vpop.f32.mrf.mxu0 }
 0x215   : > { %v5659_v11 = vpop.f32.mrf.mxu1  ;;  %v5661_v12 = vpop.f32.mrf.mxu0 }
 0x217   : > { %v5663_v13 = vpop.f32.mrf.mxu1  ;;  %v5665_v53 = vpop.f32.mrf.mxu0 }
 0x218   : > { %v4266_v16 = vadd.f32 %v5665_v53, %v5661_v12 }
 0x219   : > { %v5667_v14 = vpop.f32.mrf.mxu1  ;;  %v5669_v15 = vpop.f32.mrf.mxu0 }
 0x21b   : > { %v5671_v18 = vpop.f32.mrf.mxu1  ;;  %v5673_v19 = vpop.f32.mrf.mxu0 }
 0x21d   : > { %v5675_v20 = vpop.f32.mrf.mxu1  ;;  %v4270_v21 = vpop.f32.mrf.mxu0 }
 0x21f   : > { %v4316_v22 = vpop.f32.mrf.mxu1  ;;  %v4271_v23 = vpop.f32.mrf.mxu0 }
 0x220   : > { %v3228_v23 = vadd.f32 %v4297_v60, %v3156_v44 }
 0x221   : > { %v4317_v27 = vpop.f32.mrf.mxu1  ;;  %v4335_v28 = vpop.f32.mrf.mxu0 }
 0x223   : > { %v4381_v3 = vpop.f32.mrf.mxu1  ;;  %v4336_v31 = vpop.f32.mrf.mxu0 }
 0x224   : > { %v4337_v36 = vadd.f32 %v4336_v31, %v4335_v28  ;;  %v4300_v28 = vadd.f32 %v4299_v61, %v5639_v59  ;;  %v4303_v59 = vadd.f32 %v5643_v1, %v5641_v62  ;;  %v4306_v62 = vadd.f32 %v5651_v46, %v5647_v4 }
 0x225   : > { %v4382_v37 = vpop.f32.mrf.mxu1  ;;  %v4338_v10 = vpop.f32.mrf.mxu0 }
 0x226   : > { %v3292_v21 = vadd.f32 %v4337_v36, %v3220_v40  ;;  %v4383_v55 = vadd.f32 %v4382_v37, %v4381_v3  ;;  %v3231_v31 = vadd.f32 %v4300_v28, %v3159_v26  ;;  %v3236_v44 = vadd.f32 %v4303_v59, %v3164_v0 }
 0x227   : > { %v4384_v43 = vpop.f32.mrf.mxu1  ;;  %v4339_v17 = vpop.f32.mrf.mxu0 }
 0x228   : > { %v4340_v22 = vadd.f32 %v4339_v17, %v4338_v10  ;;  %v5681_v52 = vadd.f32 %v4383_v55, %v3292_v21 }
 0x229   : > { %v4385_v38 = vpop.f32.mrf.mxu1  ;;  %v4341_v32 = vpop.f32.mrf.mxu0 }
 0x22a   : > { %v3295_v45 = vadd.f32 %v4340_v22, %v3223_v51  ;;  %v4386_v49 = vadd.f32 %v4385_v38, %v4384_v43  ;;  %v4263_v43 = vadd.f32 %v5657_v9, %v5653_v6  ;;  %v3239_v9 = vadd.f32 %v4306_v62, %v3167_v2 }
 0x22b   : > { %v4387_v48 = vpop.f32.mrf.mxu1  ;;  %v4342_v27 = vpop.f32.mrf.mxu0 }
 0x22c   : > { %v5683_v56 = vadd.f32 %v4386_v49, %v3295_v45  ;;  %v4343_v58 = vadd.f32 %v4342_v27, %v4341_v32  ;;  %v3172_v60 = vadd.f32 %v4263_v43, %v5631_v25  ;;  %v4309_v49 = vadd.f32 %v5659_v11, %v5655_v7 }
 0x22d   : > { %v4388_v24 = vpop.f32.mrf.mxu1  ;;  %v4344_v29 = vpop.f32.mrf.mxu0  ;;  %v3175_v25 = vadd.f32 %v4266_v16, %v5634_v33 }
 0x22e   : > { %v3401_v54 = vadd.f32 %v5683_v56, %v5681_v52  ;;  %v3300_v57 = vadd.f32 %v4343_v58, %v3228_v23  ;;  %v4389_v3 = vadd.f32 %v4388_v24, %v4387_v48  ;;  %v3244_v27 = vadd.f32 %v4309_v49, %v3172_v60 }
 0x22f   : > { %v4390_v30 = vpop.f32.mrf.mxu1  ;;  %v4345_v34 = vpop.f32.mrf.mxu0  ;;  %v4269_v58 = vadd.f32 %v5673_v19, %v5669_v15  ;;  %v4315_v15 = vadd.f32 %v5675_v20, %v5671_v18 }
 0x230   : > { %v5691_v63 = vadd.f32 %v4389_v3, %v3300_v57  ;;  %v4346_v35 = vadd.f32 %v4345_v34, %v4344_v29  ;;  %v4312_v29 = vadd.f32 %v5667_v14, %v5663_v13 }
 0x231   : > { %v4391_v36 = vpop.f32.mrf.mxu1  ;;  %v4347_v37 = vpop.f32.mrf.mxu0 }
 0x232   : > { %v3402_v61 = vadd.f32 %v3401_v54, %v5691_v63  ;;  %v3303_v10 = vadd.f32 %v4346_v35, %v3231_v31  ;;  %v4392_v40 = vadd.f32 %v4391_v36, %v4390_v30  ;;  %v3247_v30 = vadd.f32 %v4312_v29, %v3175_v25 }
 0x233   : > { %v4393_v41 = vpop.f32.mrf.mxu1  ;;  %v4348_v8 = vpop.f32.mrf.mxu0  ;;  %v3180_v31 = vadd.f32 %v4269_v58, %v5637_v42 }
 0x234   : > { %v5699_v5 = vadd.f32 %v4392_v40, %v3303_v10  ;;  %v4349_v47 = vadd.f32 %v4348_v8, %v4347_v37 }
 0x235   : > { %v4394_v17 = vpop.f32.mrf.mxu1  ;;  %v4350_v51 = vpop.f32.mrf.mxu0  ;;  %v3252_v14 = vadd.f32 %v4315_v15, %v3180_v31 }
 0x236   : > { %v3403_v1 = vadd.f32 %v3402_v61, %v5699_v5  ;;  %v3308_v21 = vadd.f32 %v4349_v47, %v3236_v44  ;;  %v4395_v22 = vadd.f32 %v4394_v17, %v4393_v41 }
 0x237   : > { %v4396_v38 = vpop.f32.mrf.mxu1  ;;  %v4351_v6 = vpop.f32.mrf.mxu0 }
 0x238   : > { %v3380_v32 = vadd.f32 %v4395_v22, %v3308_v21  ;;  %v4352_v55 = vadd.f32 %v4351_v6, %v4350_v51 }
 0x239   : > { %v4397_v45 = vpop.f32.mrf.mxu1  ;;  %v4353_v48 = vpop.f32.mrf.mxu0 }
 0x23a   : > { %v3404_v4 = vadd.f32 %v3403_v1, %v3380_v32  ;;  %v3311_v46 = vadd.f32 %v4352_v55, %v3239_v9  ;;  %v4398_v23 = vadd.f32 %v4397_v45, %v4396_v38 }
 0x23b   : > { %v4399_v26 = vpop.f32.mrf.mxu1  ;;  %v4354_v50 = vpop.f32.mrf.mxu0 }
 0x23c   : > { %v3383_v24 = vadd.f32 %v4398_v23, %v3311_v46  ;;  %v4355_v12 = vadd.f32 %v4354_v50, %v4353_v48 }
 0x23d   : > { %v4400_v53 = vpop.f32.mrf.mxu1  ;;  %v4356_v28 = vpop.f32.mrf.mxu0 }
 0x23e   : > { %v3405_v7 = vadd.f32 %v3404_v4, %v3383_v24  ;;  %v3316_v11 = vadd.f32 %v4355_v12, %v3244_v27  ;;  %v4401_v54 = vadd.f32 %v4400_v53, %v4399_v26 }
 0x23f   : > { %v4402_v57 = vpop.f32.mrf.mxu1  ;;  %v4357_v3 = vpop.f32.mrf.mxu0 }
 0x240   : > { %v3388_v34 = vadd.f32 %v4401_v54, %v3316_v11  ;;  %v4358_v33 = vadd.f32 %v4357_v3, %v4356_v28 }
 0x241   : > { %v4403_v0 = vpop.f32.mrf.mxu1  ;;  %v4359_v39 = vpop.f32.mrf.mxu0 }
 0x242   : > { %v3406_v19 = vadd.f32 %v3405_v7, %v3388_v34  ;;  %v3319_v35 = vadd.f32 %v4358_v33, %v3247_v30  ;;  %v4404_v36 = vadd.f32 %v4403_v0, %v4402_v57  ;;  %v3477_v0 = vld [vmem:[%s1347_s10] sm:$0x1] }
 0x243   : > { %v4405_v37 = vpop.f32.mrf.mxu1  ;;  %v4360_v13 = vpop.f32.mrf.mxu0 }
 0x244   : > { %v3391_v59 = vadd.f32 %v4404_v36, %v3319_v35  ;;  %v4361_v61 = vadd.f32 %v4360_v13, %v4359_v39  ;;  %v3998_v36 = vld [vmem:[%s1350_s23] ss:$0 sm:$0xff] }
 0x245   : > { %v4406_v10 = vpop.f32.mrf.mxu1  ;;  %v4362_v40 = vpop.f32.mrf.mxu0 }
 0x246   : > { %v3407_v41 = vadd.f32 %v3406_v19, %v3391_v59  ;;  %v3324_v43 = vadd.f32 %v4361_v61, %v3252_v14  ;;  %v4407_v42 = vadd.f32 %v4406_v10, %v4405_v37 }
 0x247   : > { %v4408_v8 = vpop.f32.mrf.mxu1  ;;  %v4363_v44 = vpop.f32.mrf.mxu0 }
 0x248   : > { %v3396_v2 = vadd.f32 %v4407_v42, %v3324_v43 }
 0x249   : > { %v4409_v47 = vpop.f32.mrf.mxu1 }
 0x24a   : > { %v3408_v17 = vadd.f32 %v3407_v41, %v3396_v2 }
 0x24c   : > { %v3409_v51 = vrot.slane %v3408_v17, 4 }
 0x24e   : > { %v3410_v18 = vadd.f32 %v3409_v51, %v3408_v17 }
 0x250   : > { %v3411_v20 = vrot.slane %v3410_v18, 2 }
 0x252   : > { %v3412_v62 = vadd.f32 %v3411_v20, %v3410_v18 }
 0x254   : > { %v3413_v1 = vrot.slane %v3412_v62, 1 }
 0x256   : > { %v3414_v21 = vadd.f32 %v3413_v1, %v3412_v62 }
 0x258   : > { %v3415_v22 = vmul.f32 0.013888889, %v3414_v21 }
 0x25a   : > { %v3435_v38 = vsub.f32 %v5681_v52, %v3415_v22  ;;  %v3436_v60 = vsub.f32 %v5683_v56, %v3415_v22  ;;  %v3437_v6 = vsub.f32 %v5691_v63, %v3415_v22  ;;  %v3438_v9 = vsub.f32 %v5699_v5, %v3415_v22 }
 0x25b   : > { %v3439_v16 = vsub.f32 %v3380_v32, %v3415_v22  ;;  %v3440_v55 = vsub.f32 %v3383_v24, %v3415_v22  ;;  %v3441_v45 = vsub.f32 %v3388_v34, %v3415_v22  ;;  %v3442_v49 = vsub.f32 %v3391_v59, %v3415_v22 }
 0x25c   : > { %v3443_v48 = vsub.f32 %v3396_v2, %v3415_v22  ;;  %v3453_v4 = vmul.f32 %v3435_v38, %v3435_v38  ;;  %v3454_v46 = vmul.f32 %v3436_v60, %v3436_v60  ;;  %v3455_v23 = vmul.f32 %v3437_v6, %v3437_v6 }
 0x25d   : > { %v3456_v27 = vmul.f32 %v3438_v9, %v3438_v9  ;;  %v3457_v25 = vmul.f32 %v3439_v16, %v3439_v16  ;;  %v3458_v52 = vmul.f32 %v3440_v55, %v3440_v55  ;;  %v3459_v56 = vmul.f32 %v3441_v45, %v3441_v45 }
 0x25e   : > { %v3462_v26 = vadd.f32 %v3454_v46, %v3453_v4  ;;  %v3460_v5 = vmul.f32 %v3442_v49, %v3442_v49  ;;  %v3461_v24 = vmul.f32 %v3443_v48, %v3443_v48  ;;  %v3482_v34 = vlaneseq }
 0x260   : > { %v3463_v50 = vadd.f32 %v3462_v26, %v3455_v23  ;;  %v3483_v33 = vshrl.u32 %v3482_v34, 7 }
 0x262   : > { %v3464_v58 = vadd.f32 %v3463_v50, %v3456_v27  ;;  %v3484_v39 = vsub.s32 0, %v3483_v33 }
 0x264   : > { %v3465_v12 = vadd.f32 %v3464_v58, %v3457_v25 }
 0x266   : > { %v3466_v63 = vadd.f32 %v3465_v12, %v3458_v52 }
 0x268   : > { %v3467_v32 = vadd.f32 %v3466_v63, %v3459_v56 }
 0x26a   : > { %v3468_v53 = vadd.f32 %v3467_v32, %v3460_v5 }
 0x26c   : > { %v3469_v28 = vadd.f32 %v3468_v53, %v3461_v24 }
 0x26e   : > { %v3470_v29 = vrot.slane %v3469_v28, 4 }
 0x270   : > { %v3471_v7 = vadd.f32 %v3470_v29, %v3469_v28 }
 0x272   : > { %v3472_v11 = vrot.slane %v3471_v7, 2 }
 0x274   : > { %v3473_v54 = vadd.f32 %v3472_v11, %v3471_v7 }
 0x276   : > { %v3474_v57 = vrot.slane %v3473_v54, 1 }
 0x278   : > { %v3475_v3 = vadd.f32 %v3474_v57, %v3473_v54 }
 0x27a   : > { %v3476_v30 = vmul.f32 0.013888889, %v3475_v3 }
 0x27c   : > { %v3478_v31 = vadd.f32 1e-05, %v3476_v30 }
 0x27e   : > { %4596 = vrsqrt.f32 %v3478_v31 }
 0x28b   : > { %v4597_v15 = vpop.eup %4596 }
 0x28c   : > { %v3480_v19 = vmul.f32 %v4597_v15, %v3477_v0 }
 0x28e   : > { %v3485_v35 = vrot.slane %v3480_v19, %v3484_v39 }
 0x290   : > { %v3487_v37 = vmul.f32 %v3485_v35, %v3435_v38  ;;  %v3488_v13 = vmul.f32 %v3485_v35, %v3436_v60  ;;  %v3489_v14 = vmul.f32 %v3485_v35, %v3437_v6  ;;  %v3490_v59 = vmul.f32 %v3485_v35, %v3438_v9 }
 0x291   : > { %v3491_v61 = vmul.f32 %v3485_v35, %v3439_v16  ;;  %v3492_v10 = vmul.f32 %v3485_v35, %v3440_v55  ;;  %v3493_v40 = vmul.f32 %v3485_v35, %v3441_v45  ;;  %v3494_v41 = vmul.f32 %v3485_v35, %v3442_v49 }
 0x292   : > { %v3495_v43 = vmul.f32 %v3485_v35, %v3443_v48  ;;  %v3503_v42 = vadd.f32 %v3998_v36, %v3487_v37  ;;  %v3504_v8 = vadd.f32 %v3998_v36, %v3488_v13  ;;  %v3505_v44 = vadd.f32 %v3998_v36, %v3489_v14 }
 0x293   : > { %v3506_v2 = vadd.f32 %v3998_v36, %v3490_v59  ;;  %v3507_v47 = vadd.f32 %v3998_v36, %v3491_v61  ;;  %v3508_v17 = vadd.f32 %v3998_v36, %v3492_v10  ;;  %v3509_v51 = vadd.f32 %v3998_v36, %v3493_v40 }
 0x294   : > { %v3510_v18 = vadd.f32 %v3998_v36, %v3494_v41  ;;  %v3511_v20 = vadd.f32 %v3998_v36, %v3495_v43  ;;  %vm3512_vm0 = vcmp.ge.f32.partialorder %v3503_v42, 0.0  ;;  %vm3513_vm1 = vcmp.ge.f32.partialorder %v3504_v8, 0.0 }
 0x295   : > { %vm3514_vm2 = vcmp.ge.f32.partialorder %v3505_v44, 0.0  ;;  %vm3515_vm3 = vcmp.ge.f32.partialorder %v3506_v2, 0.0  ;;  %vm3516_vm4 = vcmp.ge.f32.partialorder %v3507_v47, 0.0  ;;  %vm3517_vm5 = vcmp.ge.f32.partialorder %v3508_v17, 0.0 }
 0x296   : > { %vm3518_vm6 = vcmp.ge.f32.partialorder %v3509_v51, 0.0  ;;  %vm3519_vm7 = vcmp.ge.f32.partialorder %v3510_v18, 0.0  ;;  %vm3520_vm8 = vcmp.ge.f32.partialorder %v3511_v20, 0.0  ;;  %v3521_v62 = vmul.f32 0.2, %v3503_v42 }
 0x297   : > { %v3522_v1 = vmul.f32 0.2, %v3504_v8  ;;  %v3523_v21 = vmul.f32 0.2, %v3505_v44  ;;  %v3524_v22 = vmul.f32 0.2, %v3506_v2 }
 0x298   : > { %v3525_v38 = vmul.f32 0.2, %v3507_v47  ;;  %v3526_v60 = vmul.f32 0.2, %v3508_v17  ;;  %v3527_v6 = vmul.f32 0.2, %v3509_v51  ;;  %v3530_v9 = vsel %vm3512_vm0, %v3503_v42, %v3521_v62 }
 0x299   : > { %v3528_v16 = vmul.f32 0.2, %v3510_v18  ;;  %v3529_v55 = vmul.f32 0.2, %v3511_v20  ;;  %v3531_v45 = vsel %vm3513_vm1, %v3504_v8, %v3522_v1  ;;  %v3532_v49 = vsel %vm3514_vm2, %v3505_v44, %v3523_v21 }
 0x29a   : > { %v3533_v48 = vsel %vm3515_vm3, %v3506_v2, %v3524_v22  ;;  %v3534_v4 = vsel %vm3516_vm4, %v3507_v47, %v3525_v38  ;;  %v3535_v46 = vsel %vm3517_vm5, %v3508_v17, %v3526_v60  ;;  %v3536_v23 = vsel %vm3518_vm6, %v3509_v51, %v3527_v6 }
 0x29b   : > { %v3537_v26 = vsel %vm3519_vm7, %v3510_v18, %v3528_v16  ;;  %v3538_v27 = vsel %vm3520_vm8, %v3511_v20, %v3529_v55  ;;  %v4023_v50 = vpack.c.bf16 %v3531_v45, %v3530_v9  ;;  %v4028_v25 = vpack.c.bf16 %v3533_v48, %v3532_v49  ;;  %3591 = sbr.rel (!%p4698_p6) target bundleno = 683 (0x2ab), region = 81 }
 0x29c   : > { %v4019_v58 = vpack.c.bf16 %v3538_v27, %v3538_v27  ;;  %v4033_v52 = vpack.c.bf16 %v3535_v46, %v3534_v4  ;;  %v4038_v12 = vpack.c.bf16 %v3537_v26, %v3536_v23 }
 0x29d   : > { %4024 = vst [vmem:[%s1331_s15] sm:$0xff] %v4023_v50   ;;  %4040 = vst [vmem:[%s1331_s15 + $0x8] sm:$0xff] %v4028_v25  }
 0x29e   : > { %4041 = vst [vmem:[%s1331_s15 + $0x10] sm:$0xff] %v4033_v52   ;;  %4042 = vst [vmem:[%s1331_s15 + $0x18] sm:$0xff] %v4038_v12  }
 0x29f   : > { %3584 = vst [vmem:[%s1331_s15 + $0x20] sm:$0xf] %v4019_v58 }
 0x2a4   : > { %v3613_v56 = vld [vmem:[%s1331_s15] sm:$0xf]  ;;  %v3615_v63 = vld [vmem:[%s1331_s15 + $0x4] sm:$0xf]  ;;  %v3617_v5 = vld [vmem:[%s1331_s15 + $0x8] sm:$0xf] }
 0x2a5   : > { %v3619_v32 = vld [vmem:[%s1331_s15 + $0xc] sm:$0xf]  ;;  %v3621_v24 = vld [vmem:[%s1331_s15 + $0x10] sm:$0xf]  ;;  %3614 = vst [vmem:[%s3596_s22] sm:$0xf] %v3613_v56 }
 0x2a6   : > { %3616 = vst [vmem:[%s3596_s22 + $0x8] sm:$0xf] %v3615_v63  ;;  %3618 = vst [vmem:[%s3596_s22 + $0x10] sm:$0xf] %v3617_v5  ;;  %v3623_v53 = vld [vmem:[%s1331_s15 + $0x14] sm:$0xf] }
 0x2a7   : > { %3620 = vst [vmem:[%s3596_s22 + $0x18] sm:$0xf] %v3619_v32  ;;  %3622 = vst [vmem:[%s3596_s22 + $0x20] sm:$0xf] %v3621_v24  ;;  %v3625_v28 = vld [vmem:[%s1331_s15 + $0x18] sm:$0xf] }
 0x2a8   : > { %v3627_v29 = vld [vmem:[%s1331_s15 + $0x1c] sm:$0xf]  ;;  %3624 = vst [vmem:[%s3596_s22 + $0x28] sm:$0xf] %v3623_v53  ;;  %3626 = vst [vmem:[%s3596_s22 + $0x30] sm:$0xf] %v3625_v28 }
 0x2a9   : > { %3628 = vst [vmem:[%s3596_s22 + $0x38] sm:$0xf] %v3627_v29  ;;  %v3629_v7 = vld [vmem:[%s1331_s15 + $0x20] sm:$0xf] }
 0x2aa   : > { %3630 = vst [vmem:[%s3596_s22 + $0x40] sm:$0xf] %v3629_v7 }
 0x2ab PF: > { %s14_s19 = sadd.s32 1, %s4636_s19   ;;  %s5767_s15 = smov %s4624_s16 }
 0x2ac   : > { %p11_p12 = scmp.ge.s32.totalorder %s14_s19, 4   ;;  %s5768_s16 = smov %s4703_s25 }
 0x2ad   : > { %s5769_s17 = smov %s4632_s18  ;;  %s5770_s18 = smov %s5772_s20 }
 0x2ae   :  { %13 = sbr.rel (!%p11_p12) target bundleno = 3 (0x3), region = 162 }

// kernel: discriminator_forward.7
= control target key start
LH: loop header
LB: loop body
LE: loop exit
PB: predicated region body
PF: predicated region fallthrough
CT: control target
= control target key end

     0   :  { %s10526_s15 = smov 0   ;;  %s10528_s16 = smov 0   ;;  %s12507_s0 = inlined_call_operand.vmem [shape: bf16[24,4096], index: 0, kind: input, shape index: {}]   ;;  %s12508_s1 = inlined_call_operand.vmem [shape: bf16[4096,512], index: 1, kind: input, shape index: {}]   ;;  %s12509_s2 = inlined_call_operand.vmem [shape: f32[1,512], index: 2, kind: input, shape index: {}]   ;;  %s12510_s3 = inlined_call_operand.vmem [shape: f32[1,512], index: 3, kind: input, shape index: {}]   ;;  %s12511_s4 = inlined_call_operand.vmem [shape: bf16[24,512], index: 4, kind: output, shape index: {}]  }
   0x1   :  { %s10530_s17 = smov 0   ;;  %s10532_s18 = smov 0  }
   0x2   :  { %s10534_s19 = smov 0  }
   0x3 LB: > { %s29_s20 = sadd.s32 1, %s10494_s18  ;;  %s9014_s21 = sadd.s32 4294967295, %s10498_s19   ;;  %s10498_s19 = sphi %s10534_s19, %s14_s19   ;;  %s10494_s18 = sphi %s10532_s18, %s12516_s18   ;;  %s10490_s17 = sphi %s10530_s17, %s12515_s17   ;;  %s10486_s16 = sphi %s10528_s16, %s12514_s16   ;;  %s10482_s15 = sphi %s10526_s15, %s12513_s15  }
   0x4   : > { %p31_p0 = scmp.ge.s32.totalorder %s29_s20, 2  ;;  %p77_p1 = scmp.ne.s32.totalorder %s10486_s16, %s10482_s15 }
   0x5   : > { %p78_p2 = scmp.eq.s32.totalorder %s10498_s19, 0  ;;  %p161_p4 = scmp.eq.s32.totalorder %s9014_s21, 1 }
   0x6   : > { %s12518_s20 = smov (%p31_p0, %s29_s20), 0  ;;  %s70_s23 = sadd.s32 1, %s10486_s16 }
   0x7   : > { %p79_p3 = por %p78_p2, %p77_p1  ;;  %s66_s22 = ssub.s32 %s10494_s18, %s12518_s20 }
   0x8   : > { %p68_p5 = scmp.eq.s32.totalorder %s66_s22, 0  ;;  %p10561_p6 = por %p161_p4, %p77_p1 }
   0x9   : > { %p9018_p7 = scmp.ge.s32.totalorder %s10498_s19, 2 }
   0xa   : > { %s10566_s25 = scalar_select %p68_p5, %s10486_s16, %s70_s23  }
   0xb   : > { %198 = sbr.rel (%p9018_p7) target bundleno = 276 (0x114), region = 20 }
  0x10   : > { %201 = sbr.rel (!%p79_p3) target bundleno = 276 (0x114), region = 24  ;;  %s203_s26 = sand.u32 (%p79_p3), 1, %s10486_s16  }
  0x11   : > { %s9609_s27 = sshll.u32 (%p79_p3), %s10494_s18, 3  ;;  %s9019_s28 = sshll.u32 (%p79_p3), %s203_s26, 12 }
  0x12   : > { %s10574_s5 = scalar_lea.vmem (%p79_p3), %s12508_s1, %s9609_s27  ;;  %s10579_s6 = scalar_lea.vmem (%p79_p3), [#allocation2], %s9019_s28 }
  0x13   : > { %v1265_v0 = vld [vmem:[%s10574_s5] sm:$0xff] (%p79_p3)  ;;  %v1267_v1 = vld [vmem:[%s10574_s5 + $0x10] sm:$0xff] (%p79_p3) }
  0x14   : > { %v1269_v2 = vld [vmem:[%s10574_s5 + $0x20] sm:$0xff] (%p79_p3)  ;;  %1266 = vst [vmem:[%s10579_s6] sm:$0xff] (%p79_p3), %v1265_v0  ;;  %1268 = vst [vmem:[%s10579_s6 + $0x8] sm:$0xff] (%p79_p3), %v1267_v1  ;;  %v1271_v3 = vld [vmem:[%s10574_s5 + $0x30] sm:$0xff] (%p79_p3) }
  0x15   : > { %1270 = vst [vmem:[%s10579_s6 + $0x10] sm:$0xff] %v1269_v2  ;;  %v1273_v4 = vld [vmem:[%s10574_s5 + $0x40] sm:$0xff]  ;;  %v1275_v5 = vld [vmem:[%s10574_s5 + $0x50] sm:$0xff]  ;;  %1272 = vst [vmem:[%s10579_s6 + $0x18] sm:$0xff] %v1271_v3 }
  0x16   : > { %1274 = vst [vmem:[%s10579_s6 + $0x20] sm:$0xff] %v1273_v4  ;;  %1276 = vst [vmem:[%s10579_s6 + $0x28] sm:$0xff] %v1275_v5  ;;  %v1277_v6 = vld [vmem:[%s10574_s5 + $0x60] sm:$0xff]  ;;  %v1279_v7 = vld [vmem:[%s10574_s5 + $0x70] sm:$0xff] }
  0x17   : > { %v1281_v8 = vld [vmem:[%s10574_s5 + $0x80] sm:$0xff]  ;;  %1278 = vst [vmem:[%s10579_s6 + $0x30] sm:$0xff] %v1277_v6  ;;  %1280 = vst [vmem:[%s10579_s6 + $0x38] sm:$0xff] %v1279_v7  ;;  %v1283_v9 = vld [vmem:[%s10574_s5 + $0x90] sm:$0xff] }
  0x18   : > { %1282 = vst [vmem:[%s10579_s6 + $0x40] sm:$0xff] %v1281_v8  ;;  %v1285_v10 = vld [vmem:[%s10574_s5 + $0xa0] sm:$0xff]  ;;  %v1287_v11 = vld [vmem:[%s10574_s5 + $0xb0] sm:$0xff]  ;;  %1284 = vst [vmem:[%s10579_s6 + $0x48] sm:$0xff] %v1283_v9 }
  0x19   : > { %1286 = vst [vmem:[%s10579_s6 + $0x50] sm:$0xff] %v1285_v10  ;;  %1288 = vst [vmem:[%s10579_s6 + $0x58] sm:$0xff] %v1287_v11  ;;  %v1289_v12 = vld [vmem:[%s10574_s5 + $0xc0] sm:$0xff]  ;;  %v1291_v13 = vld [vmem:[%s10574_s5 + $0xd0] sm:$0xff] }
  0x1a   : > { %v1293_v14 = vld [vmem:[%s10574_s5 + $0xe0] sm:$0xff]  ;;  %1290 = vst [vmem:[%s10579_s6 + $0x60] sm:$0xff] %v1289_v12  ;;  %1292 = vst [vmem:[%s10579_s6 + $0x68] sm:$0xff] %v1291_v13  ;;  %v1295_v15 = vld [vmem:[%s10574_s5 + $0xf0] sm:$0xff] }
  0x1b   : > { %1294 = vst [vmem:[%s10579_s6 + $0x70] sm:$0xff] %v1293_v14  ;;  %v1297_v16 = vld [vmem:[%s10574_s5 + $0x100] sm:$0xff]  ;;  %v1299_v17 = vld [vmem:[%s10574_s5 + $0x110] sm:$0xff]  ;;  %1296 = vst [vmem:[%s10579_s6 + $0x78] sm:$0xff] %v1295_v15 }
  0x1c   : > { %1298 = vst [vmem:[%s10579_s6 + $0x80] sm:$0xff] %v1297_v16  ;;  %1300 = vst [vmem:[%s10579_s6 + $0x88] sm:$0xff] %v1299_v17  ;;  %v1301_v18 = vld [vmem:[%s10574_s5 + $0x120] sm:$0xff]  ;;  %v1303_v19 = vld [vmem:[%s10574_s5 + $0x130] sm:$0xff] }
  0x1d   : > { %v1305_v20 = vld [vmem:[%s10574_s5 + $0x140] sm:$0xff]  ;;  %1302 = vst [vmem:[%s10579_s6 + $0x90] sm:$0xff] %v1301_v18  ;;  %1304 = vst [vmem:[%s10579_s6 + $0x98] sm:$0xff] %v1303_v19  ;;  %v1307_v21 = vld [vmem:[%s10574_s5 + $0x150] sm:$0xff] }
  0x1e   : > { %1306 = vst [vmem:[%s10579_s6 + $0xa0] sm:$0xff] %v1305_v20  ;;  %v1309_v22 = vld [vmem:[%s10574_s5 + $0x160] sm:$0xff]  ;;  %v1311_v23 = vld [vmem:[%s10574_s5 + $0x170] sm:$0xff]  ;;  %1308 = vst [vmem:[%s10579_s6 + $0xa8] sm:$0xff] %v1307_v21 }
  0x1f   : > { %1310 = vst [vmem:[%s10579_s6 + $0xb0] sm:$0xff] %v1309_v22  ;;  %1312 = vst [vmem:[%s10579_s6 + $0xb8] sm:$0xff] %v1311_v23  ;;  %v1313_v24 = vld [vmem:[%s10574_s5 + $0x180] sm:$0xff]  ;;  %v1315_v25 = vld [vmem:[%s10574_s5 + $0x190] sm:$0xff] }
  0x20   : > { %v1317_v26 = vld [vmem:[%s10574_s5 + $0x1a0] sm:$0xff]  ;;  %1314 = vst [vmem:[%s10579_s6 + $0xc0] sm:$0xff] %v1313_v24  ;;  %1316 = vst [vmem:[%s10579_s6 + $0xc8] sm:$0xff] %v1315_v25  ;;  %v1319_v27 = vld [vmem:[%s10574_s5 + $0x1b0] sm:$0xff] }
  0x21   : > { %1318 = vst [vmem:[%s10579_s6 + $0xd0] sm:$0xff] %v1317_v26  ;;  %v1321_v28 = vld [vmem:[%s10574_s5 + $0x1c0] sm:$0xff]  ;;  %v1323_v29 = vld [vmem:[%s10574_s5 + $0x1d0] sm:$0xff]  ;;  %1320 = vst [vmem:[%s10579_s6 + $0xd8] sm:$0xff] %v1319_v27 }
  0x22   : > { %1322 = vst [vmem:[%s10579_s6 + $0xe0] sm:$0xff] %v1321_v28  ;;  %1324 = vst [vmem:[%s10579_s6 + $0xe8] sm:$0xff] %v1323_v29  ;;  %v1325_v30 = vld [vmem:[%s10574_s5 + $0x1e0] sm:$0xff]  ;;  %v1327_v31 = vld [vmem:[%s10574_s5 + $0x1f0] sm:$0xff] }
  0x23   : > { %v1329_v32 = vld [vmem:[%s10574_s5 + $0x200] sm:$0xff]  ;;  %1326 = vst [vmem:[%s10579_s6 + $0xf0] sm:$0xff] %v1325_v30  ;;  %1328 = vst [vmem:[%s10579_s6 + $0xf8] sm:$0xff] %v1327_v31  ;;  %v1331_v33 = vld [vmem:[%s10574_s5 + $0x210] sm:$0xff] }
  0x24   : > { %1330 = vst [vmem:[%s10579_s6 + $0x100] sm:$0xff] %v1329_v32  ;;  %v1333_v34 = vld [vmem:[%s10574_s5 + $0x220] sm:$0xff]  ;;  %v1335_v35 = vld [vmem:[%s10574_s5 + $0x230] sm:$0xff]  ;;  %1332 = vst [vmem:[%s10579_s6 + $0x108] sm:$0xff] %v1331_v33 }
  0x25   : > { %1334 = vst [vmem:[%s10579_s6 + $0x110] sm:$0xff] %v1333_v34  ;;  %1336 = vst [vmem:[%s10579_s6 + $0x118] sm:$0xff] %v1335_v35  ;;  %v1337_v36 = vld [vmem:[%s10574_s5 + $0x240] sm:$0xff]  ;;  %v1339_v37 = vld [vmem:[%s10574_s5 + $0x250] sm:$0xff] }
  0x26   : > { %v1341_v38 = vld [vmem:[%s10574_s5 + $0x260] sm:$0xff]  ;;  %1338 = vst [vmem:[%s10579_s6 + $0x120] sm:$0xff] %v1337_v36  ;;  %1340 = vst [vmem:[%s10579_s6 + $0x128] sm:$0xff] %v1339_v37  ;;  %v1343_v39 = vld [vmem:[%s10574_s5 + $0x270] sm:$0xff] }
  0x27   : > { %1342 = vst [vmem:[%s10579_s6 + $0x130] sm:$0xff] %v1341_v38  ;;  %v1345_v40 = vld [vmem:[%s10574_s5 + $0x280] sm:$0xff]  ;;  %v1347_v41 = vld [vmem:[%s10574_s5 + $0x290] sm:$0xff]  ;;  %1344 = vst [vmem:[%s10579_s6 + $0x138] sm:$0xff] %v1343_v39 }
  0x28   : > { %1346 = vst [vmem:[%s10579_s6 + $0x140] sm:$0xff] %v1345_v40  ;;  %1348 = vst [vmem:[%s10579_s6 + $0x148] sm:$0xff] %v1347_v41  ;;  %v1349_v42 = vld [vmem:[%s10574_s5 + $0x2a0] sm:$0xff]  ;;  %v1351_v43 = vld [vmem:[%s10574_s5 + $0x2b0] sm:$0xff] }
  0x29   : > { %v1353_v44 = vld [vmem:[%s10574_s5 + $0x2c0] sm:$0xff]  ;;  %1350 = vst [vmem:[%s10579_s6 + $0x150] sm:$0xff] %v1349_v42  ;;  %1352 = vst [vmem:[%s10579_s6 + $0x158] sm:$0xff] %v1351_v43  ;;  %v1355_v45 = vld [vmem:[%s10574_s5 + $0x2d0] sm:$0xff] }
  0x2a   : > { %1354 = vst [vmem:[%s10579_s6 + $0x160] sm:$0xff] %v1353_v44  ;;  %v1357_v46 = vld [vmem:[%s10574_s5 + $0x2e0] sm:$0xff]  ;;  %v1359_v47 = vld [vmem:[%s10574_s5 + $0x2f0] sm:$0xff]  ;;  %1356 = vst [vmem:[%s10579_s6 + $0x168] sm:$0xff] %v1355_v45 }
  0x2b   : > { %1358 = vst [vmem:[%s10579_s6 + $0x170] sm:$0xff] %v1357_v46  ;;  %1360 = vst [vmem:[%s10579_s6 + $0x178] sm:$0xff] %v1359_v47  ;;  %v1361_v48 = vld [vmem:[%s10574_s5 + $0x300] sm:$0xff]  ;;  %v1363_v49 = vld [vmem:[%s10574_s5 + $0x310] sm:$0xff] }
  0x2c   : > { %v1365_v50 = vld [vmem:[%s10574_s5 + $0x320] sm:$0xff]  ;;  %1362 = vst [vmem:[%s10579_s6 + $0x180] sm:$0xff] %v1361_v48  ;;  %1364 = vst [vmem:[%s10579_s6 + $0x188] sm:$0xff] %v1363_v49  ;;  %v1367_v51 = vld [vmem:[%s10574_s5 + $0x330] sm:$0xff] }
  0x2d   : > { %1366 = vst [vmem:[%s10579_s6 + $0x190] sm:$0xff] %v1365_v50  ;;  %v1369_v52 = vld [vmem:[%s10574_s5 + $0x340] sm:$0xff]  ;;  %v1371_v53 = vld [vmem:[%s10574_s5 + $0x350] sm:$0xff]  ;;  %1368 = vst [vmem:[%s10579_s6 + $0x198] sm:$0xff] %v1367_v51 }
  0x2e   : > { %1370 = vst [vmem:[%s10579_s6 + $0x1a0] sm:$0xff] %v1369_v52  ;;  %1372 = vst [vmem:[%s10579_s6 + $0x1a8] sm:$0xff] %v1371_v53  ;;  %v1373_v54 = vld [vmem:[%s10574_s5 + $0x360] sm:$0xff]  ;;  %v1375_v55 = vld [vmem:[%s10574_s5 + $0x370] sm:$0xff] }
  0x2f   : > { %v1377_v56 = vld [vmem:[%s10574_s5 + $0x380] sm:$0xff]  ;;  %1374 = vst [vmem:[%s10579_s6 + $0x1b0] sm:$0xff] %v1373_v54  ;;  %1376 = vst [vmem:[%s10579_s6 + $0x1b8] sm:$0xff] %v1375_v55  ;;  %v1379_v57 = vld [vmem:[%s10574_s5 + $0x390] sm:$0xff] }
  0x30   : > { %1378 = vst [vmem:[%s10579_s6 + $0x1c0] sm:$0xff] %v1377_v56  ;;  %v1381_v58 = vld [vmem:[%s10574_s5 + $0x3a0] sm:$0xff]  ;;  %v1383_v59 = vld [vmem:[%s10574_s5 + $0x3b0] sm:$0xff]  ;;  %1380 = vst [vmem:[%s10579_s6 + $0x1c8] sm:$0xff] %v1379_v57 }
  0x31   : > { %1382 = vst [vmem:[%s10579_s6 + $0x1d0] sm:$0xff] %v1381_v58  ;;  %1384 = vst [vmem:[%s10579_s6 + $0x1d8] sm:$0xff] %v1383_v59  ;;  %v1385_v60 = vld [vmem:[%s10574_s5 + $0x3c0] sm:$0xff]  ;;  %v1387_v61 = vld [vmem:[%s10574_s5 + $0x3d0] sm:$0xff] }
  0x32   : > { %v1389_v62 = vld [vmem:[%s10574_s5 + $0x3e0] sm:$0xff]  ;;  %1386 = vst [vmem:[%s10579_s6 + $0x1e0] sm:$0xff] %v1385_v60  ;;  %1388 = vst [vmem:[%s10579_s6 + $0x1e8] sm:$0xff] %v1387_v61  ;;  %v1391_v63 = vld [vmem:[%s10574_s5 + $0x3f0] sm:$0xff] }
  0x33   : > { %1390 = vst [vmem:[%s10579_s6 + $0x1f0] sm:$0xff] %v1389_v62  ;;  %v1393_v0 = vld [vmem:[%s10574_s5 + $0x400] sm:$0xff]  ;;  %v1395_v1 = vld [vmem:[%s10574_s5 + $0x410] sm:$0xff]  ;;  %1392 = vst [vmem:[%s10579_s6 + $0x1f8] sm:$0xff] %v1391_v63 }
  0x34   : > { %1394 = vst [vmem:[%s10579_s6 + $0x200] sm:$0xff] %v1393_v0  ;;  %1396 = vst [vmem:[%s10579_s6 + $0x208] sm:$0xff] %v1395_v1  ;;  %v1397_v2 = vld [vmem:[%s10574_s5 + $0x420] sm:$0xff]  ;;  %v1399_v3 = vld [vmem:[%s10574_s5 + $0x430] sm:$0xff] }
  0x35   : > { %v1401_v4 = vld [vmem:[%s10574_s5 + $0x440] sm:$0xff]  ;;  %1398 = vst [vmem:[%s10579_s6 + $0x210] sm:$0xff] %v1397_v2  ;;  %1400 = vst [vmem:[%s10579_s6 + $0x218] sm:$0xff] %v1399_v3  ;;  %v1403_v5 = vld [vmem:[%s10574_s5 + $0x450] sm:$0xff] }
  0x36   : > { %1402 = vst [vmem:[%s10579_s6 + $0x220] sm:$0xff] %v1401_v4  ;;  %v1405_v6 = vld [vmem:[%s10574_s5 + $0x460] sm:$0xff]  ;;  %v1407_v7 = vld [vmem:[%s10574_s5 + $0x470] sm:$0xff]  ;;  %1404 = vst [vmem:[%s10579_s6 + $0x228] sm:$0xff] %v1403_v5 }
  0x37   : > { %1406 = vst [vmem:[%s10579_s6 + $0x230] sm:$0xff] %v1405_v6  ;;  %1408 = vst [vmem:[%s10579_s6 + $0x238] sm:$0xff] %v1407_v7  ;;  %v1409_v8 = vld [vmem:[%s10574_s5 + $0x480] sm:$0xff]  ;;  %v1411_v9 = vld [vmem:[%s10574_s5 + $0x490] sm:$0xff] }
  0x38   : > { %v1413_v10 = vld [vmem:[%s10574_s5 + $0x4a0] sm:$0xff]  ;;  %1410 = vst [vmem:[%s10579_s6 + $0x240] sm:$0xff] %v1409_v8  ;;  %1412 = vst [vmem:[%s10579_s6 + $0x248] sm:$0xff] %v1411_v9  ;;  %v1415_v11 = vld [vmem:[%s10574_s5 + $0x4b0] sm:$0xff] }
  0x39   : > { %1414 = vst [vmem:[%s10579_s6 + $0x250] sm:$0xff] %v1413_v10  ;;  %v1417_v12 = vld [vmem:[%s10574_s5 + $0x4c0] sm:$0xff]  ;;  %v1419_v13 = vld [vmem:[%s10574_s5 + $0x4d0] sm:$0xff]  ;;  %1416 = vst [vmem:[%s10579_s6 + $0x258] sm:$0xff] %v1415_v11 }
  0x3a   : > { %1418 = vst [vmem:[%s10579_s6 + $0x260] sm:$0xff] %v1417_v12  ;;  %1420 = vst [vmem:[%s10579_s6 + $0x268] sm:$0xff] %v1419_v13  ;;  %v1421_v14 = vld [vmem:[%s10574_s5 + $0x4e0] sm:$0xff]  ;;  %v1423_v15 = vld [vmem:[%s10574_s5 + $0x4f0] sm:$0xff] }
  0x3b   : > { %v1425_v16 = vld [vmem:[%s10574_s5 + $0x500] sm:$0xff]  ;;  %1422 = vst [vmem:[%s10579_s6 + $0x270] sm:$0xff] %v1421_v14  ;;  %1424 = vst [vmem:[%s10579_s6 + $0x278] sm:$0xff] %v1423_v15  ;;  %v1427_v17 = vld [vmem:[%s10574_s5 + $0x510] sm:$0xff] }
  0x3c   : > { %1426 = vst [vmem:[%s10579_s6 + $0x280] sm:$0xff] %v1425_v16  ;;  %v1429_v18 = vld [vmem:[%s10574_s5 + $0x520] sm:$0xff]  ;;  %v1431_v19 = vld [vmem:[%s10574_s5 + $0x530] sm:$0xff]  ;;  %1428 = vst [vmem:[%s10579_s6 + $0x288] sm:$0xff] %v1427_v17 }
  0x3d   : > { %1430 = vst [vmem:[%s10579_s6 + $0x290] sm:$0xff] %v1429_v18  ;;  %1432 = vst [vmem:[%s10579_s6 + $0x298] sm:$0xff] %v1431_v19  ;;  %v1433_v20 = vld [vmem:[%s10574_s5 + $0x540] sm:$0xff]  ;;  %v1435_v21 = vld [vmem:[%s10574_s5 + $0x550] sm:$0xff] }
  0x3e   : > { %v1437_v22 = vld [vmem:[%s10574_s5 + $0x560] sm:$0xff]  ;;  %1434 = vst [vmem:[%s10579_s6 + $0x2a0] sm:$0xff] %v1433_v20  ;;  %1436 = vst [vmem:[%s10579_s6 + $0x2a8] sm:$0xff] %v1435_v21  ;;  %v1439_v23 = vld [vmem:[%s10574_s5 + $0x570] sm:$0xff] }
  0x3f   : > { %1438 = vst [vmem:[%s10579_s6 + $0x2b0] sm:$0xff] %v1437_v22  ;;  %v1441_v24 = vld [vmem:[%s10574_s5 + $0x580] sm:$0xff]  ;;  %v1443_v25 = vld [vmem:[%s10574_s5 + $0x590] sm:$0xff]  ;;  %1440 = vst [vmem:[%s10579_s6 + $0x2b8] sm:$0xff] %v1439_v23 }
  0x40   : > { %1442 = vst [vmem:[%s10579_s6 + $0x2c0] sm:$0xff] %v1441_v24  ;;  %1444 = vst [vmem:[%s10579_s6 + $0x2c8] sm:$0xff] %v1443_v25  ;;  %v1445_v26 = vld [vmem:[%s10574_s5 + $0x5a0] sm:$0xff]  ;;  %v1447_v27 = vld [vmem:[%s10574_s5 + $0x5b0] sm:$0xff] }
  0x41   : > { %v1449_v28 = vld [vmem:[%s10574_s5 + $0x5c0] sm:$0xff]  ;;  %1446 = vst [vmem:[%s10579_s6 + $0x2d0] sm:$0xff] %v1445_v26  ;;  %1448 = vst [vmem:[%s10579_s6 + $0x2d8] sm:$0xff] %v1447_v27  ;;  %v1451_v29 = vld [vmem:[%s10574_s5 + $0x5d0] sm:$0xff] }
  0x42   : > { %1450 = vst [vmem:[%s10579_s6 + $0x2e0] sm:$0xff] %v1449_v28  ;;  %v1453_v30 = vld [vmem:[%s10574_s5 + $0x5e0] sm:$0xff]  ;;  %v1455_v31 = vld [vmem:[%s10574_s5 + $0x5f0] sm:$0xff]  ;;  %1452 = vst [vmem:[%s10579_s6 + $0x2e8] sm:$0xff] %v1451_v29 }
  0x43   : > { %1454 = vst [vmem:[%s10579_s6 + $0x2f0] sm:$0xff] %v1453_v30  ;;  %1456 = vst [vmem:[%s10579_s6 + $0x2f8] sm:$0xff] %v1455_v31  ;;  %v1457_v32 = vld [vmem:[%s10574_s5 + $0x600] sm:$0xff]  ;;  %v1459_v33 = vld [vmem:[%s10574_s5 + $0x610] sm:$0xff] }
  0x44   : > { %v1461_v34 = vld [vmem:[%s10574_s5 + $0x620] sm:$0xff]  ;;  %1458 = vst [vmem:[%s10579_s6 + $0x300] sm:$0xff] %v1457_v32  ;;  %1460 = vst [vmem:[%s10579_s6 + $0x308] sm:$0xff] %v1459_v33  ;;  %v1463_v35 = vld [vmem:[%s10574_s5 + $0x630] sm:$0xff] }
  0x45   : > { %1462 = vst [vmem:[%s10579_s6 + $0x310] sm:$0xff] %v1461_v34  ;;  %v1465_v36 = vld [vmem:[%s10574_s5 + $0x640] sm:$0xff]  ;;  %v1467_v37 = vld [vmem:[%s10574_s5 + $0x650] sm:$0xff]  ;;  %1464 = vst [vmem:[%s10579_s6 + $0x318] sm:$0xff] %v1463_v35 }
  0x46   : > { %1466 = vst [vmem:[%s10579_s6 + $0x320] sm:$0xff] %v1465_v36  ;;  %1468 = vst [vmem:[%s10579_s6 + $0x328] sm:$0xff] %v1467_v37  ;;  %v1469_v38 = vld [vmem:[%s10574_s5 + $0x660] sm:$0xff]  ;;  %v1471_v39 = vld [vmem:[%s10574_s5 + $0x670] sm:$0xff] }
  0x47   : > { %v1473_v40 = vld [vmem:[%s10574_s5 + $0x680] sm:$0xff]  ;;  %1470 = vst [vmem:[%s10579_s6 + $0x330] sm:$0xff] %v1469_v38  ;;  %1472 = vst [vmem:[%s10579_s6 + $0x338] sm:$0xff] %v1471_v39  ;;  %v1475_v41 = vld [vmem:[%s10574_s5 + $0x690] sm:$0xff] }
  0x48   : > { %1474 = vst [vmem:[%s10579_s6 + $0x340] sm:$0xff] %v1473_v40  ;;  %v1477_v42 = vld [vmem:[%s10574_s5 + $0x6a0] sm:$0xff]  ;;  %v1479_v43 = vld [vmem:[%s10574_s5 + $0x6b0] sm:$0xff]  ;;  %1476 = vst [vmem:[%s10579_s6 + $0x348] sm:$0xff] %v1475_v41 }
  0x49   : > { %1478 = vst [vmem:[%s10579_s6 + $0x350] sm:$0xff] %v1477_v42  ;;  %1480 = vst [vmem:[%s10579_s6 + $0x358] sm:$0xff] %v1479_v43  ;;  %v1481_v44 = vld [vmem:[%s10574_s5 + $0x6c0] sm:$0xff]  ;;  %v1483_v45 = vld [vmem:[%s10574_s5 + $0x6d0] sm:$0xff] }
  0x4a   : > { %v1485_v46 = vld [vmem:[%s10574_s5 + $0x6e0] sm:$0xff]  ;;  %1482 = vst [vmem:[%s10579_s6 + $0x360] sm:$0xff] %v1481_v44  ;;  %1484 = vst [vmem:[%s10579_s6 + $0x368] sm:$0xff] %v1483_v45  ;;  %v1487_v47 = vld [vmem:[%s10574_s5 + $0x6f0] sm:$0xff] }
  0x4b   : > { %1486 = vst [vmem:[%s10579_s6 + $0x370] sm:$0xff] %v1485_v46  ;;  %v1489_v48 = vld [vmem:[%s10574_s5 + $0x700] sm:$0xff]  ;;  %v1491_v49 = vld [vmem:[%s10574_s5 + $0x710] sm:$0xff]  ;;  %1488 = vst [vmem:[%s10579_s6 + $0x378] sm:$0xff] %v1487_v47 }
  0x4c   : > { %1490 = vst [vmem:[%s10579_s6 + $0x380] sm:$0xff] %v1489_v48  ;;  %1492 = vst [vmem:[%s10579_s6 + $0x388] sm:$0xff] %v1491_v49  ;;  %v1493_v50 = vld [vmem:[%s10574_s5 + $0x720] sm:$0xff]  ;;  %v1495_v51 = vld [vmem:[%s10574_s5 + $0x730] sm:$0xff] }
  0x4d   : > { %v1497_v52 = vld [vmem:[%s10574_s5 + $0x740] sm:$0xff]  ;;  %1494 = vst [vmem:[%s10579_s6 + $0x390] sm:$0xff] %v1493_v50  ;;  %1496 = vst [vmem:[%s10579_s6 + $0x398] sm:$0xff] %v1495_v51  ;;  %v1499_v53 = vld [vmem:[%s10574_s5 + $0x750] sm:$0xff] }
  0x4e   : > { %1498 = vst [vmem:[%s10579_s6 + $0x3a0] sm:$0xff] %v1497_v52  ;;  %v1501_v54 = vld [vmem:[%s10574_s5 + $0x760] sm:$0xff]  ;;  %v1503_v55 = vld [vmem:[%s10574_s5 + $0x770] sm:$0xff]  ;;  %1500 = vst [vmem:[%s10579_s6 + $0x3a8] sm:$0xff] %v1499_v53 }
  0x4f   : > { %1502 = vst [vmem:[%s10579_s6 + $0x3b0] sm:$0xff] %v1501_v54  ;;  %1504 = vst [vmem:[%s10579_s6 + $0x3b8] sm:$0xff] %v1503_v55  ;;  %v1505_v56 = vld [vmem:[%s10574_s5 + $0x780] sm:$0xff]  ;;  %v1507_v57 = vld [vmem:[%s10574_s5 + $0x790] sm:$0xff] }
  0x50   : > { %v1509_v58 = vld [vmem:[%s10574_s5 + $0x7a0] sm:$0xff]  ;;  %1506 = vst [vmem:[%s10579_s6 + $0x3c0] sm:$0xff] %v1505_v56  ;;  %1508 = vst [vmem:[%s10579_s6 + $0x3c8] sm:$0xff] %v1507_v57  ;;  %v1511_v59 = vld [vmem:[%s10574_s5 + $0x7b0] sm:$0xff] }
  0x51   : > { %1510 = vst [vmem:[%s10579_s6 + $0x3d0] sm:$0xff] %v1509_v58  ;;  %v1513_v60 = vld [vmem:[%s10574_s5 + $0x7c0] sm:$0xff]  ;;  %v1515_v61 = vld [vmem:[%s10574_s5 + $0x7d0] sm:$0xff]  ;;  %1512 = vst [vmem:[%s10579_s6 + $0x3d8] sm:$0xff] %v1511_v59 }
  0x52   : > { %1514 = vst [vmem:[%s10579_s6 + $0x3e0] sm:$0xff] %v1513_v60  ;;  %1516 = vst [vmem:[%s10579_s6 + $0x3e8] sm:$0xff] %v1515_v61  ;;  %v1517_v62 = vld [vmem:[%s10574_s5 + $0x7e0] sm:$0xff]  ;;  %v1519_v63 = vld [vmem:[%s10574_s5 + $0x7f0] sm:$0xff] }
  0x53   : > { %v1521_v0 = vld [vmem:[%s10574_s5 + $0x800] sm:$0xff]  ;;  %1518 = vst [vmem:[%s10579_s6 + $0x3f0] sm:$0xff] %v1517_v62  ;;  %1520 = vst [vmem:[%s10579_s6 + $0x3f8] sm:$0xff] %v1519_v63  ;;  %v1523_v1 = vld [vmem:[%s10574_s5 + $0x810] sm:$0xff] }
  0x54   : > { %1522 = vst [vmem:[%s10579_s6 + $0x400] sm:$0xff] %v1521_v0  ;;  %v1525_v2 = vld [vmem:[%s10574_s5 + $0x820] sm:$0xff]  ;;  %v1527_v3 = vld [vmem:[%s10574_s5 + $0x830] sm:$0xff]  ;;  %1524 = vst [vmem:[%s10579_s6 + $0x408] sm:$0xff] %v1523_v1 }
  0x55   : > { %1526 = vst [vmem:[%s10579_s6 + $0x410] sm:$0xff] %v1525_v2  ;;  %1528 = vst [vmem:[%s10579_s6 + $0x418] sm:$0xff] %v1527_v3  ;;  %v1529_v4 = vld [vmem:[%s10574_s5 + $0x840] sm:$0xff]  ;;  %v1531_v5 = vld [vmem:[%s10574_s5 + $0x850] sm:$0xff] }
  0x56   : > { %v1533_v6 = vld [vmem:[%s10574_s5 + $0x860] sm:$0xff]  ;;  %1530 = vst [vmem:[%s10579_s6 + $0x420] sm:$0xff] %v1529_v4  ;;  %1532 = vst [vmem:[%s10579_s6 + $0x428] sm:$0xff] %v1531_v5  ;;  %v1535_v7 = vld [vmem:[%s10574_s5 + $0x870] sm:$0xff] }
  0x57   : > { %1534 = vst [vmem:[%s10579_s6 + $0x430] sm:$0xff] %v1533_v6  ;;  %v1537_v8 = vld [vmem:[%s10574_s5 + $0x880] sm:$0xff]  ;;  %v1539_v9 = vld [vmem:[%s10574_s5 + $0x890] sm:$0xff]  ;;  %1536 = vst [vmem:[%s10579_s6 + $0x438] sm:$0xff] %v1535_v7 }
  0x58   : > { %1538 = vst [vmem:[%s10579_s6 + $0x440] sm:$0xff] %v1537_v8  ;;  %1540 = vst [vmem:[%s10579_s6 + $0x448] sm:$0xff] %v1539_v9  ;;  %v1541_v10 = vld [vmem:[%s10574_s5 + $0x8a0] sm:$0xff]  ;;  %v1543_v11 = vld [vmem:[%s10574_s5 + $0x8b0] sm:$0xff] }
  0x59   : > { %v1545_v12 = vld [vmem:[%s10574_s5 + $0x8c0] sm:$0xff]  ;;  %1542 = vst [vmem:[%s10579_s6 + $0x450] sm:$0xff] %v1541_v10  ;;  %1544 = vst [vmem:[%s10579_s6 + $0x458] sm:$0xff] %v1543_v11  ;;  %v1547_v13 = vld [vmem:[%s10574_s5 + $0x8d0] sm:$0xff] }
  0x5a   : > { %1546 = vst [vmem:[%s10579_s6 + $0x460] sm:$0xff] %v1545_v12  ;;  %v1549_v14 = vld [vmem:[%s10574_s5 + $0x8e0] sm:$0xff]  ;;  %v1551_v15 = vld [vmem:[%s10574_s5 + $0x8f0] sm:$0xff]  ;;  %1548 = vst [vmem:[%s10579_s6 + $0x468] sm:$0xff] %v1547_v13 }
  0x5b   : > { %1550 = vst [vmem:[%s10579_s6 + $0x470] sm:$0xff] %v1549_v14  ;;  %1552 = vst [vmem:[%s10579_s6 + $0x478] sm:$0xff] %v1551_v15  ;;  %v1553_v16 = vld [vmem:[%s10574_s5 + $0x900] sm:$0xff]  ;;  %v1555_v17 = vld [vmem:[%s10574_s5 + $0x910] sm:$0xff] }
  0x5c   : > { %v1557_v18 = vld [vmem:[%s10574_s5 + $0x920] sm:$0xff]  ;;  %1554 = vst [vmem:[%s10579_s6 + $0x480] sm:$0xff] %v1553_v16  ;;  %1556 = vst [vmem:[%s10579_s6 + $0x488] sm:$0xff] %v1555_v17  ;;  %v1559_v19 = vld [vmem:[%s10574_s5 + $0x930] sm:$0xff] }
  0x5d   : > { %1558 = vst [vmem:[%s10579_s6 + $0x490] sm:$0xff] %v1557_v18  ;;  %v1561_v20 = vld [vmem:[%s10574_s5 + $0x940] sm:$0xff]  ;;  %v1563_v21 = vld [vmem:[%s10574_s5 + $0x950] sm:$0xff]  ;;  %1560 = vst [vmem:[%s10579_s6 + $0x498] sm:$0xff] %v1559_v19 }
  0x5e   : > { %1562 = vst [vmem:[%s10579_s6 + $0x4a0] sm:$0xff] %v1561_v20  ;;  %1564 = vst [vmem:[%s10579_s6 + $0x4a8] sm:$0xff] %v1563_v21  ;;  %v1565_v22 = vld [vmem:[%s10574_s5 + $0x960] sm:$0xff]  ;;  %v1567_v23 = vld [vmem:[%s10574_s5 + $0x970] sm:$0xff] }
  0x5f   : > { %v1569_v24 = vld [vmem:[%s10574_s5 + $0x980] sm:$0xff]  ;;  %1566 = vst [vmem:[%s10579_s6 + $0x4b0] sm:$0xff] %v1565_v22  ;;  %1568 = vst [vmem:[%s10579_s6 + $0x4b8] sm:$0xff] %v1567_v23  ;;  %v1571_v25 = vld [vmem:[%s10574_s5 + $0x990] sm:$0xff] }
  0x60   : > { %1570 = vst [vmem:[%s10579_s6 + $0x4c0] sm:$0xff] %v1569_v24  ;;  %v1573_v26 = vld [vmem:[%s10574_s5 + $0x9a0] sm:$0xff]  ;;  %v1575_v27 = vld [vmem:[%s10574_s5 + $0x9b0] sm:$0xff]  ;;  %1572 = vst [vmem:[%s10579_s6 + $0x4c8] sm:$0xff] %v1571_v25 }
  0x61   : > { %1574 = vst [vmem:[%s10579_s6 + $0x4d0] sm:$0xff] %v1573_v26  ;;  %1576 = vst [vmem:[%s10579_s6 + $0x4d8] sm:$0xff] %v1575_v27  ;;  %v1577_v28 = vld [vmem:[%s10574_s5 + $0x9c0] sm:$0xff]  ;;  %v1579_v29 = vld [vmem:[%s10574_s5 + $0x9d0] sm:$0xff] }
  0x62   : > { %v1581_v30 = vld [vmem:[%s10574_s5 + $0x9e0] sm:$0xff]  ;;  %1578 = vst [vmem:[%s10579_s6 + $0x4e0] sm:$0xff] %v1577_v28  ;;  %1580 = vst [vmem:[%s10579_s6 + $0x4e8] sm:$0xff] %v1579_v29  ;;  %v1583_v31 = vld [vmem:[%s10574_s5 + $0x9f0] sm:$0xff] }
  0x63   : > { %1582 = vst [vmem:[%s10579_s6 + $0x4f0] sm:$0xff] %v1581_v30  ;;  %v1585_v32 = vld [vmem:[%s10574_s5 + $0xa00] sm:$0xff]  ;;  %v1587_v33 = vld [vmem:[%s10574_s5 + $0xa10] sm:$0xff]  ;;  %1584 = vst [vmem:[%s10579_s6 + $0x4f8] sm:$0xff] %v1583_v31 }
  0x64   : > { %1586 = vst [vmem:[%s10579_s6 + $0x500] sm:$0xff] %v1585_v32  ;;  %1588 = vst [vmem:[%s10579_s6 + $0x508] sm:$0xff] %v1587_v33  ;;  %v1589_v34 = vld [vmem:[%s10574_s5 + $0xa20] sm:$0xff]  ;;  %v1591_v35 = vld [vmem:[%s10574_s5 + $0xa30] sm:$0xff] }
  0x65   : > { %v1593_v36 = vld [vmem:[%s10574_s5 + $0xa40] sm:$0xff]  ;;  %1590 = vst [vmem:[%s10579_s6 + $0x510] sm:$0xff] %v1589_v34  ;;  %1592 = vst [vmem:[%s10579_s6 + $0x518] sm:$0xff] %v1591_v35  ;;  %v1595_v37 = vld [vmem:[%s10574_s5 + $0xa50] sm:$0xff] }
  0x66   : > { %1594 = vst [vmem:[%s10579_s6 + $0x520] sm:$0xff] %v1593_v36  ;;  %v1597_v38 = vld [vmem:[%s10574_s5 + $0xa60] sm:$0xff]  ;;  %v1599_v39 = vld [vmem:[%s10574_s5 + $0xa70] sm:$0xff]  ;;  %1596 = vst [vmem:[%s10579_s6 + $0x528] sm:$0xff] %v1595_v37 }
  0x67   : > { %1598 = vst [vmem:[%s10579_s6 + $0x530] sm:$0xff] %v1597_v38  ;;  %1600 = vst [vmem:[%s10579_s6 + $0x538] sm:$0xff] %v1599_v39  ;;  %v1601_v40 = vld [vmem:[%s10574_s5 + $0xa80] sm:$0xff]  ;;  %v1603_v41 = vld [vmem:[%s10574_s5 + $0xa90] sm:$0xff] }
  0x68   : > { %v1605_v42 = vld [vmem:[%s10574_s5 + $0xaa0] sm:$0xff]  ;;  %1602 = vst [vmem:[%s10579_s6 + $0x540] sm:$0xff] %v1601_v40  ;;  %1604 = vst [vmem:[%s10579_s6 + $0x548] sm:$0xff] %v1603_v41  ;;  %v1607_v43 = vld [vmem:[%s10574_s5 + $0xab0] sm:$0xff] }
  0x69   : > { %1606 = vst [vmem:[%s10579_s6 + $0x550] sm:$0xff] %v1605_v42  ;;  %v1609_v44 = vld [vmem:[%s10574_s5 + $0xac0] sm:$0xff]  ;;  %v1611_v45 = vld [vmem:[%s10574_s5 + $0xad0] sm:$0xff]  ;;  %1608 = vst [vmem:[%s10579_s6 + $0x558] sm:$0xff] %v1607_v43 }
  0x6a   : > { %1610 = vst [vmem:[%s10579_s6 + $0x560] sm:$0xff] %v1609_v44  ;;  %1612 = vst [vmem:[%s10579_s6 + $0x568] sm:$0xff] %v1611_v45  ;;  %v1613_v46 = vld [vmem:[%s10574_s5 + $0xae0] sm:$0xff]  ;;  %v1615_v47 = vld [vmem:[%s10574_s5 + $0xaf0] sm:$0xff] }
  0x6b   : > { %v1617_v48 = vld [vmem:[%s10574_s5 + $0xb00] sm:$0xff]  ;;  %1614 = vst [vmem:[%s10579_s6 + $0x570] sm:$0xff] %v1613_v46  ;;  %1616 = vst [vmem:[%s10579_s6 + $0x578] sm:$0xff] %v1615_v47  ;;  %v1619_v49 = vld [vmem:[%s10574_s5 + $0xb10] sm:$0xff] }
  0x6c   : > { %1618 = vst [vmem:[%s10579_s6 + $0x580] sm:$0xff] %v1617_v48  ;;  %v1621_v50 = vld [vmem:[%s10574_s5 + $0xb20] sm:$0xff]  ;;  %v1623_v51 = vld [vmem:[%s10574_s5 + $0xb30] sm:$0xff]  ;;  %1620 = vst [vmem:[%s10579_s6 + $0x588] sm:$0xff] %v1619_v49 }
  0x6d   : > { %1622 = vst [vmem:[%s10579_s6 + $0x590] sm:$0xff] %v1621_v50  ;;  %1624 = vst [vmem:[%s10579_s6 + $0x598] sm:$0xff] %v1623_v51  ;;  %v1625_v52 = vld [vmem:[%s10574_s5 + $0xb40] sm:$0xff]  ;;  %v1627_v53 = vld [vmem:[%s10574_s5 + $0xb50] sm:$0xff] }
  0x6e   : > { %v1629_v54 = vld [vmem:[%s10574_s5 + $0xb60] sm:$0xff]  ;;  %1626 = vst [vmem:[%s10579_s6 + $0x5a0] sm:$0xff] %v1625_v52  ;;  %1628 = vst [vmem:[%s10579_s6 + $0x5a8] sm:$0xff] %v1627_v53  ;;  %v1631_v55 = vld [vmem:[%s10574_s5 + $0xb70] sm:$0xff] }
  0x6f   : > { %1630 = vst [vmem:[%s10579_s6 + $0x5b0] sm:$0xff] %v1629_v54  ;;  %v1633_v56 = vld [vmem:[%s10574_s5 + $0xb80] sm:$0xff]  ;;  %v1635_v57 = vld [vmem:[%s10574_s5 + $0xb90] sm:$0xff]  ;;  %1632 = vst [vmem:[%s10579_s6 + $0x5b8] sm:$0xff] %v1631_v55 }
  0x70   : > { %1634 = vst [vmem:[%s10579_s6 + $0x5c0] sm:$0xff] %v1633_v56  ;;  %1636 = vst [vmem:[%s10579_s6 + $0x5c8] sm:$0xff] %v1635_v57  ;;  %v1637_v58 = vld [vmem:[%s10574_s5 + $0xba0] sm:$0xff]  ;;  %v1639_v59 = vld [vmem:[%s10574_s5 + $0xbb0] sm:$0xff] }
  0x71   : > { %v1641_v60 = vld [vmem:[%s10574_s5 + $0xbc0] sm:$0xff]  ;;  %1638 = vst [vmem:[%s10579_s6 + $0x5d0] sm:$0xff] %v1637_v58  ;;  %1640 = vst [vmem:[%s10579_s6 + $0x5d8] sm:$0xff] %v1639_v59  ;;  %v1643_v61 = vld [vmem:[%s10574_s5 + $0xbd0] sm:$0xff] }
  0x72   : > { %1642 = vst [vmem:[%s10579_s6 + $0x5e0] sm:$0xff] %v1641_v60  ;;  %v1645_v62 = vld [vmem:[%s10574_s5 + $0xbe0] sm:$0xff]  ;;  %v1647_v63 = vld [vmem:[%s10574_s5 + $0xbf0] sm:$0xff]  ;;  %1644 = vst [vmem:[%s10579_s6 + $0x5e8] sm:$0xff] %v1643_v61 }
  0x73   : > { %1646 = vst [vmem:[%s10579_s6 + $0x5f0] sm:$0xff] %v1645_v62  ;;  %1648 = vst [vmem:[%s10579_s6 + $0x5f8] sm:$0xff] %v1647_v63  ;;  %v1649_v0 = vld [vmem:[%s10574_s5 + $0xc00] sm:$0xff]  ;;  %v1651_v1 = vld [vmem:[%s10574_s5 + $0xc10] sm:$0xff] }
  0x74   : > { %v1653_v2 = vld [vmem:[%s10574_s5 + $0xc20] sm:$0xff]  ;;  %1650 = vst [vmem:[%s10579_s6 + $0x600] sm:$0xff] %v1649_v0  ;;  %1652 = vst [vmem:[%s10579_s6 + $0x608] sm:$0xff] %v1651_v1  ;;  %v1655_v3 = vld [vmem:[%s10574_s5 + $0xc30] sm:$0xff] }
  0x75   : > { %1654 = vst [vmem:[%s10579_s6 + $0x610] sm:$0xff] %v1653_v2  ;;  %v1657_v4 = vld [vmem:[%s10574_s5 + $0xc40] sm:$0xff]  ;;  %v1659_v5 = vld [vmem:[%s10574_s5 + $0xc50] sm:$0xff]  ;;  %1656 = vst [vmem:[%s10579_s6 + $0x618] sm:$0xff] %v1655_v3 }
  0x76   : > { %1658 = vst [vmem:[%s10579_s6 + $0x620] sm:$0xff] %v1657_v4  ;;  %1660 = vst [vmem:[%s10579_s6 + $0x628] sm:$0xff] %v1659_v5  ;;  %v1661_v6 = vld [vmem:[%s10574_s5 + $0xc60] sm:$0xff]  ;;  %v1663_v7 = vld [vmem:[%s10574_s5 + $0xc70] sm:$0xff] }
  0x77   : > { %v1665_v8 = vld [vmem:[%s10574_s5 + $0xc80] sm:$0xff]  ;;  %1662 = vst [vmem:[%s10579_s6 + $0x630] sm:$0xff] %v1661_v6  ;;  %1664 = vst [vmem:[%s10579_s6 + $0x638] sm:$0xff] %v1663_v7  ;;  %v1667_v9 = vld [vmem:[%s10574_s5 + $0xc90] sm:$0xff] }
  0x78   : > { %1666 = vst [vmem:[%s10579_s6 + $0x640] sm:$0xff] %v1665_v8  ;;  %v1669_v10 = vld [vmem:[%s10574_s5 + $0xca0] sm:$0xff]  ;;  %v1671_v11 = vld [vmem:[%s10574_s5 + $0xcb0] sm:$0xff]  ;;  %1668 = vst [vmem:[%s10579_s6 + $0x648] sm:$0xff] %v1667_v9 }
  0x79   : > { %1670 = vst [vmem:[%s10579_s6 + $0x650] sm:$0xff] %v1669_v10  ;;  %1672 = vst [vmem:[%s10579_s6 + $0x658] sm:$0xff] %v1671_v11  ;;  %v1673_v12 = vld [vmem:[%s10574_s5 + $0xcc0] sm:$0xff]  ;;  %v1675_v13 = vld [vmem:[%s10574_s5 + $0xcd0] sm:$0xff] }
  0x7a   : > { %v1677_v14 = vld [vmem:[%s10574_s5 + $0xce0] sm:$0xff]  ;;  %1674 = vst [vmem:[%s10579_s6 + $0x660] sm:$0xff] %v1673_v12  ;;  %1676 = vst [vmem:[%s10579_s6 + $0x668] sm:$0xff] %v1675_v13  ;;  %v1679_v15 = vld [vmem:[%s10574_s5 + $0xcf0] sm:$0xff] }
  0x7b   : > { %1678 = vst [vmem:[%s10579_s6 + $0x670] sm:$0xff] %v1677_v14  ;;  %v1681_v16 = vld [vmem:[%s10574_s5 + $0xd00] sm:$0xff]  ;;  %v1683_v17 = vld [vmem:[%s10574_s5 + $0xd10] sm:$0xff]  ;;  %1680 = vst [vmem:[%s10579_s6 + $0x678] sm:$0xff] %v1679_v15 }
  0x7c   : > { %1682 = vst [vmem:[%s10579_s6 + $0x680] sm:$0xff] %v1681_v16  ;;  %1684 = vst [vmem:[%s10579_s6 + $0x688] sm:$0xff] %v1683_v17  ;;  %v1685_v18 = vld [vmem:[%s10574_s5 + $0xd20] sm:$0xff]  ;;  %v1687_v19 = vld [vmem:[%s10574_s5 + $0xd30] sm:$0xff] }
  0x7d   : > { %v1689_v20 = vld [vmem:[%s10574_s5 + $0xd40] sm:$0xff]  ;;  %1686 = vst [vmem:[%s10579_s6 + $0x690] sm:$0xff] %v1685_v18  ;;  %1688 = vst [vmem:[%s10579_s6 + $0x698] sm:$0xff] %v1687_v19  ;;  %v1691_v21 = vld [vmem:[%s10574_s5 + $0xd50] sm:$0xff] }
  0x7e   : > { %1690 = vst [vmem:[%s10579_s6 + $0x6a0] sm:$0xff] %v1689_v20  ;;  %v1693_v22 = vld [vmem:[%s10574_s5 + $0xd60] sm:$0xff]  ;;  %v1695_v23 = vld [vmem:[%s10574_s5 + $0xd70] sm:$0xff]  ;;  %1692 = vst [vmem:[%s10579_s6 + $0x6a8] sm:$0xff] %v1691_v21 }
  0x7f   : > { %1694 = vst [vmem:[%s10579_s6 + $0x6b0] sm:$0xff] %v1693_v22  ;;  %1696 = vst [vmem:[%s10579_s6 + $0x6b8] sm:$0xff] %v1695_v23  ;;  %v1697_v24 = vld [vmem:[%s10574_s5 + $0xd80] sm:$0xff]  ;;  %v1699_v25 = vld [vmem:[%s10574_s5 + $0xd90] sm:$0xff] }
  0x80   : > { %v1701_v26 = vld [vmem:[%s10574_s5 + $0xda0] sm:$0xff]  ;;  %1698 = vst [vmem:[%s10579_s6 + $0x6c0] sm:$0xff] %v1697_v24  ;;  %1700 = vst [vmem:[%s10579_s6 + $0x6c8] sm:$0xff] %v1699_v25  ;;  %v1703_v27 = vld [vmem:[%s10574_s5 + $0xdb0] sm:$0xff] }
  0x81   : > { %1702 = vst [vmem:[%s10579_s6 + $0x6d0] sm:$0xff] %v1701_v26  ;;  %v1705_v28 = vld [vmem:[%s10574_s5 + $0xdc0] sm:$0xff]  ;;  %v1707_v29 = vld [vmem:[%s10574_s5 + $0xdd0] sm:$0xff]  ;;  %1704 = vst [vmem:[%s10579_s6 + $0x6d8] sm:$0xff] %v1703_v27 }
  0x82   : > { %1706 = vst [vmem:[%s10579_s6 + $0x6e0] sm:$0xff] %v1705_v28  ;;  %1708 = vst [vmem:[%s10579_s6 + $0x6e8] sm:$0xff] %v1707_v29  ;;  %v1709_v30 = vld [vmem:[%s10574_s5 + $0xde0] sm:$0xff]  ;;  %v1711_v31 = vld [vmem:[%s10574_s5 + $0xdf0] sm:$0xff] }
  0x83   : > { %v1713_v32 = vld [vmem:[%s10574_s5 + $0xe00] sm:$0xff]  ;;  %1710 = vst [vmem:[%s10579_s6 + $0x6f0] sm:$0xff] %v1709_v30  ;;  %1712 = vst [vmem:[%s10579_s6 + $0x6f8] sm:$0xff] %v1711_v31  ;;  %v1715_v33 = vld [vmem:[%s10574_s5 + $0xe10] sm:$0xff] }
  0x84   : > { %1714 = vst [vmem:[%s10579_s6 + $0x700] sm:$0xff] %v1713_v32  ;;  %v1717_v34 = vld [vmem:[%s10574_s5 + $0xe20] sm:$0xff]  ;;  %v1719_v35 = vld [vmem:[%s10574_s5 + $0xe30] sm:$0xff]  ;;  %1716 = vst [vmem:[%s10579_s6 + $0x708] sm:$0xff] %v1715_v33 }
  0x85   : > { %1718 = vst [vmem:[%s10579_s6 + $0x710] sm:$0xff] %v1717_v34  ;;  %1720 = vst [vmem:[%s10579_s6 + $0x718] sm:$0xff] %v1719_v35  ;;  %v1721_v36 = vld [vmem:[%s10574_s5 + $0xe40] sm:$0xff]  ;;  %v1723_v37 = vld [vmem:[%s10574_s5 + $0xe50] sm:$0xff] }
  0x86   : > { %v1725_v38 = vld [vmem:[%s10574_s5 + $0xe60] sm:$0xff]  ;;  %1722 = vst [vmem:[%s10579_s6 + $0x720] sm:$0xff] %v1721_v36  ;;  %1724 = vst [vmem:[%s10579_s6 + $0x728] sm:$0xff] %v1723_v37  ;;  %v1727_v39 = vld [vmem:[%s10574_s5 + $0xe70] sm:$0xff] }
  0x87   : > { %1726 = vst [vmem:[%s10579_s6 + $0x730] sm:$0xff] %v1725_v38  ;;  %v1729_v40 = vld [vmem:[%s10574_s5 + $0xe80] sm:$0xff]  ;;  %v1731_v41 = vld [vmem:[%s10574_s5 + $0xe90] sm:$0xff]  ;;  %1728 = vst [vmem:[%s10579_s6 + $0x738] sm:$0xff] %v1727_v39 }
  0x88   : > { %1730 = vst [vmem:[%s10579_s6 + $0x740] sm:$0xff] %v1729_v40  ;;  %1732 = vst [vmem:[%s10579_s6 + $0x748] sm:$0xff] %v1731_v41  ;;  %v1733_v42 = vld [vmem:[%s10574_s5 + $0xea0] sm:$0xff]  ;;  %v1735_v43 = vld [vmem:[%s10574_s5 + $0xeb0] sm:$0xff] }
  0x89   : > { %v1737_v44 = vld [vmem:[%s10574_s5 + $0xec0] sm:$0xff]  ;;  %1734 = vst [vmem:[%s10579_s6 + $0x750] sm:$0xff] %v1733_v42  ;;  %1736 = vst [vmem:[%s10579_s6 + $0x758] sm:$0xff] %v1735_v43  ;;  %v1739_v45 = vld [vmem:[%s10574_s5 + $0xed0] sm:$0xff] }
  0x8a   : > { %1738 = vst [vmem:[%s10579_s6 + $0x760] sm:$0xff] %v1737_v44  ;;  %v1741_v46 = vld [vmem:[%s10574_s5 + $0xee0] sm:$0xff]  ;;  %v1743_v47 = vld [vmem:[%s10574_s5 + $0xef0] sm:$0xff]  ;;  %1740 = vst [vmem:[%s10579_s6 + $0x768] sm:$0xff] %v1739_v45 }
  0x8b   : > { %1742 = vst [vmem:[%s10579_s6 + $0x770] sm:$0xff] %v1741_v46  ;;  %1744 = vst [vmem:[%s10579_s6 + $0x778] sm:$0xff] %v1743_v47  ;;  %v1745_v48 = vld [vmem:[%s10574_s5 + $0xf00] sm:$0xff]  ;;  %v1747_v49 = vld [vmem:[%s10574_s5 + $0xf10] sm:$0xff] }
  0x8c   : > { %v1749_v50 = vld [vmem:[%s10574_s5 + $0xf20] sm:$0xff]  ;;  %1746 = vst [vmem:[%s10579_s6 + $0x780] sm:$0xff] %v1745_v48  ;;  %1748 = vst [vmem:[%s10579_s6 + $0x788] sm:$0xff] %v1747_v49  ;;  %v1751_v51 = vld [vmem:[%s10574_s5 + $0xf30] sm:$0xff] }
  0x8d   : > { %1750 = vst [vmem:[%s10579_s6 + $0x790] sm:$0xff] %v1749_v50  ;;  %v1753_v52 = vld [vmem:[%s10574_s5 + $0xf40] sm:$0xff]  ;;  %v1755_v53 = vld [vmem:[%s10574_s5 + $0xf50] sm:$0xff]  ;;  %1752 = vst [vmem:[%s10579_s6 + $0x798] sm:$0xff] %v1751_v51 }
  0x8e   : > { %1754 = vst [vmem:[%s10579_s6 + $0x7a0] sm:$0xff] %v1753_v52  ;;  %1756 = vst [vmem:[%s10579_s6 + $0x7a8] sm:$0xff] %v1755_v53  ;;  %v1757_v54 = vld [vmem:[%s10574_s5 + $0xf60] sm:$0xff]  ;;  %v1759_v55 = vld [vmem:[%s10574_s5 + $0xf70] sm:$0xff] }
  0x8f   : > { %v1761_v56 = vld [vmem:[%s10574_s5 + $0xf80] sm:$0xff]  ;;  %1758 = vst [vmem:[%s10579_s6 + $0x7b0] sm:$0xff] %v1757_v54  ;;  %1760 = vst [vmem:[%s10579_s6 + $0x7b8] sm:$0xff] %v1759_v55  ;;  %v1763_v57 = vld [vmem:[%s10574_s5 + $0xf90] sm:$0xff] }
  0x90   : > { %1762 = vst [vmem:[%s10579_s6 + $0x7c0] sm:$0xff] %v1761_v56  ;;  %v1765_v58 = vld [vmem:[%s10574_s5 + $0xfa0] sm:$0xff]  ;;  %v1767_v59 = vld [vmem:[%s10574_s5 + $0xfb0] sm:$0xff]  ;;  %1764 = vst [vmem:[%s10579_s6 + $0x7c8] sm:$0xff] %v1763_v57 }
  0x91   : > { %1766 = vst [vmem:[%s10579_s6 + $0x7d0] sm:$0xff] %v1765_v58  ;;  %1768 = vst [vmem:[%s10579_s6 + $0x7d8] sm:$0xff] %v1767_v59  ;;  %v1769_v60 = vld [vmem:[%s10574_s5 + $0xfc0] sm:$0xff]  ;;  %v1771_v61 = vld [vmem:[%s10574_s5 + $0xfd0] sm:$0xff] }
  0x92   : > { %v1773_v62 = vld [vmem:[%s10574_s5 + $0xfe0] sm:$0xff]  ;;  %1770 = vst [vmem:[%s10579_s6 + $0x7e0] sm:$0xff] %v1769_v60  ;;  %1772 = vst [vmem:[%s10579_s6 + $0x7e8] sm:$0xff] %v1771_v61  ;;  %v1775_v63 = vld [vmem:[%s10574_s5 + $0xff0] sm:$0xff] }
  0x93   : > { %1774 = vst [vmem:[%s10579_s6 + $0x7f0] sm:$0xff] %v1773_v62  ;;  %v1777_v0 = vld [vmem:[%s10574_s5 + $0x1000] sm:$0xff]  ;;  %v1779_v1 = vld [vmem:[%s10574_s5 + $0x1010] sm:$0xff]  ;;  %1776 = vst [vmem:[%s10579_s6 + $0x7f8] sm:$0xff] %v1775_v63 }
  0x94   : > { %1778 = vst [vmem:[%s10579_s6 + $0x800] sm:$0xff] %v1777_v0  ;;  %1780 = vst [vmem:[%s10579_s6 + $0x808] sm:$0xff] %v1779_v1  ;;  %v1781_v2 = vld [vmem:[%s10574_s5 + $0x1020] sm:$0xff]  ;;  %v1783_v3 = vld [vmem:[%s10574_s5 + $0x1030] sm:$0xff] }
  0x95   : > { %v1785_v4 = vld [vmem:[%s10574_s5 + $0x1040] sm:$0xff]  ;;  %1782 = vst [vmem:[%s10579_s6 + $0x810] sm:$0xff] %v1781_v2  ;;  %1784 = vst [vmem:[%s10579_s6 + $0x818] sm:$0xff] %v1783_v3  ;;  %v1787_v5 = vld [vmem:[%s10574_s5 + $0x1050] sm:$0xff] }
  0x96   : > { %1786 = vst [vmem:[%s10579_s6 + $0x820] sm:$0xff] %v1785_v4  ;;  %v1789_v6 = vld [vmem:[%s10574_s5 + $0x1060] sm:$0xff]  ;;  %v1791_v7 = vld [vmem:[%s10574_s5 + $0x1070] sm:$0xff]  ;;  %1788 = vst [vmem:[%s10579_s6 + $0x828] sm:$0xff] %v1787_v5 }
  0x97   : > { %1790 = vst [vmem:[%s10579_s6 + $0x830] sm:$0xff] %v1789_v6  ;;  %1792 = vst [vmem:[%s10579_s6 + $0x838] sm:$0xff] %v1791_v7  ;;  %v1793_v8 = vld [vmem:[%s10574_s5 + $0x1080] sm:$0xff]  ;;  %v1795_v9 = vld [vmem:[%s10574_s5 + $0x1090] sm:$0xff] }
  0x98   : > { %v1797_v10 = vld [vmem:[%s10574_s5 + $0x10a0] sm:$0xff]  ;;  %1794 = vst [vmem:[%s10579_s6 + $0x840] sm:$0xff] %v1793_v8  ;;  %1796 = vst [vmem:[%s10579_s6 + $0x848] sm:$0xff] %v1795_v9  ;;  %v1799_v11 = vld [vmem:[%s10574_s5 + $0x10b0] sm:$0xff] }
  0x99   : > { %1798 = vst [vmem:[%s10579_s6 + $0x850] sm:$0xff] %v1797_v10  ;;  %v1801_v12 = vld [vmem:[%s10574_s5 + $0x10c0] sm:$0xff]  ;;  %v1803_v13 = vld [vmem:[%s10574_s5 + $0x10d0] sm:$0xff]  ;;  %1800 = vst [vmem:[%s10579_s6 + $0x858] sm:$0xff] %v1799_v11 }
  0x9a   : > { %1802 = vst [vmem:[%s10579_s6 + $0x860] sm:$0xff] %v1801_v12  ;;  %1804 = vst [vmem:[%s10579_s6 + $0x868] sm:$0xff] %v1803_v13  ;;  %v1805_v14 = vld [vmem:[%s10574_s5 + $0x10e0] sm:$0xff]  ;;  %v1807_v15 = vld [vmem:[%s10574_s5 + $0x10f0] sm:$0xff] }
  0x9b   : > { %v1809_v16 = vld [vmem:[%s10574_s5 + $0x1100] sm:$0xff]  ;;  %1806 = vst [vmem:[%s10579_s6 + $0x870] sm:$0xff] %v1805_v14  ;;  %1808 = vst [vmem:[%s10579_s6 + $0x878] sm:$0xff] %v1807_v15  ;;  %v1811_v17 = vld [vmem:[%s10574_s5 + $0x1110] sm:$0xff] }
  0x9c   : > { %1810 = vst [vmem:[%s10579_s6 + $0x880] sm:$0xff] %v1809_v16  ;;  %v1813_v18 = vld [vmem:[%s10574_s5 + $0x1120] sm:$0xff]  ;;  %v1815_v19 = vld [vmem:[%s10574_s5 + $0x1130] sm:$0xff]  ;;  %1812 = vst [vmem:[%s10579_s6 + $0x888] sm:$0xff] %v1811_v17 }
  0x9d   : > { %1814 = vst [vmem:[%s10579_s6 + $0x890] sm:$0xff] %v1813_v18  ;;  %1816 = vst [vmem:[%s10579_s6 + $0x898] sm:$0xff] %v1815_v19  ;;  %v1817_v20 = vld [vmem:[%s10574_s5 + $0x1140] sm:$0xff]  ;;  %v1819_v21 = vld [vmem:[%s10574_s5 + $0x1150] sm:$0xff] }
  0x9e   : > { %v1821_v22 = vld [vmem:[%s10574_s5 + $0x1160] sm:$0xff]  ;;  %1818 = vst [vmem:[%s10579_s6 + $0x8a0] sm:$0xff] %v1817_v20  ;;  %1820 = vst [vmem:[%s10579_s6 + $0x8a8] sm:$0xff] %v1819_v21  ;;  %v1823_v23 = vld [vmem:[%s10574_s5 + $0x1170] sm:$0xff] }
  0x9f   : > { %1822 = vst [vmem:[%s10579_s6 + $0x8b0] sm:$0xff] %v1821_v22  ;;  %v1825_v24 = vld [vmem:[%s10574_s5 + $0x1180] sm:$0xff]  ;;  %v1827_v25 = vld [vmem:[%s10574_s5 + $0x1190] sm:$0xff]  ;;  %1824 = vst [vmem:[%s10579_s6 + $0x8b8] sm:$0xff] %v1823_v23 }
  0xa0   : > { %1826 = vst [vmem:[%s10579_s6 + $0x8c0] sm:$0xff] %v1825_v24  ;;  %1828 = vst [vmem:[%s10579_s6 + $0x8c8] sm:$0xff] %v1827_v25  ;;  %v1829_v26 = vld [vmem:[%s10574_s5 + $0x11a0] sm:$0xff]  ;;  %v1831_v27 = vld [vmem:[%s10574_s5 + $0x11b0] sm:$0xff] }
  0xa1   : > { %v1833_v28 = vld [vmem:[%s10574_s5 + $0x11c0] sm:$0xff]  ;;  %1830 = vst [vmem:[%s10579_s6 + $0x8d0] sm:$0xff] %v1829_v26  ;;  %1832 = vst [vmem:[%s10579_s6 + $0x8d8] sm:$0xff] %v1831_v27  ;;  %v1835_v29 = vld [vmem:[%s10574_s5 + $0x11d0] sm:$0xff] }
  0xa2   : > { %1834 = vst [vmem:[%s10579_s6 + $0x8e0] sm:$0xff] %v1833_v28  ;;  %v1837_v30 = vld [vmem:[%s10574_s5 + $0x11e0] sm:$0xff]  ;;  %v1839_v31 = vld [vmem:[%s10574_s5 + $0x11f0] sm:$0xff]  ;;  %1836 = vst [vmem:[%s10579_s6 + $0x8e8] sm:$0xff] %v1835_v29 }
  0xa3   : > { %1838 = vst [vmem:[%s10579_s6 + $0x8f0] sm:$0xff] %v1837_v30  ;;  %1840 = vst [vmem:[%s10579_s6 + $0x8f8] sm:$0xff] %v1839_v31  ;;  %v1841_v32 = vld [vmem:[%s10574_s5 + $0x1200] sm:$0xff]  ;;  %v1843_v33 = vld [vmem:[%s10574_s5 + $0x1210] sm:$0xff] }
  0xa4   : > { %v1845_v34 = vld [vmem:[%s10574_s5 + $0x1220] sm:$0xff]  ;;  %1842 = vst [vmem:[%s10579_s6 + $0x900] sm:$0xff] %v1841_v32  ;;  %1844 = vst [vmem:[%s10579_s6 + $0x908] sm:$0xff] %v1843_v33  ;;  %v1847_v35 = vld [vmem:[%s10574_s5 + $0x1230] sm:$0xff] }
  0xa5   : > { %1846 = vst [vmem:[%s10579_s6 + $0x910] sm:$0xff] %v1845_v34  ;;  %v1849_v36 = vld [vmem:[%s10574_s5 + $0x1240] sm:$0xff]  ;;  %v1851_v37 = vld [vmem:[%s10574_s5 + $0x1250] sm:$0xff]  ;;  %1848 = vst [vmem:[%s10579_s6 + $0x918] sm:$0xff] %v1847_v35 }
  0xa6   : > { %1850 = vst [vmem:[%s10579_s6 + $0x920] sm:$0xff] %v1849_v36  ;;  %1852 = vst [vmem:[%s10579_s6 + $0x928] sm:$0xff] %v1851_v37  ;;  %v1853_v38 = vld [vmem:[%s10574_s5 + $0x1260] sm:$0xff]  ;;  %v1855_v39 = vld [vmem:[%s10574_s5 + $0x1270] sm:$0xff] }
  0xa7   : > { %v1857_v40 = vld [vmem:[%s10574_s5 + $0x1280] sm:$0xff]  ;;  %1854 = vst [vmem:[%s10579_s6 + $0x930] sm:$0xff] %v1853_v38  ;;  %1856 = vst [vmem:[%s10579_s6 + $0x938] sm:$0xff] %v1855_v39  ;;  %v1859_v41 = vld [vmem:[%s10574_s5 + $0x1290] sm:$0xff] }
  0xa8   : > { %1858 = vst [vmem:[%s10579_s6 + $0x940] sm:$0xff] %v1857_v40  ;;  %v1861_v42 = vld [vmem:[%s10574_s5 + $0x12a0] sm:$0xff]  ;;  %v1863_v43 = vld [vmem:[%s10574_s5 + $0x12b0] sm:$0xff]  ;;  %1860 = vst [vmem:[%s10579_s6 + $0x948] sm:$0xff] %v1859_v41 }
  0xa9   : > { %1862 = vst [vmem:[%s10579_s6 + $0x950] sm:$0xff] %v1861_v42  ;;  %1864 = vst [vmem:[%s10579_s6 + $0x958] sm:$0xff] %v1863_v43  ;;  %v1865_v44 = vld [vmem:[%s10574_s5 + $0x12c0] sm:$0xff]  ;;  %v1867_v45 = vld [vmem:[%s10574_s5 + $0x12d0] sm:$0xff] }
  0xaa   : > { %v1869_v46 = vld [vmem:[%s10574_s5 + $0x12e0] sm:$0xff]  ;;  %1866 = vst [vmem:[%s10579_s6 + $0x960] sm:$0xff] %v1865_v44  ;;  %1868 = vst [vmem:[%s10579_s6 + $0x968] sm:$0xff] %v1867_v45  ;;  %v1871_v47 = vld [vmem:[%s10574_s5 + $0x12f0] sm:$0xff] }
  0xab   : > { %1870 = vst [vmem:[%s10579_s6 + $0x970] sm:$0xff] %v1869_v46  ;;  %v1873_v48 = vld [vmem:[%s10574_s5 + $0x1300] sm:$0xff]  ;;  %v1875_v49 = vld [vmem:[%s10574_s5 + $0x1310] sm:$0xff]  ;;  %1872 = vst [vmem:[%s10579_s6 + $0x978] sm:$0xff] %v1871_v47 }
  0xac   : > { %1874 = vst [vmem:[%s10579_s6 + $0x980] sm:$0xff] %v1873_v48  ;;  %1876 = vst [vmem:[%s10579_s6 + $0x988] sm:$0xff] %v1875_v49  ;;  %v1877_v50 = vld [vmem:[%s10574_s5 + $0x1320] sm:$0xff]  ;;  %v1879_v51 = vld [vmem:[%s10574_s5 + $0x1330] sm:$0xff] }
  0xad   : > { %v1881_v52 = vld [vmem:[%s10574_s5 + $0x1340] sm:$0xff]  ;;  %1878 = vst [vmem:[%s10579_s6 + $0x990] sm:$0xff] %v1877_v50  ;;  %1880 = vst [vmem:[%s10579_s6 + $0x998] sm:$0xff] %v1879_v51  ;;  %v1883_v53 = vld [vmem:[%s10574_s5 + $0x1350] sm:$0xff] }
  0xae   : > { %1882 = vst [vmem:[%s10579_s6 + $0x9a0] sm:$0xff] %v1881_v52  ;;  %v1885_v54 = vld [vmem:[%s10574_s5 + $0x1360] sm:$0xff]  ;;  %v1887_v55 = vld [vmem:[%s10574_s5 + $0x1370] sm:$0xff]  ;;  %1884 = vst [vmem:[%s10579_s6 + $0x9a8] sm:$0xff] %v1883_v53 }
  0xaf   : > { %1886 = vst [vmem:[%s10579_s6 + $0x9b0] sm:$0xff] %v1885_v54  ;;  %1888 = vst [vmem:[%s10579_s6 + $0x9b8] sm:$0xff] %v1887_v55  ;;  %v1889_v56 = vld [vmem:[%s10574_s5 + $0x1380] sm:$0xff]  ;;  %v1891_v57 = vld [vmem:[%s10574_s5 + $0x1390] sm:$0xff] }
  0xb0   : > { %v1893_v58 = vld [vmem:[%s10574_s5 + $0x13a0] sm:$0xff]  ;;  %1890 = vst [vmem:[%s10579_s6 + $0x9c0] sm:$0xff] %v1889_v56  ;;  %1892 = vst [vmem:[%s10579_s6 + $0x9c8] sm:$0xff] %v1891_v57  ;;  %v1895_v59 = vld [vmem:[%s10574_s5 + $0x13b0] sm:$0xff] }
  0xb1   : > { %1894 = vst [vmem:[%s10579_s6 + $0x9d0] sm:$0xff] %v1893_v58  ;;  %v1897_v60 = vld [vmem:[%s10574_s5 + $0x13c0] sm:$0xff]  ;;  %v1899_v61 = vld [vmem:[%s10574_s5 + $0x13d0] sm:$0xff]  ;;  %1896 = vst [vmem:[%s10579_s6 + $0x9d8] sm:$0xff] %v1895_v59 }
  0xb2   : > { %1898 = vst [vmem:[%s10579_s6 + $0x9e0] sm:$0xff] %v1897_v60  ;;  %1900 = vst [vmem:[%s10579_s6 + $0x9e8] sm:$0xff] %v1899_v61  ;;  %v1901_v62 = vld [vmem:[%s10574_s5 + $0x13e0] sm:$0xff]  ;;  %v1903_v63 = vld [vmem:[%s10574_s5 + $0x13f0] sm:$0xff] }
  0xb3   : > { %v1905_v0 = vld [vmem:[%s10574_s5 + $0x1400] sm:$0xff]  ;;  %1902 = vst [vmem:[%s10579_s6 + $0x9f0] sm:$0xff] %v1901_v62  ;;  %1904 = vst [vmem:[%s10579_s6 + $0x9f8] sm:$0xff] %v1903_v63  ;;  %v1907_v1 = vld [vmem:[%s10574_s5 + $0x1410] sm:$0xff] }
  0xb4   : > { %1906 = vst [vmem:[%s10579_s6 + $0xa00] sm:$0xff] %v1905_v0  ;;  %v1909_v2 = vld [vmem:[%s10574_s5 + $0x1420] sm:$0xff]  ;;  %v1911_v3 = vld [vmem:[%s10574_s5 + $0x1430] sm:$0xff]  ;;  %1908 = vst [vmem:[%s10579_s6 + $0xa08] sm:$0xff] %v1907_v1 }
  0xb5   : > { %1910 = vst [vmem:[%s10579_s6 + $0xa10] sm:$0xff] %v1909_v2  ;;  %1912 = vst [vmem:[%s10579_s6 + $0xa18] sm:$0xff] %v1911_v3  ;;  %v1913_v4 = vld [vmem:[%s10574_s5 + $0x1440] sm:$0xff]  ;;  %v1915_v5 = vld [vmem:[%s10574_s5 + $0x1450] sm:$0xff] }
  0xb6   : > { %v1917_v6 = vld [vmem:[%s10574_s5 + $0x1460] sm:$0xff]  ;;  %1914 = vst [vmem:[%s10579_s6 + $0xa20] sm:$0xff] %v1913_v4  ;;  %1916 = vst [vmem:[%s10579_s6 + $0xa28] sm:$0xff] %v1915_v5  ;;  %v1919_v7 = vld [vmem:[%s10574_s5 + $0x1470] sm:$0xff] }
  0xb7   : > { %1918 = vst [vmem:[%s10579_s6 + $0xa30] sm:$0xff] %v1917_v6  ;;  %v1921_v8 = vld [vmem:[%s10574_s5 + $0x1480] sm:$0xff]  ;;  %v1923_v9 = vld [vmem:[%s10574_s5 + $0x1490] sm:$0xff]  ;;  %1920 = vst [vmem:[%s10579_s6 + $0xa38] sm:$0xff] %v1919_v7 }
  0xb8   : > { %1922 = vst [vmem:[%s10579_s6 + $0xa40] sm:$0xff] %v1921_v8  ;;  %1924 = vst [vmem:[%s10579_s6 + $0xa48] sm:$0xff] %v1923_v9  ;;  %v1925_v10 = vld [vmem:[%s10574_s5 + $0x14a0] sm:$0xff]  ;;  %v1927_v11 = vld [vmem:[%s10574_s5 + $0x14b0] sm:$0xff] }
  0xb9   : > { %v1929_v12 = vld [vmem:[%s10574_s5 + $0x14c0] sm:$0xff]  ;;  %1926 = vst [vmem:[%s10579_s6 + $0xa50] sm:$0xff] %v1925_v10  ;;  %1928 = vst [vmem:[%s10579_s6 + $0xa58] sm:$0xff] %v1927_v11  ;;  %v1931_v13 = vld [vmem:[%s10574_s5 + $0x14d0] sm:$0xff] }
  0xba   : > { %1930 = vst [vmem:[%s10579_s6 + $0xa60] sm:$0xff] %v1929_v12  ;;  %v1933_v14 = vld [vmem:[%s10574_s5 + $0x14e0] sm:$0xff]  ;;  %v1935_v15 = vld [vmem:[%s10574_s5 + $0x14f0] sm:$0xff]  ;;  %1932 = vst [vmem:[%s10579_s6 + $0xa68] sm:$0xff] %v1931_v13 }
  0xbb   : > { %1934 = vst [vmem:[%s10579_s6 + $0xa70] sm:$0xff] %v1933_v14  ;;  %1936 = vst [vmem:[%s10579_s6 + $0xa78] sm:$0xff] %v1935_v15  ;;  %v1937_v16 = vld [vmem:[%s10574_s5 + $0x1500] sm:$0xff]  ;;  %v1939_v17 = vld [vmem:[%s10574_s5 + $0x1510] sm:$0xff] }
  0xbc   : > { %v1941_v18 = vld [vmem:[%s10574_s5 + $0x1520] sm:$0xff]  ;;  %1938 = vst [vmem:[%s10579_s6 + $0xa80] sm:$0xff] %v1937_v16  ;;  %1940 = vst [vmem:[%s10579_s6 + $0xa88] sm:$0xff] %v1939_v17  ;;  %v1943_v19 = vld [vmem:[%s10574_s5 + $0x1530] sm:$0xff] }
  0xbd   : > { %1942 = vst [vmem:[%s10579_s6 + $0xa90] sm:$0xff] %v1941_v18  ;;  %v1945_v20 = vld [vmem:[%s10574_s5 + $0x1540] sm:$0xff]  ;;  %v1947_v21 = vld [vmem:[%s10574_s5 + $0x1550] sm:$0xff]  ;;  %1944 = vst [vmem:[%s10579_s6 + $0xa98] sm:$0xff] %v1943_v19 }
  0xbe   : > { %1946 = vst [vmem:[%s10579_s6 + $0xaa0] sm:$0xff] %v1945_v20  ;;  %1948 = vst [vmem:[%s10579_s6 + $0xaa8] sm:$0xff] %v1947_v21  ;;  %v1949_v22 = vld [vmem:[%s10574_s5 + $0x1560] sm:$0xff]  ;;  %v1951_v23 = vld [vmem:[%s10574_s5 + $0x1570] sm:$0xff] }
  0xbf   : > { %v1953_v24 = vld [vmem:[%s10574_s5 + $0x1580] sm:$0xff]  ;;  %1950 = vst [vmem:[%s10579_s6 + $0xab0] sm:$0xff] %v1949_v22  ;;  %1952 = vst [vmem:[%s10579_s6 + $0xab8] sm:$0xff] %v1951_v23  ;;  %v1955_v25 = vld [vmem:[%s10574_s5 + $0x1590] sm:$0xff] }
  0xc0   : > { %1954 = vst [vmem:[%s10579_s6 + $0xac0] sm:$0xff] %v1953_v24  ;;  %v1957_v26 = vld [vmem:[%s10574_s5 + $0x15a0] sm:$0xff]  ;;  %v1959_v27 = vld [vmem:[%s10574_s5 + $0x15b0] sm:$0xff]  ;;  %1956 = vst [vmem:[%s10579_s6 + $0xac8] sm:$0xff] %v1955_v25 }
  0xc1   : > { %1958 = vst [vmem:[%s10579_s6 + $0xad0] sm:$0xff] %v1957_v26  ;;  %1960 = vst [vmem:[%s10579_s6 + $0xad8] sm:$0xff] %v1959_v27  ;;  %v1961_v28 = vld [vmem:[%s10574_s5 + $0x15c0] sm:$0xff]  ;;  %v1963_v29 = vld [vmem:[%s10574_s5 + $0x15d0] sm:$0xff] }
  0xc2   : > { %v1965_v30 = vld [vmem:[%s10574_s5 + $0x15e0] sm:$0xff]  ;;  %1962 = vst [vmem:[%s10579_s6 + $0xae0] sm:$0xff] %v1961_v28  ;;  %1964 = vst [vmem:[%s10579_s6 + $0xae8] sm:$0xff] %v1963_v29  ;;  %v1967_v31 = vld [vmem:[%s10574_s5 + $0x15f0] sm:$0xff] }
  0xc3   : > { %1966 = vst [vmem:[%s10579_s6 + $0xaf0] sm:$0xff] %v1965_v30  ;;  %v1969_v32 = vld [vmem:[%s10574_s5 + $0x1600] sm:$0xff]  ;;  %v1971_v33 = vld [vmem:[%s10574_s5 + $0x1610] sm:$0xff]  ;;  %1968 = vst [vmem:[%s10579_s6 + $0xaf8] sm:$0xff] %v1967_v31 }
  0xc4   : > { %1970 = vst [vmem:[%s10579_s6 + $0xb00] sm:$0xff] %v1969_v32  ;;  %1972 = vst [vmem:[%s10579_s6 + $0xb08] sm:$0xff] %v1971_v33  ;;  %v1973_v34 = vld [vmem:[%s10574_s5 + $0x1620] sm:$0xff]  ;;  %v1975_v35 = vld [vmem:[%s10574_s5 + $0x1630] sm:$0xff] }
  0xc5   : > { %v1977_v36 = vld [vmem:[%s10574_s5 + $0x1640] sm:$0xff]  ;;  %1974 = vst [vmem:[%s10579_s6 + $0xb10] sm:$0xff] %v1973_v34  ;;  %1976 = vst [vmem:[%s10579_s6 + $0xb18] sm:$0xff] %v1975_v35  ;;  %v1979_v37 = vld [vmem:[%s10574_s5 + $0x1650] sm:$0xff] }
  0xc6   : > { %1978 = vst [vmem:[%s10579_s6 + $0xb20] sm:$0xff] %v1977_v36  ;;  %v1981_v38 = vld [vmem:[%s10574_s5 + $0x1660] sm:$0xff]  ;;  %v1983_v39 = vld [vmem:[%s10574_s5 + $0x1670] sm:$0xff]  ;;  %1980 = vst [vmem:[%s10579_s6 + $0xb28] sm:$0xff] %v1979_v37 }
  0xc7   : > { %1982 = vst [vmem:[%s10579_s6 + $0xb30] sm:$0xff] %v1981_v38  ;;  %1984 = vst [vmem:[%s10579_s6 + $0xb38] sm:$0xff] %v1983_v39  ;;  %v1985_v40 = vld [vmem:[%s10574_s5 + $0x1680] sm:$0xff]  ;;  %v1987_v41 = vld [vmem:[%s10574_s5 + $0x1690] sm:$0xff] }
  0xc8   : > { %v1989_v42 = vld [vmem:[%s10574_s5 + $0x16a0] sm:$0xff]  ;;  %1986 = vst [vmem:[%s10579_s6 + $0xb40] sm:$0xff] %v1985_v40  ;;  %1988 = vst [vmem:[%s10579_s6 + $0xb48] sm:$0xff] %v1987_v41  ;;  %v1991_v43 = vld [vmem:[%s10574_s5 + $0x16b0] sm:$0xff] }
  0xc9   : > { %1990 = vst [vmem:[%s10579_s6 + $0xb50] sm:$0xff] %v1989_v42  ;;  %v1993_v44 = vld [vmem:[%s10574_s5 + $0x16c0] sm:$0xff]  ;;  %v1995_v45 = vld [vmem:[%s10574_s5 + $0x16d0] sm:$0xff]  ;;  %1992 = vst [vmem:[%s10579_s6 + $0xb58] sm:$0xff] %v1991_v43 }
  0xca   : > { %1994 = vst [vmem:[%s10579_s6 + $0xb60] sm:$0xff] %v1993_v44  ;;  %1996 = vst [vmem:[%s10579_s6 + $0xb68] sm:$0xff] %v1995_v45  ;;  %v1997_v46 = vld [vmem:[%s10574_s5 + $0x16e0] sm:$0xff]  ;;  %v1999_v47 = vld [vmem:[%s10574_s5 + $0x16f0] sm:$0xff] }
  0xcb   : > { %v2001_v48 = vld [vmem:[%s10574_s5 + $0x1700] sm:$0xff]  ;;  %1998 = vst [vmem:[%s10579_s6 + $0xb70] sm:$0xff] %v1997_v46  ;;  %2000 = vst [vmem:[%s10579_s6 + $0xb78] sm:$0xff] %v1999_v47  ;;  %v2003_v49 = vld [vmem:[%s10574_s5 + $0x1710] sm:$0xff] }
  0xcc   : > { %2002 = vst [vmem:[%s10579_s6 + $0xb80] sm:$0xff] %v2001_v48  ;;  %v2005_v50 = vld [vmem:[%s10574_s5 + $0x1720] sm:$0xff]  ;;  %v2007_v51 = vld [vmem:[%s10574_s5 + $0x1730] sm:$0xff]  ;;  %2004 = vst [vmem:[%s10579_s6 + $0xb88] sm:$0xff] %v2003_v49 }
  0xcd   : > { %2006 = vst [vmem:[%s10579_s6 + $0xb90] sm:$0xff] %v2005_v50  ;;  %2008 = vst [vmem:[%s10579_s6 + $0xb98] sm:$0xff] %v2007_v51  ;;  %v2009_v52 = vld [vmem:[%s10574_s5 + $0x1740] sm:$0xff]  ;;  %v2011_v53 = vld [vmem:[%s10574_s5 + $0x1750] sm:$0xff] }
  0xce   : > { %v2013_v54 = vld [vmem:[%s10574_s5 + $0x1760] sm:$0xff]  ;;  %2010 = vst [vmem:[%s10579_s6 + $0xba0] sm:$0xff] %v2009_v52  ;;  %2012 = vst [vmem:[%s10579_s6 + $0xba8] sm:$0xff] %v2011_v53  ;;  %v2015_v55 = vld [vmem:[%s10574_s5 + $0x1770] sm:$0xff] }
  0xcf   : > { %2014 = vst [vmem:[%s10579_s6 + $0xbb0] sm:$0xff] %v2013_v54  ;;  %v2017_v56 = vld [vmem:[%s10574_s5 + $0x1780] sm:$0xff]  ;;  %v2019_v57 = vld [vmem:[%s10574_s5 + $0x1790] sm:$0xff]  ;;  %2016 = vst [vmem:[%s10579_s6 + $0xbb8] sm:$0xff] %v2015_v55 }
  0xd0   : > { %2018 = vst [vmem:[%s10579_s6 + $0xbc0] sm:$0xff] %v2017_v56  ;;  %2020 = vst [vmem:[%s10579_s6 + $0xbc8] sm:$0xff] %v2019_v57  ;;  %v2021_v58 = vld [vmem:[%s10574_s5 + $0x17a0] sm:$0xff]  ;;  %v2023_v59 = vld [vmem:[%s10574_s5 + $0x17b0] sm:$0xff] }
  0xd1   : > { %v2025_v60 = vld [vmem:[%s10574_s5 + $0x17c0] sm:$0xff]  ;;  %2022 = vst [vmem:[%s10579_s6 + $0xbd0] sm:$0xff] %v2021_v58  ;;  %2024 = vst [vmem:[%s10579_s6 + $0xbd8] sm:$0xff] %v2023_v59  ;;  %v2027_v61 = vld [vmem:[%s10574_s5 + $0x17d0] sm:$0xff] }
  0xd2   : > { %2026 = vst [vmem:[%s10579_s6 + $0xbe0] sm:$0xff] %v2025_v60  ;;  %v2029_v62 = vld [vmem:[%s10574_s5 + $0x17e0] sm:$0xff]  ;;  %v2031_v63 = vld [vmem:[%s10574_s5 + $0x17f0] sm:$0xff]  ;;  %2028 = vst [vmem:[%s10579_s6 + $0xbe8] sm:$0xff] %v2027_v61 }
  0xd3   : > { %2030 = vst [vmem:[%s10579_s6 + $0xbf0] sm:$0xff] %v2029_v62  ;;  %2032 = vst [vmem:[%s10579_s6 + $0xbf8] sm:$0xff] %v2031_v63  ;;  %v2033_v0 = vld [vmem:[%s10574_s5 + $0x1800] sm:$0xff]  ;;  %v2035_v1 = vld [vmem:[%s10574_s5 + $0x1810] sm:$0xff] }
  0xd4   : > { %v2037_v2 = vld [vmem:[%s10574_s5 + $0x1820] sm:$0xff]  ;;  %2034 = vst [vmem:[%s10579_s6 + $0xc00] sm:$0xff] %v2033_v0  ;;  %2036 = vst [vmem:[%s10579_s6 + $0xc08] sm:$0xff] %v2035_v1  ;;  %v2039_v3 = vld [vmem:[%s10574_s5 + $0x1830] sm:$0xff] }
  0xd5   : > { %2038 = vst [vmem:[%s10579_s6 + $0xc10] sm:$0xff] %v2037_v2  ;;  %v2041_v4 = vld [vmem:[%s10574_s5 + $0x1840] sm:$0xff]  ;;  %v2043_v5 = vld [vmem:[%s10574_s5 + $0x1850] sm:$0xff]  ;;  %2040 = vst [vmem:[%s10579_s6 + $0xc18] sm:$0xff] %v2039_v3 }
  0xd6   : > { %2042 = vst [vmem:[%s10579_s6 + $0xc20] sm:$0xff] %v2041_v4  ;;  %2044 = vst [vmem:[%s10579_s6 + $0xc28] sm:$0xff] %v2043_v5  ;;  %v2045_v6 = vld [vmem:[%s10574_s5 + $0x1860] sm:$0xff]  ;;  %v2047_v7 = vld [vmem:[%s10574_s5 + $0x1870] sm:$0xff] }
  0xd7   : > { %v2049_v8 = vld [vmem:[%s10574_s5 + $0x1880] sm:$0xff]  ;;  %2046 = vst [vmem:[%s10579_s6 + $0xc30] sm:$0xff] %v2045_v6  ;;  %2048 = vst [vmem:[%s10579_s6 + $0xc38] sm:$0xff] %v2047_v7  ;;  %v2051_v9 = vld [vmem:[%s10574_s5 + $0x1890] sm:$0xff] }
  0xd8   : > { %2050 = vst [vmem:[%s10579_s6 + $0xc40] sm:$0xff] %v2049_v8  ;;  %v2053_v10 = vld [vmem:[%s10574_s5 + $0x18a0] sm:$0xff]  ;;  %v2055_v11 = vld [vmem:[%s10574_s5 + $0x18b0] sm:$0xff]  ;;  %2052 = vst [vmem:[%s10579_s6 + $0xc48] sm:$0xff] %v2051_v9 }
  0xd9   : > { %2054 = vst [vmem:[%s10579_s6 + $0xc50] sm:$0xff] %v2053_v10  ;;  %2056 = vst [vmem:[%s10579_s6 + $0xc58] sm:$0xff] %v2055_v11  ;;  %v2057_v12 = vld [vmem:[%s10574_s5 + $0x18c0] sm:$0xff]  ;;  %v2059_v13 = vld [vmem:[%s10574_s5 + $0x18d0] sm:$0xff] }
  0xda   : > { %v2061_v14 = vld [vmem:[%s10574_s5 + $0x18e0] sm:$0xff]  ;;  %2058 = vst [vmem:[%s10579_s6 + $0xc60] sm:$0xff] %v2057_v12  ;;  %2060 = vst [vmem:[%s10579_s6 + $0xc68] sm:$0xff] %v2059_v13  ;;  %v2063_v15 = vld [vmem:[%s10574_s5 + $0x18f0] sm:$0xff] }
  0xdb   : > { %2062 = vst [vmem:[%s10579_s6 + $0xc70] sm:$0xff] %v2061_v14  ;;  %v2065_v16 = vld [vmem:[%s10574_s5 + $0x1900] sm:$0xff]  ;;  %v2067_v17 = vld [vmem:[%s10574_s5 + $0x1910] sm:$0xff]  ;;  %2064 = vst [vmem:[%s10579_s6 + $0xc78] sm:$0xff] %v2063_v15 }
  0xdc   : > { %2066 = vst [vmem:[%s10579_s6 + $0xc80] sm:$0xff] %v2065_v16  ;;  %2068 = vst [vmem:[%s10579_s6 + $0xc88] sm:$0xff] %v2067_v17  ;;  %v2069_v18 = vld [vmem:[%s10574_s5 + $0x1920] sm:$0xff]  ;;  %v2071_v19 = vld [vmem:[%s10574_s5 + $0x1930] sm:$0xff] }
  0xdd   : > { %v2073_v20 = vld [vmem:[%s10574_s5 + $0x1940] sm:$0xff]  ;;  %2070 = vst [vmem:[%s10579_s6 + $0xc90] sm:$0xff] %v2069_v18  ;;  %2072 = vst [vmem:[%s10579_s6 + $0xc98] sm:$0xff] %v2071_v19  ;;  %v2075_v21 = vld [vmem:[%s10574_s5 + $0x1950] sm:$0xff] }
  0xde   : > { %2074 = vst [vmem:[%s10579_s6 + $0xca0] sm:$0xff] %v2073_v20  ;;  %v2077_v22 = vld [vmem:[%s10574_s5 + $0x1960] sm:$0xff]  ;;  %v2079_v23 = vld [vmem:[%s10574_s5 + $0x1970] sm:$0xff]  ;;  %2076 = vst [vmem:[%s10579_s6 + $0xca8] sm:$0xff] %v2075_v21 }
  0xdf   : > { %2078 = vst [vmem:[%s10579_s6 + $0xcb0] sm:$0xff] %v2077_v22  ;;  %2080 = vst [vmem:[%s10579_s6 + $0xcb8] sm:$0xff] %v2079_v23  ;;  %v2081_v24 = vld [vmem:[%s10574_s5 + $0x1980] sm:$0xff]  ;;  %v2083_v25 = vld [vmem:[%s10574_s5 + $0x1990] sm:$0xff] }
  0xe0   : > { %v2085_v26 = vld [vmem:[%s10574_s5 + $0x19a0] sm:$0xff]  ;;  %2082 = vst [vmem:[%s10579_s6 + $0xcc0] sm:$0xff] %v2081_v24  ;;  %2084 = vst [vmem:[%s10579_s6 + $0xcc8] sm:$0xff] %v2083_v25  ;;  %v2087_v27 = vld [vmem:[%s10574_s5 + $0x19b0] sm:$0xff] }
  0xe1   : > { %2086 = vst [vmem:[%s10579_s6 + $0xcd0] sm:$0xff] %v2085_v26  ;;  %v2089_v28 = vld [vmem:[%s10574_s5 + $0x19c0] sm:$0xff]  ;;  %v2091_v29 = vld [vmem:[%s10574_s5 + $0x19d0] sm:$0xff]  ;;  %2088 = vst [vmem:[%s10579_s6 + $0xcd8] sm:$0xff] %v2087_v27 }
  0xe2   : > { %2090 = vst [vmem:[%s10579_s6 + $0xce0] sm:$0xff] %v2089_v28  ;;  %2092 = vst [vmem:[%s10579_s6 + $0xce8] sm:$0xff] %v2091_v29  ;;  %v2093_v30 = vld [vmem:[%s10574_s5 + $0x19e0] sm:$0xff]  ;;  %v2095_v31 = vld [vmem:[%s10574_s5 + $0x19f0] sm:$0xff] }
  0xe3   : > { %v2097_v32 = vld [vmem:[%s10574_s5 + $0x1a00] sm:$0xff]  ;;  %2094 = vst [vmem:[%s10579_s6 + $0xcf0] sm:$0xff] %v2093_v30  ;;  %2096 = vst [vmem:[%s10579_s6 + $0xcf8] sm:$0xff] %v2095_v31  ;;  %v2099_v33 = vld [vmem:[%s10574_s5 + $0x1a10] sm:$0xff] }
  0xe4   : > { %2098 = vst [vmem:[%s10579_s6 + $0xd00] sm:$0xff] %v2097_v32  ;;  %v2101_v34 = vld [vmem:[%s10574_s5 + $0x1a20] sm:$0xff]  ;;  %v2103_v35 = vld [vmem:[%s10574_s5 + $0x1a30] sm:$0xff]  ;;  %2100 = vst [vmem:[%s10579_s6 + $0xd08] sm:$0xff] %v2099_v33 }
  0xe5   : > { %2102 = vst [vmem:[%s10579_s6 + $0xd10] sm:$0xff] %v2101_v34  ;;  %2104 = vst [vmem:[%s10579_s6 + $0xd18] sm:$0xff] %v2103_v35  ;;  %v2105_v36 = vld [vmem:[%s10574_s5 + $0x1a40] sm:$0xff]  ;;  %v2107_v37 = vld [vmem:[%s10574_s5 + $0x1a50] sm:$0xff] }
  0xe6   : > { %v2109_v38 = vld [vmem:[%s10574_s5 + $0x1a60] sm:$0xff]  ;;  %2106 = vst [vmem:[%s10579_s6 + $0xd20] sm:$0xff] %v2105_v36  ;;  %2108 = vst [vmem:[%s10579_s6 + $0xd28] sm:$0xff] %v2107_v37  ;;  %v2111_v39 = vld [vmem:[%s10574_s5 + $0x1a70] sm:$0xff] }
  0xe7   : > { %2110 = vst [vmem:[%s10579_s6 + $0xd30] sm:$0xff] %v2109_v38  ;;  %v2113_v40 = vld [vmem:[%s10574_s5 + $0x1a80] sm:$0xff]  ;;  %v2115_v41 = vld [vmem:[%s10574_s5 + $0x1a90] sm:$0xff]  ;;  %2112 = vst [vmem:[%s10579_s6 + $0xd38] sm:$0xff] %v2111_v39 }
  0xe8   : > { %2114 = vst [vmem:[%s10579_s6 + $0xd40] sm:$0xff] %v2113_v40  ;;  %2116 = vst [vmem:[%s10579_s6 + $0xd48] sm:$0xff] %v2115_v41  ;;  %v2117_v42 = vld [vmem:[%s10574_s5 + $0x1aa0] sm:$0xff]  ;;  %v2119_v43 = vld [vmem:[%s10574_s5 + $0x1ab0] sm:$0xff] }
  0xe9   : > { %v2121_v44 = vld [vmem:[%s10574_s5 + $0x1ac0] sm:$0xff]  ;;  %2118 = vst [vmem:[%s10579_s6 + $0xd50] sm:$0xff] %v2117_v42  ;;  %2120 = vst [vmem:[%s10579_s6 + $0xd58] sm:$0xff] %v2119_v43  ;;  %v2123_v45 = vld [vmem:[%s10574_s5 + $0x1ad0] sm:$0xff] }
  0xea   : > { %2122 = vst [vmem:[%s10579_s6 + $0xd60] sm:$0xff] %v2121_v44  ;;  %v2125_v46 = vld [vmem:[%s10574_s5 + $0x1ae0] sm:$0xff]  ;;  %v2127_v47 = vld [vmem:[%s10574_s5 + $0x1af0] sm:$0xff]  ;;  %2124 = vst [vmem:[%s10579_s6 + $0xd68] sm:$0xff] %v2123_v45 }
  0xeb   : > { %2126 = vst [vmem:[%s10579_s6 + $0xd70] sm:$0xff] %v2125_v46  ;;  %2128 = vst [vmem:[%s10579_s6 + $0xd78] sm:$0xff] %v2127_v47  ;;  %v2129_v48 = vld [vmem:[%s10574_s5 + $0x1b00] sm:$0xff]  ;;  %v2131_v49 = vld [vmem:[%s10574_s5 + $0x1b10] sm:$0xff] }
  0xec   : > { %v2133_v50 = vld [vmem:[%s10574_s5 + $0x1b20] sm:$0xff]  ;;  %2130 = vst [vmem:[%s10579_s6 + $0xd80] sm:$0xff] %v2129_v48  ;;  %2132 = vst [vmem:[%s10579_s6 + $0xd88] sm:$0xff] %v2131_v49  ;;  %v2135_v51 = vld [vmem:[%s10574_s5 + $0x1b30] sm:$0xff] }
  0xed   : > { %2134 = vst [vmem:[%s10579_s6 + $0xd90] sm:$0xff] %v2133_v50  ;;  %v2137_v52 = vld [vmem:[%s10574_s5 + $0x1b40] sm:$0xff]  ;;  %v2139_v53 = vld [vmem:[%s10574_s5 + $0x1b50] sm:$0xff]  ;;  %2136 = vst [vmem:[%s10579_s6 + $0xd98] sm:$0xff] %v2135_v51 }
  0xee   : > { %2138 = vst [vmem:[%s10579_s6 + $0xda0] sm:$0xff] %v2137_v52  ;;  %2140 = vst [vmem:[%s10579_s6 + $0xda8] sm:$0xff] %v2139_v53  ;;  %v2141_v54 = vld [vmem:[%s10574_s5 + $0x1b60] sm:$0xff]  ;;  %v2143_v55 = vld [vmem:[%s10574_s5 + $0x1b70] sm:$0xff] }
  0xef   : > { %v2145_v56 = vld [vmem:[%s10574_s5 + $0x1b80] sm:$0xff]  ;;  %2142 = vst [vmem:[%s10579_s6 + $0xdb0] sm:$0xff] %v2141_v54  ;;  %2144 = vst [vmem:[%s10579_s6 + $0xdb8] sm:$0xff] %v2143_v55  ;;  %v2147_v57 = vld [vmem:[%s10574_s5 + $0x1b90] sm:$0xff] }
  0xf0   : > { %2146 = vst [vmem:[%s10579_s6 + $0xdc0] sm:$0xff] %v2145_v56  ;;  %v2149_v58 = vld [vmem:[%s10574_s5 + $0x1ba0] sm:$0xff]  ;;  %v2151_v59 = vld [vmem:[%s10574_s5 + $0x1bb0] sm:$0xff]  ;;  %2148 = vst [vmem:[%s10579_s6 + $0xdc8] sm:$0xff] %v2147_v57 }
  0xf1   : > { %2150 = vst [vmem:[%s10579_s6 + $0xdd0] sm:$0xff] %v2149_v58  ;;  %2152 = vst [vmem:[%s10579_s6 + $0xdd8] sm:$0xff] %v2151_v59  ;;  %v2153_v60 = vld [vmem:[%s10574_s5 + $0x1bc0] sm:$0xff]  ;;  %v2155_v61 = vld [vmem:[%s10574_s5 + $0x1bd0] sm:$0xff] }
  0xf2   : > { %v2157_v62 = vld [vmem:[%s10574_s5 + $0x1be0] sm:$0xff]  ;;  %2154 = vst [vmem:[%s10579_s6 + $0xde0] sm:$0xff] %v2153_v60  ;;  %2156 = vst [vmem:[%s10579_s6 + $0xde8] sm:$0xff] %v2155_v61  ;;  %v2159_v63 = vld [vmem:[%s10574_s5 + $0x1bf0] sm:$0xff] }
  0xf3   : > { %2158 = vst [vmem:[%s10579_s6 + $0xdf0] sm:$0xff] %v2157_v62  ;;  %v2161_v0 = vld [vmem:[%s10574_s5 + $0x1c00] sm:$0xff]  ;;  %v2163_v1 = vld [vmem:[%s10574_s5 + $0x1c10] sm:$0xff]  ;;  %2160 = vst [vmem:[%s10579_s6 + $0xdf8] sm:$0xff] %v2159_v63 }
  0xf4   : > { %2162 = vst [vmem:[%s10579_s6 + $0xe00] sm:$0xff] %v2161_v0  ;;  %2164 = vst [vmem:[%s10579_s6 + $0xe08] sm:$0xff] %v2163_v1  ;;  %v2165_v2 = vld [vmem:[%s10574_s5 + $0x1c20] sm:$0xff]  ;;  %v2167_v3 = vld [vmem:[%s10574_s5 + $0x1c30] sm:$0xff] }
  0xf5   : > { %v2169_v4 = vld [vmem:[%s10574_s5 + $0x1c40] sm:$0xff]  ;;  %2166 = vst [vmem:[%s10579_s6 + $0xe10] sm:$0xff] %v2165_v2  ;;  %2168 = vst [vmem:[%s10579_s6 + $0xe18] sm:$0xff] %v2167_v3  ;;  %v2171_v5 = vld [vmem:[%s10574_s5 + $0x1c50] sm:$0xff] }
  0xf6   : > { %2170 = vst [vmem:[%s10579_s6 + $0xe20] sm:$0xff] %v2169_v4  ;;  %v2173_v6 = vld [vmem:[%s10574_s5 + $0x1c60] sm:$0xff]  ;;  %v2175_v7 = vld [vmem:[%s10574_s5 + $0x1c70] sm:$0xff]  ;;  %2172 = vst [vmem:[%s10579_s6 + $0xe28] sm:$0xff] %v2171_v5 }
  0xf7   : > { %2174 = vst [vmem:[%s10579_s6 + $0xe30] sm:$0xff] %v2173_v6  ;;  %2176 = vst [vmem:[%s10579_s6 + $0xe38] sm:$0xff] %v2175_v7  ;;  %v2177_v8 = vld [vmem:[%s10574_s5 + $0x1c80] sm:$0xff]  ;;  %v2179_v9 = vld [vmem:[%s10574_s5 + $0x1c90] sm:$0xff] }
  0xf8   : > { %v2181_v10 = vld [vmem:[%s10574_s5 + $0x1ca0] sm:$0xff]  ;;  %2178 = vst [vmem:[%s10579_s6 + $0xe40] sm:$0xff] %v2177_v8  ;;  %2180 = vst [vmem:[%s10579_s6 + $0xe48] sm:$0xff] %v2179_v9  ;;  %v2183_v11 = vld [vmem:[%s10574_s5 + $0x1cb0] sm:$0xff] }
  0xf9   : > { %2182 = vst [vmem:[%s10579_s6 + $0xe50] sm:$0xff] %v2181_v10  ;;  %v2185_v12 = vld [vmem:[%s10574_s5 + $0x1cc0] sm:$0xff]  ;;  %v2187_v13 = vld [vmem:[%s10574_s5 + $0x1cd0] sm:$0xff]  ;;  %2184 = vst [vmem:[%s10579_s6 + $0xe58] sm:$0xff] %v2183_v11 }
  0xfa   : > { %2186 = vst [vmem:[%s10579_s6 + $0xe60] sm:$0xff] %v2185_v12  ;;  %2188 = vst [vmem:[%s10579_s6 + $0xe68] sm:$0xff] %v2187_v13  ;;  %v2189_v14 = vld [vmem:[%s10574_s5 + $0x1ce0] sm:$0xff]  ;;  %v2191_v15 = vld [vmem:[%s10574_s5 + $0x1cf0] sm:$0xff] }
  0xfb   : > { %v2193_v16 = vld [vmem:[%s10574_s5 + $0x1d00] sm:$0xff]  ;;  %2190 = vst [vmem:[%s10579_s6 + $0xe70] sm:$0xff] %v2189_v14  ;;  %2192 = vst [vmem:[%s10579_s6 + $0xe78] sm:$0xff] %v2191_v15  ;;  %v2195_v17 = vld [vmem:[%s10574_s5 + $0x1d10] sm:$0xff] }
  0xfc   : > { %2194 = vst [vmem:[%s10579_s6 + $0xe80] sm:$0xff] %v2193_v16  ;;  %v2197_v18 = vld [vmem:[%s10574_s5 + $0x1d20] sm:$0xff]  ;;  %v2199_v19 = vld [vmem:[%s10574_s5 + $0x1d30] sm:$0xff]  ;;  %2196 = vst [vmem:[%s10579_s6 + $0xe88] sm:$0xff] %v2195_v17 }
  0xfd   : > { %2198 = vst [vmem:[%s10579_s6 + $0xe90] sm:$0xff] %v2197_v18  ;;  %2200 = vst [vmem:[%s10579_s6 + $0xe98] sm:$0xff] %v2199_v19  ;;  %v2201_v20 = vld [vmem:[%s10574_s5 + $0x1d40] sm:$0xff]  ;;  %v2203_v21 = vld [vmem:[%s10574_s5 + $0x1d50] sm:$0xff] }
  0xfe   : > { %v2205_v22 = vld [vmem:[%s10574_s5 + $0x1d60] sm:$0xff]  ;;  %2202 = vst [vmem:[%s10579_s6 + $0xea0] sm:$0xff] %v2201_v20  ;;  %2204 = vst [vmem:[%s10579_s6 + $0xea8] sm:$0xff] %v2203_v21  ;;  %v2207_v23 = vld [vmem:[%s10574_s5 + $0x1d70] sm:$0xff] }
  0xff   : > { %2206 = vst [vmem:[%s10579_s6 + $0xeb0] sm:$0xff] %v2205_v22  ;;  %v2209_v24 = vld [vmem:[%s10574_s5 + $0x1d80] sm:$0xff]  ;;  %v2211_v25 = vld [vmem:[%s10574_s5 + $0x1d90] sm:$0xff]  ;;  %2208 = vst [vmem:[%s10579_s6 + $0xeb8] sm:$0xff] %v2207_v23 }
 0x100   : > { %2210 = vst [vmem:[%s10579_s6 + $0xec0] sm:$0xff] %v2209_v24  ;;  %2212 = vst [vmem:[%s10579_s6 + $0xec8] sm:$0xff] %v2211_v25  ;;  %v2213_v26 = vld [vmem:[%s10574_s5 + $0x1da0] sm:$0xff]  ;;  %v2215_v27 = vld [vmem:[%s10574_s5 + $0x1db0] sm:$0xff] }
 0x101   : > { %v2217_v28 = vld [vmem:[%s10574_s5 + $0x1dc0] sm:$0xff]  ;;  %2214 = vst [vmem:[%s10579_s6 + $0xed0] sm:$0xff] %v2213_v26  ;;  %2216 = vst [vmem:[%s10579_s6 + $0xed8] sm:$0xff] %v2215_v27  ;;  %v2219_v29 = vld [vmem:[%s10574_s5 + $0x1dd0] sm:$0xff] }
 0x102   : > { %2218 = vst [vmem:[%s10579_s6 + $0xee0] sm:$0xff] %v2217_v28  ;;  %v2221_v30 = vld [vmem:[%s10574_s5 + $0x1de0] sm:$0xff]  ;;  %v2223_v31 = vld [vmem:[%s10574_s5 + $0x1df0] sm:$0xff]  ;;  %2220 = vst [vmem:[%s10579_s6 + $0xee8] sm:$0xff] %v2219_v29 }
 0x103   : > { %2222 = vst [vmem:[%s10579_s6 + $0xef0] sm:$0xff] %v2221_v30  ;;  %2224 = vst [vmem:[%s10579_s6 + $0xef8] sm:$0xff] %v2223_v31  ;;  %v2225_v32 = vld [vmem:[%s10574_s5 + $0x1e00] sm:$0xff]  ;;  %v2227_v33 = vld [vmem:[%s10574_s5 + $0x1e10] sm:$0xff] }
 0x104   : > { %v2229_v34 = vld [vmem:[%s10574_s5 + $0x1e20] sm:$0xff]  ;;  %2226 = vst [vmem:[%s10579_s6 + $0xf00] sm:$0xff] %v2225_v32  ;;  %2228 = vst [vmem:[%s10579_s6 + $0xf08] sm:$0xff] %v2227_v33  ;;  %v2231_v35 = vld [vmem:[%s10574_s5 + $0x1e30] sm:$0xff] }
 0x105   : > { %2230 = vst [vmem:[%s10579_s6 + $0xf10] sm:$0xff] %v2229_v34  ;;  %v2233_v36 = vld [vmem:[%s10574_s5 + $0x1e40] sm:$0xff]  ;;  %v2235_v37 = vld [vmem:[%s10574_s5 + $0x1e50] sm:$0xff]  ;;  %2232 = vst [vmem:[%s10579_s6 + $0xf18] sm:$0xff] %v2231_v35 }
 0x106   : > { %2234 = vst [vmem:[%s10579_s6 + $0xf20] sm:$0xff] %v2233_v36  ;;  %2236 = vst [vmem:[%s10579_s6 + $0xf28] sm:$0xff] %v2235_v37  ;;  %v2237_v38 = vld [vmem:[%s10574_s5 + $0x1e60] sm:$0xff]  ;;  %v2239_v39 = vld [vmem:[%s10574_s5 + $0x1e70] sm:$0xff] }
 0x107   : > { %v2241_v40 = vld [vmem:[%s10574_s5 + $0x1e80] sm:$0xff]  ;;  %2238 = vst [vmem:[%s10579_s6 + $0xf30] sm:$0xff] %v2237_v38  ;;  %2240 = vst [vmem:[%s10579_s6 + $0xf38] sm:$0xff] %v2239_v39  ;;  %v2243_v41 = vld [vmem:[%s10574_s5 + $0x1e90] sm:$0xff] }
 0x108   : > { %2242 = vst [vmem:[%s10579_s6 + $0xf40] sm:$0xff] %v2241_v40  ;;  %v2245_v42 = vld [vmem:[%s10574_s5 + $0x1ea0] sm:$0xff]  ;;  %v2247_v43 = vld [vmem:[%s10574_s5 + $0x1eb0] sm:$0xff]  ;;  %2244 = vst [vmem:[%s10579_s6 + $0xf48] sm:$0xff] %v2243_v41 }
 0x109   : > { %2246 = vst [vmem:[%s10579_s6 + $0xf50] sm:$0xff] %v2245_v42  ;;  %2248 = vst [vmem:[%s10579_s6 + $0xf58] sm:$0xff] %v2247_v43  ;;  %v2249_v44 = vld [vmem:[%s10574_s5 + $0x1ec0] sm:$0xff]  ;;  %v2251_v45 = vld [vmem:[%s10574_s5 + $0x1ed0] sm:$0xff] }
 0x10a   : > { %v2253_v46 = vld [vmem:[%s10574_s5 + $0x1ee0] sm:$0xff]  ;;  %2250 = vst [vmem:[%s10579_s6 + $0xf60] sm:$0xff] %v2249_v44  ;;  %2252 = vst [vmem:[%s10579_s6 + $0xf68] sm:$0xff] %v2251_v45  ;;  %v2255_v47 = vld [vmem:[%s10574_s5 + $0x1ef0] sm:$0xff] }
 0x10b   : > { %2254 = vst [vmem:[%s10579_s6 + $0xf70] sm:$0xff] %v2253_v46  ;;  %v2257_v48 = vld [vmem:[%s10574_s5 + $0x1f00] sm:$0xff]  ;;  %v2259_v49 = vld [vmem:[%s10574_s5 + $0x1f10] sm:$0xff]  ;;  %2256 = vst [vmem:[%s10579_s6 + $0xf78] sm:$0xff] %v2255_v47 }
 0x10c   : > { %2258 = vst [vmem:[%s10579_s6 + $0xf80] sm:$0xff] %v2257_v48  ;;  %2260 = vst [vmem:[%s10579_s6 + $0xf88] sm:$0xff] %v2259_v49  ;;  %v2261_v50 = vld [vmem:[%s10574_s5 + $0x1f20] sm:$0xff]  ;;  %v2263_v51 = vld [vmem:[%s10574_s5 + $0x1f30] sm:$0xff] }
 0x10d   : > { %v2265_v52 = vld [vmem:[%s10574_s5 + $0x1f40] sm:$0xff]  ;;  %2262 = vst [vmem:[%s10579_s6 + $0xf90] sm:$0xff] %v2261_v50  ;;  %2264 = vst [vmem:[%s10579_s6 + $0xf98] sm:$0xff] %v2263_v51  ;;  %v2267_v53 = vld [vmem:[%s10574_s5 + $0x1f50] sm:$0xff] }
 0x10e   : > { %2266 = vst [vmem:[%s10579_s6 + $0xfa0] sm:$0xff] %v2265_v52  ;;  %v2269_v54 = vld [vmem:[%s10574_s5 + $0x1f60] sm:$0xff]  ;;  %v2271_v55 = vld [vmem:[%s10574_s5 + $0x1f70] sm:$0xff]  ;;  %2268 = vst [vmem:[%s10579_s6 + $0xfa8] sm:$0xff] %v2267_v53 }
 0x10f   : > { %2270 = vst [vmem:[%s10579_s6 + $0xfb0] sm:$0xff] %v2269_v54  ;;  %2272 = vst [vmem:[%s10579_s6 + $0xfb8] sm:$0xff] %v2271_v55  ;;  %v2273_v56 = vld [vmem:[%s10574_s5 + $0x1f80] sm:$0xff]  ;;  %v2275_v57 = vld [vmem:[%s10574_s5 + $0x1f90] sm:$0xff] }
 0x110   : > { %v2277_v58 = vld [vmem:[%s10574_s5 + $0x1fa0] sm:$0xff]  ;;  %2274 = vst [vmem:[%s10579_s6 + $0xfc0] sm:$0xff] %v2273_v56  ;;  %2276 = vst [vmem:[%s10579_s6 + $0xfc8] sm:$0xff] %v2275_v57  ;;  %v2279_v59 = vld [vmem:[%s10574_s5 + $0x1fb0] sm:$0xff] }
 0x111   : > { %2278 = vst [vmem:[%s10579_s6 + $0xfd0] sm:$0xff] %v2277_v58  ;;  %v2281_v60 = vld [vmem:[%s10574_s5 + $0x1fc0] sm:$0xff]  ;;  %v2283_v61 = vld [vmem:[%s10574_s5 + $0x1fd0] sm:$0xff]  ;;  %2280 = vst [vmem:[%s10579_s6 + $0xfd8] sm:$0xff] %v2279_v59 }
 0x112   : > { %2282 = vst [vmem:[%s10579_s6 + $0xfe0] sm:$0xff] %v2281_v60  ;;  %2284 = vst [vmem:[%s10579_s6 + $0xfe8] sm:$0xff] %v2283_v61  ;;  %v2285_v62 = vld [vmem:[%s10574_s5 + $0x1fe0] sm:$0xff]  ;;  %v2287_v63 = vld [vmem:[%s10574_s5 + $0x1ff0] sm:$0xff] }
 0x113   : > { %2286 = vst [vmem:[%s10579_s6 + $0xff0] sm:$0xff] %v2285_v62  ;;  %2288 = vst [vmem:[%s10579_s6 + $0xff8] sm:$0xff] %v2287_v63 }
 0x114 PF: > { %p9022_p8 = scmp.ge.s32.totalorder %s10498_s19, 1  ;;  %p4394_p9 = scmp.lt.s32.totalorder %s10498_s19, 3 }
 0x116   : > { %p4395_p10 = pnand %p9022_p8, %p4394_p9 }
 0x117   : > { %s4401_s7 = sand.u32 (!%p4395_p10), 1, %s10482_s15  }
 0x118   : > { %4398 = sbr.rel (%p4395_p10) target bundleno = 1092 (0x444), region = 84  ;;  %s9023_s14 = sshll.u32 (!%p4395_p10), %s4401_s7, 12 }
 0x119   : > { %s11635_s23 = scalar_lea.vmem (!%p4395_p10), [#allocation2], %s9023_s14  ;;  %s9614_s21 = smul.u32 (!%p4395_p10), 24, %s4401_s7 }
 0x11b   : > { %s4442_s15 = scalar_lea.vmem (!%p4395_p10), [#allocation3], %s9614_s21 }
 0x11d   : > { %v11608_v0 = vld [vmem:[%s12507_s0] sm:$0xff]  ;;  %v11618_v2 = vld [vmem:[%s12507_s0 + $0x8] sm:$0xff]  ;;  %v9656_v8 = vld [vmem:[%s11635_s23 + $0x74] ss:$8 sps:$4 sm:$0xff]   ;;  %s9613_s7 = sshll.u32 (%p10561_p6), %s10490_s17, 3 }
 0x11e   : > { %v11613_v1 = vld [vmem:[%s12507_s0 + $0x80] sm:$0xff]  ;;  %v11629_v5 = vld [vmem:[%s12507_s0 + $0x88] sm:$0xff]  ;;  %v9658_v9 = vld [vmem:[%s11635_s23 + $0x174] ss:$8 sps:$4 sm:$0xff]   ;;  %7861 = vmatprep.subr.bf16.mxu0 %v9656_v8  ;;  %s8850_s27 = scalar_lea.vmem (%p10561_p6), %s12511_s4, %s9613_s7 }
 0x11f   : > { %v9026_v3 = vcombine.low %v11608_v0, %v11613_v1  ;;  %v9027_v4 = vcombine.high %v11608_v0, %v11613_v1  ;;  %v9028_v6 = vcombine.low %v11618_v2, %v11629_v5  ;;  %v9029_v7 = vcombine.high %v11618_v2, %v11629_v5  ;;  %v9660_v10 = vld [vmem:[%s11635_s23 + $0x70] ss:$8 sps:$4 sm:$0xff]   ;;  %7912 = vmatprep.subr.bf16.mxu1 %v9658_v9  ;;  %v9662_v12 = vld [vmem:[%s11635_s23 + $0x64] ss:$8 sps:$4 sm:$0xff]   ;;  %v9666_v14 = vld [vmem:[%s11635_s23 + $0x60] ss:$8 sps:$4 sm:$0xff]  }
 0x120   : > { %v9661_v11 = vld [vmem:[%s11635_s23 + $0x170] ss:$8 sps:$4 sm:$0xff]   ;;  %7862 = vmatpush1.bf16.msra.mxu0 %v9660_v10  ;;  %v9664_v13 = vld [vmem:[%s11635_s23 + $0x164] ss:$8 sps:$4 sm:$0xff]   ;;  %v9667_v15 = vld [vmem:[%s11635_s23 + $0x160] ss:$8 sps:$4 sm:$0xff]  }
 0x121   : > { %7893 = vmatprep.mubr.bf16.mxu0 %v9027_v4  ;;  %7944 = vmatprep.mubr.bf16.mxu1 %v9029_v7  ;;  %v9668_v16 = vld [vmem:[%s11635_s23 + $0x54] ss:$8 sps:$4 sm:$0xff]   ;;  %v9672_v18 = vld [vmem:[%s11635_s23 + $0x50] ss:$8 sps:$4 sm:$0xff]   ;;  %v9674_v20 = vld [vmem:[%s11635_s23 + $0x44] ss:$8 sps:$4 sm:$0xff]  }
 0x122   : > { %7913 = vmatpush1.bf16.msra.mxu1 %v9661_v11  ;;  %7863 = vmatprep.subr.bf16.mxu0 %v9662_v12  ;;  %v9670_v17 = vld [vmem:[%s11635_s23 + $0x154] ss:$8 sps:$4 sm:$0xff]   ;;  %v9673_v19 = vld [vmem:[%s11635_s23 + $0x150] ss:$8 sps:$4 sm:$0xff]   ;;  %v9676_v21 = vld [vmem:[%s11635_s23 + $0x144] ss:$8 sps:$4 sm:$0xff]  }
 0x123   : > { %7914 = vmatprep.subr.bf16.mxu1 %v9664_v13  ;;  %v9678_v22 = vld [vmem:[%s11635_s23 + $0x40] ss:$8 sps:$4 sm:$0xff]   ;;  %v9680_v24 = vld [vmem:[%s11635_s23 + $0x34] ss:$8 sps:$4 sm:$0xff]   ;;  %v9684_v26 = vld [vmem:[%s11635_s23 + $0x30] ss:$8 sps:$4 sm:$0xff]  }
 0x124   : > { %7864 = vmatpush1.bf16.msra.mxu0 %v9666_v14  ;;  %v9679_v23 = vld [vmem:[%s11635_s23 + $0x140] ss:$8 sps:$4 sm:$0xff]   ;;  %v9682_v25 = vld [vmem:[%s11635_s23 + $0x134] ss:$8 sps:$4 sm:$0xff]   ;;  %v9685_v27 = vld [vmem:[%s11635_s23 + $0x130] ss:$8 sps:$4 sm:$0xff]  }
 0x125   : > { %7865 = vmatprep.subr.bf16.mxu0 %v9668_v16  ;;  %v9686_v28 = vld [vmem:[%s11635_s23 + $0x24] ss:$8 sps:$4 sm:$0xff]   ;;  %v9690_v30 = vld [vmem:[%s11635_s23 + $0x20] ss:$8 sps:$4 sm:$0xff]   ;;  %v9692_v32 = vld [vmem:[%s11635_s23 + $0x14] ss:$8 sps:$4 sm:$0xff]  }
 0x126   : > { %7915 = vmatpush1.bf16.msra.mxu1 %v9667_v15  ;;  %v9688_v29 = vld [vmem:[%s11635_s23 + $0x124] ss:$8 sps:$4 sm:$0xff]   ;;  %v9691_v31 = vld [vmem:[%s11635_s23 + $0x120] ss:$8 sps:$4 sm:$0xff]   ;;  %v9694_v33 = vld [vmem:[%s11635_s23 + $0x114] ss:$8 sps:$4 sm:$0xff]  }
 0x127   : > { %7916 = vmatprep.subr.bf16.mxu1 %v9670_v17  ;;  %v9696_v34 = vld [vmem:[%s11635_s23 + $0x10] ss:$8 sps:$4 sm:$0xff]   ;;  %v9698_v36 = vld [vmem:[%s11635_s23 + $0x4] ss:$8 sps:$4 sm:$0xff]   ;;  %v9702_v38 = vld [vmem:[%s11635_s23] ss:$8 sps:$4 sm:$0xff]  }
 0x128   : > { %7866 = vmatpush1.bf16.msra.mxu0 %v9672_v18  ;;  %v9697_v35 = vld [vmem:[%s11635_s23 + $0x110] ss:$8 sps:$4 sm:$0xff]   ;;  %v9700_v37 = vld [vmem:[%s11635_s23 + $0x104] ss:$8 sps:$4 sm:$0xff]   ;;  %v9703_v39 = vld [vmem:[%s11635_s23 + $0x100] ss:$8 sps:$4 sm:$0xff]  }
 0x129   : > { %7867 = vmatprep.subr.bf16.mxu0 %v9674_v20  ;;  %v9704_v40 = vld [vmem:[%s11635_s23 + $0xf4] ss:$8 sps:$4 sm:$0xff]   ;;  %v9708_v42 = vld [vmem:[%s11635_s23 + $0xf0] ss:$8 sps:$4 sm:$0xff]   ;;  %v9710_v44 = vld [vmem:[%s11635_s23 + $0xe4] ss:$8 sps:$4 sm:$0xff]  }
 0x12a   : > { %7917 = vmatpush1.bf16.msra.mxu1 %v9673_v19  ;;  %v9706_v41 = vld [vmem:[%s11635_s23 + $0x1f4] ss:$8 sps:$4 sm:$0xff]   ;;  %v9709_v43 = vld [vmem:[%s11635_s23 + $0x1f0] ss:$8 sps:$4 sm:$0xff]   ;;  %v9712_v45 = vld [vmem:[%s11635_s23 + $0x1e4] ss:$8 sps:$4 sm:$0xff]  }
 0x12b   : > { %7918 = vmatprep.subr.bf16.mxu1 %v9676_v21  ;;  %v9714_v46 = vld [vmem:[%s11635_s23 + $0xe0] ss:$8 sps:$4 sm:$0xff]   ;;  %v9716_v48 = vld [vmem:[%s11635_s23 + $0xd4] ss:$8 sps:$4 sm:$0xff]   ;;  %v9720_v50 = vld [vmem:[%s11635_s23 + $0xd0] ss:$8 sps:$4 sm:$0xff]  }
 0x12c   : > { %7868 = vmatpush1.bf16.msra.mxu0 %v9678_v22  ;;  %v9715_v47 = vld [vmem:[%s11635_s23 + $0x1e0] ss:$8 sps:$4 sm:$0xff]   ;;  %v9718_v49 = vld [vmem:[%s11635_s23 + $0x1d4] ss:$8 sps:$4 sm:$0xff]   ;;  %v9721_v51 = vld [vmem:[%s11635_s23 + $0x1d0] ss:$8 sps:$4 sm:$0xff]  }
 0x12d   : > { %7869 = vmatprep.subr.bf16.mxu0 %v9680_v24  ;;  %v9722_v52 = vld [vmem:[%s11635_s23 + $0xc4] ss:$8 sps:$4 sm:$0xff]   ;;  %v9726_v54 = vld [vmem:[%s11635_s23 + $0xc0] ss:$8 sps:$4 sm:$0xff]   ;;  %v9728_v56 = vld [vmem:[%s11635_s23 + $0xb4] ss:$8 sps:$4 sm:$0xff]  }
 0x12e   : > { %7919 = vmatpush1.bf16.msra.mxu1 %v9679_v23  ;;  %v9724_v53 = vld [vmem:[%s11635_s23 + $0x1c4] ss:$8 sps:$4 sm:$0xff]   ;;  %v9727_v55 = vld [vmem:[%s11635_s23 + $0x1c0] ss:$8 sps:$4 sm:$0xff]   ;;  %v9730_v57 = vld [vmem:[%s11635_s23 + $0x1b4] ss:$8 sps:$4 sm:$0xff]  }
 0x12f   : > { %7920 = vmatprep.subr.bf16.mxu1 %v9682_v25  ;;  %v9732_v58 = vld [vmem:[%s11635_s23 + $0xb0] ss:$8 sps:$4 sm:$0xff]   ;;  %v9734_v60 = vld [vmem:[%s11635_s23 + $0xa4] ss:$8 sps:$4 sm:$0xff]   ;;  %v9738_v62 = vld [vmem:[%s11635_s23 + $0xa0] ss:$8 sps:$4 sm:$0xff]  }
 0x130   : > { %7870 = vmatpush1.bf16.msra.mxu0 %v9684_v26  ;;  %v9733_v59 = vld [vmem:[%s11635_s23 + $0x1b0] ss:$8 sps:$4 sm:$0xff]   ;;  %v9736_v61 = vld [vmem:[%s11635_s23 + $0x1a4] ss:$8 sps:$4 sm:$0xff]   ;;  %v9739_v63 = vld [vmem:[%s11635_s23 + $0x1a0] ss:$8 sps:$4 sm:$0xff]  }
 0x131   : > { %7871 = vmatprep.subr.bf16.mxu0 %v9686_v28  ;;  %v9740_v4 = vld [vmem:[%s11635_s23 + $0x94] ss:$8 sps:$4 sm:$0xff]   ;;  %v9744_v8 = vld [vmem:[%s11635_s23 + $0x90] ss:$8 sps:$4 sm:$0xff]   ;;  %v9746_v10 = vld [vmem:[%s11635_s23 + $0x84] ss:$8 sps:$4 sm:$0xff]  }
 0x132   : > { %7921 = vmatpush1.bf16.msra.mxu1 %v9685_v27  ;;  %v9742_v7 = vld [vmem:[%s11635_s23 + $0x194] ss:$8 sps:$4 sm:$0xff]   ;;  %v9745_v9 = vld [vmem:[%s11635_s23 + $0x190] ss:$8 sps:$4 sm:$0xff]   ;;  %v9748_v11 = vld [vmem:[%s11635_s23 + $0x184] ss:$8 sps:$4 sm:$0xff]  }
 0x133   : > { %7922 = vmatprep.subr.bf16.mxu1 %v9688_v29  ;;  %v9750_v12 = vld [vmem:[%s11635_s23 + $0x80] ss:$8 sps:$4 sm:$0xff]   ;;  %v9754_v14 = vld [vmem:[%s11635_s23 + $0x274] ss:$8 sps:$4 sm:$0xff]   ;;  %v9752_v18 = vld [vmem:[%s11635_s23 + $0x270] ss:$8 sps:$4 sm:$0xff]  }
 0x134   : > { %7872 = vmatpush1.bf16.msra.mxu0 %v9690_v30  ;;  %v9751_v13 = vld [vmem:[%s11635_s23 + $0x180] ss:$8 sps:$4 sm:$0xff]   ;;  %v9757_v15 = vld [vmem:[%s11635_s23 + $0x374] ss:$8 sps:$4 sm:$0xff]   ;;  %v9755_v19 = vld [vmem:[%s11635_s23 + $0x370] ss:$8 sps:$4 sm:$0xff]  }
 0x135   : > { %7873 = vmatprep.subr.bf16.mxu0 %v9692_v32  ;;  %v4501_v16 = vld [vmem:[%s12507_s0 + $0x100] sm:$0xff]  ;;  %v4502_v17 = vld [vmem:[%s12507_s0 + $0x108] sm:$0xff]  ;;  %v9766_v26 = vld [vmem:[%s11635_s23 + $0x254] ss:$8 sps:$4 sm:$0xff]  }
 0x136   : > { %7923 = vmatpush1.bf16.msra.mxu1 %v9691_v31  ;;  %v9760_v20 = vld [vmem:[%s11635_s23 + $0x264] ss:$8 sps:$4 sm:$0xff]   ;;  %v9059_v22 = vcombine.high %v4501_v16, %v4501_v16  ;;  %v9061_v23 = vcombine.high %v4502_v17, %v4502_v17  ;;  %v9758_v24 = vld [vmem:[%s11635_s23 + $0x260] ss:$8 sps:$4 sm:$0xff]   ;;  %v9769_v27 = vld [vmem:[%s11635_s23 + $0x354] ss:$8 sps:$4 sm:$0xff]   ;;  %v9058_v5 = vcombine.low %v4501_v16, %v4501_v16 }
 0x137   : > { %7924 = vmatprep.subr.bf16.mxu1 %v9694_v33  ;;  %v9763_v21 = vld [vmem:[%s11635_s23 + $0x364] ss:$8 sps:$4 sm:$0xff]   ;;  %v9761_v25 = vld [vmem:[%s11635_s23 + $0x360] ss:$8 sps:$4 sm:$0xff]   ;;  %v11726_v0 = vld [vmem:[%s12507_s0 + $0x10] sm:$0xff] }
 0x138   : > { %7874 = vmatpush1.bf16.msra.mxu0 %v9696_v34  ;;  %v11731_v1 = vld [vmem:[%s12507_s0 + $0x90] sm:$0xff]  ;;  %v9772_v28 = vld [vmem:[%s11635_s23 + $0x244] ss:$8 sps:$4 sm:$0xff]   ;;  %v9770_v31 = vld [vmem:[%s11635_s23 + $0x240] ss:$8 sps:$4 sm:$0xff]  }
 0x139   : > { %7875 = vmatprep.subr.bf16.mxu0 %v9698_v36  ;;  %v9764_v2 = vld [vmem:[%s11635_s23 + $0x250] ss:$8 sps:$4 sm:$0xff]   ;;  %v9775_v29 = vld [vmem:[%s11635_s23 + $0x344] ss:$8 sps:$4 sm:$0xff]   ;;  %v9031_v30 = vcombine.high %v11726_v0, %v11731_v1  ;;  %v9773_v32 = vld [vmem:[%s11635_s23 + $0x340] ss:$8 sps:$4 sm:$0xff]  }
 0x13a   : > { %7925 = vmatpush1.bf16.msra.mxu1 %v9697_v35  ;;  %v9778_v33 = vld [vmem:[%s11635_s23 + $0x234] ss:$8 sps:$4 sm:$0xff]   ;;  %v9776_v35 = vld [vmem:[%s11635_s23 + $0x230] ss:$8 sps:$4 sm:$0xff]   ;;  %v9833_v16 = vld [vmem:[%s11635_s23 + $0x2a0] ss:$8 sps:$4 sm:$0xff]  }
 0x13b   : > { %7926 = vmatprep.subr.bf16.mxu1 %v9700_v37  ;;  %v9781_v34 = vld [vmem:[%s11635_s23 + $0x334] ss:$8 sps:$4 sm:$0xff]   ;;  %v9779_v36 = vld [vmem:[%s11635_s23 + $0x330] ss:$8 sps:$4 sm:$0xff]   ;;  %v9784_v37 = vld [vmem:[%s11635_s23 + $0x224] ss:$8 sps:$4 sm:$0xff]  }
 0x13c   : > { %7876 = vmatpush1.bf16.msra.mxu0 %v9702_v38  ;;  %v9787_v38 = vld [vmem:[%s11635_s23 + $0x324] ss:$8 sps:$4 sm:$0xff]  }
 0x13d   : > { %7877 = vmatprep.subr.bf16.mxu0 %v9704_v40  ;;  %v9782_v40 = vld [vmem:[%s11635_s23 + $0x220] ss:$8 sps:$4 sm:$0xff]  }
 0x13e   : > { %7927 = vmatpush1.bf16.msra.mxu1 %v9703_v39  ;;  %v11750_v39 = vld [vmem:[%s12507_s0 + $0x18] sm:$0xff] }
 0x13f   : > { %7928 = vmatprep.subr.bf16.mxu1 %v9706_v41  ;;  %v9785_v41 = vld [vmem:[%s11635_s23 + $0x320] ss:$8 sps:$4 sm:$0xff]  }
 0x140   : > { %7878 = vmatpush2.bf16.msra.mxu0 %v9708_v42  ;;  %v9790_v42 = vld [vmem:[%s11635_s23 + $0x214] ss:$8 sps:$4 sm:$0xff]  }
 0x141   : > { %7879 = vmatprep.subr.bf16.mxu0 %v9710_v44  ;;  %v11759_v44 = vld [vmem:[%s12507_s0 + $0x98] sm:$0xff] }
 0x142   : > { %7929 = vmatpush2.bf16.msra.mxu1 %v9709_v43  ;;  %v9793_v43 = vld [vmem:[%s11635_s23 + $0x314] ss:$8 sps:$4 sm:$0xff]  }
 0x143   : > { %7930 = vmatprep.subr.bf16.mxu1 %v9712_v45  ;;  %v9033_v45 = vcombine.high %v11750_v39, %v11759_v44 }
 0x144   : > { %7880 = vmatpush2.bf16.msra.mxu0 %v9714_v46  ;;  %v9788_v46 = vld [vmem:[%s11635_s23 + $0x210] ss:$8 sps:$4 sm:$0xff]  }
 0x145   : > { %7881 = vmatprep.subr.bf16.mxu0 %v9716_v48  ;;  %v9796_v48 = vld [vmem:[%s11635_s23 + $0x204] ss:$8 sps:$4 sm:$0xff]  }
 0x146   : > { %7931 = vmatpush2.bf16.msra.mxu1 %v9715_v47  ;;  %v9791_v47 = vld [vmem:[%s11635_s23 + $0x310] ss:$8 sps:$4 sm:$0xff]  }
 0x147   : > { %7932 = vmatprep.subr.bf16.mxu1 %v9718_v49  ;;  %v9799_v49 = vld [vmem:[%s11635_s23 + $0x304] ss:$8 sps:$4 sm:$0xff]  }
 0x148   : > { %7882 = vmatpush2.bf16.msra.mxu0 %v9720_v50  ;;  %v9794_v50 = vld [vmem:[%s11635_s23 + $0x200] ss:$8 sps:$4 sm:$0xff]  }
 0x149   : > { %7883 = vmatprep.subr.bf16.mxu0 %v9722_v52  ;;  %v9802_v52 = vld [vmem:[%s11635_s23 + $0x2f4] ss:$8 sps:$4 sm:$0xff]  }
 0x14a   : > { %7933 = vmatpush2.bf16.msra.mxu1 %v9721_v51  ;;  %v9797_v51 = vld [vmem:[%s11635_s23 + $0x300] ss:$8 sps:$4 sm:$0xff]  }
 0x14b   : > { %7934 = vmatprep.subr.bf16.mxu1 %v9724_v53  ;;  %v9805_v53 = vld [vmem:[%s11635_s23 + $0x3f4] ss:$8 sps:$4 sm:$0xff]  }
 0x14c   : > { %7884 = vmatpush2.bf16.msra.mxu0 %v9726_v54  ;;  %v9800_v54 = vld [vmem:[%s11635_s23 + $0x2f0] ss:$8 sps:$4 sm:$0xff]  }
 0x14d   : > { %7885 = vmatprep.subr.bf16.mxu0 %v9728_v56  ;;  %v9808_v56 = vld [vmem:[%s11635_s23 + $0x2e4] ss:$8 sps:$4 sm:$0xff]  }
 0x14e   : > { %7935 = vmatpush2.bf16.msra.mxu1 %v9727_v55  ;;  %v9803_v55 = vld [vmem:[%s11635_s23 + $0x3f0] ss:$8 sps:$4 sm:$0xff]  }
 0x14f   : > { %7936 = vmatprep.subr.bf16.mxu1 %v9730_v57  ;;  %v9811_v57 = vld [vmem:[%s11635_s23 + $0x3e4] ss:$8 sps:$4 sm:$0xff]  }
 0x150   : > { %7886 = vmatpush2.bf16.msra.mxu0 %v9732_v58  ;;  %v9806_v58 = vld [vmem:[%s11635_s23 + $0x2e0] ss:$8 sps:$4 sm:$0xff]  }
 0x151   : > { %7887 = vmatprep.subr.bf16.mxu0 %v9734_v60  ;;  %v9814_v60 = vld [vmem:[%s11635_s23 + $0x2d4] ss:$8 sps:$4 sm:$0xff]  }
 0x152   : > { %7937 = vmatpush2.bf16.msra.mxu1 %v9733_v59  ;;  %v9809_v59 = vld [vmem:[%s11635_s23 + $0x3e0] ss:$8 sps:$4 sm:$0xff]  }
 0x153   : > { %7938 = vmatprep.subr.bf16.mxu1 %v9736_v61  ;;  %v9817_v61 = vld [vmem:[%s11635_s23 + $0x3d4] ss:$8 sps:$4 sm:$0xff]  }
 0x154   : > { %7888 = vmatpush2.bf16.msra.mxu0 %v9738_v62  ;;  %v9812_v62 = vld [vmem:[%s11635_s23 + $0x2d0] ss:$8 sps:$4 sm:$0xff]  }
 0x155   : > { %7889 = vmatprep.subr.bf16.mxu0 %v9740_v4  ;;  %v9820_v4 = vld [vmem:[%s11635_s23 + $0x2c4] ss:$8 sps:$4 sm:$0xff]  }
 0x156   : > { %7939 = vmatpush2.bf16.msra.mxu1 %v9739_v63  ;;  %v9815_v63 = vld [vmem:[%s11635_s23 + $0x3d0] ss:$8 sps:$4 sm:$0xff]  }
 0x157   : > { %7940 = vmatprep.subr.bf16.mxu1 %v9742_v7  ;;  %v9823_v7 = vld [vmem:[%s11635_s23 + $0x3c4] ss:$8 sps:$4 sm:$0xff]  }
 0x158   : > { %7890 = vmatpush2.bf16.msra.mxu0 %v9744_v8  ;;  %v9818_v8 = vld [vmem:[%s11635_s23 + $0x2c0] ss:$8 sps:$4 sm:$0xff]  }
 0x159   : > { %7891 = vmatprep.subr.bf16.mxu0 %v9746_v10  ;;  %v9826_v10 = vld [vmem:[%s11635_s23 + $0x2b4] ss:$8 sps:$4 sm:$0xff]  }
 0x15a   : > { %7941 = vmatpush2.bf16.msra.mxu1 %v9745_v9  ;;  %v9821_v9 = vld [vmem:[%s11635_s23 + $0x3c0] ss:$8 sps:$4 sm:$0xff]  }
 0x15b   : > { %7942 = vmatprep.subr.bf16.mxu1 %v9748_v11  ;;  %v9829_v11 = vld [vmem:[%s11635_s23 + $0x3b4] ss:$8 sps:$4 sm:$0xff]  }
 0x15c   : > { %7892 = vmatpush2.bf16.msra.mxu0 %v9750_v12  ;;  %v9824_v12 = vld [vmem:[%s11635_s23 + $0x2b0] ss:$8 sps:$4 sm:$0xff]  }
 0x15d   : > { %7963 = vmatprep.subr.bf16.mxu0 %v9754_v14  ;;  %v9835_v14 = vld [vmem:[%s11635_s23 + $0x2a4] ss:$8 sps:$4 sm:$0xff]  }
 0x15e   : > { %7943 = vmatpush2.bf16.msra.mxu1 %v9751_v13  ;;  %v9827_v13 = vld [vmem:[%s11635_s23 + $0x3b0] ss:$8 sps:$4 sm:$0xff]  }
 0x15f   : > { %8014 = vmatprep.subr.bf16.mxu1 %v9757_v15  ;;  %7894 = vmatmul.mubr.bf16.vlgmr.msra.gmra.mxu0 %v9026_v3  ;;  %v9767_v3 = vld [vmem:[%s11635_s23 + $0x350] ss:$8 sps:$4 sm:$0xff]   ;;  %v9838_v15 = vld [vmem:[%s11635_s23 + $0x3a4] ss:$8 sps:$4 sm:$0xff]  }
 0x160   : > { %7964 = vmatpush1.bf16.msra.mxu0 %v9752_v18  ;;  %7903 = vmatprep.mubr.bf16.mxu0 %v9059_v22  ;;  %v9842_v18 = vld [vmem:[%s11635_s23 + $0x294] ss:$8 sps:$4 sm:$0xff]   ;;  %v9848_v22 = vld [vmem:[%s11635_s23 + $0x284] ss:$8 sps:$4 sm:$0xff]  }
 0x161   : > { %7945 = vmatmul.mubr.bf16.vlgmr.msra.gmra.mxu1 %v9028_v6  ;;  %7965 = vmatprep.subr.bf16.mxu0 %v9760_v20  ;;  %v9060_v6 = vcombine.low %v4502_v17, %v4502_v17  ;;  %v9836_v17 = vld [vmem:[%s11635_s23 + $0x3a0] ss:$8 sps:$4 sm:$0xff]   ;;  %v9840_v20 = vld [vmem:[%s11635_s23 + $0x290] ss:$8 sps:$4 sm:$0xff]  }
 0x162   : > { %8015 = vmatpush1.bf16.msra.mxu1 %v9755_v19  ;;  %7954 = vmatprep.mubr.bf16.mxu1 %v9061_v23  ;;  %v9845_v19 = vld [vmem:[%s11635_s23 + $0x394] ss:$8 sps:$4 sm:$0xff]   ;;  %v9851_v23 = vld [vmem:[%s11635_s23 + $0x384] ss:$8 sps:$4 sm:$0xff]  }
 0x163   : > { %8016 = vmatprep.subr.bf16.mxu1 %v9763_v21  ;;  %v9843_v21 = vld [vmem:[%s11635_s23 + $0x390] ss:$8 sps:$4 sm:$0xff]  }
 0x164   : > { %7966 = vmatpush1.bf16.msra.mxu0 %v9758_v24  ;;  %v9846_v24 = vld [vmem:[%s11635_s23 + $0x280] ss:$8 sps:$4 sm:$0xff]  }
 0x165   : > { %7967 = vmatprep.subr.bf16.mxu0 %v9766_v26  ;;  %v9854_v26 = vld [vmem:[%s11635_s23 + $0x474] ss:$8 sps:$4 sm:$0xff]  }
 0x166   : > { %8017 = vmatpush1.bf16.msra.mxu1 %v9761_v25  ;;  %v9849_v25 = vld [vmem:[%s11635_s23 + $0x380] ss:$8 sps:$4 sm:$0xff]  }
 0x167   : > { %8018 = vmatprep.subr.bf16.mxu1 %v9769_v27  ;;  %7904 = vmatmul.mubr.bf16.gmra.mxu0 %v9058_v5  ;;  %v9857_v27 = vld [vmem:[%s11635_s23 + $0x574] ss:$8 sps:$4 sm:$0xff]  }
 0x168   : > { %7968 = vmatpush1.bf16.msra.mxu0 %v9764_v2  ;;  %7995 = vmatprep.mubr.bf16.mxu0 %v9031_v30  ;;  %v9030_v2 = vcombine.low %v11726_v0, %v11731_v1  ;;  %v4503_v5 = vld [vmem:[%s12507_s0 + $0x110] sm:$0xff]  ;;  %v9860_v0 = vld [vmem:[%s11635_s23 + $0x464] ss:$8 sps:$4 sm:$0xff]  }
 0x169   : > { %7955 = vmatmul.mubr.bf16.gmra.mxu1 %v9060_v6  ;;  %7969 = vmatprep.subr.bf16.mxu0 %v9772_v28  ;;  %v4504_v6 = vld [vmem:[%s12507_s0 + $0x118] sm:$0xff]  ;;  %v9863_v1 = vld [vmem:[%s11635_s23 + $0x564] ss:$8 sps:$4 sm:$0xff]   ;;  %v9063_v30 = vcombine.high %v4503_v5, %v4503_v5 }
 0x16a   : > { %8019 = vmatpush1.bf16.msra.mxu1 %v9767_v3  ;;  %8046 = vmatprep.mubr.bf16.mxu1 %v9033_v45  ;;  %v9032_v3 = vcombine.low %v11750_v39, %v11759_v44  ;;  %v9852_v28 = vld [vmem:[%s11635_s23 + $0x470] ss:$8 sps:$4 sm:$0xff]   ;;  %v9062_v39 = vcombine.low %v4503_v5, %v4503_v5  ;;  %v9876_v44 = vld [vmem:[%s11635_s23 + $0x444] ss:$8 sps:$4 sm:$0xff]   ;;  %v9934_v5 = vld [vmem:[%s11635_s23 + $0x4a0] ss:$8 sps:$4 sm:$0xff]  }
 0x16b   : > { %8020 = vmatprep.subr.bf16.mxu1 %v9775_v29  ;;  %v9855_v29 = vld [vmem:[%s11635_s23 + $0x570] ss:$8 sps:$4 sm:$0xff]   ;;  %v9879_v45 = vld [vmem:[%s11635_s23 + $0x544] ss:$8 sps:$4 sm:$0xff]  }
 0x16c   : > { %7970 = vmatpush1.bf16.msra.mxu0 %v9770_v31  ;;  %v9065_v31 = vcombine.high %v4504_v6, %v4504_v6 }
 0x16d   : > { %7971 = vmatprep.subr.bf16.mxu0 %v9778_v33  ;;  %v9861_v33 = vld [vmem:[%s11635_s23 + $0x560] ss:$8 sps:$4 sm:$0xff]  }
 0x16e   : > { %8021 = vmatpush1.bf16.msra.mxu1 %v9773_v32  ;;  %v9858_v32 = vld [vmem:[%s11635_s23 + $0x460] ss:$8 sps:$4 sm:$0xff]  }
 0x16f   : > { %8022 = vmatprep.subr.bf16.mxu1 %v9781_v34  ;;  %v9868_v34 = vld [vmem:[%s11635_s23 + $0x454] ss:$8 sps:$4 sm:$0xff]  }
 0x170   : > { %7972 = vmatpush1.bf16.msra.mxu0 %v9776_v35  ;;  %v9871_v35 = vld [vmem:[%s11635_s23 + $0x554] ss:$8 sps:$4 sm:$0xff]  }
 0x171   : > { %7973 = vmatprep.subr.bf16.mxu0 %v9784_v37  ;;  %v9869_v37 = vld [vmem:[%s11635_s23 + $0x550] ss:$8 sps:$4 sm:$0xff]  }
 0x172   : > { %8023 = vmatpush1.bf16.msra.mxu1 %v9779_v36  ;;  %v9866_v36 = vld [vmem:[%s11635_s23 + $0x450] ss:$8 sps:$4 sm:$0xff]  }
 0x173   : > { %8024 = vmatprep.subr.bf16.mxu1 %v9787_v38  ;;  %v11826_v38 = vld [vmem:[%s12507_s0 + $0x20] sm:$0xff] }
 0x174   : > { %7974 = vmatpush1.bf16.msra.mxu0 %v9782_v40  ;;  %v9064_v40 = vcombine.low %v4504_v6, %v4504_v6  ;;  %v9937_v6 = vld [vmem:[%s11635_s23 + $0x5a0] ss:$8 sps:$4 sm:$0xff]  }
 0x175   : > { %7975 = vmatprep.subr.bf16.mxu0 %v9790_v42  ;;  %v11836_v42 = vld [vmem:[%s12507_s0 + $0x28] sm:$0xff] }
 0x176   : > { %8025 = vmatpush1.bf16.msra.mxu1 %v9785_v41  ;;  %v11831_v41 = vld [vmem:[%s12507_s0 + $0xa0] sm:$0xff] }
 0x177   : > { %8026 = vmatprep.subr.bf16.mxu1 %v9793_v43  ;;  %v11841_v43 = vld [vmem:[%s12507_s0 + $0xa8] sm:$0xff] }
 0x178   : > { %7976 = vmatpush1.bf16.msra.mxu0 %v9788_v46  ;;  %v9035_v46 = vcombine.high %v11826_v38, %v11831_v41 }
 0x179   : > { %7977 = vmatprep.subr.bf16.mxu0 %v9796_v48  ;;  %v9874_v48 = vld [vmem:[%s11635_s23 + $0x440] ss:$8 sps:$4 sm:$0xff]  }
 0x17a   : > { %8027 = vmatpush1.bf16.msra.mxu1 %v9791_v47  ;;  %v9037_v47 = vcombine.high %v11836_v42, %v11841_v43 }
 0x17b   : > { %8028 = vmatprep.subr.bf16.mxu1 %v9799_v49  ;;  %v9877_v49 = vld [vmem:[%s11635_s23 + $0x540] ss:$8 sps:$4 sm:$0xff]  }
 0x17c   : > { %7978 = vmatpush1.bf16.msra.mxu0 %v9794_v50  ;;  %v9882_v50 = vld [vmem:[%s11635_s23 + $0x434] ss:$8 sps:$4 sm:$0xff]  }
 0x17d   : > { %7979 = vmatprep.subr.bf16.mxu0 %v9802_v52  ;;  %v9880_v52 = vld [vmem:[%s11635_s23 + $0x430] ss:$8 sps:$4 sm:$0xff]  }
 0x17e   : > { %8029 = vmatpush1.bf16.msra.mxu1 %v9797_v51  ;;  %v9885_v51 = vld [vmem:[%s11635_s23 + $0x534] ss:$8 sps:$4 sm:$0xff]  }
 0x17f   : > { %8030 = vmatprep.subr.bf16.mxu1 %v9805_v53  ;;  %v9883_v53 = vld [vmem:[%s11635_s23 + $0x530] ss:$8 sps:$4 sm:$0xff]  }
 0x180   : > { %7980 = vmatpush2.bf16.msra.mxu0 %v9800_v54  ;;  %v9888_v54 = vld [vmem:[%s11635_s23 + $0x424] ss:$8 sps:$4 sm:$0xff]  }
 0x181   : > { %7981 = vmatprep.subr.bf16.mxu0 %v9808_v56  ;;  %v9886_v56 = vld [vmem:[%s11635_s23 + $0x420] ss:$8 sps:$4 sm:$0xff]  }
 0x182   : > { %8031 = vmatpush2.bf16.msra.mxu1 %v9803_v55  ;;  %v9891_v55 = vld [vmem:[%s11635_s23 + $0x524] ss:$8 sps:$4 sm:$0xff]  }
 0x183   : > { %8032 = vmatprep.subr.bf16.mxu1 %v9811_v57  ;;  %v9889_v57 = vld [vmem:[%s11635_s23 + $0x520] ss:$8 sps:$4 sm:$0xff]  }
 0x184   : > { %7982 = vmatpush2.bf16.msra.mxu0 %v9806_v58  ;;  %v9894_v58 = vld [vmem:[%s11635_s23 + $0x414] ss:$8 sps:$4 sm:$0xff]  }
 0x185   : > { %7983 = vmatprep.subr.bf16.mxu0 %v9814_v60  ;;  %v9892_v60 = vld [vmem:[%s11635_s23 + $0x410] ss:$8 sps:$4 sm:$0xff]  }
 0x186   : > { %8033 = vmatpush2.bf16.msra.mxu1 %v9809_v59  ;;  %v9897_v59 = vld [vmem:[%s11635_s23 + $0x514] ss:$8 sps:$4 sm:$0xff]  }
 0x187   : > { %8034 = vmatprep.subr.bf16.mxu1 %v9817_v61  ;;  %v9895_v61 = vld [vmem:[%s11635_s23 + $0x510] ss:$8 sps:$4 sm:$0xff]  }
 0x188   : > { %7984 = vmatpush2.bf16.msra.mxu0 %v9812_v62  ;;  %v9900_v62 = vld [vmem:[%s11635_s23 + $0x404] ss:$8 sps:$4 sm:$0xff]  }
 0x189   : > { %7985 = vmatprep.subr.bf16.mxu0 %v9820_v4  ;;  %v9898_v4 = vld [vmem:[%s11635_s23 + $0x400] ss:$8 sps:$4 sm:$0xff]  }
 0x18a   : > { %8035 = vmatpush2.bf16.msra.mxu1 %v9815_v63  ;;  %v9903_v63 = vld [vmem:[%s11635_s23 + $0x504] ss:$8 sps:$4 sm:$0xff]  }
 0x18b   : > { %8036 = vmatprep.subr.bf16.mxu1 %v9823_v7  ;;  %v9901_v7 = vld [vmem:[%s11635_s23 + $0x500] ss:$8 sps:$4 sm:$0xff]  }
 0x18c   : > { %7986 = vmatpush2.bf16.msra.mxu0 %v9818_v8  ;;  %v9906_v8 = vld [vmem:[%s11635_s23 + $0x4f4] ss:$8 sps:$4 sm:$0xff]  }
 0x18d   : > { %7987 = vmatprep.subr.bf16.mxu0 %v9826_v10  ;;  %v9904_v10 = vld [vmem:[%s11635_s23 + $0x4f0] ss:$8 sps:$4 sm:$0xff]  }
 0x18e   : > { %8037 = vmatpush2.bf16.msra.mxu1 %v9821_v9  ;;  %v9909_v9 = vld [vmem:[%s11635_s23 + $0x5f4] ss:$8 sps:$4 sm:$0xff]  }
 0x18f   : > { %8038 = vmatprep.subr.bf16.mxu1 %v9829_v11  ;;  %v9907_v11 = vld [vmem:[%s11635_s23 + $0x5f0] ss:$8 sps:$4 sm:$0xff]  }
 0x190   : > { %7988 = vmatpush2.bf16.msra.mxu0 %v9824_v12  ;;  %v9912_v12 = vld [vmem:[%s11635_s23 + $0x4e4] ss:$8 sps:$4 sm:$0xff]  }
 0x191   : > { %7989 = vmatprep.subr.bf16.mxu0 %v9835_v14  ;;  %v9910_v14 = vld [vmem:[%s11635_s23 + $0x4e0] ss:$8 sps:$4 sm:$0xff]  }
 0x192   : > { %8039 = vmatpush2.bf16.msra.mxu1 %v9827_v13  ;;  %v9915_v13 = vld [vmem:[%s11635_s23 + $0x5e4] ss:$8 sps:$4 sm:$0xff]  }
 0x193   : > { %8040 = vmatprep.subr.bf16.mxu1 %v9838_v15  ;;  %v9913_v15 = vld [vmem:[%s11635_s23 + $0x5e0] ss:$8 sps:$4 sm:$0xff]  }
 0x194   : > { %7990 = vmatpush2.bf16.msra.mxu0 %v9833_v16  ;;  %v9918_v16 = vld [vmem:[%s11635_s23 + $0x4d4] ss:$8 sps:$4 sm:$0xff]  }
 0x195   : > { %7991 = vmatprep.subr.bf16.mxu0 %v9842_v18  ;;  %v9916_v18 = vld [vmem:[%s11635_s23 + $0x4d0] ss:$8 sps:$4 sm:$0xff]  }
 0x196   : > { %8041 = vmatpush2.bf16.msra.mxu1 %v9836_v17  ;;  %v9921_v17 = vld [vmem:[%s11635_s23 + $0x5d4] ss:$8 sps:$4 sm:$0xff]  }
 0x197   : > { %8042 = vmatprep.subr.bf16.mxu1 %v9845_v19  ;;  %v9919_v19 = vld [vmem:[%s11635_s23 + $0x5d0] ss:$8 sps:$4 sm:$0xff]  }
 0x198   : > { %7992 = vmatpush2.bf16.msra.mxu0 %v9840_v20  ;;  %v9924_v20 = vld [vmem:[%s11635_s23 + $0x4c4] ss:$8 sps:$4 sm:$0xff]  }
 0x199   : > { %7993 = vmatprep.subr.bf16.mxu0 %v9848_v22  ;;  %v9922_v22 = vld [vmem:[%s11635_s23 + $0x4c0] ss:$8 sps:$4 sm:$0xff]  }
 0x19a   : > { %8043 = vmatpush2.bf16.msra.mxu1 %v9843_v21  ;;  %v9927_v21 = vld [vmem:[%s11635_s23 + $0x5c4] ss:$8 sps:$4 sm:$0xff]  }
 0x19b   : > { %8044 = vmatprep.subr.bf16.mxu1 %v9851_v23  ;;  %v9925_v23 = vld [vmem:[%s11635_s23 + $0x5c0] ss:$8 sps:$4 sm:$0xff]  }
 0x19c   : > { %7994 = vmatpush2.bf16.msra.mxu0 %v9846_v24  ;;  %v9930_v24 = vld [vmem:[%s11635_s23 + $0x4b4] ss:$8 sps:$4 sm:$0xff]  }
 0x19d   : > { %8065 = vmatprep.subr.bf16.mxu0 %v9854_v26  ;;  %v9928_v26 = vld [vmem:[%s11635_s23 + $0x4b0] ss:$8 sps:$4 sm:$0xff]  }
 0x19e   : > { %8045 = vmatpush2.bf16.msra.mxu1 %v9849_v25  ;;  %v9933_v25 = vld [vmem:[%s11635_s23 + $0x5b4] ss:$8 sps:$4 sm:$0xff]  }
 0x19f   : > { %8116 = vmatprep.subr.bf16.mxu1 %v9857_v27  ;;  %7996 = vmatmul.mubr.bf16.vlgmr.msra.gmra.mxu0 %v9030_v2  ;;  %v9931_v27 = vld [vmem:[%s11635_s23 + $0x5b0] ss:$8 sps:$4 sm:$0xff]   ;;  %v9936_v2 = vld [vmem:[%s11635_s23 + $0x4a4] ss:$8 sps:$4 sm:$0xff]  }
 0x1a0   : > { %8066 = vmatpush1.bf16.msra.mxu0 %v9852_v28  ;;  %8005 = vmatprep.mubr.bf16.mxu0 %v9063_v30  ;;  %v9942_v28 = vld [vmem:[%s11635_s23 + $0x494] ss:$8 sps:$4 sm:$0xff]   ;;  %v9948_v30 = vld [vmem:[%s11635_s23 + $0x484] ss:$8 sps:$4 sm:$0xff]  }
 0x1a1   : > { %8047 = vmatmul.mubr.bf16.vlgmr.msra.gmra.mxu1 %v9032_v3  ;;  %8067 = vmatprep.subr.bf16.mxu0 %v9860_v0  ;;  %v9939_v3 = vld [vmem:[%s11635_s23 + $0x5a4] ss:$8 sps:$4 sm:$0xff]   ;;  %v9940_v0 = vld [vmem:[%s11635_s23 + $0x490] ss:$8 sps:$4 sm:$0xff]  }
 0x1a2   : > { %8117 = vmatpush1.bf16.msra.mxu1 %v9855_v29  ;;  %8056 = vmatprep.mubr.bf16.mxu1 %v9065_v31  ;;  %v9945_v29 = vld [vmem:[%s11635_s23 + $0x594] ss:$8 sps:$4 sm:$0xff]   ;;  %v9951_v31 = vld [vmem:[%s11635_s23 + $0x584] ss:$8 sps:$4 sm:$0xff]  }
 0x1a3   : > { %8118 = vmatprep.subr.bf16.mxu1 %v9863_v1  ;;  %v9943_v1 = vld [vmem:[%s11635_s23 + $0x590] ss:$8 sps:$4 sm:$0xff]  }
 0x1a4   : > { %8068 = vmatpush1.bf16.msra.mxu0 %v9858_v32  ;;  %v9946_v32 = vld [vmem:[%s11635_s23 + $0x480] ss:$8 sps:$4 sm:$0xff]  }
 0x1a5   : > { %8069 = vmatprep.subr.bf16.mxu0 %v9868_v34  ;;  %v9954_v34 = vld [vmem:[%s11635_s23 + $0x674] ss:$8 sps:$4 sm:$0xff]  }
 0x1a6   : > { %8119 = vmatpush1.bf16.msra.mxu1 %v9861_v33  ;;  %v9949_v33 = vld [vmem:[%s11635_s23 + $0x580] ss:$8 sps:$4 sm:$0xff]  }
 0x1a7   : > { %8120 = vmatprep.subr.bf16.mxu1 %v9871_v35  ;;  %8006 = vmatmul.mubr.bf16.gmra.mxu0 %v9062_v39  ;;  %v9957_v35 = vld [vmem:[%s11635_s23 + $0x774] ss:$8 sps:$4 sm:$0xff]   ;;  %v9036_v39 = vcombine.low %v11836_v42, %v11841_v43  ;;  %v9958_v43 = vld [vmem:[%s11635_s23 + $0x660] ss:$8 sps:$4 sm:$0xff]  }
 0x1a8   : > { %8070 = vmatpush1.bf16.msra.mxu0 %v9866_v36  ;;  %8097 = vmatprep.mubr.bf16.mxu0 %v9035_v46  ;;  %v9952_v36 = vld [vmem:[%s11635_s23 + $0x670] ss:$8 sps:$4 sm:$0xff]   ;;  %v9960_v46 = vld [vmem:[%s11635_s23 + $0x664] ss:$8 sps:$4 sm:$0xff]  }
 0x1a9   : > { %8057 = vmatmul.mubr.bf16.gmra.mxu1 %v9064_v40  ;;  %8071 = vmatprep.subr.bf16.mxu0 %v9876_v44  ;;  %v4505_v40 = vld [vmem:[%s12507_s0 + $0x120] sm:$0xff]  ;;  %v4506_v44 = vld [vmem:[%s12507_s0 + $0x128] sm:$0xff] }
 0x1aa   : > { %8121 = vmatpush1.bf16.msra.mxu1 %v9869_v37  ;;  %8148 = vmatprep.mubr.bf16.mxu1 %v9037_v47  ;;  %v9034_v37 = vcombine.low %v11826_v38, %v11831_v41  ;;  %v9963_v38 = vld [vmem:[%s11635_s23 + $0x764] ss:$8 sps:$4 sm:$0xff]   ;;  %v9067_v41 = vcombine.high %v4505_v40, %v4505_v40  ;;  %v9069_v42 = vcombine.high %v4506_v44, %v4506_v44  ;;  %v9961_v47 = vld [vmem:[%s11635_s23 + $0x760] ss:$8 sps:$4 sm:$0xff]  }
 0x1ab   : > { %8122 = vmatprep.subr.bf16.mxu1 %v9879_v45  ;;  %v9955_v45 = vld [vmem:[%s11635_s23 + $0x770] ss:$8 sps:$4 sm:$0xff]  }
 0x1ac   : > { %8072 = vmatpush1.bf16.msra.mxu0 %v9874_v48  ;;  %v9968_v48 = vld [vmem:[%s11635_s23 + $0x654] ss:$8 sps:$4 sm:$0xff]  }
 0x1ad   : > { %8073 = vmatprep.subr.bf16.mxu0 %v9882_v50  ;;  %v11922_v50 = vld [vmem:[%s12507_s0 + $0x30] sm:$0xff] }
 0x1ae   : > { %8123 = vmatpush1.bf16.msra.mxu1 %v9877_v49  ;;  %v9971_v49 = vld [vmem:[%s11635_s23 + $0x754] ss:$8 sps:$4 sm:$0xff]  }
 0x1af   : > { %8124 = vmatprep.subr.bf16.mxu1 %v9885_v51  ;;  %v9966_v51 = vld [vmem:[%s11635_s23 + $0x650] ss:$8 sps:$4 sm:$0xff]  }
 0x1b0   : > { %8074 = vmatpush1.bf16.msra.mxu0 %v9880_v52  ;;  %v11928_v52 = vld [vmem:[%s12507_s0 + $0xb0] sm:$0xff] }
 0x1b1   : > { %8075 = vmatprep.subr.bf16.mxu0 %v9888_v54  ;;  %v9068_v54 = vcombine.low %v4506_v44, %v4506_v44  ;;  %v10042_v44 = vld [vmem:[%s11635_s23 + $0x694] ss:$8 sps:$4 sm:$0xff]  }
 0x1b2   : > { %8125 = vmatpush1.bf16.msra.mxu1 %v9883_v53  ;;  %v9066_v53 = vcombine.low %v4505_v40, %v4505_v40  ;;  %v10037_v40 = vld [vmem:[%s11635_s23 + $0x7a0] ss:$8 sps:$4 sm:$0xff]  }
 0x1b3   : > { %8126 = vmatprep.subr.bf16.mxu1 %v9891_v55  ;;  %v11933_v55 = vld [vmem:[%s12507_s0 + $0x38] sm:$0xff] }
 0x1b4   : > { %8076 = vmatpush1.bf16.msra.mxu0 %v9886_v56  ;;  %v11938_v56 = vld [vmem:[%s12507_s0 + $0xb8] sm:$0xff] }
 0x1b5   : > { %8077 = vmatprep.subr.bf16.mxu0 %v9894_v58  ;;  %v9976_v58 = vld [vmem:[%s11635_s23 + $0x644] ss:$8 sps:$4 sm:$0xff]  }
 0x1b6   : > { %8127 = vmatpush1.bf16.msra.mxu1 %v9889_v57  ;;  %v9969_v57 = vld [vmem:[%s11635_s23 + $0x750] ss:$8 sps:$4 sm:$0xff]  }
 0x1b7   : > { %8128 = vmatprep.subr.bf16.mxu1 %v9897_v59  ;;  %v9979_v59 = vld [vmem:[%s11635_s23 + $0x744] ss:$8 sps:$4 sm:$0xff]  }
 0x1b8   : > { %8078 = vmatpush1.bf16.msra.mxu0 %v9892_v60  ;;  %v9039_v60 = vcombine.high %v11922_v50, %v11928_v52 }
 0x1b9   : > { %8079 = vmatprep.subr.bf16.mxu0 %v9900_v62  ;;  %v9974_v62 = vld [vmem:[%s11635_s23 + $0x640] ss:$8 sps:$4 sm:$0xff]  }
 0x1ba   : > { %8129 = vmatpush1.bf16.msra.mxu1 %v9895_v61  ;;  %v9041_v61 = vcombine.high %v11933_v55, %v11938_v56 }
 0x1bb   : > { %8130 = vmatprep.subr.bf16.mxu1 %v9903_v63  ;;  %v9977_v63 = vld [vmem:[%s11635_s23 + $0x740] ss:$8 sps:$4 sm:$0xff]  }
 0x1bc   : > { %8080 = vmatpush1.bf16.msra.mxu0 %v9898_v4  ;;  %v9982_v4 = vld [vmem:[%s11635_s23 + $0x634] ss:$8 sps:$4 sm:$0xff]  }
 0x1bd   : > { %8081 = vmatprep.subr.bf16.mxu0 %v9906_v8  ;;  %v9980_v8 = vld [vmem:[%s11635_s23 + $0x630] ss:$8 sps:$4 sm:$0xff]  }
 0x1be   : > { %8131 = vmatpush1.bf16.msra.mxu1 %v9901_v7  ;;  %v9985_v7 = vld [vmem:[%s11635_s23 + $0x734] ss:$8 sps:$4 sm:$0xff]  }
 0x1bf   : > { %8132 = vmatprep.subr.bf16.mxu1 %v9909_v9  ;;  %v9983_v9 = vld [vmem:[%s11635_s23 + $0x730] ss:$8 sps:$4 sm:$0xff]  }
 0x1c0   : > { %8082 = vmatpush2.bf16.msra.mxu0 %v9904_v10  ;;  %v9988_v10 = vld [vmem:[%s11635_s23 + $0x624] ss:$8 sps:$4 sm:$0xff]  }
 0x1c1   : > { %8083 = vmatprep.subr.bf16.mxu0 %v9912_v12  ;;  %v9986_v12 = vld [vmem:[%s11635_s23 + $0x620] ss:$8 sps:$4 sm:$0xff]  }
 0x1c2   : > { %8133 = vmatpush2.bf16.msra.mxu1 %v9907_v11  ;;  %v9991_v11 = vld [vmem:[%s11635_s23 + $0x724] ss:$8 sps:$4 sm:$0xff]  }
 0x1c3   : > { %8134 = vmatprep.subr.bf16.mxu1 %v9915_v13  ;;  %v9989_v13 = vld [vmem:[%s11635_s23 + $0x720] ss:$8 sps:$4 sm:$0xff]  }
 0x1c4   : > { %8084 = vmatpush2.bf16.msra.mxu0 %v9910_v14  ;;  %v9994_v14 = vld [vmem:[%s11635_s23 + $0x614] ss:$8 sps:$4 sm:$0xff]  }
 0x1c5   : > { %8085 = vmatprep.subr.bf16.mxu0 %v9918_v16  ;;  %v9992_v16 = vld [vmem:[%s11635_s23 + $0x610] ss:$8 sps:$4 sm:$0xff]  }
 0x1c6   : > { %8135 = vmatpush2.bf16.msra.mxu1 %v9913_v15  ;;  %v9997_v15 = vld [vmem:[%s11635_s23 + $0x714] ss:$8 sps:$4 sm:$0xff]  }
 0x1c7   : > { %8136 = vmatprep.subr.bf16.mxu1 %v9921_v17  ;;  %v9995_v17 = vld [vmem:[%s11635_s23 + $0x710] ss:$8 sps:$4 sm:$0xff]  }
 0x1c8   : > { %8086 = vmatpush2.bf16.msra.mxu0 %v9916_v18  ;;  %v10000_v18 = vld [vmem:[%s11635_s23 + $0x604] ss:$8 sps:$4 sm:$0xff]  }
 0x1c9   : > { %8087 = vmatprep.subr.bf16.mxu0 %v9924_v20  ;;  %v9998_v20 = vld [vmem:[%s11635_s23 + $0x600] ss:$8 sps:$4 sm:$0xff]  }
 0x1ca   : > { %8137 = vmatpush2.bf16.msra.mxu1 %v9919_v19  ;;  %v10003_v19 = vld [vmem:[%s11635_s23 + $0x704] ss:$8 sps:$4 sm:$0xff]  }
 0x1cb   : > { %8138 = vmatprep.subr.bf16.mxu1 %v9927_v21  ;;  %v10001_v21 = vld [vmem:[%s11635_s23 + $0x700] ss:$8 sps:$4 sm:$0xff]  }
 0x1cc   : > { %8088 = vmatpush2.bf16.msra.mxu0 %v9922_v22  ;;  %v10006_v22 = vld [vmem:[%s11635_s23 + $0x6f4] ss:$8 sps:$4 sm:$0xff]  }
 0x1cd   : > { %8089 = vmatprep.subr.bf16.mxu0 %v9930_v24  ;;  %v10004_v24 = vld [vmem:[%s11635_s23 + $0x6f0] ss:$8 sps:$4 sm:$0xff]  }
 0x1ce   : > { %8139 = vmatpush2.bf16.msra.mxu1 %v9925_v23  ;;  %v10009_v23 = vld [vmem:[%s11635_s23 + $0x7f4] ss:$8 sps:$4 sm:$0xff]  }
 0x1cf   : > { %8140 = vmatprep.subr.bf16.mxu1 %v9933_v25  ;;  %v10007_v25 = vld [vmem:[%s11635_s23 + $0x7f0] ss:$8 sps:$4 sm:$0xff]  }
 0x1d0   : > { %8090 = vmatpush2.bf16.msra.mxu0 %v9928_v26  ;;  %v10012_v26 = vld [vmem:[%s11635_s23 + $0x6e4] ss:$8 sps:$4 sm:$0xff]  }
 0x1d1   : > { %8091 = vmatprep.subr.bf16.mxu0 %v9936_v2  ;;  %v10010_v2 = vld [vmem:[%s11635_s23 + $0x6e0] ss:$8 sps:$4 sm:$0xff]  }
 0x1d2   : > { %8141 = vmatpush2.bf16.msra.mxu1 %v9931_v27  ;;  %v10015_v27 = vld [vmem:[%s11635_s23 + $0x7e4] ss:$8 sps:$4 sm:$0xff]  }
 0x1d3   : > { %8142 = vmatprep.subr.bf16.mxu1 %v9939_v3  ;;  %v10013_v3 = vld [vmem:[%s11635_s23 + $0x7e0] ss:$8 sps:$4 sm:$0xff]  }
 0x1d4   : > { %8092 = vmatpush2.bf16.msra.mxu0 %v9934_v5  ;;  %v10018_v5 = vld [vmem:[%s11635_s23 + $0x6d4] ss:$8 sps:$4 sm:$0xff]  }
 0x1d5   : > { %8093 = vmatprep.subr.bf16.mxu0 %v9942_v28  ;;  %v10016_v28 = vld [vmem:[%s11635_s23 + $0x6d0] ss:$8 sps:$4 sm:$0xff]  }
 0x1d6   : > { %8143 = vmatpush2.bf16.msra.mxu1 %v9937_v6  ;;  %v10021_v6 = vld [vmem:[%s11635_s23 + $0x7d4] ss:$8 sps:$4 sm:$0xff]  }
 0x1d7   : > { %8144 = vmatprep.subr.bf16.mxu1 %v9945_v29  ;;  %v10019_v29 = vld [vmem:[%s11635_s23 + $0x7d0] ss:$8 sps:$4 sm:$0xff]  }
 0x1d8   : > { %8094 = vmatpush2.bf16.msra.mxu0 %v9940_v0  ;;  %v10024_v0 = vld [vmem:[%s11635_s23 + $0x6c4] ss:$8 sps:$4 sm:$0xff]  }
 0x1d9   : > { %8095 = vmatprep.subr.bf16.mxu0 %v9948_v30  ;;  %v10022_v30 = vld [vmem:[%s11635_s23 + $0x6c0] ss:$8 sps:$4 sm:$0xff]  }
 0x1da   : > { %8145 = vmatpush2.bf16.msra.mxu1 %v9943_v1  ;;  %v10027_v1 = vld [vmem:[%s11635_s23 + $0x7c4] ss:$8 sps:$4 sm:$0xff]  }
 0x1db   : > { %8146 = vmatprep.subr.bf16.mxu1 %v9951_v31  ;;  %v10025_v31 = vld [vmem:[%s11635_s23 + $0x7c0] ss:$8 sps:$4 sm:$0xff]  }
 0x1dc   : > { %8096 = vmatpush2.bf16.msra.mxu0 %v9946_v32  ;;  %v10030_v32 = vld [vmem:[%s11635_s23 + $0x6b4] ss:$8 sps:$4 sm:$0xff]  }
 0x1dd   : > { %8167 = vmatprep.subr.bf16.mxu0 %v9954_v34  ;;  %v10028_v34 = vld [vmem:[%s11635_s23 + $0x6b0] ss:$8 sps:$4 sm:$0xff]  }
 0x1de   : > { %8147 = vmatpush2.bf16.msra.mxu1 %v9949_v33  ;;  %v10033_v33 = vld [vmem:[%s11635_s23 + $0x7b4] ss:$8 sps:$4 sm:$0xff]  }
 0x1df   : > { %8218 = vmatprep.subr.bf16.mxu1 %v9957_v35  ;;  %8098 = vmatmul.mubr.bf16.vlgmr.msra.gmra.mxu0 %v9034_v37  ;;  %v10031_v35 = vld [vmem:[%s11635_s23 + $0x7b0] ss:$8 sps:$4 sm:$0xff]   ;;  %v10039_v37 = vld [vmem:[%s11635_s23 + $0x7a4] ss:$8 sps:$4 sm:$0xff]  }
 0x1e0   : > { %8168 = vmatpush1.bf16.msra.mxu0 %v9952_v36  ;;  %8107 = vmatprep.mubr.bf16.mxu0 %v9067_v41  ;;  %v10036_v36 = vld [vmem:[%s11635_s23 + $0x6a4] ss:$8 sps:$4 sm:$0xff]  }
 0x1e1   : > { %8149 = vmatmul.mubr.bf16.vlgmr.msra.gmra.mxu1 %v9036_v39  ;;  %8169 = vmatprep.subr.bf16.mxu0 %v9960_v46  ;;  %v10034_v39 = vld [vmem:[%s11635_s23 + $0x6a0] ss:$8 sps:$4 sm:$0xff]   ;;  %v10040_v46 = vld [vmem:[%s11635_s23 + $0x690] ss:$8 sps:$4 sm:$0xff]   ;;  %v10048_v41 = vld [vmem:[%s11635_s23 + $0x684] ss:$8 sps:$4 sm:$0xff]  }
 0x1e2   : > { %8219 = vmatpush1.bf16.msra.mxu1 %v9955_v45  ;;  %8158 = vmatprep.mubr.bf16.mxu1 %v9069_v42  ;;  %v10045_v45 = vld [vmem:[%s11635_s23 + $0x794] ss:$8 sps:$4 sm:$0xff]   ;;  %v10051_v42 = vld [vmem:[%s11635_s23 + $0x784] ss:$8 sps:$4 sm:$0xff]  }
 0x1e3   : > { %8220 = vmatprep.subr.bf16.mxu1 %v9963_v38  ;;  %v10043_v38 = vld [vmem:[%s11635_s23 + $0x790] ss:$8 sps:$4 sm:$0xff]  }
 0x1e4   : > { %8170 = vmatpush1.bf16.msra.mxu0 %v9958_v43  ;;  %v10046_v43 = vld [vmem:[%s11635_s23 + $0x680] ss:$8 sps:$4 sm:$0xff]  }
 0x1e5   : > { %8171 = vmatprep.subr.bf16.mxu0 %v9968_v48  ;;  %v10054_v48 = vld [vmem:[%s11635_s23 + $0x874] ss:$8 sps:$4 sm:$0xff]  }
 0x1e6   : > { %8221 = vmatpush1.bf16.msra.mxu1 %v9961_v47  ;;  %v10049_v47 = vld [vmem:[%s11635_s23 + $0x780] ss:$8 sps:$4 sm:$0xff]  }
 0x1e7   : > { %8222 = vmatprep.subr.bf16.mxu1 %v9971_v49  ;;  %8108 = vmatmul.mubr.bf16.gmra.mxu0 %v9066_v53  ;;  %v10057_v49 = vld [vmem:[%s11635_s23 + $0x974] ss:$8 sps:$4 sm:$0xff]  }
 0x1e8   : > { %8172 = vmatpush1.bf16.msra.mxu0 %v9966_v51  ;;  %8199 = vmatprep.mubr.bf16.mxu0 %v9039_v60  ;;  %v10052_v51 = vld [vmem:[%s11635_s23 + $0x870] ss:$8 sps:$4 sm:$0xff]   ;;  %v10060_v60 = vld [vmem:[%s11635_s23 + $0x864] ss:$8 sps:$4 sm:$0xff]  }
 0x1e9   : > { %8159 = vmatmul.mubr.bf16.gmra.mxu1 %v9068_v54  ;;  %8173 = vmatprep.subr.bf16.mxu0 %v9976_v58  ;;  %v4507_v53 = vld [vmem:[%s12507_s0 + $0x130] sm:$0xff]  ;;  %v9038_v54 = vcombine.low %v11922_v50, %v11928_v52  ;;  %v4508_v58 = vld [vmem:[%s12507_s0 + $0x138] sm:$0xff] }
 0x1ea   : > { %8223 = vmatpush1.bf16.msra.mxu1 %v9969_v57  ;;  %8250 = vmatprep.mubr.bf16.mxu1 %v9041_v61  ;;  %v9040_v57 = vcombine.low %v11933_v55, %v11938_v56  ;;  %v10063_v61 = vld [vmem:[%s11635_s23 + $0x964] ss:$8 sps:$4 sm:$0xff]   ;;  %v9073_v50 = vcombine.high %v4508_v58, %v4508_v58  ;;  %v10058_v55 = vld [vmem:[%s11635_s23 + $0x860] ss:$8 sps:$4 sm:$0xff]  }
 0x1eb   : > { %8224 = vmatprep.subr.bf16.mxu1 %v9979_v59  ;;  %v10055_v59 = vld [vmem:[%s11635_s23 + $0x970] ss:$8 sps:$4 sm:$0xff]  }
 0x1ec   : > { %8174 = vmatpush1.bf16.msra.mxu0 %v9974_v62  ;;  %v9071_v62 = vcombine.high %v4507_v53, %v4507_v53 }
 0x1ed   : > { %8175 = vmatprep.subr.bf16.mxu0 %v9982_v4  ;;  %v10061_v4 = vld [vmem:[%s11635_s23 + $0x960] ss:$8 sps:$4 sm:$0xff]  }
 0x1ee   : > { %8225 = vmatpush1.bf16.msra.mxu1 %v9977_v63 }
 0x1ef   : > { %8226 = vmatprep.subr.bf16.mxu1 %v9985_v7 }
 0x1f0   : > { %8176 = vmatpush1.bf16.msra.mxu0 %v9980_v8 }
 0x1f1   : > { %8177 = vmatprep.subr.bf16.mxu0 %v9988_v10  ;;  %v10071_v10 = vld [vmem:[%s11635_s23 + $0x954] ss:$8 sps:$4 sm:$0xff]  }
 0x1f2   : > { %8227 = vmatpush1.bf16.msra.mxu1 %v9983_v9  ;;  %v10068_v9 = vld [vmem:[%s11635_s23 + $0x854] ss:$8 sps:$4 sm:$0xff]  }
 0x1f3   : > { %8228 = vmatprep.subr.bf16.mxu1 %v9991_v11 }
 0x1f4   : > { %8178 = vmatpush1.bf16.msra.mxu0 %v9986_v12  ;;  %v10066_v12 = vld [vmem:[%s11635_s23 + $0x850] ss:$8 sps:$4 sm:$0xff]  }
 0x1f5   : > { %8179 = vmatprep.subr.bf16.mxu0 %v9994_v14 }
 0x1f6   : > { %8229 = vmatpush1.bf16.msra.mxu1 %v9989_v13  ;;  %v12025_v13 = vld [vmem:[%s12507_s0 + $0x40] sm:$0xff] }
 0x1f7   : > { %8230 = vmatprep.subr.bf16.mxu1 %v9997_v15 }
 0x1f8   : > { %8180 = vmatpush1.bf16.msra.mxu0 %v9992_v16  ;;  %v9070_v16 = vcombine.low %v4507_v53, %v4507_v53  ;;  %v10101_v53 = vld [vmem:[%s11635_s23 + $0x900] ss:$8 sps:$4 sm:$0xff]  }
 0x1f9   : > { %8181 = vmatprep.subr.bf16.mxu0 %v10000_v18  ;;  %v12030_v18 = vld [vmem:[%s12507_s0 + $0xc0] sm:$0xff] }
 0x1fa   : > { %8231 = vmatpush1.bf16.msra.mxu1 %v9995_v17  ;;  %v9072_v17 = vcombine.low %v4508_v58, %v4508_v58  ;;  %v10104_v58 = vld [vmem:[%s11635_s23 + $0x8f0] ss:$8 sps:$4 sm:$0xff]  }
 0x1fb   : > { %8232 = vmatprep.subr.bf16.mxu1 %v10003_v19  ;;  %v12035_v19 = vld [vmem:[%s12507_s0 + $0x48] sm:$0xff] }
 0x1fc   : > { %8182 = vmatpush1.bf16.msra.mxu0 %v9998_v20  ;;  %v12040_v20 = vld [vmem:[%s12507_s0 + $0xc8] sm:$0xff] }
 0x1fd   : > { %8183 = vmatprep.subr.bf16.mxu0 %v10006_v22  ;;  %v10069_v22 = vld [vmem:[%s11635_s23 + $0x950] ss:$8 sps:$4 sm:$0xff]  }
 0x1fe   : > { %8233 = vmatpush1.bf16.msra.mxu1 %v10001_v21 }
 0x1ff   : > { %8234 = vmatprep.subr.bf16.mxu1 %v10009_v23 }
 0x200   : > { %8184 = vmatpush2.bf16.msra.mxu0 %v10004_v24 }
 0x201   : > { %8185 = vmatprep.subr.bf16.mxu0 %v10012_v26  ;;  %v10079_v26 = vld [vmem:[%s11635_s23 + $0x944] ss:$8 sps:$4 sm:$0xff]  }
 0x202   : > { %8235 = vmatpush2.bf16.msra.mxu1 %v10007_v25  ;;  %v10076_v25 = vld [vmem:[%s11635_s23 + $0x844] ss:$8 sps:$4 sm:$0xff]  }
 0x203   : > { %8236 = vmatprep.subr.bf16.mxu1 %v10015_v27 }
 0x204   : > { %8186 = vmatpush2.bf16.msra.mxu0 %v10010_v2  ;;  %v9043_v2 = vcombine.high %v12025_v13, %v12030_v18 }
 0x205   : > { %8187 = vmatprep.subr.bf16.mxu0 %v10018_v5  ;;  %v10074_v5 = vld [vmem:[%s11635_s23 + $0x840] ss:$8 sps:$4 sm:$0xff]  }
 0x206   : > { %8237 = vmatpush2.bf16.msra.mxu1 %v10013_v3  ;;  %v9045_v3 = vcombine.high %v12035_v19, %v12040_v20 }
 0x207   : > { %8238 = vmatprep.subr.bf16.mxu1 %v10021_v6 }
 0x208   : > { %8188 = vmatpush2.bf16.msra.mxu0 %v10016_v28 }
 0x209   : > { %8189 = vmatprep.subr.bf16.mxu0 %v10024_v0 }
 0x20a   : > { %8239 = vmatpush2.bf16.msra.mxu1 %v10019_v29  ;;  %v10077_v29 = vld [vmem:[%s11635_s23 + $0x940] ss:$8 sps:$4 sm:$0xff]  }
 0x20b   : > { %8240 = vmatprep.subr.bf16.mxu1 %v10027_v1  ;;  %v10082_v1 = vld [vmem:[%s11635_s23 + $0x834] ss:$8 sps:$4 sm:$0xff]  }
 0x20c   : > { %8190 = vmatpush2.bf16.msra.mxu0 %v10022_v30  ;;  %v10085_v30 = vld [vmem:[%s11635_s23 + $0x934] ss:$8 sps:$4 sm:$0xff]  }
 0x20d   : > { %8191 = vmatprep.subr.bf16.mxu0 %v10030_v32 }
 0x20e   : > { %8241 = vmatpush2.bf16.msra.mxu1 %v10025_v31 }
 0x20f   : > { %8242 = vmatprep.subr.bf16.mxu1 %v10033_v33 }
 0x210   : > { %8192 = vmatpush2.bf16.msra.mxu0 %v10028_v34 }
 0x211   : > { %8193 = vmatprep.subr.bf16.mxu0 %v10036_v36  ;;  %v10080_v36 = vld [vmem:[%s11635_s23 + $0x830] ss:$8 sps:$4 sm:$0xff]  }
 0x212   : > { %8243 = vmatpush2.bf16.msra.mxu1 %v10031_v35 }
 0x213   : > { %8244 = vmatprep.subr.bf16.mxu1 %v10039_v37  ;;  %v10083_v37 = vld [vmem:[%s11635_s23 + $0x930] ss:$8 sps:$4 sm:$0xff]  }
 0x214   : > { %8194 = vmatpush2.bf16.msra.mxu0 %v10034_v39  ;;  %v10088_v39 = vld [vmem:[%s11635_s23 + $0x824] ss:$8 sps:$4 sm:$0xff]  }
 0x215   : > { %8195 = vmatprep.subr.bf16.mxu0 %v10042_v44 }
 0x216   : > { %8245 = vmatpush2.bf16.msra.mxu1 %v10037_v40  ;;  %v10091_v40 = vld [vmem:[%s11635_s23 + $0x924] ss:$8 sps:$4 sm:$0xff]  }
 0x217   : > { %8246 = vmatprep.subr.bf16.mxu1 %v10045_v45 }
 0x218   : > { %8196 = vmatpush2.bf16.msra.mxu0 %v10040_v46  ;;  %v10086_v46 = vld [vmem:[%s11635_s23 + $0x820] ss:$8 sps:$4 sm:$0xff]  }
 0x219   : > { %8197 = vmatprep.subr.bf16.mxu0 %v10048_v41  ;;  %v10094_v41 = vld [vmem:[%s11635_s23 + $0x814] ss:$8 sps:$4 sm:$0xff]  }
 0x21a   : > { %8247 = vmatpush2.bf16.msra.mxu1 %v10043_v38  ;;  %v10089_v38 = vld [vmem:[%s11635_s23 + $0x920] ss:$8 sps:$4 sm:$0xff]  }
 0x21b   : > { %8248 = vmatprep.subr.bf16.mxu1 %v10051_v42  ;;  %v10097_v42 = vld [vmem:[%s11635_s23 + $0x914] ss:$8 sps:$4 sm:$0xff]  }
 0x21c   : > { %8198 = vmatpush2.bf16.msra.mxu0 %v10046_v43  ;;  %v10092_v43 = vld [vmem:[%s11635_s23 + $0x810] ss:$8 sps:$4 sm:$0xff]  }
 0x21d   : > { %8269 = vmatprep.subr.bf16.mxu0 %v10054_v48  ;;  %v10100_v48 = vld [vmem:[%s11635_s23 + $0x804] ss:$8 sps:$4 sm:$0xff]  }
 0x21e   : > { %8249 = vmatpush2.bf16.msra.mxu1 %v10049_v47  ;;  %v10095_v47 = vld [vmem:[%s11635_s23 + $0x910] ss:$8 sps:$4 sm:$0xff]  }
 0x21f   : > { %8320 = vmatprep.subr.bf16.mxu1 %v10057_v49  ;;  %v7895_v52 = vpop.f32.mrf.mxu0  ;;  %8200 = vmatmul.mubr.bf16.vlgmr.msra.gmra.mxu0 %v9038_v54  ;;  %v10103_v49 = vld [vmem:[%s11635_s23 + $0x904] ss:$8 sps:$4 sm:$0xff]   ;;  %v10106_v54 = vld [vmem:[%s11635_s23 + $0x8f4] ss:$8 sps:$4 sm:$0xff]  }
 0x220   : > { %8270 = vmatpush1.bf16.msra.mxu0 %v10052_v51  ;;  %8209 = vmatprep.mubr.bf16.mxu0 %v9071_v62  ;;  %v10098_v51 = vld [vmem:[%s11635_s23 + $0x800] ss:$8 sps:$4 sm:$0xff]  }
 0x221   : > { %v7946_v63 = vpop.f32.mrf.mxu1  ;;  %8251 = vmatmul.mubr.bf16.vlgmr.msra.gmra.mxu1 %v9040_v57  ;;  %v7897_v7 = vpop.f32.mrf.mxu0  ;;  %8271 = vmatprep.subr.bf16.mxu0 %v10060_v60  ;;  %v10109_v57 = vld [vmem:[%s11635_s23 + $0x9f4] ss:$8 sps:$4 sm:$0xff]   ;;  %v10112_v60 = vld [vmem:[%s11635_s23 + $0x8e4] ss:$8 sps:$4 sm:$0xff]   ;;  %v10110_v62 = vld [vmem:[%s11635_s23 + $0x8e0] ss:$8 sps:$4 sm:$0xff]  }
 0x222   : > { %v12014_v56 = vadd.f32 %v7946_v63, %v7895_v52  ;;  %8321 = vmatpush1.bf16.msra.mxu1 %v10055_v59  ;;  %8260 = vmatprep.mubr.bf16.mxu1 %v9073_v50  ;;  %v10107_v59 = vld [vmem:[%s11635_s23 + $0x9f0] ss:$8 sps:$4 sm:$0xff]   ;;  %v10113_v50 = vld [vmem:[%s11635_s23 + $0x9e0] ss:$8 sps:$4 sm:$0xff]   ;;  %v10118_v52 = vld [vmem:[%s11635_s23 + $0x8d4] ss:$8 sps:$4 sm:$0xff]  }
 0x223   : > { %v7948_v8 = vpop.f32.mrf.mxu1  ;;  %8322 = vmatprep.subr.bf16.mxu1 %v10063_v61  ;;  %v7899_v14 = vpop.f32.mrf.mxu0  ;;  %v10115_v61 = vld [vmem:[%s11635_s23 + $0x9e4] ss:$8 sps:$4 sm:$0xff]   ;;  %v10121_v63 = vld [vmem:[%s11635_s23 + $0x9d4] ss:$8 sps:$4 sm:$0xff]  }
 0x224   : > { %v12019_v11 = vadd.f32 %v7948_v8, %v7897_v7  ;;  %8272 = vmatpush1.bf16.msra.mxu0 %v10058_v55  ;;  %v10116_v55 = vld [vmem:[%s11635_s23 + $0x8d0] ss:$8 sps:$4 sm:$0xff]   ;;  %v10124_v7 = vld [vmem:[%s11635_s23 + $0x8c4] ss:$8 sps:$4 sm:$0xff]  }
 0x225   : > { %v7950_v15 = vpop.f32.mrf.mxu1  ;;  %v7901_v23 = vpop.f32.mrf.mxu0  ;;  %8273 = vmatprep.subr.bf16.mxu0 %v10068_v9  ;;  %v10127_v8 = vld [vmem:[%s11635_s23 + $0x9c4] ss:$8 sps:$4 sm:$0xff]   ;;  %v10122_v9 = vld [vmem:[%s11635_s23 + $0x8c0] ss:$8 sps:$4 sm:$0xff]  }
 0x226   : > { %v12042_v21 = vadd.f32 %v7950_v15, %v7899_v14  ;;  %8323 = vmatpush1.bf16.msra.mxu1 %v10061_v4  ;;  %v10119_v4 = vld [vmem:[%s11635_s23 + $0x9d0] ss:$8 sps:$4 sm:$0xff]   ;;  %v10133_v14 = vld [vmem:[%s11635_s23 + $0x9b4] ss:$8 sps:$4 sm:$0xff]  }
 0x227   : > { %v7952_v24 = vpop.f32.mrf.mxu1  ;;  %8324 = vmatprep.subr.bf16.mxu1 %v10071_v10  ;;  %8210 = vmatmul.mubr.bf16.gmra.mxu0 %v9070_v16  ;;  %v7905_v6 = vpop.f32.mrf.mxu0  ;;  %v10125_v10 = vld [vmem:[%s11635_s23 + $0x9c0] ss:$8 sps:$4 sm:$0xff]   ;;  %v10128_v15 = vld [vmem:[%s11635_s23 + $0x8b0] ss:$8 sps:$4 sm:$0xff]  }
 0x228   : > { %v12047_v27 = vadd.f32 %v7952_v24, %v7901_v23  ;;  %8274 = vmatpush1.bf16.msra.mxu0 %v10066_v12  ;;  %8301 = vmatprep.mubr.bf16.mxu0 %v9043_v2  ;;  %v10130_v12 = vld [vmem:[%s11635_s23 + $0x8b4] ss:$8 sps:$4 sm:$0xff]   ;;  %v10131_v16 = vld [vmem:[%s11635_s23 + $0x9b0] ss:$8 sps:$4 sm:$0xff]   ;;  %v10134_v23 = vld [vmem:[%s11635_s23 + $0x8a0] ss:$8 sps:$4 sm:$0xff]  }
 0x229   : > { %8261 = vmatmul.mubr.bf16.gmra.mxu1 %v9072_v17  ;;  %v7956_v28 = vpop.f32.mrf.mxu1  ;;  %8275 = vmatprep.subr.bf16.mxu0 %v10076_v25  ;;  %v7907_v31 = vpop.f32.mrf.mxu0  ;;  %v10136_v17 = vld [vmem:[%s11635_s23 + $0x8a4] ss:$8 sps:$4 sm:$0xff]   ;;  %v10137_v24 = vld [vmem:[%s11635_s23 + $0x9a0] ss:$8 sps:$4 sm:$0xff]   ;;  %v10142_v25 = vld [vmem:[%s11635_s23 + $0x894] ss:$8 sps:$4 sm:$0xff]  }
 0x22a   : > { %8325 = vmatpush1.bf16.msra.mxu1 %v10069_v22  ;;  %v12055_v0 = vadd.f32 %v7956_v28, %v7905_v6  ;;  %8352 = vmatprep.mubr.bf16.mxu1 %v9045_v3  ;;  %v10139_v22 = vld [vmem:[%s11635_s23 + $0x9a4] ss:$8 sps:$4 sm:$0xff]   ;;  %v10140_v2 = vld [vmem:[%s11635_s23 + $0x890] ss:$8 sps:$4 sm:$0xff]   ;;  %v10146_v28 = vld [vmem:[%s11635_s23 + $0x880] ss:$8 sps:$4 sm:$0xff]  }
 0x22b   : > { %8326 = vmatprep.subr.bf16.mxu1 %v10079_v26  ;;  %v7958_v32 = vpop.f32.mrf.mxu1  ;;  %v7909_v34 = vpop.f32.mrf.mxu0  ;;  %v10145_v26 = vld [vmem:[%s11635_s23 + $0x994] ss:$8 sps:$4 sm:$0xff]   ;;  %v10143_v3 = vld [vmem:[%s11635_s23 + $0x990] ss:$8 sps:$4 sm:$0xff]   ;;  %v10151_v6 = vld [vmem:[%s11635_s23 + $0x984] ss:$8 sps:$4 sm:$0xff]  }
 0x22c   : > { %v12059_v33 = vadd.f32 %v7958_v32, %v7907_v31  ;;  %8276 = vmatpush1.bf16.msra.mxu0 %v10074_v5  ;;  %v10148_v5 = vld [vmem:[%s11635_s23 + $0x884] ss:$8 sps:$4 sm:$0xff]   ;;  %v9042_v31 = vcombine.low %v12025_v13, %v12030_v18  ;;  %v9044_v32 = vcombine.low %v12035_v19, %v12040_v20  ;;  %v10152_v34 = vld [vmem:[%s11635_s23 + $0xa70] ss:$8 sps:$4 sm:$0xff]   ;;  %v10158_v18 = vld [vmem:[%s11635_s23 + $0xa60] ss:$8 sps:$4 sm:$0xff]  }
 0x22d   : > { %v7960_v35 = vpop.f32.mrf.mxu1  ;;  %8277 = vmatprep.subr.bf16.mxu0 %v10082_v1  ;;  %v7910_v44 = vpop.f32.mrf.mxu0  ;;  %v10154_v1 = vld [vmem:[%s11635_s23 + $0xa74] ss:$8 sps:$4 sm:$0xff]   ;;  %v10163_v13 = vld [vmem:[%s11635_s23 + $0xb64] ss:$8 sps:$4 sm:$0xff]   ;;  %v10161_v19 = vld [vmem:[%s11635_s23 + $0xb60] ss:$8 sps:$4 sm:$0xff]  }
 0x22e   : > { %8327 = vmatpush1.bf16.msra.mxu1 %v10077_v29  ;;  %v10149_v29 = vld [vmem:[%s11635_s23 + $0x980] ss:$8 sps:$4 sm:$0xff]  }
 0x22f   : > { %8328 = vmatprep.subr.bf16.mxu1 %v10085_v30  ;;  %v7961_v45 = vpop.f32.mrf.mxu1  ;;  %v10157_v30 = vld [vmem:[%s11635_s23 + $0xb74] ss:$8 sps:$4 sm:$0xff]   ;;  %v4509_v35 = vld [vmem:[%s12507_s0 + $0x140] sm:$0xff] }
 0x230   : > { %8278 = vmatpush1.bf16.msra.mxu0 %v10080_v36  ;;  %v4510_v36 = vld [vmem:[%s12507_s0 + $0x148] sm:$0xff]  ;;  %v9075_v20 = vcombine.high %v4509_v35, %v4509_v35 }
 0x231   : > { %8279 = vmatprep.subr.bf16.mxu0 %v10088_v39  ;;  %v10160_v39 = vld [vmem:[%s11635_s23 + $0xa64] ss:$8 sps:$4 sm:$0xff]  }
 0x232   : > { %8329 = vmatpush1.bf16.msra.mxu1 %v10083_v37  ;;  %v10155_v37 = vld [vmem:[%s11635_s23 + $0xb70] ss:$8 sps:$4 sm:$0xff]  }
 0x233   : > { %8330 = vmatprep.subr.bf16.mxu1 %v10091_v40  ;;  %v9077_v40 = vcombine.high %v4510_v36, %v4510_v36 }
 0x234   : > { %8280 = vmatpush1.bf16.msra.mxu0 %v10086_v46  ;;  %v10168_v46 = vld [vmem:[%s11635_s23 + $0xa54] ss:$8 sps:$4 sm:$0xff]  }
 0x235   : > { %8281 = vmatprep.subr.bf16.mxu0 %v10094_v41 }
 0x236   : > { %8331 = vmatpush1.bf16.msra.mxu1 %v10089_v38 }
 0x237   : > { %8332 = vmatprep.subr.bf16.mxu1 %v10097_v42 }
 0x238   : > { %8282 = vmatpush1.bf16.msra.mxu0 %v10092_v43  ;;  %v10171_v43 = vld [vmem:[%s11635_s23 + $0xb54] ss:$8 sps:$4 sm:$0xff]  }
 0x239   : > { %8283 = vmatprep.subr.bf16.mxu0 %v10100_v48 }
 0x23a   : > { %8333 = vmatpush1.bf16.msra.mxu1 %v10095_v47  ;;  %v12131_v47 = vld [vmem:[%s12507_s0 + $0x50] sm:$0xff] }
 0x23b   : > { %8334 = vmatprep.subr.bf16.mxu1 %v10103_v49 }
 0x23c   : > { %8284 = vmatpush1.bf16.msra.mxu0 %v10098_v51  ;;  %v10166_v51 = vld [vmem:[%s11635_s23 + $0xa50] ss:$8 sps:$4 sm:$0xff]  }
 0x23d   : > { %8285 = vmatprep.subr.bf16.mxu0 %v10106_v54  ;;  %v12146_v54 = vld [vmem:[%s12507_s0 + $0x58] sm:$0xff] }
 0x23e   : > { %8335 = vmatpush1.bf16.msra.mxu1 %v10101_v53  ;;  %v10169_v53 = vld [vmem:[%s11635_s23 + $0xb50] ss:$8 sps:$4 sm:$0xff]  }
 0x23f   : > { %8336 = vmatprep.subr.bf16.mxu1 %v10109_v57 }
 0x240   : > { %8286 = vmatpush2.bf16.msra.mxu0 %v10104_v58 }
 0x241   : > { %8287 = vmatprep.subr.bf16.mxu0 %v10112_v60  ;;  %v12151_v60 = vld [vmem:[%s12507_s0 + $0xd8] sm:$0xff] }
 0x242   : > { %8337 = vmatpush2.bf16.msra.mxu1 %v10107_v59  ;;  %v9076_v59 = vcombine.low %v4510_v36, %v4510_v36  ;;  %v10200_v36 = vld [vmem:[%s11635_s23 + $0xa04] ss:$8 sps:$4 sm:$0xff]  }
 0x243   : > { %8338 = vmatprep.subr.bf16.mxu1 %v10115_v61 }
 0x244   : > { %8288 = vmatpush2.bf16.msra.mxu0 %v10110_v62 }
 0x245   : > { %8289 = vmatprep.subr.bf16.mxu0 %v10118_v52 }
 0x246   : > { %8339 = vmatpush2.bf16.msra.mxu1 %v10113_v50 }
 0x247   : > { %8340 = vmatprep.subr.bf16.mxu1 %v10121_v63  ;;  %v10176_v63 = vld [vmem:[%s11635_s23 + $0xa44] ss:$8 sps:$4 sm:$0xff]  }
 0x248   : > { %8290 = vmatpush2.bf16.msra.mxu0 %v10116_v55  ;;  %v10179_v55 = vld [vmem:[%s11635_s23 + $0xb44] ss:$8 sps:$4 sm:$0xff]  }
 0x249   : > { %8291 = vmatprep.subr.bf16.mxu0 %v10124_v7 }
 0x24a   : > { %8341 = vmatpush2.bf16.msra.mxu1 %v10119_v4 }
 0x24b   : > { %8342 = vmatprep.subr.bf16.mxu1 %v10127_v8  ;;  %v10174_v8 = vld [vmem:[%s11635_s23 + $0xa40] ss:$8 sps:$4 sm:$0xff]  }
 0x24c   : > { %8292 = vmatpush2.bf16.msra.mxu0 %v10122_v9  ;;  %v10177_v9 = vld [vmem:[%s11635_s23 + $0xb40] ss:$8 sps:$4 sm:$0xff]  }
 0x24d   : > { %8293 = vmatprep.subr.bf16.mxu0 %v10130_v12 }
 0x24e   : > { %8343 = vmatpush2.bf16.msra.mxu1 %v10125_v10 }
 0x24f   : > { %8344 = vmatprep.subr.bf16.mxu1 %v10133_v14 }
 0x250   : > { %8294 = vmatpush2.bf16.msra.mxu0 %v10128_v15 }
 0x251   : > { %8295 = vmatprep.subr.bf16.mxu0 %v10136_v17 }
 0x252   : > { %8345 = vmatpush2.bf16.msra.mxu1 %v10131_v16 }
 0x253   : > { %8346 = vmatprep.subr.bf16.mxu1 %v10139_v22  ;;  %v10182_v22 = vld [vmem:[%s11635_s23 + $0xa34] ss:$8 sps:$4 sm:$0xff]  }
 0x254   : > { %8296 = vmatpush2.bf16.msra.mxu0 %v10134_v23  ;;  %v10185_v23 = vld [vmem:[%s11635_s23 + $0xb34] ss:$8 sps:$4 sm:$0xff]  }
 0x255   : > { %8297 = vmatprep.subr.bf16.mxu0 %v10142_v25 }
 0x256   : > { %8347 = vmatpush2.bf16.msra.mxu1 %v10137_v24 }
 0x257   : > { %8348 = vmatprep.subr.bf16.mxu1 %v10145_v26 }
 0x258   : > { %8298 = vmatpush2.bf16.msra.mxu0 %v10140_v2 }
 0x259   : > { %8299 = vmatprep.subr.bf16.mxu0 %v10148_v5  ;;  %v10183_v5 = vld [vmem:[%s11635_s23 + $0xb30] ss:$8 sps:$4 sm:$0xff]  }
 0x25a   : > { %8349 = vmatpush2.bf16.msra.mxu1 %v10143_v3  ;;  %v10180_v3 = vld [vmem:[%s11635_s23 + $0xa30] ss:$8 sps:$4 sm:$0xff]  }
 0x25b   : > { %8350 = vmatprep.subr.bf16.mxu1 %v10151_v6  ;;  %v10191_v6 = vld [vmem:[%s11635_s23 + $0xb24] ss:$8 sps:$4 sm:$0xff]  }
 0x25c   : > { %8300 = vmatpush2.bf16.msra.mxu0 %v10146_v28 }
 0x25d   : > { %8371 = vmatprep.subr.bf16.mxu0 %v10154_v1  ;;  %v10186_v1 = vld [vmem:[%s11635_s23 + $0xa20] ss:$8 sps:$4 sm:$0xff]  }
 0x25e   : > { %8351 = vmatpush2.bf16.msra.mxu1 %v10149_v29 }
 0x25f   : > { %8422 = vmatprep.subr.bf16.mxu1 %v10157_v30  ;;  %v7997_v44 = vpop.f32.mrf.mxu0  ;;  %8302 = vmatmul.mubr.bf16.vlgmr.msra.gmra.mxu0 %v9042_v31  ;;  %v10189_v30 = vld [vmem:[%s11635_s23 + $0xb20] ss:$8 sps:$4 sm:$0xff]   ;;  %v10194_v31 = vld [vmem:[%s11635_s23 + $0xa14] ss:$8 sps:$4 sm:$0xff]  }
 0x260   : > { %v7998_v38 = vadd.f32 %v7997_v44, %v12014_v56  ;;  %8372 = vmatpush1.bf16.msra.mxu0 %v10152_v34  ;;  %8311 = vmatprep.mubr.bf16.mxu0 %v9075_v20  ;;  %v12141_v56 = vld [vmem:[%s12507_s0 + $0xd0] sm:$0xff]  ;;  %v10212_v44 = vld [vmem:[%s11635_s23 + $0xae4] ss:$8 sps:$4 sm:$0xff]  }
 0x261   : > { %v8048_v45 = vpop.f32.mrf.mxu1  ;;  %8353 = vmatmul.mubr.bf16.vlgmr.msra.gmra.mxu1 %v9044_v32  ;;  %v7999_v41 = vpop.f32.mrf.mxu0  ;;  %8373 = vmatprep.subr.bf16.mxu0 %v10160_v39  ;;  %v9047_v10 = vcombine.high %v12131_v47, %v12141_v56  ;;  %v10197_v32 = vld [vmem:[%s11635_s23 + $0xb14] ss:$8 sps:$4 sm:$0xff]   ;;  %v10192_v34 = vld [vmem:[%s11635_s23 + $0xa10] ss:$8 sps:$4 sm:$0xff]   ;;  %v10198_v39 = vld [vmem:[%s11635_s23 + $0xa00] ss:$8 sps:$4 sm:$0xff]  }
 0x262   : > { %8423 = vmatpush1.bf16.msra.mxu1 %v10155_v37  ;;  %v12133_v48 = vadd.f32 %v8048_v45, %v7998_v38  ;;  %v8000_v49 = vadd.f32 %v7999_v41, %v12019_v11  ;;  %8362 = vmatprep.mubr.bf16.mxu1 %v9077_v40  ;;  %v9074_v11 = vcombine.low %v4509_v35, %v4509_v35  ;;  %v10195_v35 = vld [vmem:[%s11635_s23 + $0xb10] ss:$8 sps:$4 sm:$0xff]   ;;  %v10203_v37 = vld [vmem:[%s11635_s23 + $0xb04] ss:$8 sps:$4 sm:$0xff]   ;;  %v10213_v38 = vld [vmem:[%s11635_s23 + $0xbe0] ss:$8 sps:$4 sm:$0xff]  }
 0x263   : > { %v8050_v42 = vpop.f32.mrf.mxu1  ;;  %8424 = vmatprep.subr.bf16.mxu1 %v10163_v13  ;;  %v8001_v57 = vpop.f32.mrf.mxu0  ;;  %v10201_v13 = vld [vmem:[%s11635_s23 + $0xb00] ss:$8 sps:$4 sm:$0xff]   ;;  %v10204_v20 = vld [vmem:[%s11635_s23 + $0xaf0] ss:$8 sps:$4 sm:$0xff]   ;;  %v10215_v45 = vld [vmem:[%s11635_s23 + $0xbe4] ss:$8 sps:$4 sm:$0xff]  }
 0x264   : > { %v12153_v61 = vadd.f32 %v8050_v42, %v8000_v49  ;;  %v8002_v62 = vadd.f32 %v8001_v57, %v12042_v21  ;;  %8374 = vmatpush1.bf16.msra.mxu0 %v10158_v18  ;;  %v9049_v21 = vcombine.high %v12146_v54, %v12151_v60  ;;  %v10206_v18 = vld [vmem:[%s11635_s23 + $0xaf4] ss:$8 sps:$4 sm:$0xff]   ;;  %v10207_v40 = vld [vmem:[%s11635_s23 + $0xbf0] ss:$8 sps:$4 sm:$0xff]   ;;  %v10222_v57 = vld [vmem:[%s11635_s23 + $0xac0] ss:$8 sps:$4 sm:$0xff]  }
 0x265   : > { %v8052_v58 = vpop.f32.mrf.mxu1  ;;  %v8003_v50 = vpop.f32.mrf.mxu0  ;;  %8375 = vmatprep.subr.bf16.mxu0 %v10168_v46  ;;  %v10210_v46 = vld [vmem:[%s11635_s23 + $0xae0] ss:$8 sps:$4 sm:$0xff]   ;;  %v10218_v41 = vld [vmem:[%s11635_s23 + $0xad4] ss:$8 sps:$4 sm:$0xff]   ;;  %v10219_v49 = vld [vmem:[%s11635_s23 + $0xbd0] ss:$8 sps:$4 sm:$0xff]  }
 0x266   : > { %8425 = vmatpush1.bf16.msra.mxu1 %v10161_v19  ;;  %v12158_v4 = vadd.f32 %v8052_v58, %v8002_v62  ;;  %v8004_v7 = vadd.f32 %v8003_v50, %v12047_v27  ;;  %v10209_v19 = vld [vmem:[%s11635_s23 + $0xbf4] ss:$8 sps:$4 sm:$0xff]   ;;  %v10225_v58 = vld [vmem:[%s11635_s23 + $0xbc0] ss:$8 sps:$4 sm:$0xff]   ;;  %v10228_v62 = vld [vmem:[%s11635_s23 + $0xab0] ss:$8 sps:$4 sm:$0xff]  }
 0x267   : > { %v8054_v52 = vpop.f32.mrf.mxu1  ;;  %8426 = vmatprep.subr.bf16.mxu1 %v10171_v43  ;;  %v8007_v12 = vpop.f32.mrf.mxu0  ;;  %8312 = vmatmul.mubr.bf16.gmra.mxu0 %v9074_v11  ;;  %v10221_v42 = vld [vmem:[%s11635_s23 + $0xbd4] ss:$8 sps:$4 sm:$0xff]   ;;  %v10216_v43 = vld [vmem:[%s11635_s23 + $0xad0] ss:$8 sps:$4 sm:$0xff]  }
 0x268   : > { %v12167_v15 = vadd.f32 %v8054_v52, %v8004_v7  ;;  %v8008_v16 = vadd.f32 %v8007_v12, %v12055_v0  ;;  %8376 = vmatpush1.bf16.msra.mxu0 %v10166_v51  ;;  %8403 = vmatprep.mubr.bf16.mxu0 %v9047_v10  ;;  %v10224_v51 = vld [vmem:[%s11635_s23 + $0xac4] ss:$8 sps:$4 sm:$0xff]   ;;  %v10230_v11 = vld [vmem:[%s11635_s23 + $0xab4] ss:$8 sps:$4 sm:$0xff]   ;;  %v10231_v50 = vld [vmem:[%s11635_s23 + $0xbb0] ss:$8 sps:$4 sm:$0xff]  }
 0x269   : > { %v8058_v14 = vpop.f32.mrf.mxu1  ;;  %8363 = vmatmul.mubr.bf16.gmra.mxu1 %v9076_v59  ;;  %v8009_v27 = vpop.f32.mrf.mxu0  ;;  %8377 = vmatprep.subr.bf16.mxu0 %v10176_v63  ;;  %v10233_v59 = vld [vmem:[%s11635_s23 + $0xbb4] ss:$8 sps:$4 sm:$0xff]   ;;  %v10236_v52 = vld [vmem:[%s11635_s23 + $0xaa4] ss:$8 sps:$4 sm:$0xff]   ;;  %v10237_v7 = vld [vmem:[%s11635_s23 + $0xba0] ss:$8 sps:$4 sm:$0xff]  }
 0x26a   : > { %8427 = vmatpush1.bf16.msra.mxu1 %v10169_v53  ;;  %v8010_v24 = vadd.f32 %v8009_v27, %v12059_v33  ;;  %v12173_v25 = vadd.f32 %v8058_v14, %v8008_v16  ;;  %8454 = vmatprep.mubr.bf16.mxu1 %v9049_v21  ;;  %v10188_v33 = vld [vmem:[%s11635_s23 + $0xa24] ss:$8 sps:$4 sm:$0xff]   ;;  %v10240_v10 = vld [vmem:[%s11635_s23 + $0xa90] ss:$8 sps:$4 sm:$0xff]   ;;  %v10246_v16 = vld [vmem:[%s11635_s23 + $0xa80] ss:$8 sps:$4 sm:$0xff]  }
 0x26b   : > { %v8060_v17 = vpop.f32.mrf.mxu1  ;;  %8428 = vmatprep.subr.bf16.mxu1 %v10179_v55  ;;  %v8011_v0 = vpop.f32.mrf.mxu0  ;;  %v10227_v53 = vld [vmem:[%s11635_s23 + $0xbc4] ss:$8 sps:$4 sm:$0xff]   ;;  %v10234_v55 = vld [vmem:[%s11635_s23 + $0xaa0] ss:$8 sps:$4 sm:$0xff]   ;;  %v10243_v21 = vld [vmem:[%s11635_s23 + $0xb90] ss:$8 sps:$4 sm:$0xff]  }
 0x26c   : > { %v12175_v2 = vadd.f32 %v8060_v17, %v8010_v24  ;;  %8378 = vmatpush1.bf16.msra.mxu0 %v10174_v8  ;;  %v10239_v63 = vld [vmem:[%s11635_s23 + $0xba4] ss:$8 sps:$4 sm:$0xff]   ;;  %v10242_v8 = vld [vmem:[%s11635_s23 + $0xa94] ss:$8 sps:$4 sm:$0xff]   ;;  %v10249_v27 = vld [vmem:[%s11635_s23 + $0xb80] ss:$8 sps:$4 sm:$0xff]   ;;  %v9048_v24 = vcombine.low %v12146_v54, %v12151_v60 }
 0x26d   : > { %v8062_v26 = vpop.f32.mrf.mxu1  ;;  %8379 = vmatprep.subr.bf16.mxu0 %v10182_v22  ;;  %v8012_v28 = vpop.f32.mrf.mxu0  ;;  %v10248_v12 = vld [vmem:[%s11635_s23 + $0xa84] ss:$8 sps:$4 sm:$0xff]   ;;  %v10254_v17 = vld [vmem:[%s11635_s23 + $0xc74] ss:$8 sps:$4 sm:$0xff]  }
 0x26e   : > { %8429 = vmatpush1.bf16.msra.mxu1 %v10177_v9  ;;  %v10245_v9 = vld [vmem:[%s11635_s23 + $0xb94] ss:$8 sps:$4 sm:$0xff]   ;;  %v10251_v14 = vld [vmem:[%s11635_s23 + $0xb84] ss:$8 sps:$4 sm:$0xff]  }
 0x26f   : > { %8430 = vmatprep.subr.bf16.mxu1 %v10185_v23  ;;  %v8063_v29 = vpop.f32.mrf.mxu1  ;;  %v10257_v22 = vld [vmem:[%s11635_s23 + $0xd74] ss:$8 sps:$4 sm:$0xff]   ;;  %v9046_v23 = vcombine.low %v12131_v47, %v12141_v56  ;;  %v10260_v47 = vld [vmem:[%s11635_s23 + $0xc64] ss:$8 sps:$4 sm:$0xff]  }
 0x270   : > { %8380 = vmatpush1.bf16.msra.mxu0 %v10180_v3  ;;  %v4511_v0 = vld [vmem:[%s12507_s0 + $0x150] sm:$0xff]  ;;  %v4512_v26 = vld [vmem:[%s12507_s0 + $0x158] sm:$0xff]  ;;  %v10263_v56 = vld [vmem:[%s11635_s23 + $0xd64] ss:$8 sps:$4 sm:$0xff]  }
 0x271   : > { %8381 = vmatprep.subr.bf16.mxu0 %v10188_v33  ;;  %v10252_v3 = vld [vmem:[%s11635_s23 + $0xc70] ss:$8 sps:$4 sm:$0xff]   ;;  %v9079_v54 = vcombine.high %v4511_v0, %v4511_v0  ;;  %v9081_v60 = vcombine.high %v4512_v26, %v4512_v26  ;;  %v10258_v29 = vld [vmem:[%s11635_s23 + $0xc60] ss:$8 sps:$4 sm:$0xff]  }
 0x272   : > { %8431 = vmatpush1.bf16.msra.mxu1 %v10183_v5  ;;  %v10255_v5 = vld [vmem:[%s11635_s23 + $0xd70] ss:$8 sps:$4 sm:$0xff]  }
 0x273   : > { %8432 = vmatprep.subr.bf16.mxu1 %v10191_v6 }
 0x274   : > { %8382 = vmatpush1.bf16.msra.mxu0 %v10186_v1  ;;  %v10261_v1 = vld [vmem:[%s11635_s23 + $0xd60] ss:$8 sps:$4 sm:$0xff]  }
 0x275   : > { %8383 = vmatprep.subr.bf16.mxu0 %v10194_v31 }
 0x276   : > { %8433 = vmatpush1.bf16.msra.mxu1 %v10189_v30 }
 0x277   : > { %8434 = vmatprep.subr.bf16.mxu1 %v10197_v32  ;;  %v10268_v32 = vld [vmem:[%s11635_s23 + $0xc54] ss:$8 sps:$4 sm:$0xff]  }
 0x278   : > { %8384 = vmatpush1.bf16.msra.mxu0 %v10192_v34  ;;  %v10271_v34 = vld [vmem:[%s11635_s23 + $0xd54] ss:$8 sps:$4 sm:$0xff]  }
 0x279   : > { %8385 = vmatprep.subr.bf16.mxu0 %v10200_v36 }
 0x27a   : > { %8435 = vmatpush1.bf16.msra.mxu1 %v10195_v35 }
 0x27b   : > { %8436 = vmatprep.subr.bf16.mxu1 %v10203_v37 }
 0x27c   : > { %8386 = vmatpush1.bf16.msra.mxu0 %v10198_v39 }
 0x27d   : > { %8387 = vmatprep.subr.bf16.mxu0 %v10206_v18  ;;  %v9080_v18 = vcombine.low %v4512_v26, %v4512_v26  ;;  %v10295_v26 = vld [vmem:[%s11635_s23 + $0xd10] ss:$8 sps:$4 sm:$0xff]  }
 0x27e   : > { %8437 = vmatpush1.bf16.msra.mxu1 %v10201_v13  ;;  %v9078_v13 = vcombine.low %v4511_v0, %v4511_v0  ;;  %v10292_v0 = vld [vmem:[%s11635_s23 + $0xc10] ss:$8 sps:$4 sm:$0xff]  }
 0x27f   : > { %8438 = vmatprep.subr.bf16.mxu1 %v10209_v19  ;;  %v12255_v19 = vld [vmem:[%s12507_s0 + $0xe0] sm:$0xff] }
 0x280   : > { %8388 = vmatpush2.bf16.msra.mxu0 %v10204_v20  ;;  %v12265_v20 = vld [vmem:[%s12507_s0 + $0xe8] sm:$0xff] }
 0x281   : > { %8389 = vmatprep.subr.bf16.mxu0 %v10212_v44 }
 0x282   : > { %8439 = vmatpush2.bf16.msra.mxu1 %v10207_v40 }
 0x283   : > { %8440 = vmatprep.subr.bf16.mxu1 %v10215_v45  ;;  %v10266_v45 = vld [vmem:[%s11635_s23 + $0xc50] ss:$8 sps:$4 sm:$0xff]  }
 0x284   : > { %8390 = vmatpush2.bf16.msra.mxu0 %v10210_v46  ;;  %v10269_v46 = vld [vmem:[%s11635_s23 + $0xd50] ss:$8 sps:$4 sm:$0xff]  }
 0x285   : > { %8391 = vmatprep.subr.bf16.mxu0 %v10218_v41 }
 0x286   : > { %8441 = vmatpush2.bf16.msra.mxu1 %v10213_v38 }
 0x287   : > { %8442 = vmatprep.subr.bf16.mxu1 %v10221_v42  ;;  %v10276_v42 = vld [vmem:[%s11635_s23 + $0xc44] ss:$8 sps:$4 sm:$0xff]  }
 0x288   : > { %8392 = vmatpush2.bf16.msra.mxu0 %v10216_v43  ;;  %v10279_v43 = vld [vmem:[%s11635_s23 + $0xd44] ss:$8 sps:$4 sm:$0xff]  }
 0x289   : > { %8393 = vmatprep.subr.bf16.mxu0 %v10224_v51 }
 0x28a   : > { %8443 = vmatpush2.bf16.msra.mxu1 %v10219_v49 }
 0x28b   : > { %8444 = vmatprep.subr.bf16.mxu1 %v10227_v53 }
 0x28c   : > { %8394 = vmatpush2.bf16.msra.mxu0 %v10222_v57 }
 0x28d   : > { %8395 = vmatprep.subr.bf16.mxu0 %v10230_v11 }
 0x28e   : > { %8445 = vmatpush2.bf16.msra.mxu1 %v10225_v58 }
 0x28f   : > { %8446 = vmatprep.subr.bf16.mxu1 %v10233_v59 }
 0x290   : > { %8396 = vmatpush2.bf16.msra.mxu0 %v10228_v62  ;;  %v10274_v62 = vld [vmem:[%s11635_s23 + $0xc40] ss:$8 sps:$4 sm:$0xff]  }
 0x291   : > { %8397 = vmatprep.subr.bf16.mxu0 %v10236_v52 }
 0x292   : > { %8447 = vmatpush2.bf16.msra.mxu1 %v10231_v50 }
 0x293   : > { %8448 = vmatprep.subr.bf16.mxu1 %v10239_v63  ;;  %v10282_v63 = vld [vmem:[%s11635_s23 + $0xc34] ss:$8 sps:$4 sm:$0xff]  }
 0x294   : > { %8398 = vmatpush2.bf16.msra.mxu0 %v10234_v55  ;;  %v10285_v55 = vld [vmem:[%s11635_s23 + $0xd34] ss:$8 sps:$4 sm:$0xff]  }
 0x295   : > { %8399 = vmatprep.subr.bf16.mxu0 %v10242_v8 }
 0x296   : > { %8449 = vmatpush2.bf16.msra.mxu1 %v10237_v7 }
 0x297   : > { %8450 = vmatprep.subr.bf16.mxu1 %v10245_v9 }
 0x298   : > { %8400 = vmatpush2.bf16.msra.mxu0 %v10240_v10 }
 0x299   : > { %8401 = vmatprep.subr.bf16.mxu0 %v10248_v12  ;;  %v10283_v12 = vld [vmem:[%s11635_s23 + $0xd30] ss:$8 sps:$4 sm:$0xff]  }
 0x29a   : > { %8451 = vmatpush2.bf16.msra.mxu1 %v10243_v21  ;;  %v10280_v21 = vld [vmem:[%s11635_s23 + $0xc30] ss:$8 sps:$4 sm:$0xff]  }
 0x29b   : > { %8452 = vmatprep.subr.bf16.mxu1 %v10251_v14  ;;  %v10291_v14 = vld [vmem:[%s11635_s23 + $0xd24] ss:$8 sps:$4 sm:$0xff]  }
 0x29c   : > { %8402 = vmatpush2.bf16.msra.mxu0 %v10246_v16 }
 0x29d   : > { %8473 = vmatprep.subr.bf16.mxu0 %v10254_v17  ;;  %v10286_v17 = vld [vmem:[%s11635_s23 + $0xc20] ss:$8 sps:$4 sm:$0xff]  }
 0x29e   : > { %8453 = vmatpush2.bf16.msra.mxu1 %v10249_v27 }
 0x29f   : > { %8524 = vmatprep.subr.bf16.mxu1 %v10257_v22  ;;  %v8099_v33 = vpop.f32.mrf.mxu0  ;;  %8404 = vmatmul.mubr.bf16.vlgmr.msra.gmra.mxu0 %v9046_v23  ;;  %v10289_v22 = vld [vmem:[%s11635_s23 + $0xd20] ss:$8 sps:$4 sm:$0xff]   ;;  %v10294_v23 = vld [vmem:[%s11635_s23 + $0xc14] ss:$8 sps:$4 sm:$0xff]  }
 0x2a0   : > { %v8100_v28 = vadd.f32 %v8099_v33, %v12133_v48  ;;  %8474 = vmatpush1.bf16.msra.mxu0 %v10252_v3  ;;  %8413 = vmatprep.mubr.bf16.mxu0 %v9079_v54  ;;  %v12250_v48 = vld [vmem:[%s12507_s0 + $0x60] sm:$0xff]  ;;  %v10306_v54 = vld [vmem:[%s11635_s23 + $0xcf4] ss:$8 sps:$4 sm:$0xff]   ;;  %v10304_v33 = vld [vmem:[%s11635_s23 + $0xcf0] ss:$8 sps:$4 sm:$0xff]  }
 0x2a1   : > { %v8150_v6 = vpop.f32.mrf.mxu1  ;;  %8455 = vmatmul.mubr.bf16.vlgmr.msra.gmra.mxu1 %v9048_v24  ;;  %v8101_v30 = vpop.f32.mrf.mxu0  ;;  %8475 = vmatprep.subr.bf16.mxu0 %v10260_v47  ;;  %v9051_v53 = vcombine.high %v12250_v48, %v12255_v19  ;;  %v10297_v24 = vld [vmem:[%s11635_s23 + $0xd14] ss:$8 sps:$4 sm:$0xff]   ;;  %v10300_v3 = vld [vmem:[%s11635_s23 + $0xc04] ss:$8 sps:$4 sm:$0xff]   ;;  %v10298_v47 = vld [vmem:[%s11635_s23 + $0xc00] ss:$8 sps:$4 sm:$0xff]  }
 0x2a2   : > { %8525 = vmatpush1.bf16.msra.mxu1 %v10255_v5  ;;  %v12244_v35 = vadd.f32 %v8150_v6, %v8100_v28  ;;  %v8102_v36 = vadd.f32 %v8101_v30, %v12153_v61  ;;  %8464 = vmatprep.mubr.bf16.mxu1 %v9081_v60  ;;  %v12260_v61 = vld [vmem:[%s12507_s0 + $0x68] sm:$0xff]  ;;  %v10309_v60 = vld [vmem:[%s11635_s23 + $0xdf4] ss:$8 sps:$4 sm:$0xff]   ;;  %v10307_v6 = vld [vmem:[%s11635_s23 + $0xdf0] ss:$8 sps:$4 sm:$0xff]  }
 0x2a3   : > { %v8152_v31 = vpop.f32.mrf.mxu1  ;;  %8526 = vmatprep.subr.bf16.mxu1 %v10263_v56  ;;  %v8103_v37 = vpop.f32.mrf.mxu0  ;;  %v10303_v5 = vld [vmem:[%s11635_s23 + $0xd04] ss:$8 sps:$4 sm:$0xff]   ;;  %v10301_v56 = vld [vmem:[%s11635_s23 + $0xd00] ss:$8 sps:$4 sm:$0xff]  }
 0x2a4   : > { %v12267_v40 = vadd.f32 %v8152_v31, %v8102_v36  ;;  %v8104_v44 = vadd.f32 %v8103_v37, %v12158_v4  ;;  %8476 = vmatpush1.bf16.msra.mxu0 %v10258_v29  ;;  %v9053_v4 = vcombine.high %v12260_v61, %v12265_v20  ;;  %v10312_v28 = vld [vmem:[%s11635_s23 + $0xce4] ss:$8 sps:$4 sm:$0xff]   ;;  %v10313_v30 = vld [vmem:[%s11635_s23 + $0xde0] ss:$8 sps:$4 sm:$0xff]   ;;  %v10318_v31 = vld [vmem:[%s11635_s23 + $0xcd4] ss:$8 sps:$4 sm:$0xff]  }
 0x2a5   : > { %v8154_v39 = vpop.f32.mrf.mxu1  ;;  %v8105_v38 = vpop.f32.mrf.mxu0  ;;  %8477 = vmatprep.subr.bf16.mxu0 %v10268_v32  ;;  %v10315_v29 = vld [vmem:[%s11635_s23 + $0xde4] ss:$8 sps:$4 sm:$0xff]   ;;  %v10321_v32 = vld [vmem:[%s11635_s23 + $0xdd4] ss:$8 sps:$4 sm:$0xff]   ;;  %v10319_v36 = vld [vmem:[%s11635_s23 + $0xdd0] ss:$8 sps:$4 sm:$0xff]  }
 0x2a6   : > { %8527 = vmatpush1.bf16.msra.mxu1 %v10261_v1  ;;  %v12274_v49 = vadd.f32 %v8154_v39, %v8104_v44  ;;  %v8106_v51 = vadd.f32 %v8105_v38, %v12167_v15  ;;  %v10277_v15 = vld [vmem:[%s11635_s23 + $0xd40] ss:$8 sps:$4 sm:$0xff]   ;;  %v10324_v37 = vld [vmem:[%s11635_s23 + $0xcc4] ss:$8 sps:$4 sm:$0xff]   ;;  %v10330_v44 = vld [vmem:[%s11635_s23 + $0xcb4] ss:$8 sps:$4 sm:$0xff]  }
 0x2a7   : > { %v8156_v41 = vpop.f32.mrf.mxu1  ;;  %8528 = vmatprep.subr.bf16.mxu1 %v10271_v34  ;;  %v8109_v57 = vpop.f32.mrf.mxu0  ;;  %8414 = vmatmul.mubr.bf16.gmra.mxu0 %v9078_v13  ;;  %v10310_v1 = vld [vmem:[%s11635_s23 + $0xce0] ss:$8 sps:$4 sm:$0xff]   ;;  %v10316_v34 = vld [vmem:[%s11635_s23 + $0xcd0] ss:$8 sps:$4 sm:$0xff]   ;;  %v10327_v39 = vld [vmem:[%s11635_s23 + $0xdc4] ss:$8 sps:$4 sm:$0xff]  }
 0x2a8   : > { %v12281_v11 = vadd.f32 %v8156_v41, %v8106_v51  ;;  %v8110_v59 = vadd.f32 %v8109_v57, %v12173_v25  ;;  %8478 = vmatpush1.bf16.msra.mxu0 %v10266_v45  ;;  %8505 = vmatprep.mubr.bf16.mxu0 %v9051_v53  ;;  %v10322_v13 = vld [vmem:[%s11635_s23 + $0xcc0] ss:$8 sps:$4 sm:$0xff]   ;;  %v10333_v45 = vld [vmem:[%s11635_s23 + $0xdb4] ss:$8 sps:$4 sm:$0xff]   ;;  %v10331_v38 = vld [vmem:[%s11635_s23 + $0xdb0] ss:$8 sps:$4 sm:$0xff]  }
 0x2a9   : > { %v8160_v58 = vpop.f32.mrf.mxu1  ;;  %8465 = vmatmul.mubr.bf16.gmra.mxu1 %v9080_v18  ;;  %v8111_v50 = vpop.f32.mrf.mxu0  ;;  %8479 = vmatprep.subr.bf16.mxu0 %v10276_v42  ;;  %v10325_v18 = vld [vmem:[%s11635_s23 + $0xdc0] ss:$8 sps:$4 sm:$0xff]   ;;  %v10336_v41 = vld [vmem:[%s11635_s23 + $0xca4] ss:$8 sps:$4 sm:$0xff]   ;;  %v10342_v53 = vld [vmem:[%s11635_s23 + $0xc94] ss:$8 sps:$4 sm:$0xff]  }
 0x2aa   : > { %8529 = vmatpush1.bf16.msra.mxu1 %v10269_v46  ;;  %v8112_v7 = vadd.f32 %v8111_v50, %v12175_v2  ;;  %v12289_v8 = vadd.f32 %v8160_v58, %v8110_v59  ;;  %8556 = vmatprep.mubr.bf16.mxu1 %v9053_v4  ;;  %v10288_v2 = vld [vmem:[%s11635_s23 + $0xc24] ss:$8 sps:$4 sm:$0xff]   ;;  %v10328_v46 = vld [vmem:[%s11635_s23 + $0xcb0] ss:$8 sps:$4 sm:$0xff]   ;;  %v10337_v51 = vld [vmem:[%s11635_s23 + $0xda0] ss:$8 sps:$4 sm:$0xff]  }
 0x2ab   : > { %v8162_v52 = vpop.f32.mrf.mxu1  ;;  %8530 = vmatprep.subr.bf16.mxu1 %v10279_v43  ;;  %v8113_v25 = vpop.f32.mrf.mxu0  ;;  %v10339_v42 = vld [vmem:[%s11635_s23 + $0xda4] ss:$8 sps:$4 sm:$0xff]   ;;  %v10334_v43 = vld [vmem:[%s11635_s23 + $0xca0] ss:$8 sps:$4 sm:$0xff]   ;;  %v10345_v4 = vld [vmem:[%s11635_s23 + $0xd94] ss:$8 sps:$4 sm:$0xff]  }
 0x2ac   : > { %v12291_v10 = vadd.f32 %v8162_v52, %v8112_v7  ;;  %8480 = vmatpush1.bf16.msra.mxu0 %v10274_v62  ;;  %v10340_v57 = vld [vmem:[%s11635_s23 + $0xc90] ss:$8 sps:$4 sm:$0xff]   ;;  %v10348_v59 = vld [vmem:[%s11635_s23 + $0xc84] ss:$8 sps:$4 sm:$0xff]   ;;  %v10349_v50 = vld [vmem:[%s11635_s23 + $0xd80] ss:$8 sps:$4 sm:$0xff]   ;;  %v9052_v7 = vcombine.low %v12260_v61, %v12265_v20 }
 0x2ad   : > { %v8164_v9 = vpop.f32.mrf.mxu1  ;;  %8481 = vmatprep.subr.bf16.mxu0 %v10282_v63  ;;  %v8114_v16 = vpop.f32.mrf.mxu0  ;;  %v10343_v58 = vld [vmem:[%s11635_s23 + $0xd90] ss:$8 sps:$4 sm:$0xff]   ;;  %v10351_v62 = vld [vmem:[%s11635_s23 + $0xd84] ss:$8 sps:$4 sm:$0xff]   ;;  %v10354_v52 = vld [vmem:[%s11635_s23 + $0xe74] ss:$8 sps:$4 sm:$0xff]  }
 0x2ae   : > { %8531 = vmatpush1.bf16.msra.mxu1 %v10277_v15  ;;  %v10346_v15 = vld [vmem:[%s11635_s23 + $0xc80] ss:$8 sps:$4 sm:$0xff]   ;;  %v10357_v63 = vld [vmem:[%s11635_s23 + $0xf74] ss:$8 sps:$4 sm:$0xff]  }
 0x2af   : > { %8532 = vmatprep.subr.bf16.mxu1 %v10285_v55  ;;  %v8165_v27 = vpop.f32.mrf.mxu1  ;;  %v9050_v55 = vcombine.low %v12250_v48, %v12255_v19  ;;  %v4513_v25 = vld [vmem:[%s12507_s0 + $0x160] sm:$0xff]  ;;  %v4514_v9 = vld [vmem:[%s12507_s0 + $0x168] sm:$0xff] }
 0x2b0   : > { %8482 = vmatpush1.bf16.msra.mxu0 %v10280_v21  ;;  %v10352_v21 = vld [vmem:[%s11635_s23 + $0xe70] ss:$8 sps:$4 sm:$0xff]   ;;  %v10360_v48 = vld [vmem:[%s11635_s23 + $0xe64] ss:$8 sps:$4 sm:$0xff]   ;;  %v9083_v61 = vcombine.high %v4513_v25, %v4513_v25  ;;  %v9085_v20 = vcombine.high %v4514_v9, %v4514_v9  ;;  %v10358_v27 = vld [vmem:[%s11635_s23 + $0xe60] ss:$8 sps:$4 sm:$0xff]  }
 0x2b1   : > { %8483 = vmatprep.subr.bf16.mxu0 %v10288_v2  ;;  %v10363_v19 = vld [vmem:[%s11635_s23 + $0xf64] ss:$8 sps:$4 sm:$0xff]  }
 0x2b2   : > { %8533 = vmatpush1.bf16.msra.mxu1 %v10283_v12  ;;  %v10355_v12 = vld [vmem:[%s11635_s23 + $0xf70] ss:$8 sps:$4 sm:$0xff]  }
 0x2b3   : > { %8534 = vmatprep.subr.bf16.mxu1 %v10291_v14 }
 0x2b4   : > { %8484 = vmatpush1.bf16.msra.mxu0 %v10286_v17  ;;  %v10361_v17 = vld [vmem:[%s11635_s23 + $0xf60] ss:$8 sps:$4 sm:$0xff]  }
 0x2b5   : > { %8485 = vmatprep.subr.bf16.mxu0 %v10294_v23 }
 0x2b6   : > { %8535 = vmatpush1.bf16.msra.mxu1 %v10289_v22 }
 0x2b7   : > { %8536 = vmatprep.subr.bf16.mxu1 %v10297_v24  ;;  %v10368_v24 = vld [vmem:[%s11635_s23 + $0xe54] ss:$8 sps:$4 sm:$0xff]  }
 0x2b8   : > { %8486 = vmatpush1.bf16.msra.mxu0 %v10292_v0  ;;  %v10371_v0 = vld [vmem:[%s11635_s23 + $0xf54] ss:$8 sps:$4 sm:$0xff]  }
 0x2b9   : > { %8487 = vmatprep.subr.bf16.mxu0 %v10300_v3 }
 0x2ba   : > { %8537 = vmatpush1.bf16.msra.mxu1 %v10295_v26 }
 0x2bb   : > { %8538 = vmatprep.subr.bf16.mxu1 %v10303_v5 }
 0x2bc   : > { %8488 = vmatpush1.bf16.msra.mxu0 %v10298_v47 }
 0x2bd   : > { %8489 = vmatprep.subr.bf16.mxu0 %v10306_v54  ;;  %v9084_v54 = vcombine.low %v4514_v9, %v4514_v9  ;;  %v10395_v9 = vld [vmem:[%s11635_s23 + $0xf10] ss:$8 sps:$4 sm:$0xff]  }
 0x2be   : > { %8539 = vmatpush1.bf16.msra.mxu1 %v10301_v56  ;;  %v9082_v56 = vcombine.low %v4513_v25, %v4513_v25  ;;  %v10392_v25 = vld [vmem:[%s11635_s23 + $0xe10] ss:$8 sps:$4 sm:$0xff]  }
 0x2bf   : > { %8540 = vmatprep.subr.bf16.mxu1 %v10309_v60  ;;  %v12371_v60 = vld [vmem:[%s12507_s0 + $0xf0] sm:$0xff] }
 0x2c0   : > { %8490 = vmatpush2.bf16.msra.mxu0 %v10304_v33  ;;  %v12381_v33 = vld [vmem:[%s12507_s0 + $0xf8] sm:$0xff] }
 0x2c1   : > { %8491 = vmatprep.subr.bf16.mxu0 %v10312_v28 }
 0x2c2   : > { %8541 = vmatpush2.bf16.msra.mxu1 %v10307_v6 }
 0x2c3   : > { %8542 = vmatprep.subr.bf16.mxu1 %v10315_v29  ;;  %v10366_v29 = vld [vmem:[%s11635_s23 + $0xe50] ss:$8 sps:$4 sm:$0xff]  }
 0x2c4   : > { %8492 = vmatpush2.bf16.msra.mxu0 %v10310_v1  ;;  %v10369_v1 = vld [vmem:[%s11635_s23 + $0xf50] ss:$8 sps:$4 sm:$0xff]  }
 0x2c5   : > { %8493 = vmatprep.subr.bf16.mxu0 %v10318_v31 }
 0x2c6   : > { %8543 = vmatpush2.bf16.msra.mxu1 %v10313_v30 }
 0x2c7   : > { %8544 = vmatprep.subr.bf16.mxu1 %v10321_v32  ;;  %v10376_v32 = vld [vmem:[%s11635_s23 + $0xe44] ss:$8 sps:$4 sm:$0xff]  }
 0x2c8   : > { %8494 = vmatpush2.bf16.msra.mxu0 %v10316_v34  ;;  %v10379_v34 = vld [vmem:[%s11635_s23 + $0xf44] ss:$8 sps:$4 sm:$0xff]  }
 0x2c9   : > { %8495 = vmatprep.subr.bf16.mxu0 %v10324_v37 }
 0x2ca   : > { %8545 = vmatpush2.bf16.msra.mxu1 %v10319_v36 }
 0x2cb   : > { %8546 = vmatprep.subr.bf16.mxu1 %v10327_v39 }
 0x2cc   : > { %8496 = vmatpush2.bf16.msra.mxu0 %v10322_v13 }
 0x2cd   : > { %8497 = vmatprep.subr.bf16.mxu0 %v10330_v44 }
 0x2ce   : > { %8547 = vmatpush2.bf16.msra.mxu1 %v10325_v18 }
 0x2cf   : > { %8548 = vmatprep.subr.bf16.mxu1 %v10333_v45 }
 0x2d0   : > { %8498 = vmatpush2.bf16.msra.mxu0 %v10328_v46  ;;  %v10374_v46 = vld [vmem:[%s11635_s23 + $0xe40] ss:$8 sps:$4 sm:$0xff]  }
 0x2d1   : > { %8499 = vmatprep.subr.bf16.mxu0 %v10336_v41 }
 0x2d2   : > { %8549 = vmatpush2.bf16.msra.mxu1 %v10331_v38 }
 0x2d3   : > { %8550 = vmatprep.subr.bf16.mxu1 %v10339_v42  ;;  %v10382_v42 = vld [vmem:[%s11635_s23 + $0xe34] ss:$8 sps:$4 sm:$0xff]  }
 0x2d4   : > { %8500 = vmatpush2.bf16.msra.mxu0 %v10334_v43  ;;  %v10385_v43 = vld [vmem:[%s11635_s23 + $0xf34] ss:$8 sps:$4 sm:$0xff]  }
 0x2d5   : > { %8501 = vmatprep.subr.bf16.mxu0 %v10342_v53 }
 0x2d6   : > { %8551 = vmatpush2.bf16.msra.mxu1 %v10337_v51 }
 0x2d7   : > { %8552 = vmatprep.subr.bf16.mxu1 %v10345_v4 }
 0x2d8   : > { %8502 = vmatpush2.bf16.msra.mxu0 %v10340_v57 }
 0x2d9   : > { %8503 = vmatprep.subr.bf16.mxu0 %v10348_v59  ;;  %v10383_v59 = vld [vmem:[%s11635_s23 + $0xf30] ss:$8 sps:$4 sm:$0xff]  }
 0x2da   : > { %8553 = vmatpush2.bf16.msra.mxu1 %v10343_v58  ;;  %v10380_v58 = vld [vmem:[%s11635_s23 + $0xe30] ss:$8 sps:$4 sm:$0xff]  }
 0x2db   : > { %8554 = vmatprep.subr.bf16.mxu1 %v10351_v62  ;;  %v10391_v62 = vld [vmem:[%s11635_s23 + $0xf24] ss:$8 sps:$4 sm:$0xff]  }
 0x2dc   : > { %8504 = vmatpush2.bf16.msra.mxu0 %v10346_v15 }
 0x2dd   : > { %8575 = vmatprep.subr.bf16.mxu0 %v10354_v52  ;;  %v10386_v52 = vld [vmem:[%s11635_s23 + $0xe20] ss:$8 sps:$4 sm:$0xff]  }
 0x2de   : > { %8555 = vmatpush2.bf16.msra.mxu1 %v10349_v50 }
 0x2df   : > { %8626 = vmatprep.subr.bf16.mxu1 %v10357_v63  ;;  %v8201_v2 = vpop.f32.mrf.mxu0  ;;  %8506 = vmatmul.mubr.bf16.vlgmr.msra.gmra.mxu0 %v9050_v55  ;;  %v10389_v63 = vld [vmem:[%s11635_s23 + $0xf20] ss:$8 sps:$4 sm:$0xff]   ;;  %v10394_v55 = vld [vmem:[%s11635_s23 + $0xe14] ss:$8 sps:$4 sm:$0xff]  }
 0x2e0   : > { %v8202_v16 = vadd.f32 %v8201_v2, %v12244_v35  ;;  %8576 = vmatpush1.bf16.msra.mxu0 %v10352_v21  ;;  %8515 = vmatprep.mubr.bf16.mxu0 %v9083_v61  ;;  %v12366_v35 = vld [vmem:[%s12507_s0 + $0x70] sm:$0xff]  ;;  %v10400_v21 = vld [vmem:[%s11635_s23 + $0xe04] ss:$8 sps:$4 sm:$0xff]  }
 0x2e1   : > { %v8252_v14 = vpop.f32.mrf.mxu1  ;;  %8557 = vmatmul.mubr.bf16.vlgmr.msra.gmra.mxu1 %v9052_v7  ;;  %v8203_v22 = vpop.f32.mrf.mxu0  ;;  %8577 = vmatprep.subr.bf16.mxu0 %v10360_v48  ;;  %v9055_v39 = vcombine.high %v12366_v35, %v12371_v60  ;;  %v10397_v7 = vld [vmem:[%s11635_s23 + $0xf14] ss:$8 sps:$4 sm:$0xff]   ;;  %v10398_v48 = vld [vmem:[%s11635_s23 + $0xe00] ss:$8 sps:$4 sm:$0xff]   ;;  %v10404_v2 = vld [vmem:[%s11635_s23 + $0xef0] ss:$8 sps:$4 sm:$0xff]  }
 0x2e2   : > { %8627 = vmatpush1.bf16.msra.mxu1 %v10355_v12  ;;  %v12360_v26 = vadd.f32 %v8252_v14, %v8202_v16  ;;  %v8204_v3 = vadd.f32 %v8203_v22, %v12267_v40  ;;  %8566 = vmatprep.mubr.bf16.mxu1 %v9085_v20  ;;  %v12376_v40 = vld [vmem:[%s12507_s0 + $0x78] sm:$0xff]  ;;  %v10403_v12 = vld [vmem:[%s11635_s23 + $0xf04] ss:$8 sps:$4 sm:$0xff]   ;;  %v10413_v22 = vld [vmem:[%s11635_s23 + $0xfe0] ss:$8 sps:$4 sm:$0xff]  }
 0x2e3   : > { %v8254_v23 = vpop.f32.mrf.mxu1  ;;  %8628 = vmatprep.subr.bf16.mxu1 %v10363_v19  ;;  %v8205_v5 = vpop.f32.mrf.mxu0  ;;  %v10401_v19 = vld [vmem:[%s11635_s23 + $0xf00] ss:$8 sps:$4 sm:$0xff]   ;;  %v10406_v61 = vld [vmem:[%s11635_s23 + $0xef4] ss:$8 sps:$4 sm:$0xff]   ;;  %v10407_v14 = vld [vmem:[%s11635_s23 + $0xff0] ss:$8 sps:$4 sm:$0xff]  }
 0x2e4   : > { %v12383_v6 = vadd.f32 %v8254_v23, %v8204_v3  ;;  %v8206_v28 = vadd.f32 %v8205_v5, %v12274_v49  ;;  %8578 = vmatpush1.bf16.msra.mxu0 %v10358_v27  ;;  %v9057_v49 = vcombine.high %v12376_v40, %v12381_v33  ;;  %v10409_v20 = vld [vmem:[%s11635_s23 + $0xff4] ss:$8 sps:$4 sm:$0xff]   ;;  %v10412_v16 = vld [vmem:[%s11635_s23 + $0xee4] ss:$8 sps:$4 sm:$0xff]   ;;  %v10419_v3 = vld [vmem:[%s11635_s23 + $0xfd0] ss:$8 sps:$4 sm:$0xff]  }
 0x2e5   : > { %v8256_v47 = vpop.f32.mrf.mxu1  ;;  %v8207_v30 = vpop.f32.mrf.mxu0  ;;  %8579 = vmatprep.subr.bf16.mxu0 %v10368_v24  ;;  %v10415_v27 = vld [vmem:[%s11635_s23 + $0xfe4] ss:$8 sps:$4 sm:$0xff]   ;;  %v10418_v23 = vld [vmem:[%s11635_s23 + $0xed4] ss:$8 sps:$4 sm:$0xff]  }
 0x2e6   : > { %8629 = vmatpush1.bf16.msra.mxu1 %v10361_v17  ;;  %v12390_v36 = vadd.f32 %v8256_v47, %v8206_v28  ;;  %v8208_v37 = vadd.f32 %v8207_v30, %v12281_v11  ;;  %v10377_v11 = vld [vmem:[%s11635_s23 + $0xf40] ss:$8 sps:$4 sm:$0xff]   ;;  %v10421_v24 = vld [vmem:[%s11635_s23 + $0xfd4] ss:$8 sps:$4 sm:$0xff]   ;;  %v10424_v5 = vld [vmem:[%s11635_s23 + $0xec4] ss:$8 sps:$4 sm:$0xff]  }
 0x2e7   : > { %v8258_v31 = vpop.f32.mrf.mxu1  ;;  %8630 = vmatprep.subr.bf16.mxu1 %v10371_v0  ;;  %v8211_v13 = vpop.f32.mrf.mxu0  ;;  %8516 = vmatmul.mubr.bf16.gmra.mxu0 %v9082_v56  ;;  %v10410_v17 = vld [vmem:[%s11635_s23 + $0xee0] ss:$8 sps:$4 sm:$0xff]   ;;  %v10416_v0 = vld [vmem:[%s11635_s23 + $0xed0] ss:$8 sps:$4 sm:$0xff]   ;;  %v10427_v47 = vld [vmem:[%s11635_s23 + $0xfc4] ss:$8 sps:$4 sm:$0xff]  }
 0x2e8   : > { %v12397_v44 = vadd.f32 %v8258_v31, %v8208_v37  ;;  %v8212_v45 = vadd.f32 %v8211_v13, %v12289_v8  ;;  %8580 = vmatpush1.bf16.msra.mxu0 %v10366_v29  ;;  %8607 = vmatprep.mubr.bf16.mxu0 %v9055_v39  ;;  %v10422_v56 = vld [vmem:[%s11635_s23 + $0xec0] ss:$8 sps:$4 sm:$0xff]   ;;  %v10430_v28 = vld [vmem:[%s11635_s23 + $0xeb4] ss:$8 sps:$4 sm:$0xff]   ;;  %v10431_v30 = vld [vmem:[%s11635_s23 + $0xfb0] ss:$8 sps:$4 sm:$0xff]  }
 0x2e9   : > { %v8262_v18 = vpop.f32.mrf.mxu1  ;;  %8567 = vmatmul.mubr.bf16.gmra.mxu1 %v9084_v54  ;;  %v8213_v38 = vpop.f32.mrf.mxu0  ;;  %8581 = vmatprep.subr.bf16.mxu0 %v10376_v32  ;;  %v10425_v54 = vld [vmem:[%s11635_s23 + $0xfc0] ss:$8 sps:$4 sm:$0xff]   ;;  %v10433_v29 = vld [vmem:[%s11635_s23 + $0xfb4] ss:$8 sps:$4 sm:$0xff]   ;;  %v10436_v31 = vld [vmem:[%s11635_s23 + $0xea4] ss:$8 sps:$4 sm:$0xff]  }
 0x2ea   : > { %8631 = vmatpush1.bf16.msra.mxu1 %v10369_v1  ;;  %v8214_v51 = vadd.f32 %v8213_v38, %v12291_v10  ;;  %v12405_v53 = vadd.f32 %v8262_v18, %v8212_v45  ;;  %8658 = vmatprep.mubr.bf16.mxu1 %v9057_v49  ;;  %v10388_v10 = vld [vmem:[%s11635_s23 + $0xe24] ss:$8 sps:$4 sm:$0xff]   ;;  %v10428_v1 = vld [vmem:[%s11635_s23 + $0xeb0] ss:$8 sps:$4 sm:$0xff]   ;;  %v10437_v37 = vld [vmem:[%s11635_s23 + $0xfa0] ss:$8 sps:$4 sm:$0xff]  }
 0x2eb   : > { %v8264_v41 = vpop.f32.mrf.mxu1  ;;  %8632 = vmatprep.subr.bf16.mxu1 %v10379_v34  ;;  %v8215_v8 = vpop.f32.mrf.mxu0  ;;  %v10439_v32 = vld [vmem:[%s11635_s23 + $0xfa4] ss:$8 sps:$4 sm:$0xff]   ;;  %v10434_v34 = vld [vmem:[%s11635_s23 + $0xea0] ss:$8 sps:$4 sm:$0xff]   ;;  %v10442_v39 = vld [vmem:[%s11635_s23 + $0xe94] ss:$8 sps:$4 sm:$0xff]  }
 0x2ec   : > { %v12407_v57 = vadd.f32 %v8264_v41, %v8214_v51  ;;  %8582 = vmatpush1.bf16.msra.mxu0 %v10374_v46  ;;  %v10445_v49 = vld [vmem:[%s11635_s23 + $0xf94] ss:$8 sps:$4 sm:$0xff]   ;;  %v10440_v13 = vld [vmem:[%s11635_s23 + $0xe90] ss:$8 sps:$4 sm:$0xff]   ;;  %v10448_v45 = vld [vmem:[%s11635_s23 + $0xe84] ss:$8 sps:$4 sm:$0xff]   ;;  %v9056_v51 = vcombine.low %v12376_v40, %v12381_v33 }
 0x2ed   : > { %v8266_v4 = vpop.f32.mrf.mxu1  ;;  %8583 = vmatprep.subr.bf16.mxu0 %v10382_v42  ;;  %v8216_v15 = vpop.f32.mrf.mxu0  ;;  %v10443_v18 = vld [vmem:[%s11635_s23 + $0xf90] ss:$8 sps:$4 sm:$0xff]   ;;  %v10451_v46 = vld [vmem:[%s11635_s23 + $0xf84] ss:$8 sps:$4 sm:$0xff]   ;;  %v10449_v38 = vld [vmem:[%s11635_s23 + $0xf80] ss:$8 sps:$4 sm:$0xff]  }
 0x2ee   : > { %8633 = vmatpush1.bf16.msra.mxu1 %v10377_v11  ;;  %v10446_v11 = vld [vmem:[%s11635_s23 + $0xe80] ss:$8 sps:$4 sm:$0xff]   ;;  %v4515_v41 = vld [vmem:[%s12507_s0 + $0x170] sm:$0xff]  ;;  %v4516_v42 = vld [vmem:[%s12507_s0 + $0x178] sm:$0xff]  ;;  %s9024_s23 = sshll.u32 %s10490_s17, 1 }
 0x2ef   : > { %8634 = vmatprep.subr.bf16.mxu1 %v10385_v43  ;;  %v8267_v50 = vpop.f32.mrf.mxu1  ;;  %v9054_v43 = vcombine.low %v12366_v35, %v12371_v60  ;;  %v9087_v8 = vcombine.high %v4515_v41, %v4515_v41  ;;  %v9089_v4 = vcombine.high %v4516_v42, %v4516_v42  ;;  %v9086_v40 = vcombine.low %v4515_v41, %v4515_v41  ;;  %p4458_p11 = scmp.lt.s32.totalorder %s9024_s23, 3 }
 0x2f0   : > { %8584 = vmatpush1.bf16.msra.mxu0 %v10380_v58  ;;  %v9088_v33 = vcombine.low %v4516_v42, %v4516_v42 }
 0x2f1   : > { %8585 = vmatprep.subr.bf16.mxu0 %v10388_v10  ;;  %s12520_s23 = smov (!%p4458_p11, %s9024_s23), 3 }
 0x2f2   : > { %8635 = vmatpush1.bf16.msra.mxu1 %v10383_v59  ;;  %s4460_s11 = scalar_lea.vmem %s12509_s2, %s12520_s23  ;;  %s4465_s14 = scalar_lea.vmem %s12510_s3, %s12520_s23 }
 0x2f3   : > { %8636 = vmatprep.subr.bf16.mxu1 %v10391_v62 }
 0x2f4   : > { %8586 = vmatpush1.bf16.msra.mxu0 %v10386_v52 }
 0x2f5   : > { %8587 = vmatprep.subr.bf16.mxu0 %v10394_v55 }
 0x2f6   : > { %8637 = vmatpush1.bf16.msra.mxu1 %v10389_v63 }
 0x2f7   : > { %8638 = vmatprep.subr.bf16.mxu1 %v10397_v7 }
 0x2f8   : > { %8588 = vmatpush1.bf16.msra.mxu0 %v10392_v25 }
 0x2f9   : > { %8589 = vmatprep.subr.bf16.mxu0 %v10400_v21 }
 0x2fa   : > { %8639 = vmatpush1.bf16.msra.mxu1 %v10395_v9 }
 0x2fb   : > { %8640 = vmatprep.subr.bf16.mxu1 %v10403_v12 }
 0x2fc   : > { %8590 = vmatpush1.bf16.msra.mxu0 %v10398_v48 }
 0x2fd   : > { %8591 = vmatprep.subr.bf16.mxu0 %v10406_v61 }
 0x2fe   : > { %8641 = vmatpush1.bf16.msra.mxu1 %v10401_v19 }
 0x2ff   : > { %8642 = vmatprep.subr.bf16.mxu1 %v10409_v20 }
 0x300   : > { %8592 = vmatpush2.bf16.msra.mxu0 %v10404_v2 }
 0x301   : > { %8593 = vmatprep.subr.bf16.mxu0 %v10412_v16 }
 0x302   : > { %8643 = vmatpush2.bf16.msra.mxu1 %v10407_v14 }
 0x303   : > { %8644 = vmatprep.subr.bf16.mxu1 %v10415_v27 }
 0x304   : > { %8594 = vmatpush2.bf16.msra.mxu0 %v10410_v17 }
 0x305   : > { %8595 = vmatprep.subr.bf16.mxu0 %v10418_v23 }
 0x306   : > { %8645 = vmatpush2.bf16.msra.mxu1 %v10413_v22 }
 0x307   : > { %8646 = vmatprep.subr.bf16.mxu1 %v10421_v24 }
 0x308   : > { %8596 = vmatpush2.bf16.msra.mxu0 %v10416_v0 }
 0x309   : > { %8597 = vmatprep.subr.bf16.mxu0 %v10424_v5 }
 0x30a   : > { %8647 = vmatpush2.bf16.msra.mxu1 %v10419_v3 }
 0x30b   : > { %8648 = vmatprep.subr.bf16.mxu1 %v10427_v47 }
 0x30c   : > { %8598 = vmatpush2.bf16.msra.mxu0 %v10422_v56 }
 0x30d   : > { %8599 = vmatprep.subr.bf16.mxu0 %v10430_v28 }
 0x30e   : > { %8649 = vmatpush2.bf16.msra.mxu1 %v10425_v54 }
 0x30f   : > { %8650 = vmatprep.subr.bf16.mxu1 %v10433_v29 }
 0x310   : > { %8600 = vmatpush2.bf16.msra.mxu0 %v10428_v1 }
 0x311   : > { %8601 = vmatprep.subr.bf16.mxu0 %v10436_v31 }
 0x312   : > { %8651 = vmatpush2.bf16.msra.mxu1 %v10431_v30 }
 0x313   : > { %8652 = vmatprep.subr.bf16.mxu1 %v10439_v32 }
 0x314   : > { %8602 = vmatpush2.bf16.msra.mxu0 %v10434_v34 }
 0x315   : > { %8603 = vmatprep.subr.bf16.mxu0 %v10442_v39 }
 0x316   : > { %8653 = vmatpush2.bf16.msra.mxu1 %v10437_v37 }
 0x317   : > { %8654 = vmatprep.subr.bf16.mxu1 %v10445_v49 }
 0x318   : > { %8604 = vmatpush2.bf16.msra.mxu0 %v10440_v13 }
 0x319   : > { %8605 = vmatprep.subr.bf16.mxu0 %v10448_v45 }
 0x31a   : > { %8655 = vmatpush2.bf16.msra.mxu1 %v10443_v18 }
 0x31b   : > { %8656 = vmatprep.subr.bf16.mxu1 %v10451_v46 }
 0x31c   : > { %8606 = vmatpush2.bf16.msra.mxu0 %v10446_v11 }
 0x31e   : > { %8657 = vmatpush2.bf16.msra.mxu1 %v10449_v38 }
 0x31f   : > { %v8303_v58 = vpop.f32.mrf.mxu0  ;;  %8608 = vmatmul.mubr.bf16.vlgmr.msra.gmra.mxu0 %v9054_v43 }
 0x320   : > { %v8304_v10 = vadd.f32 %v8303_v58, %v12360_v26  ;;  %8617 = vmatprep.mubr.bf16.mxu0 %v9087_v8 }
 0x321   : > { %v8354_v59 = vpop.f32.mrf.mxu1  ;;  %8659 = vmatmul.mubr.bf16.vlgmr.msra.gmra.mxu1 %v9056_v51  ;;  %v8305_v62 = vpop.f32.mrf.mxu0 }
 0x322   : > { %8668 = vmatprep.mubr.bf16.mxu1 %v9089_v4  ;;  %v8355_v50 = vadd.f32 %v8354_v59, %v8304_v10  ;;  %v8306_v35 = vadd.f32 %v8305_v62, %v12383_v6 }
 0x323   : > { %v8356_v15 = vpop.f32.mrf.mxu1  ;;  %v8307_v60 = vpop.f32.mrf.mxu0 }
 0x324   : > { %v8357_v63 = vadd.f32 %v8356_v15, %v8306_v35  ;;  %v8308_v55 = vadd.f32 %v8307_v60, %v12390_v36 }
 0x325   : > { %v8358_v52 = vpop.f32.mrf.mxu1  ;;  %v8309_v7 = vpop.f32.mrf.mxu0 }
 0x326   : > { %v8359_v9 = vadd.f32 %v8358_v52, %v8308_v55  ;;  %v8310_v21 = vadd.f32 %v8309_v7, %v12397_v44 }
 0x327   : > { %v8360_v25 = vpop.f32.mrf.mxu1  ;;  %v8313_v26 = vpop.f32.mrf.mxu0  ;;  %8618 = vmatmul.mubr.bf16.gmra.mxu0 %v9086_v40 }
 0x328   : > { %v8361_v48 = vadd.f32 %v8360_v25, %v8310_v21  ;;  %v8314_v19 = vadd.f32 %v8313_v26, %v12405_v53 }
 0x329   : > { %8669 = vmatmul.mubr.bf16.gmra.mxu1 %v9088_v33  ;;  %v8364_v12 = vpop.f32.mrf.mxu1  ;;  %v8315_v6 = vpop.f32.mrf.mxu0 }
 0x32a   : > { %v8316_v20 = vadd.f32 %v8315_v6, %v12407_v57  ;;  %v8365_v2 = vadd.f32 %v8364_v12, %v8314_v19 }
 0x32b   : > { %v8366_v61 = vpop.f32.mrf.mxu1  ;;  %v8317_v14 = vpop.f32.mrf.mxu0 }
 0x32c   : > { %v8367_v36 = vadd.f32 %v8366_v61, %v8316_v20 }
 0x32d   : > { %v8368_v16 = vpop.f32.mrf.mxu1  ;;  %v8318_v27 = vpop.f32.mrf.mxu0 }
 0x32f   : > { %v8369_v17 = vpop.f32.mrf.mxu1 }
 0x35f   : > { %v8405_v22 = vpop.f32.mrf.mxu0 }
 0x360   : > { %v8406_v44 = vadd.f32 %v8405_v22, %v8355_v50 }
 0x361   : > { %v8456_v23 = vpop.f32.mrf.mxu1  ;;  %v8407_v24 = vpop.f32.mrf.mxu0 }
 0x362   : > { %v8457_v3 = vadd.f32 %v8456_v23, %v8406_v44  ;;  %v8408_v5 = vadd.f32 %v8407_v24, %v8357_v63 }
 0x363   : > { %v8458_v0 = vpop.f32.mrf.mxu1  ;;  %v8409_v47 = vpop.f32.mrf.mxu0 }
 0x364   : > { %v8459_v53 = vadd.f32 %v8458_v0, %v8408_v5  ;;  %v8410_v54 = vadd.f32 %v8409_v47, %v8359_v9 }
 0x365   : > { %v8460_v56 = vpop.f32.mrf.mxu1  ;;  %v8411_v28 = vpop.f32.mrf.mxu0 }
 0x366   : > { %v8461_v57 = vadd.f32 %v8460_v56, %v8410_v54  ;;  %v8412_v1 = vadd.f32 %v8411_v28, %v8361_v48 }
 0x367   : > { %v8462_v29 = vpop.f32.mrf.mxu1  ;;  %v8415_v30 = vpop.f32.mrf.mxu0 }
 0x368   : > { %v8463_v32 = vadd.f32 %v8462_v29, %v8412_v1  ;;  %v8416_v34 = vadd.f32 %v8415_v30, %v8365_v2 }
 0x369   : > { %v8466_v31 = vpop.f32.mrf.mxu1  ;;  %v8417_v37 = vpop.f32.mrf.mxu0 }
 0x36a   : > { %v8418_v49 = vadd.f32 %v8417_v37, %v8367_v36  ;;  %v8467_v13 = vadd.f32 %v8466_v31, %v8416_v34 }
 0x36b   : > { %v8468_v39 = vpop.f32.mrf.mxu1  ;;  %v8419_v18 = vpop.f32.mrf.mxu0 }
 0x36c   : > { %v8469_v46 = vadd.f32 %v8468_v39, %v8418_v49 }
 0x36d   : > { %v8470_v45 = vpop.f32.mrf.mxu1  ;;  %v8420_v11 = vpop.f32.mrf.mxu0 }
 0x36f   : > { %v8471_v38 = vpop.f32.mrf.mxu1 }
 0x39f   : > { %v8507_v41 = vpop.f32.mrf.mxu0 }
 0x3a0   : > { %v8508_v43 = vadd.f32 %v8507_v41, %v8457_v3 }
 0x3a1   : > { %v8558_v42 = vpop.f32.mrf.mxu1  ;;  %v8509_v51 = vpop.f32.mrf.mxu0 }
 0x3a2   : > { %v8559_v4 = vadd.f32 %v8558_v42, %v8508_v43  ;;  %v8510_v58 = vadd.f32 %v8509_v51, %v8459_v53 }
 0x3a3   : > { %v8560_v8 = vpop.f32.mrf.mxu1  ;;  %v8511_v59 = vpop.f32.mrf.mxu0 }
 0x3a4   : > { %v8561_v62 = vadd.f32 %v8560_v8, %v8510_v58  ;;  %v8512_v15 = vadd.f32 %v8511_v59, %v8461_v57 }
 0x3a5   : > { %v8562_v10 = vpop.f32.mrf.mxu1  ;;  %v8513_v50 = vpop.f32.mrf.mxu0 }
 0x3a6   : > { %v8563_v60 = vadd.f32 %v8562_v10, %v8512_v15  ;;  %v8514_v52 = vadd.f32 %v8513_v50, %v8463_v32 }
 0x3a7   : > { %v8564_v35 = vpop.f32.mrf.mxu1  ;;  %v8517_v40 = vpop.f32.mrf.mxu0 }
 0x3a8   : > { %v8565_v63 = vadd.f32 %v8564_v35, %v8514_v52  ;;  %v8518_v55 = vadd.f32 %v8517_v40, %v8467_v13 }
 0x3a9   : > { %v8568_v33 = vpop.f32.mrf.mxu1  ;;  %v8519_v7 = vpop.f32.mrf.mxu0 }
 0x3aa   : > { %v8520_v9 = vadd.f32 %v8519_v7, %v8469_v46  ;;  %v8569_v21 = vadd.f32 %v8568_v33, %v8518_v55  ;;  %v8695_v46 = vlaneseq }
 0x3ab   : > { %v8570_v25 = vpop.f32.mrf.mxu1  ;;  %v8521_v26 = vpop.f32.mrf.mxu0 }
 0x3ac   : > { %v8571_v48 = vadd.f32 %v8570_v25, %v8520_v9  ;;  %v12471_v43 = vshrl.u32 %v8695_v46, 7 }
 0x3ad   : > { %v8572_v12 = vpop.f32.mrf.mxu1  ;;  %v8522_v19 = vpop.f32.mrf.mxu0 }
 0x3ae   : > { %v8698_v59 = vadd.s32 16, %v12471_v43 }
 0x3af   : > { %v8573_v6 = vpop.f32.mrf.mxu1 }
 0x3b0   : > { %vm8701_vm0 = vcmp.lt.s32.totalorder %v8698_v59, 18 }
 0x3df   : > { %v8609_v61 = vpop.f32.mrf.mxu0 }
 0x3e0   : > { %v8610_v16 = vadd.f32 %v8609_v61, %v8559_v4 }
 0x3e1   : > { %v8660_v20 = vpop.f32.mrf.mxu1  ;;  %v8611_v2 = vpop.f32.mrf.mxu0 }
 0x3e2   : > { %v8612_v17 = vadd.f32 %v8611_v2, %v8561_v62  ;;  %v8661_v24 = vadd.f32 %v8660_v20, %v8610_v16 }
 0x3e3   : > { %v8662_v14 = vpop.f32.mrf.mxu1  ;;  %v8613_v36 = vpop.f32.mrf.mxu0 }
 0x3e4   : > { %v8614_v22 = vadd.f32 %v8613_v36, %v8563_v60  ;;  %v8663_v56 = vadd.f32 %v8662_v14, %v8612_v17 }
 0x3e5   : > { %v8664_v27 = vpop.f32.mrf.mxu1  ;;  %v8615_v23 = vpop.f32.mrf.mxu0 }
 0x3e6   : > { %v8665_v0 = vadd.f32 %v8664_v27, %v8614_v22  ;;  %v8616_v3 = vadd.f32 %v8615_v23, %v8565_v63 }
 0x3e7   : > { %v8666_v44 = vpop.f32.mrf.mxu1  ;;  %v8619_v5 = vpop.f32.mrf.mxu0 }
 0x3e8   : > { %v8677_v53 = vadd.f32 %v8665_v0, %v8661_v24  ;;  %v8667_v54 = vadd.f32 %v8666_v44, %v8616_v3  ;;  %v8620_v28 = vadd.f32 %v8619_v5, %v8569_v21 }
 0x3e9   : > { %v8670_v47 = vpop.f32.mrf.mxu1  ;;  %v8621_v29 = vpop.f32.mrf.mxu0 }
 0x3ea   : > { %v8685_v1 = vadd.f32 %v8667_v54, %v8663_v56  ;;  %v8671_v30 = vadd.f32 %v8670_v47, %v8620_v28  ;;  %v8622_v31 = vadd.f32 %v8621_v29, %v8571_v48  ;;  %v10500_v28 = vmov 1966171168  }
 0x3eb   : > { %v8672_v57 = vpop.f32.mrf.mxu1  ;;  %v8623_v32 = vpop.f32.mrf.mxu0  ;;  %v8747_v29 = vunpack.c.l.s4 %v10500_v28 }
 0x3ec   : > { %v8678_v37 = vadd.f32 %v8677_v53, %v8671_v30  ;;  %v8673_v39 = vadd.f32 %v8672_v57, %v8622_v31 }
 0x3ed   : > { %v8674_v34 = vpop.f32.mrf.mxu1  ;;  %v8624_v49 = vpop.f32.mrf.mxu0  ;;  %v8748_v57 = vunpack.c.0.s8 %v8747_v29 }
 0x3ee   : > { %v8679_v18 = vrot.slane %v8678_v37, 4  ;;  %v8686_v45 = vadd.f32 %v8685_v1, %v8673_v39  ;;  %v8765_v49 = vsub.s32 0, %v12471_v43 }
 0x3ef   : > { %v8675_v13 = vpop.f32.mrf.mxu1 }
 0x3f0   : > { %v8680_v11 = vadd.f32 %v8679_v18, %v8678_v37  ;;  %v8687_v38 = vrot.slane %v8686_v45, 4  ;;  %v8738_v37 = vld [vmem:[%s4460_s11] sm:$0x3]  ;;  %v8769_v13 = vsub.s32 1, %v12471_v43 }
 0x3f1   : > { %v8779_v18 = vld [vmem:[%s4465_s14] sm:$0x3] }
 0x3f2   : > { %v8681_v41 = vrot.slane %v8680_v11, 2  ;;  %v8688_v42 = vadd.f32 %v8687_v38, %v8686_v45  ;;  %v8784_v38 = vrot.slane %v8779_v18, %v8765_v49 }
 0x3f4   : > { %v8682_v51 = vadd.f32 %v8681_v41, %v8680_v11  ;;  %v8689_v8 = vrot.slane %v8688_v42, 2  ;;  %v8788_v41 = vrot.slane %v8779_v18, %v8769_v13 }
 0x3f6   : > { %v8683_v4 = vrot.slane %v8682_v51, 1  ;;  %v8690_v58 = vadd.f32 %v8689_v8, %v8688_v42 }
 0x3f8   : > { %v8684_v10 = vadd.f32 %v8683_v4, %v8682_v51  ;;  %v8691_v62 = vrot.slane %v8690_v58, 1 }
 0x3fa   : > { %v8693_v15 = vmul.f32 0.055555556, %v8684_v10  ;;  %v8692_v50 = vadd.f32 %v8691_v62, %v8690_v58 }
 0x3fc   : > { %v8702_v35 = vsub.f32 %v8661_v24, %v8693_v15  ;;  %v8704_v60 = vsub.f32 %v8665_v0, %v8693_v15  ;;  %v8706_v52 = vsub.f32 %v8671_v30, %v8693_v15  ;;  %v8694_v40 = vmul.f32 0.055555556, %v8692_v50 }
 0x3fd   : > { %v8751_v30 = vsub.s32 %v8748_v57, %v12471_v43 }
 0x3fe   : > { %v8712_v33 = vsel %vm8701_vm0, %v8706_v52, 0.0  ;;  %v8714_v63 = vmul.f32 %v8702_v35, %v8702_v35  ;;  %v8716_v55 = vmul.f32 %v8704_v60, %v8704_v60  ;;  %v8703_v7 = vsub.f32 %v8663_v56, %v8694_v40 }
 0x3ff   : > { %v8718_v25 = vmul.f32 %v8712_v33, %v8712_v33  ;;  %v8705_v9 = vsub.f32 %v8667_v54, %v8694_v40  ;;  %v8707_v21 = vsub.f32 %v8673_v39, %v8694_v40 }
 0x400   : > { %v8720_v26 = vadd.f32 %v8716_v55, %v8714_v63  ;;  %v8715_v12 = vmul.f32 %v8703_v7, %v8703_v7 }
 0x401   : > { %v8713_v48 = vsel %vm8701_vm0, %v8707_v21, 0.0  ;;  %v8717_v19 = vmul.f32 %v8705_v9, %v8705_v9 }
 0x402   : > { %v8721_v6 = vadd.f32 %v8720_v26, %v8718_v25  ;;  %v8719_v61 = vmul.f32 %v8713_v48, %v8713_v48 }
 0x403   : > { %v8728_v20 = vadd.f32 %v8717_v19, %v8715_v12 }
 0x404   : > { %v8722_v2 = vrot.slane %v8721_v6, 4 }
 0x405   : > { %v8729_v14 = vadd.f32 %v8728_v20, %v8719_v61 }
 0x406   : > { %v8723_v16 = vadd.f32 %v8722_v2, %v8721_v6 }
 0x407   : > { %v8730_v36 = vrot.slane %v8729_v14, 4 }
 0x408   : > { %v8724_v27 = vrot.slane %v8723_v16, 2 }
 0x409   : > { %v8731_v17 = vadd.f32 %v8730_v36, %v8729_v14 }
 0x40a   : > { %v8725_v22 = vadd.f32 %v8724_v27, %v8723_v16 }
 0x40b   : > { %v8732_v23 = vrot.slane %v8731_v17, 2 }
 0x40c   : > { %v8726_v44 = vrot.slane %v8725_v22, 1 }
 0x40d   : > { %v8733_v24 = vadd.f32 %v8732_v23, %v8731_v17 }
 0x40e   : > { %v8727_v0 = vadd.f32 %v8726_v44, %v8725_v22 }
 0x40f   : > { %v8734_v3 = vrot.slane %v8733_v24, 1 }
 0x410   : > { %v8736_v5 = vmul.f32 0.055555556, %v8727_v0 }
 0x411   : > { %v8735_v47 = vadd.f32 %v8734_v3, %v8733_v24 }
 0x412   : > { %v8739_v56 = vadd.f32 1e-05, %v8736_v5 }
 0x413   : > { %v8737_v53 = vmul.f32 0.055555556, %v8735_v47 }
 0x414   : > { %10456 = vrsqrt.f32 %v8739_v56 }
 0x415   : > { %v8740_v54 = vadd.f32 1e-05, %v8737_v53 }
 0x417   : > { %10458 = vrsqrt.f32 %v8740_v54 }
 0x421   : > { %v10457_v1 = vpop.eup %10456 }
 0x424   : > { %v10459_v31 = vpop.eup %10458 }
 0x425   : > { %v8745_v32 = vcombine.low %v10457_v1, %v10459_v31 }
 0x427   : > { %v8752_v34 = vrot.slane %v8745_v32, %v8751_v30 }
 0x429   : > { %v8759_v39 = vrot.slane %v8752_v34, %v8751_v30 }
 0x42b   : > { %v8761_v45 = vmul.f32 %v8759_v39, %v8738_v37 }
 0x42d   : > { %v8766_v46 = vrot.slane %v8761_v45, %v8765_v49  ;;  %v8770_v11 = vrot.slane %v8761_v45, %v8769_v13 }
 0x42f   : > { %v8773_v42 = vmul.f32 %v8766_v46, %v8702_v35  ;;  %v8774_v51 = vmul.f32 %v8770_v11, %v8703_v7  ;;  %v8775_v8 = vmul.f32 %v8766_v46, %v8704_v60  ;;  %v8776_v4 = vmul.f32 %v8770_v11, %v8705_v9 }
 0x430   : > { %v8777_v58 = vmul.f32 %v8766_v46, %v8712_v33  ;;  %v8778_v59 = vmul.f32 %v8770_v11, %v8713_v48 }
 0x431   : > { %v8791_v10 = vadd.f32 %v8784_v38, %v8773_v42  ;;  %v8792_v62 = vadd.f32 %v8788_v41, %v8774_v51  ;;  %v8793_v15 = vadd.f32 %v8784_v38, %v8775_v8  ;;  %v8794_v50 = vadd.f32 %v8788_v41, %v8776_v4 }
 0x432   : > { %v8795_v43 = vadd.f32 %v8784_v38, %v8777_v58  ;;  %v8796_v52 = vadd.f32 %v8788_v41, %v8778_v59 }
 0x433   : > { %vm8797_vm1 = vcmp.ge.f32.partialorder %v8791_v10, 0.0  ;;  %vm8798_vm2 = vcmp.ge.f32.partialorder %v8792_v62, 0.0  ;;  %vm8799_vm3 = vcmp.ge.f32.partialorder %v8793_v15, 0.0  ;;  %vm8800_vm4 = vcmp.ge.f32.partialorder %v8794_v50, 0.0 }
 0x434   : > { %vm8801_vm5 = vcmp.ge.f32.partialorder %v8795_v43, 0.0  ;;  %vm8802_vm6 = vcmp.ge.f32.partialorder %v8796_v52, 0.0  ;;  %v8803_v35 = vmul.f32 0.2, %v8791_v10  ;;  %v8804_v40 = vmul.f32 0.2, %v8792_v62 }
 0x435   : > { %v8805_v60 = vmul.f32 0.2, %v8793_v15  ;;  %v8806_v63 = vmul.f32 0.2, %v8794_v50  ;;  %v8807_v33 = vmul.f32 0.2, %v8795_v43 }
 0x436   : > { %v8808_v55 = vmul.f32 0.2, %v8796_v52  ;;  %v8809_v7 = vsel %vm8797_vm1, %v8791_v10, %v8803_v35  ;;  %v8810_v25 = vsel %vm8798_vm2, %v8792_v62, %v8804_v40 }
 0x437   : > { %v8811_v9 = vsel %vm8799_vm3, %v8793_v15, %v8805_v60  ;;  %v8812_v21 = vsel %vm8800_vm4, %v8794_v50, %v8806_v63  ;;  %v8813_v26 = vsel %vm8801_vm5, %v8795_v43, %v8807_v33  ;;  %v9610_v12 = vpack.c.bf16 %v8810_v25, %v8809_v7  ;;  %8844 = sbr.rel (!%p10561_p6) target bundleno = 1092 (0x444), region = 92 }
 0x438   : > { %v8814_v48 = vsel %vm8802_vm6, %v8796_v52, %v8808_v55  ;;  %v9611_v19 = vpack.c.bf16 %v8812_v21, %v8811_v9 }
 0x439   : > { %v9612_v6 = vpack.c.bf16 %v8814_v48, %v8813_v26  ;;  %8835 = vst [vmem:[%s4442_s15] sm:$0xff] %v9610_v12 }
 0x43a   : > { %8836 = vst [vmem:[%s4442_s15 + $0x8] sm:$0xff] %v9611_v19 }
 0x43b   : > { %8837 = vst [vmem:[%s4442_s15 + $0x10] sm:$0xff] %v9612_v6 }
 0x440   : > { %v8883_v61 = vld [vmem:[%s4442_s15] sm:$0xff] }
 0x441   : > { %v8885_v20 = vld [vmem:[%s4442_s15 + $0x8] sm:$0xff]  ;;  %8884 = vst [vmem:[%s8850_s27] sm:$0xff] %v8883_v61 }
 0x442   : > { %v8887_v2 = vld [vmem:[%s4442_s15 + $0x10] sm:$0xff]  ;;  %8886 = vst [vmem:[%s8850_s27 + $0x10] sm:$0xff] %v8885_v20 }
 0x443   : > { %8888 = vst [vmem:[%s8850_s27 + $0x20] sm:$0xff] %v8887_v2 }
 0x444 PF: > { %s14_s19 = sadd.s32 1, %s10498_s19   ;;  %s12513_s15 = smov %s10486_s16 }
 0x445   : > { %p11_p12 = scmp.ge.s32.totalorder %s14_s19, 4   ;;  %s12514_s16 = smov %s10566_s25 }
 0x446   : > { %s12515_s17 = smov %s10494_s18  ;;  %s12516_s18 = smov %s12518_s20 }
 0x447   :  { %13 = sbr.rel (!%p11_p12) target bundleno = 3 (0x3), region = 176 }

</bundles_post_ra>
